<compile_context>
chip_gen: v6e
topology: v6e:2x2x1
jax: 0.10.0
libtpu: 0.0.40
codegen_flags: <defaults>
</compile_context>

<pallas_src>
import numpy as np
import jax
import jax.numpy as jnp
from jax import lax
from jax.experimental import pallas as pl
from jax.experimental.pallas import tpu as pltpu

F32 = jnp.float32
BF16 = jnp.bfloat16

# ---------------- config (mirrors args.* of the PyTorch module) ----------------
VOCAB        = 64     # len(word_dict)
NEMBED_WORD  = 32     # args.nembed_word
NHID_LANG    = 32     # args.nhid_lang
NEMBED_CTX   = 32     # args.nembed_ctx
NHID_ATTN    = 32     # args.nhid_attn
NUM_ENT      = 7      # domain.num_ent()
DIM_ENT      = 4      # per-entity raw features (x, y, size, color)
INIT_RANGE   = 0.01   # args.init_range

_VMEM = lambda: pl.BlockSpec(memory_space=pltpu.MemorySpace.VMEM)


# ----------------------------- fused forward kernel -----------------------------

def _fused_forward_kernel(
    # runtime data
    ctx_ref, gxd_ref, gxe_ref, hid_ref, reftgt_ref,
    # constant 0/1 expansion matrices (host-built, static shapes)
    expbe_ref, expbet_ref, expctx_ref, expref_ref, sum3_ref,
    # ctx encoder
    ctx_w_ref, ctx_b_ref,
    # decoder ctx-part input weights + recurrence weights (whh in bf16)
    d_wih_ctx_ref, d_whh_ref, d_bhh_ref,
    # encoder recurrence weights
    e_whh_ref, e_bhh_ref,
    # memory GRUCell
    m_wih_ref, m_bih_ref, m_whh_ref, m_bhh_ref,
    # folded hid2output @ word_embed.T
    u_w_ref, u_b_ref,
    # lang / sel / ref attention MLPs
    la_w1_ref, la_b1_ref, la_w2_ref, la_b2_ref, la_w3_ref, la_b3_ref,
    sa_w1_ref, sa_b1_ref, sa_w2_ref, sa_b2_ref, sa_w3_ref, sa_b3_ref,
    ra_w1_ref, ra_b1_ref, ra_w2_ref, ra_b2_ref, ra_w3_ref, ra_b3_ref,
    # outputs
    outs_ref, ref_out_ref, sel_out_ref,
    # VMEM scratch slabs (decoder states / mem-init encoder states)
    dec_slab, ref_slab,
):
    U, T, B, H3 = gxd_ref.shape
    H = H3 // 3
    NE = ctx_ref.shape[0] // B
    Ec = ctx_w_ref.shape[1]
    NM3 = reftgt_ref.shape[0]
    S = U * T * B

    def dotf(a, b):
        return jnp.dot(a, b, preferred_element_type=F32)

    def gru_step(h, gx, whh_bf, bhh):
        # ONE fused hidden-to-hidden matmul (bf16 operands, f32 accumulate),
        # gates peeled from the (rows, 3H) result.  gx already holds the
        # input-to-hidden contribution + b_ih (hoisted / host-folded).
        gh = dotf(h.astype(BF16), whh_bf) + bhh
        r = jax.nn.sigmoid(gx[:, 0:H] + gh[:, 0:H])
        z = jax.nn.sigmoid(gx[:, H:2 * H] + gh[:, H:2 * H])
        n = jnp.tanh(gx[:, 2 * H:3 * H] + r * gh[:, 2 * H:3 * H])   # b_hh_n inside r*(.)
        return (1.0 - z) * n + z * h

    def attn_tail(h1, w2_ref, b2_ref, w3_ref, b3_ref):
        h2 = jnp.tanh(dotf(h1, w2_ref[...]) + b2_ref[...])
        return dotf(h2, w3_ref[...]) + b3_ref[...]

    # ---- context encoder: per-entity Linear + Tanh ----
    # TODO(synk): ctx_encoder is an external module (models.get_ctx_encoder_type);
    #             per-entity Linear+Tanh is used as a stand-in.
    ctx_h = jnp.tanh(dotf(ctx_ref[...], ctx_w_ref[...]) + ctx_b_ref[...])    # (B*NE, Ec)

    # mem-independent ctx branch of the language attention (reused every utterance)
    la_w1 = la_w1_ref[...]
    la_pc = dotf(ctx_h, la_w1[0:Ec, :])                                      # (B*NE, A)
    la_w1_h = la_w1[Ec:Ec + H, :]                                            # (H, A)

    expand_be = expbe_ref[...]                                               # (B*NE, B)
    expand_be_t = expbet_ref[...]                                            # (B, B*NE)

    # hot recurrence weights (only these are hoisted; everything else is read
    # at point of use to keep vreg pressure down)
    d_whh = d_whh_ref[...]; d_bhh = d_bhh_ref[...]                           # bf16 / f32
    e_whh = e_whh_ref[...]; e_bhh = e_bhh_ref[...]

    zeros_bh = jnp.zeros((B, H), dtype=F32)
    mem_h = zeros_bh

    for ui in range(U):                                   # static, fully unrolled
        # ---- language attention over entities (vectorized segment softmax) ----
        la_pm = dotf(expand_be, dotf(mem_h, la_w1_h))                        # (B*NE, A)
        h1l = jnp.tanh(la_pc + la_pm + la_b1_ref[...])
        lang_logit = attn_tail(h1l, la_w2_ref, la_b2_ref, la_w3_ref, la_b3_ref)  # (B*NE, 1)
        mx = jnp.max(lang_logit, axis=0, keepdims=True)                      # shift (softmax-invariant)
        ex = jnp.exp(lang_logit - mx)
        seg_sum = dotf(expand_be, dotf(expand_be_t, ex))                     # per-row segment sum
        pr = ex * pl.reciprocal(seg_sum, approx=True)                        # softmax over entities
        attended = dotf(expand_be_t, pr * ctx_h)                             # (B, Ec)

        gxc = dotf(attended, d_wih_ctx_ref[...])                             # (B, 3H), time-invariant

        # ---- decoder + (2-pass) encoder recurrences, interleaved per step ----
        dec_h = mem_h                                                        # decoder init = mem_h
        enc_h = jnp.concatenate([zeros_bh, mem_h], axis=0)                   # rows 0:B zero-init, B:2B mem-init
        enc_last = zeros_bh
        hid_idx = hid_ref[ui]                                                # (B, 1) int32
        for t in range(T):                                # static, fully unrolled
            s = ui * T + t
            dec_h = gru_step(dec_h, gxd_ref[ui, t, :, :] + gxc, d_whh, d_bhh)
            enc_h = gru_step(enc_h, gxe_ref[ui, t, :, :], e_whh, e_bhh)
            dec_slab[pl.ds(s * B, B), :] = dec_h
            ref_slab[pl.ds(s * B, B), :] = enc_h[B:2 * B, :]                 # mem_h-init half
            enc_last = jnp.where(hid_idx == t, enc_h[0:B, :], enc_last)      # hid_idx gather (zero-init half)

        # ---- memory GRUCell update (fused-gate) ----
        gm = dotf(enc_last.astype(BF16), m_wih_ref[...]) + m_bih_ref[...]    # (B, 3H)
        mem_h = gru_step(mem_h, gm, m_whh_ref[...], m_bhh_ref[...])

    # ---- tied unembedding: ONE matmul over all decoder states ----
    outs_ref[...] = dotf(dec_slab[...], u_w_ref[...]) + u_b_ref[...]         # (U*T*B, VOCAB)

    # ---- reference resolution (one-hot gather + expansion matmuls) ----
    tgt = reftgt_ref[...]                                                    # (B*nm*3, 1), = idx*B + b
    gat = (lax.broadcasted_iota(jnp.int32, (NM3, S), 1) == tgt).astype(F32)  # (B*nm*3, U*T*B)
    gathered = dotf(gat, ref_slab[...])                                      # (B*nm*3, H)
    ref_sum = dotf(sum3_ref[...], gathered)                                  # (B*nm, H)
    ra_w1 = ra_w1_ref[...]
    h1r = jnp.tanh(dotf(expctx_ref[...], dotf(ctx_h, ra_w1[0:Ec, :]))
                   + dotf(expref_ref[...], dotf(ref_sum, ra_w1[Ec:Ec + H, :]))
                   + ra_b1_ref[...])                                         # (B*nm*NE, A)
    ref_out_ref[...] = attn_tail(h1r, ra_w2_ref, ra_b2_ref, ra_w3_ref, ra_b3_ref)

    # ---- selection ----
    sa_w1 = sa_w1_ref[...]
    h1s = jnp.tanh(dotf(ctx_h, sa_w1[0:Ec, :])
                   + dotf(expand_be, dotf(mem_h, sa_w1[Ec:Ec + H, :]))
                   + sa_b1_ref[...])                                         # (B*NE, A)
    sel_out_ref[...] = attn_tail(h1s, sa_w2_ref, sa_b2_ref, sa_w3_ref, sa_b3_ref)


def _fused_forward(params, ctx2d, gxd, gxe, hid3d, reftgt, consts, U, T, B, nm):
    expand_be, expand_be_t, exp_ctx, exp_ref, sum3 = consts
    out_shapes = (
        jax.ShapeDtypeStruct((U * T * B, VOCAB), F32),
        jax.ShapeDtypeStruct((B * nm * NUM_ENT, 1), F32),
        jax.ShapeDtypeStruct((B * NUM_ENT, 1), F32),
    )
    args = (
        ctx2d, gxd, gxe, hid3d, reftgt,
        expand_be, expand_be_t, exp_ctx, exp_ref, sum3,
        params["ctx_w"], params["ctx_b"],
        params["d_wih_ctx"], params["d_whh_bf"], params["decoder"]["bhh"],
        params["e_whh_bf"], params["encoder"]["bhh"],
        params["m_wih_bf"], params["memory"]["bih"],
        params["m_whh_bf"], params["memory"]["bhh"],
        params["unemb_w"], params["unemb_b"],
        params["lang_attn"]["w1"], params["lang_attn"]["b1"],
        params["lang_attn"]["w2"], params["lang_attn"]["b2"],
        params["lang_attn"]["w3"], params["lang_attn"]["b3"],
        params["sel_attn"]["w1"], params["sel_attn"]["b1"],
        params["sel_attn"]["w2"], params["sel_attn"]["b2"],
        params["sel_attn"]["w3"], params["sel_attn"]["b3"],
        params["ref_attn"]["w1"], params["ref_attn"]["b1"],
        params["ref_attn"]["w2"], params["ref_attn"]["b2"],
        params["ref_attn"]["w3"], params["ref_attn"]["b3"],
    )
    return pl.pallas_call(
        _fused_forward_kernel,
        out_shape=out_shapes,
        in_specs=[_VMEM() for _ in range(len(args))],
        out_specs=tuple(_VMEM() for _ in range(3)),
        scratch_shapes=[
            pltpu.VMEM((U * T * B, NHID_LANG), F32),   # decoder states slab
            pltpu.VMEM((U * T * B, NHID_LANG), F32),   # mem-init encoder states slab
        ],
    )(*args)


# --------------------------------- parameters ---------------------------------

def _u(key, shape):
    return jax.random.uniform(key, shape, dtype=F32, minval=-INIT_RANGE, maxval=INIT_RANGE)


def init_params(key):
    ks = iter(jax.random.split(key, 64))
    p = {}
    p["word_embed"] = _u(next(ks), (VOCAB, NEMBED_WORD))
    # TODO(synk): ctx_encoder is an external module; per-entity Linear+Tanh stand-in.
    p["ctx_w"] = _u(next(ks), (DIM_ENT, NEMBED_CTX))
    p["ctx_b"] = _u(next(ks), (1, NEMBED_CTX))

    def gru_params(din, h):
        return {
            "wih_t": _u(next(ks), (3 * h, din)).T,   # (Din, 3H), gate order (r, z, n)
            "whh_t": _u(next(ks), (3 * h, h)).T,
            "bih":   _u(next(ks), (1, 3 * h)),
            "bhh":   _u(next(ks), (1, 3 * h)),
        }

    p["encoder"] = gru_params(NEMBED_WORD, NHID_LANG)                 # nn.GRU
    p["memory"] = gru_params(NHID_LANG, NHID_LANG)                    # nn.GRUCell
    p["decoder"] = gru_params(NEMBED_CTX + NEMBED_WORD, NHID_LANG)    # decoder reader/writer (tied)

    p["hid2out_w"] = _u(next(ks), (NEMBED_WORD, NHID_LANG)).T         # (H, E_word)
    p["hid2out_b"] = _u(next(ks), (1, NEMBED_WORD))
    # Eval-mode fold: hid2output Linear (dropout identity) + tied vocab projection.
    p["unemb_w"] = p["hid2out_w"] @ p["word_embed"].T                 # (H, VOCAB)
    p["unemb_b"] = p["hid2out_b"] @ p["word_embed"].T                 # (1, VOCAB)

    # --- folds for the kernel (eval-mode) ---
    # word_embed folded into the GRU input weights + input biases (V, 3H) tables;
    # decoder ctx rows pre-sliced (torch.cat order: [attended_ctx, word_emb]).
    p["d_wih_ctx"] = p["decoder"]["wih_t"][0:NEMBED_CTX, :]
    p["dec_word_tbl"] = (p["word_embed"] @ p["decoder"]["wih_t"][NEMBED_CTX:, :]
                         + p["decoder"]["bih"])                        # (V, 3H)
    p["enc_word_tbl"] = p["word_embed"] @ p["encoder"]["wih_t"] + p["encoder"]["bih"]
    # bf16 copies of the recurrence-path MXU operands (f32 accumulate in-kernel).
    p["d_whh_bf"] = p["decoder"]["whh_t"].astype(BF16)
    p["e_whh_bf"] = p["encoder"]["whh_t"].astype(BF16)
    p["m_whh_bf"] = p["memory"]["whh_t"].astype(BF16)
    p["m_wih_bf"] = p["memory"]["wih_t"].astype(BF16)

    def attn_params():
        din = NEMBED_CTX + NHID_LANG
        return {
            "w1": _u(next(ks), (NHID_ATTN, din)).T, "b1": _u(next(ks), (1, NHID_ATTN)),
            "w2": _u(next(ks), (NHID_ATTN, NHID_ATTN)).T, "b2": _u(next(ks), (1, NHID_ATTN)),
            "w3": _u(next(ks), (1, NHID_ATTN)).T, "b3": _u(next(ks), (1, 1)),
        }

    p["lang_attn"] = attn_params()      # args.share_attn = False
    p["sel_attn"] = attn_params()
    p["ref_attn"] = attn_params()
    return p


# ---------------------------------- forward -----------------------------------

def forward(params, ctx, inpts, ref_inpts, hid_idxs, sel_idx):
    del sel_idx   # loss-side only, unused in forward
    bsz = ctx.shape[0]
    U = len(inpts)
    T = inpts[0].shape[1]
    nm = ref_inpts.shape[1]

    ctx2d = ctx.reshape(bsz * NUM_ENT, DIM_ENT).astype(F32)

    # host-side embedding gather folded into the GRU input weights:
    # time-major-leading (U, T, B, 3H) gate slabs, encoder slab duplicated to 2B rows.
    ids_tm = jnp.transpose(jnp.stack(inpts, axis=0).astype(jnp.int32), (0, 2, 1))   # (U, T, B)
    gxd = jnp.take(params["dec_word_tbl"], ids_tm, axis=0)                          # (U, T, B, 3H)
    gxe1 = jnp.take(params["enc_word_tbl"], ids_tm, axis=0)                         # (U, T, B, 3H)
    gxe = jnp.concatenate([gxe1, gxe1], axis=2)                                     # (U, T, 2B, 3H)

    hid3d = jnp.stack(hid_idxs, axis=0).reshape(U, bsz, 1).astype(jnp.int32)
    # ref gather targets into the (U*T*B, H) time-major state slab: idx*B + b
    row_b = jnp.repeat(jnp.arange(bsz, dtype=jnp.int32), nm * 3)
    reftgt = (ref_inpts.reshape(bsz * nm * 3).astype(jnp.int32) * bsz + row_b).reshape(-1, 1)

    # constant 0/1 expansion matrices (trace-time numpy constants)
    expand_be = np.kron(np.eye(bsz, dtype=np.float32), np.ones((NUM_ENT, 1), np.float32))
    exp_ctx = np.kron(np.eye(bsz, dtype=np.float32),
                      np.kron(np.ones((nm, 1), np.float32), np.eye(NUM_ENT, dtype=np.float32)))
    exp_ref = np.kron(np.eye(bsz * nm, dtype=np.float32), np.ones((NUM_ENT, 1), np.float32))
    sum3 = np.kron(np.eye(bsz * nm, dtype=np.float32), np.ones((1, 3), np.float32))
    consts = (jnp.asarray(expand_be), jnp.asarray(np.ascontiguousarray(expand_be.T)),
              jnp.asarray(exp_ctx), jnp.asarray(exp_ref), jnp.asarray(sum3))

    outs_flat, ref_logits, sel_logits = _fused_forward(
        params, ctx2d, gxd, gxe, hid3d, reftgt, consts, U, T, bsz, nm)

    outs_bt = outs_flat.reshape(U, T, bsz, VOCAB).transpose(0, 2, 1, 3).reshape(U, bsz * T, VOCAB)
    outs = [outs_bt[ui] for ui in range(U)]
    ref_outs = ref_logits.reshape(bsz, nm, NUM_ENT)
    sel_out = sel_logits.reshape(bsz, NUM_ENT)
    return outs, ref_outs, sel_out


# ----------------------------------- main --------------------------------------

if __name__ == "__main__":
    key = jax.random.PRNGKey(0)
    kp, kc, ki0, ki1, kr, kh0, kh1, ks = jax.random.split(key, 8)

    params = init_params(kp)

    bsz, T, n_utt, n_markables = 2, 8, 2, 3
    ctx = jax.random.uniform(kc, (bsz, NUM_ENT * DIM_ENT), dtype=F32, minval=-1.0, maxval=1.0)
    inpts = [jax.random.randint(ki0, (bsz, T), 0, VOCAB),
             jax.random.randint(ki1, (bsz, T), 0, VOCAB)]
    hid_idxs = [jax.random.randint(kh0, (bsz,), 0, T),
                jax.random.randint(kh1, (bsz,), 0, T)]
    ref_inpts = jax.random.randint(kr, (bsz, n_markables, 3), 0, n_utt * T)
    sel_idx = jax.random.randint(ks, (bsz,), 0, NUM_ENT)   # unused in forward (loss-side)

    fwd = jax.jit(forward)
    outs, ref_outs, sel_out = fwd(params, ctx, inpts, ref_inpts, hid_idxs, sel_idx)

    for o in outs:
        jax.block_until_ready(o)
    jax.block_until_ready(ref_outs)
    jax.block_until_ready(sel_out)

    assert outs[0].shape == (bsz * T, VOCAB)
    assert ref_outs.shape == (bsz, n_markables, NUM_ENT)
    assert sel_out.shape == (bsz, NUM_ENT)
    print("KERNEL_OK")
</pallas_src>

<mosaic_0001>
module attributes {stable_mosaic.version = 11 : i64} {
  func.func @_fused_forward_kernel(%arg0: memref<14x4xf32, #tpu.memory_space<vmem>>, %arg1: memref<2x8x2x96xf32, #tpu.memory_space<vmem>>, %arg2: memref<2x8x4x96xf32, #tpu.memory_space<vmem>>, %arg3: memref<2x2x1xi32, #tpu.memory_space<vmem>>, %arg4: memref<18x1xi32, #tpu.memory_space<vmem>>, %arg5: memref<14x2xf32, #tpu.memory_space<vmem>>, %arg6: memref<2x14xf32, #tpu.memory_space<vmem>>, %arg7: memref<42x14xf32, #tpu.memory_space<vmem>>, %arg8: memref<42x6xf32, #tpu.memory_space<vmem>>, %arg9: memref<6x18xf32, #tpu.memory_space<vmem>>, %arg10: memref<4x32xf32, #tpu.memory_space<vmem>>, %arg11: memref<1x32xf32, #tpu.memory_space<vmem>>, %arg12: memref<32x96xf32, #tpu.memory_space<vmem>>, %arg13: memref<32x96xbf16, #tpu.memory_space<vmem>>, %arg14: memref<1x96xf32, #tpu.memory_space<vmem>>, %arg15: memref<32x96xbf16, #tpu.memory_space<vmem>>, %arg16: memref<1x96xf32, #tpu.memory_space<vmem>>, %arg17: memref<32x96xbf16, #tpu.memory_space<vmem>>, %arg18: memref<1x96xf32, #tpu.memory_space<vmem>>, %arg19: memref<32x96xbf16, #tpu.memory_space<vmem>>, %arg20: memref<1x96xf32, #tpu.memory_space<vmem>>, %arg21: memref<32x64xf32, #tpu.memory_space<vmem>>, %arg22: memref<1x64xf32, #tpu.memory_space<vmem>>, %arg23: memref<64x32xf32, #tpu.memory_space<vmem>>, %arg24: memref<1x32xf32, #tpu.memory_space<vmem>>, %arg25: memref<32x32xf32, #tpu.memory_space<vmem>>, %arg26: memref<1x32xf32, #tpu.memory_space<vmem>>, %arg27: memref<32x1xf32, #tpu.memory_space<vmem>>, %arg28: memref<1x1xf32, #tpu.memory_space<vmem>>, %arg29: memref<64x32xf32, #tpu.memory_space<vmem>>, %arg30: memref<1x32xf32, #tpu.memory_space<vmem>>, %arg31: memref<32x32xf32, #tpu.memory_space<vmem>>, %arg32: memref<1x32xf32, #tpu.memory_space<vmem>>, %arg33: memref<32x1xf32, #tpu.memory_space<vmem>>, %arg34: memref<1x1xf32, #tpu.memory_space<vmem>>, %arg35: memref<64x32xf32, #tpu.memory_space<vmem>>, %arg36: memref<1x32xf32, #tpu.memory_space<vmem>>, %arg37: memref<32x32xf32, #tpu.memory_space<vmem>>, %arg38: memref<1x32xf32, #tpu.memory_space<vmem>>, %arg39: memref<32x1xf32, #tpu.memory_space<vmem>>, %arg40: memref<1x1xf32, #tpu.memory_space<vmem>>, %arg41: memref<32x64xf32, #tpu.memory_space<vmem>>, %arg42: memref<42x1xf32, #tpu.memory_space<vmem>>, %arg43: memref<14x1xf32, #tpu.memory_space<vmem>>, %arg44: memref<32x32xf32, #tpu.memory_space<vmem>>, %arg45: memref<32x32xf32, #tpu.memory_space<vmem>>) attributes {dimension_semantics = [], scalar_prefetch = 0 : i64, scratch_operands = 2 : i64, tpu.core_type = #tpu.core_type<tc>} {
    %c0 = arith.constant 0 : index
    %c0_0 = arith.constant 0 : index
    %0 = vector.load %arg0[%c0, %c0_0] : memref<14x4xf32, #tpu.memory_space<vmem>>, vector<14x4xf32>
    %c0_1 = arith.constant 0 : index
    %c0_2 = arith.constant 0 : index
    %1 = vector.load %arg10[%c0_1, %c0_2] : memref<4x32xf32, #tpu.memory_space<vmem>>, vector<4x32xf32>
    %cst = arith.constant dense<0.000000e+00> : vector<14x32xf32>
    %2 = tpu.matmul %0, %1, %cst {dimension_numbers = #tpu.dot_dimension_numbers<[1], [0], [0], [1], [0, 0, 1, 1], [], []>} : vector<14x4xf32>, vector<4x32xf32>, vector<14x32xf32> -> vector<14x32xf32>
    %c0_3 = arith.constant 0 : index
    %c0_4 = arith.constant 0 : index
    %3 = vector.load %arg11[%c0_3, %c0_4] : memref<1x32xf32, #tpu.memory_space<vmem>>, vector<1x32xf32>
    %4 = vector.broadcast %3 : vector<1x32xf32> to vector<14x32xf32>
    %5 = arith.addf %2, %4 : vector<14x32xf32>
    %6 = math.tanh %5 : vector<14x32xf32>
    %c0_5 = arith.constant 0 : index
    %c0_6 = arith.constant 0 : index
    %7 = vector.load %arg23[%c0_5, %c0_6] : memref<64x32xf32, #tpu.memory_space<vmem>>, vector<64x32xf32>
    %8 = vector.extract_strided_slice %7 {offsets = [0, 0], sizes = [32, 32], strides = [1, 1]} : vector<64x32xf32> to vector<32x32xf32>
    %cst_7 = arith.constant dense<0.000000e+00> : vector<14x32xf32>
    %9 = tpu.matmul %6, %8, %cst_7 {dimension_numbers = #tpu.dot_dimension_numbers<[1], [0], [0], [1], [0, 0, 1, 1], [], []>} : vector<14x32xf32>, vector<32x32xf32>, vector<14x32xf32> -> vector<14x32xf32>
    %10 = vector.extract_strided_slice %7 {offsets = [32, 0], sizes = [32, 32], strides = [1, 1]} : vector<64x32xf32> to vector<32x32xf32>
    %c0_8 = arith.constant 0 : index
    %c0_9 = arith.constant 0 : index
    %11 = vector.load %arg5[%c0_8, %c0_9] : memref<14x2xf32, #tpu.memory_space<vmem>>, vector<14x2xf32>
    %c0_10 = arith.constant 0 : index
    %c0_11 = arith.constant 0 : index
    %12 = vector.load %arg6[%c0_10, %c0_11] : memref<2x14xf32, #tpu.memory_space<vmem>>, vector<2x14xf32>
    %c0_12 = arith.constant 0 : index
    %c0_13 = arith.constant 0 : index
    %13 = vector.load %arg13[%c0_12, %c0_13] : memref<32x96xbf16, #tpu.memory_space<vmem>>, vector<32x96xbf16>
    %c0_14 = arith.constant 0 : index
    %c0_15 = arith.constant 0 : index
    %14 = vector.load %arg14[%c0_14, %c0_15] : memref<1x96xf32, #tpu.memory_space<vmem>>, vector<1x96xf32>
    %c0_16 = arith.constant 0 : index
    %c0_17 = arith.constant 0 : index
    %15 = vector.load %arg15[%c0_16, %c0_17] : memref<32x96xbf16, #tpu.memory_space<vmem>>, vector<32x96xbf16>
    %c0_18 = arith.constant 0 : index
    %c0_19 = arith.constant 0 : index
    %16 = vector.load %arg16[%c0_18, %c0_19] : memref<1x96xf32, #tpu.memory_space<vmem>>, vector<1x96xf32>
    %cst_20 = arith.constant 0.000000e+00 : f32
    %17 = vector.broadcast %cst_20 : f32 to vector<2x32xf32>
    %cst_21 = arith.constant dense<0.000000e+00> : vector<2x32xf32>
    %18 = tpu.matmul %17, %10, %cst_21 {dimension_numbers = #tpu.dot_dimension_numbers<[1], [0], [0], [1], [0, 0, 1, 1], [], []>} : vector<2x32xf32>, vector<32x32xf32>, vector<2x32xf32> -> vector<2x32xf32>
    %cst_22 = arith.constant dense<0.000000e+00> : vector<14x32xf32>
    %19 = tpu.matmul %11, %18, %cst_22 {dimension_numbers = #tpu.dot_dimension_numbers<[1], [0], [0], [1], [0, 0, 1, 1], [], []>} : vector<14x2xf32>, vector<2x32xf32>, vector<14x32xf32> -> vector<14x32xf32>
    %20 = arith.addf %9, %19 : vector<14x32xf32>
    %c0_23 = arith.constant 0 : index
    %c0_24 = arith.constant 0 : index
    %21 = vector.load %arg24[%c0_23, %c0_24] : memref<1x32xf32, #tpu.memory_space<vmem>>, vector<1x32xf32>
    %22 = vector.broadcast %21 : vector<1x32xf32> to vector<14x32xf32>
    %23 = arith.addf %20, %22 : vector<14x32xf32>
    %24 = math.tanh %23 : vector<14x32xf32>
    %c0_25 = arith.constant 0 : index
    %c0_26 = arith.constant 0 : index
    %25 = vector.load %arg25[%c0_25, %c0_26] : memref<32x32xf32, #tpu.memory_space<vmem>>, vector<32x32xf32>
    %cst_27 = arith.constant dense<0.000000e+00> : vector<14x32xf32>
    %26 = tpu.matmul %24, %25, %cst_27 {dimension_numbers = #tpu.dot_dimension_numbers<[1], [0], [0], [1], [0, 0, 1, 1], [], []>} : vector<14x32xf32>, vector<32x32xf32>, vector<14x32xf32> -> vector<14x32xf32>
    %c0_28 = arith.constant 0 : index
    %c0_29 = arith.constant 0 : index
    %27 = vector.load %arg26[%c0_28, %c0_29] : memref<1x32xf32, #tpu.memory_space<vmem>>, vector<1x32xf32>
    %28 = vector.broadcast %27 : vector<1x32xf32> to vector<14x32xf32>
    %29 = arith.addf %26, %28 : vector<14x32xf32>
    %30 = math.tanh %29 : vector<14x32xf32>
    %c0_30 = arith.constant 0 : index
    %c0_31 = arith.constant 0 : index
    %31 = vector.load %arg27[%c0_30, %c0_31] : memref<32x1xf32, #tpu.memory_space<vmem>>, vector<32x1xf32>
    %cst_32 = arith.constant dense<0.000000e+00> : vector<14x1xf32>
    %32 = tpu.matmul %30, %31, %cst_32 {dimension_numbers = #tpu.dot_dimension_numbers<[1], [0], [0], [1], [0, 0, 1, 1], [], []>} : vector<14x32xf32>, vector<32x1xf32>, vector<14x1xf32> -> vector<14x1xf32>
    %c0_33 = arith.constant 0 : index
    %c0_34 = arith.constant 0 : index
    %33 = vector.load %arg28[%c0_33, %c0_34] : memref<1x1xf32, #tpu.memory_space<vmem>>, vector<1x1xf32>
    %34 = vector.broadcast %33 : vector<1x1xf32> to vector<14x1xf32>
    %35 = arith.addf %32, %34 : vector<14x1xf32>
    %cst_35 = arith.constant dense<0xFF800000> : vector<1xf32>
    %36 = vector.multi_reduction <maximumf>, %35, %cst_35 [0] : vector<14x1xf32> to vector<1xf32>
    %37 = vector.shape_cast %36 : vector<1xf32> to vector<1x1xf32>
    %38 = vector.broadcast %37 : vector<1x1xf32> to vector<14x1xf32>
    %39 = arith.subf %35, %38 : vector<14x1xf32>
    %40 = math.exp %39 : vector<14x1xf32>
    %cst_36 = arith.constant dense<0.000000e+00> : vector<2x1xf32>
    %41 = tpu.matmul %12, %40, %cst_36 {dimension_numbers = #tpu.dot_dimension_numbers<[1], [0], [0], [1], [0, 0, 1, 1], [], []>} : vector<2x14xf32>, vector<14x1xf32>, vector<2x1xf32> -> vector<2x1xf32>
    %cst_37 = arith.constant dense<0.000000e+00> : vector<14x1xf32>
    %42 = tpu.matmul %11, %41, %cst_37 {dimension_numbers = #tpu.dot_dimension_numbers<[1], [0], [0], [1], [0, 0, 1, 1], [], []>} : vector<14x2xf32>, vector<2x1xf32>, vector<14x1xf32> -> vector<14x1xf32>
    %43 = tpu.reciprocal %42 {approx = true} : vector<14x1xf32> -> vector<14x1xf32>
    %44 = arith.mulf %40, %43 : vector<14x1xf32>
    %45 = vector.broadcast %44 : vector<14x1xf32> to vector<14x32xf32>
    %46 = arith.mulf %45, %6 : vector<14x32xf32>
    %cst_38 = arith.constant dense<0.000000e+00> : vector<2x32xf32>
    %47 = tpu.matmul %12, %46, %cst_38 {dimension_numbers = #tpu.dot_dimension_numbers<[1], [0], [0], [1], [0, 0, 1, 1], [], []>} : vector<2x14xf32>, vector<14x32xf32>, vector<2x32xf32> -> vector<2x32xf32>
    %c0_39 = arith.constant 0 : index
    %c0_40 = arith.constant 0 : index
    %48 = vector.load %arg12[%c0_39, %c0_40] : memref<32x96xf32, #tpu.memory_space<vmem>>, vector<32x96xf32>
    %cst_41 = arith.constant dense<0.000000e+00> : vector<2x96xf32>
    %49 = tpu.matmul %47, %48, %cst_41 {dimension_numbers = #tpu.dot_dimension_numbers<[1], [0], [0], [1], [0, 0, 1, 1], [], []>} : vector<2x32xf32>, vector<32x96xf32>, vector<2x96xf32> -> vector<2x96xf32>
    %50 = tpu.concatenate %17, %17 in 0 : vector<2x32xf32>, vector<2x32xf32> -> vector<4x32xf32>
    %c0_42 = arith.constant 0 : index
    %c0_43 = arith.constant 0 : index
    %c0_44 = arith.constant 0 : index
    %51 = vector.load %arg3[%c0_42, %c0_43, %c0_44] : memref<2x2x1xi32, #tpu.memory_space<vmem>>, vector<1x2x1xi32>
    %52 = vector.shape_cast %51 : vector<1x2x1xi32> to vector<2x1xi32>
    %c0_45 = arith.constant 0 : index
    %c0_46 = arith.constant 0 : index
    %c0_47 = arith.constant 0 : index
    %c0_48 = arith.constant 0 : index
    %53 = vector.load %arg1[%c0_45, %c0_46, %c0_47, %c0_48] : memref<2x8x2x96xf32, #tpu.memory_space<vmem>>, vector<1x1x2x96xf32>
    %54 = vector.shape_cast %53 : vector<1x1x2x96xf32> to vector<2x96xf32>
    %55 = arith.addf %54, %49 : vector<2x96xf32>
    %56 = arith.truncf %17 : vector<2x32xf32> to vector<2x32xbf16>
    %cst_49 = arith.constant dense<0.000000e+00> : vector<2x96xf32>
    %57 = tpu.matmul %56, %13, %cst_49 {dimension_numbers = #tpu.dot_dimension_numbers<[1], [0], [0], [1], [0, 0, 1, 1], [], []>} : vector<2x32xbf16>, vector<32x96xbf16>, vector<2x96xf32> -> vector<2x96xf32>
    %58 = vector.broadcast %14 : vector<1x96xf32> to vector<2x96xf32>
    %59 = arith.addf %57, %58 : vector<2x96xf32>
    %60 = vector.extract_strided_slice %55 {offsets = [0, 0], sizes = [2, 32], strides = [1, 1]} : vector<2x96xf32> to vector<2x32xf32>
    %61 = vector.extract_strided_slice %59 {offsets = [0, 0], sizes = [2, 32], strides = [1, 1]} : vector<2x96xf32> to vector<2x32xf32>
    %62 = arith.addf %60, %61 : vector<2x32xf32>
    %63 = arith.negf %62 : vector<2x32xf32>
    %64 = math.exp %63 : vector<2x32xf32>
    %cst_50 = arith.constant 1.000000e+00 : f32
    %65 = vector.broadcast %cst_50 : f32 to vector<2x32xf32>
    %66 = arith.addf %65, %64 : vector<2x32xf32>
    %67 = arith.divf %65, %66 : vector<2x32xf32>
    %68 = vector.extract_strided_slice %55 {offsets = [0, 32], sizes = [2, 32], strides = [1, 1]} : vector<2x96xf32> to vector<2x32xf32>
    %69 = vector.extract_strided_slice %59 {offsets = [0, 32], sizes = [2, 32], strides = [1, 1]} : vector<2x96xf32> to vector<2x32xf32>
    %70 = arith.addf %68, %69 : vector<2x32xf32>
    %71 = arith.negf %70 : vector<2x32xf32>
    %72 = math.exp %71 : vector<2x32xf32>
    %cst_51 = arith.constant 1.000000e+00 : f32
    %73 = vector.broadcast %cst_51 : f32 to vector<2x32xf32>
    %74 = arith.addf %73, %72 : vector<2x32xf32>
    %75 = arith.divf %73, %74 : vector<2x32xf32>
    %76 = vector.extract_strided_slice %55 {offsets = [0, 64], sizes = [2, 32], strides = [1, 1]} : vector<2x96xf32> to vector<2x32xf32>
    %77 = vector.extract_strided_slice %59 {offsets = [0, 64], sizes = [2, 32], strides = [1, 1]} : vector<2x96xf32> to vector<2x32xf32>
    %78 = arith.mulf %67, %77 : vector<2x32xf32>
    %79 = arith.addf %76, %78 : vector<2x32xf32>
    %80 = math.tanh %79 : vector<2x32xf32>
    %cst_52 = arith.constant 1.000000e+00 : f32
    %81 = vector.broadcast %cst_52 : f32 to vector<2x32xf32>
    %82 = arith.subf %81, %75 : vector<2x32xf32>
    %83 = arith.mulf %82, %80 : vector<2x32xf32>
    %84 = arith.mulf %75, %17 : vector<2x32xf32>
    %85 = arith.addf %83, %84 : vector<2x32xf32>
    %c0_53 = arith.constant 0 : index
    %c0_54 = arith.constant 0 : index
    %c0_55 = arith.constant 0 : index
    %c0_56 = arith.constant 0 : index
    %86 = vector.load %arg2[%c0_53, %c0_54, %c0_55, %c0_56] : memref<2x8x4x96xf32, #tpu.memory_space<vmem>>, vector<1x1x4x96xf32>
    %87 = vector.shape_cast %86 : vector<1x1x4x96xf32> to vector<4x96xf32>
    %88 = arith.truncf %50 : vector<4x32xf32> to vector<4x32xbf16>
    %cst_57 = arith.constant dense<0.000000e+00> : vector<4x96xf32>
    %89 = tpu.matmul %88, %15, %cst_57 {dimension_numbers = #tpu.dot_dimension_numbers<[1], [0], [0], [1], [0, 0, 1, 1], [], []>} : vector<4x32xbf16>, vector<32x96xbf16>, vector<4x96xf32> -> vector<4x96xf32>
    %90 = vector.broadcast %16 : vector<1x96xf32> to vector<4x96xf32>
    %91 = arith.addf %89, %90 : vector<4x96xf32>
    %92 = vector.extract_strided_slice %87 {offsets = [0, 0], sizes = [4, 32], strides = [1, 1]} : vector<4x96xf32> to vector<4x32xf32>
    %93 = vector.extract_strided_slice %91 {offsets = [0, 0], sizes = [4, 32], strides = [1, 1]} : vector<4x96xf32> to vector<4x32xf32>
    %94 = arith.addf %92, %93 : vector<4x32xf32>
    %95 = arith.negf %94 : vector<4x32xf32>
    %96 = math.exp %95 : vector<4x32xf32>
    %cst_58 = arith.constant 1.000000e+00 : f32
    %97 = vector.broadcast %cst_58 : f32 to vector<4x32xf32>
    %98 = arith.addf %97, %96 : vector<4x32xf32>
    %99 = arith.divf %97, %98 : vector<4x32xf32>
    %100 = vector.extract_strided_slice %87 {offsets = [0, 32], sizes = [4, 32], strides = [1, 1]} : vector<4x96xf32> to vector<4x32xf32>
    %101 = vector.extract_strided_slice %91 {offsets = [0, 32], sizes = [4, 32], strides = [1, 1]} : vector<4x96xf32> to vector<4x32xf32>
    %102 = arith.addf %100, %101 : vector<4x32xf32>
    %103 = arith.negf %102 : vector<4x32xf32>
    %104 = math.exp %103 : vector<4x32xf32>
    %cst_59 = arith.constant 1.000000e+00 : f32
    %105 = vector.broadcast %cst_59 : f32 to vector<4x32xf32>
    %106 = arith.addf %105, %104 : vector<4x32xf32>
    %107 = arith.divf %105, %106 : vector<4x32xf32>
    %108 = vector.extract_strided_slice %87 {offsets = [0, 64], sizes = [4, 32], strides = [1, 1]} : vector<4x96xf32> to vector<4x32xf32>
    %109 = vector.extract_strided_slice %91 {offsets = [0, 64], sizes = [4, 32], strides = [1, 1]} : vector<4x96xf32> to vector<4x32xf32>
    %110 = arith.mulf %99, %109 : vector<4x32xf32>
    %111 = arith.addf %108, %110 : vector<4x32xf32>
    %112 = math.tanh %111 : vector<4x32xf32>
    %cst_60 = arith.constant 1.000000e+00 : f32
    %113 = vector.broadcast %cst_60 : f32 to vector<4x32xf32>
    %114 = arith.subf %113, %107 : vector<4x32xf32>
    %115 = arith.mulf %114, %112 : vector<4x32xf32>
    %116 = arith.mulf %107, %50 : vector<4x32xf32>
    %117 = arith.addf %115, %116 : vector<4x32xf32>
    %c0_61 = arith.constant 0 : index
    %c0_62 = arith.constant 0 : index
    %118 = vector.load %arg44[%c0_61, %c0_62] : memref<32x32xf32, #tpu.memory_space<vmem>>, vector<2x32xf32>
    tpu.vector_store %arg44[%c0_61, %c0_62], %85 {strides = array<i32>} : memref<32x32xf32, #tpu.memory_space<vmem>>, vector<2x32xf32>,
    %119 = vector.extract_strided_slice %117 {offsets = [2, 0], sizes = [2, 32], strides = [1, 1]} : vector<4x32xf32> to vector<2x32xf32>
    %c0_63 = arith.constant 0 : index
    %c0_64 = arith.constant 0 : index
    %120 = vector.load %arg45[%c0_63, %c0_64] : memref<32x32xf32, #tpu.memory_space<vmem>>, vector<2x32xf32>
    tpu.vector_store %arg45[%c0_63, %c0_64], %119 {strides = array<i32>} : memref<32x32xf32, #tpu.memory_space<vmem>>, vector<2x32xf32>,
    %c0_i32 = arith.constant 0 : i32
    %121 = vector.broadcast %c0_i32 : i32 to vector<2x1xi32>
    %122 = arith.cmpi eq, %52, %121 : vector<2x1xi32>
    %123 = vector.extract_strided_slice %117 {offsets = [0, 0], sizes = [2, 32], strides = [1, 1]} : vector<4x32xf32> to vector<2x32xf32>
    %124 = vector.shape_cast %122 : vector<2x1xi1> to vector<2x1xi1>
    %125 = vector.broadcast %124 : vector<2x1xi1> to vector<2x32xi1>
    %126 = arith.select %125, %123, %17 : vector<2x32xi1>, vector<2x32xf32>
    %c0_65 = arith.constant 0 : index
    %c1 = arith.constant 1 : index
    %c0_66 = arith.constant 0 : index
    %c0_67 = arith.constant 0 : index
    %127 = vector.load %arg1[%c0_65, %c1, %c0_66, %c0_67] : memref<2x8x2x96xf32, #tpu.memory_space<vmem>>, vector<1x1x2x96xf32>
    %128 = vector.shape_cast %127 : vector<1x1x2x96xf32> to vector<2x96xf32>
    %129 = arith.addf %128, %49 : vector<2x96xf32>
    %130 = arith.truncf %85 : vector<2x32xf32> to vector<2x32xbf16>
    %cst_68 = arith.constant dense<0.000000e+00> : vector<2x96xf32>
    %131 = tpu.matmul %130, %13, %cst_68 {dimension_numbers = #tpu.dot_dimension_numbers<[1], [0], [0], [1], [0, 0, 1, 1], [], []>} : vector<2x32xbf16>, vector<32x96xbf16>, vector<2x96xf32> -> vector<2x96xf32>
    %132 = vector.broadcast %14 : vector<1x96xf32> to vector<2x96xf32>
    %133 = arith.addf %131, %132 : vector<2x96xf32>
    %134 = vector.extract_strided_slice %129 {offsets = [0, 0], sizes = [2, 32], strides = [1, 1]} : vector<2x96xf32> to vector<2x32xf32>
    %135 = vector.extract_strided_slice %133 {offsets = [0, 0], sizes = [2, 32], strides = [1, 1]} : vector<2x96xf32> to vector<2x32xf32>
    %136 = arith.addf %134, %135 : vector<2x32xf32>
    %137 = arith.negf %136 : vector<2x32xf32>
    %138 = math.exp %137 : vector<2x32xf32>
    %cst_69 = arith.constant 1.000000e+00 : f32
    %139 = vector.broadcast %cst_69 : f32 to vector<2x32xf32>
    %140 = arith.addf %139, %138 : vector<2x32xf32>
    %141 = arith.divf %139, %140 : vector<2x32xf32>
    %142 = vector.extract_strided_slice %129 {offsets = [0, 32], sizes = [2, 32], strides = [1, 1]} : vector<2x96xf32> to vector<2x32xf32>
    %143 = vector.extract_strided_slice %133 {offsets = [0, 32], sizes = [2, 32], strides = [1, 1]} : vector<2x96xf32> to vector<2x32xf32>
    %144 = arith.addf %142, %143 : vector<2x32xf32>
    %145 = arith.negf %144 : vector<2x32xf32>
    %146 = math.exp %145 : vector<2x32xf32>
    %cst_70 = arith.constant 1.000000e+00 : f32
    %147 = vector.broadcast %cst_70 : f32 to vector<2x32xf32>
    %148 = arith.addf %147, %146 : vector<2x32xf32>
    %149 = arith.divf %147, %148 : vector<2x32xf32>
    %150 = vector.extract_strided_slice %129 {offsets = [0, 64], sizes = [2, 32], strides = [1, 1]} : vector<2x96xf32> to vector<2x32xf32>
    %151 = vector.extract_strided_slice %133 {offsets = [0, 64], sizes = [2, 32], strides = [1, 1]} : vector<2x96xf32> to vector<2x32xf32>
    %152 = arith.mulf %141, %151 : vector<2x32xf32>
    %153 = arith.addf %150, %152 : vector<2x32xf32>
    %154 = math.tanh %153 : vector<2x32xf32>
    %cst_71 = arith.constant 1.000000e+00 : f32
    %155 = vector.broadcast %cst_71 : f32 to vector<2x32xf32>
    %156 = arith.subf %155, %149 : vector<2x32xf32>
    %157 = arith.mulf %156, %154 : vector<2x32xf32>
    %158 = arith.mulf %149, %85 : vector<2x32xf32>
    %159 = arith.addf %157, %158 : vector<2x32xf32>
    %c0_72 = arith.constant 0 : index
    %c1_73 = arith.constant 1 : index
    %c0_74 = arith.constant 0 : index
    %c0_75 = arith.constant 0 : index
    %160 = vector.load %arg2[%c0_72, %c1_73, %c0_74, %c0_75] : memref<2x8x4x96xf32, #tpu.memory_space<vmem>>, vector<1x1x4x96xf32>
    %161 = vector.shape_cast %160 : vector<1x1x4x96xf32> to vector<4x96xf32>
    %162 = arith.truncf %117 : vector<4x32xf32> to vector<4x32xbf16>
    %cst_76 = arith.constant dense<0.000000e+00> : vector<4x96xf32>
    %163 = tpu.matmul %162, %15, %cst_76 {dimension_numbers = #tpu.dot_dimension_numbers<[1], [0], [0], [1], [0, 0, 1, 1], [], []>} : vector<4x32xbf16>, vector<32x96xbf16>, vector<4x96xf32> -> vector<4x96xf32>
    %164 = vector.broadcast %16 : vector<1x96xf32> to vector<4x96xf32>
    %165 = arith.addf %163, %164 : vector<4x96xf32>
    %166 = vector.extract_strided_slice %161 {offsets = [0, 0], sizes = [4, 32], strides = [1, 1]} : vector<4x96xf32> to vector<4x32xf32>
    %167 = vector.extract_strided_slice %165 {offsets = [0, 0], sizes = [4, 32], strides = [1, 1]} : vector<4x96xf32> to vector<4x32xf32>
    %168 = arith.addf %166, %167 : vector<4x32xf32>
    %169 = arith.negf %168 : vector<4x32xf32>
    %170 = math.exp %169 : vector<4x32xf32>
    %cst_77 = arith.constant 1.000000e+00 : f32
    %171 = vector.broadcast %cst_77 : f32 to vector<4x32xf32>
    %172 = arith.addf %171, %170 : vector<4x32xf32>
    %173 = arith.divf %171, %172 : vector<4x32xf32>
    %174 = vector.extract_strided_slice %161 {offsets = [0, 32], sizes = [4, 32], strides = [1, 1]} : vector<4x96xf32> to vector<4x32xf32>
    %175 = vector.extract_strided_slice %165 {offsets = [0, 32], sizes = [4, 32], strides = [1, 1]} : vector<4x96xf32> to vector<4x32xf32>
    %176 = arith.addf %174, %175 : vector<4x32xf32>
    %177 = arith.negf %176 : vector<4x32xf32>
    %178 = math.exp %177 : vector<4x32xf32>
    %cst_78 = arith.constant 1.000000e+00 : f32
    %179 = vector.broadcast %cst_78 : f32 to vector<4x32xf32>
    %180 = arith.addf %179, %178 : vector<4x32xf32>
    %181 = arith.divf %179, %180 : vector<4x32xf32>
    %182 = vector.extract_strided_slice %161 {offsets = [0, 64], sizes = [4, 32], strides = [1, 1]} : vector<4x96xf32> to vector<4x32xf32>
    %183 = vector.extract_strided_slice %165 {offsets = [0, 64], sizes = [4, 32], strides = [1, 1]} : vector<4x96xf32> to vector<4x32xf32>
    %184 = arith.mulf %173, %183 : vector<4x32xf32>
    %185 = arith.addf %182, %184 : vector<4x32xf32>
    %186 = math.tanh %185 : vector<4x32xf32>
    %cst_79 = arith.constant 1.000000e+00 : f32
    %187 = vector.broadcast %cst_79 : f32 to vector<4x32xf32>
    %188 = arith.subf %187, %181 : vector<4x32xf32>
    %189 = arith.mulf %188, %186 : vector<4x32xf32>
    %190 = arith.mulf %181, %117 : vector<4x32xf32>
    %191 = arith.addf %189, %190 : vector<4x32xf32>
    %c2 = arith.constant 2 : index
    %c0_80 = arith.constant 0 : index
    %192 = vector.load %arg44[%c2, %c0_80] : memref<32x32xf32, #tpu.memory_space<vmem>>, vector<2x32xf32>
    tpu.vector_store %arg44[%c2, %c0_80], %159 {strides = array<i32>} : memref<32x32xf32, #tpu.memory_space<vmem>>, vector<2x32xf32>,
    %193 = vector.extract_strided_slice %191 {offsets = [2, 0], sizes = [2, 32], strides = [1, 1]} : vector<4x32xf32> to vector<2x32xf32>
    %c2_81 = arith.constant 2 : index
    %c0_82 = arith.constant 0 : index
    %194 = vector.load %arg45[%c2_81, %c0_82] : memref<32x32xf32, #tpu.memory_space<vmem>>, vector<2x32xf32>
    tpu.vector_store %arg45[%c2_81, %c0_82], %193 {strides = array<i32>} : memref<32x32xf32, #tpu.memory_space<vmem>>, vector<2x32xf32>,
    %c1_i32 = arith.constant 1 : i32
    %195 = vector.broadcast %c1_i32 : i32 to vector<2x1xi32>
    %196 = arith.cmpi eq, %52, %195 : vector<2x1xi32>
    %197 = vector.extract_strided_slice %191 {offsets = [0, 0], sizes = [2, 32], strides = [1, 1]} : vector<4x32xf32> to vector<2x32xf32>
    %198 = vector.shape_cast %196 : vector<2x1xi1> to vector<2x1xi1>
    %199 = vector.broadcast %198 : vector<2x1xi1> to vector<2x32xi1>
    %200 = arith.select %199, %197, %126 : vector<2x32xi1>, vector<2x32xf32>
    %c0_83 = arith.constant 0 : index
    %c2_84 = arith.constant 2 : index
    %c0_85 = arith.constant 0 : index
    %c0_86 = arith.constant 0 : index
    %201 = vector.load %arg1[%c0_83, %c2_84, %c0_85, %c0_86] : memref<2x8x2x96xf32, #tpu.memory_space<vmem>>, vector<1x1x2x96xf32>
    %202 = vector.shape_cast %201 : vector<1x1x2x96xf32> to vector<2x96xf32>
    %203 = arith.addf %202, %49 : vector<2x96xf32>
    %204 = arith.truncf %159 : vector<2x32xf32> to vector<2x32xbf16>
    %cst_87 = arith.constant dense<0.000000e+00> : vector<2x96xf32>
    %205 = tpu.matmul %204, %13, %cst_87 {dimension_numbers = #tpu.dot_dimension_numbers<[1], [0], [0], [1], [0, 0, 1, 1], [], []>} : vector<2x32xbf16>, vector<32x96xbf16>, vector<2x96xf32> -> vector<2x96xf32>
    %206 = vector.broadcast %14 : vector<1x96xf32> to vector<2x96xf32>
    %207 = arith.addf %205, %206 : vector<2x96xf32>
    %208 = vector.extract_strided_slice %203 {offsets = [0, 0], sizes = [2, 32], strides = [1, 1]} : vector<2x96xf32> to vector<2x32xf32>
    %209 = vector.extract_strided_slice %207 {offsets = [0, 0], sizes = [2, 32], strides = [1, 1]} : vector<2x96xf32> to vector<2x32xf32>
    %210 = arith.addf %208, %209 : vector<2x32xf32>
    %211 = arith.negf %210 : vector<2x32xf32>
    %212 = math.exp %211 : vector<2x32xf32>
    %cst_88 = arith.constant 1.000000e+00 : f32
    %213 = vector.broadcast %cst_88 : f32 to vector<2x32xf32>
    %214 = arith.addf %213, %212 : vector<2x32xf32>
    %215 = arith.divf %213, %214 : vector<2x32xf32>
    %216 = vector.extract_strided_slice %203 {offsets = [0, 32], sizes = [2, 32], strides = [1, 1]} : vector<2x96xf32> to vector<2x32xf32>
    %217 = vector.extract_strided_slice %207 {offsets = [0, 32], sizes = [2, 32], strides = [1, 1]} : vector<2x96xf32> to vector<2x32xf32>
    %218 = arith.addf %216, %217 : vector<2x32xf32>
    %219 = arith.negf %218 : vector<2x32xf32>
    %220 = math.exp %219 : vector<2x32xf32>
    %cst_89 = arith.constant 1.000000e+00 : f32
    %221 = vector.broadcast %cst_89 : f32 to vector<2x32xf32>
    %222 = arith.addf %221, %220 : vector<2x32xf32>
    %223 = arith.divf %221, %222 : vector<2x32xf32>
    %224 = vector.extract_strided_slice %203 {offsets = [0, 64], sizes = [2, 32], strides = [1, 1]} : vector<2x96xf32> to vector<2x32xf32>
    %225 = vector.extract_strided_slice %207 {offsets = [0, 64], sizes = [2, 32], strides = [1, 1]} : vector<2x96xf32> to vector<2x32xf32>
    %226 = arith.mulf %215, %225 : vector<2x32xf32>
    %227 = arith.addf %224, %226 : vector<2x32xf32>
    %228 = math.tanh %227 : vector<2x32xf32>
    %cst_90 = arith.constant 1.000000e+00 : f32
    %229 = vector.broadcast %cst_90 : f32 to vector<2x32xf32>
    %230 = arith.subf %229, %223 : vector<2x32xf32>
    %231 = arith.mulf %230, %228 : vector<2x32xf32>
    %232 = arith.mulf %223, %159 : vector<2x32xf32>
    %233 = arith.addf %231, %232 : vector<2x32xf32>
    %c0_91 = arith.constant 0 : index
    %c2_92 = arith.constant 2 : index
    %c0_93 = arith.constant 0 : index
    %c0_94 = arith.constant 0 : index
    %234 = vector.load %arg2[%c0_91, %c2_92, %c0_93, %c0_94] : memref<2x8x4x96xf32, #tpu.memory_space<vmem>>, vector<1x1x4x96xf32>
    %235 = vector.shape_cast %234 : vector<1x1x4x96xf32> to vector<4x96xf32>
    %236 = arith.truncf %191 : vector<4x32xf32> to vector<4x32xbf16>
    %cst_95 = arith.constant dense<0.000000e+00> : vector<4x96xf32>
    %237 = tpu.matmul %236, %15, %cst_95 {dimension_numbers = #tpu.dot_dimension_numbers<[1], [0], [0], [1], [0, 0, 1, 1], [], []>} : vector<4x32xbf16>, vector<32x96xbf16>, vector<4x96xf32> -> vector<4x96xf32>
    %238 = vector.broadcast %16 : vector<1x96xf32> to vector<4x96xf32>
    %239 = arith.addf %237, %238 : vector<4x96xf32>
    %240 = vector.extract_strided_slice %235 {offsets = [0, 0], sizes = [4, 32], strides = [1, 1]} : vector<4x96xf32> to vector<4x32xf32>
    %241 = vector.extract_strided_slice %239 {offsets = [0, 0], sizes = [4, 32], strides = [1, 1]} : vector<4x96xf32> to vector<4x32xf32>
    %242 = arith.addf %240, %241 : vector<4x32xf32>
    %243 = arith.negf %242 : vector<4x32xf32>
    %244 = math.exp %243 : vector<4x32xf32>
    %cst_96 = arith.constant 1.000000e+00 : f32
    %245 = vector.broadcast %cst_96 : f32 to vector<4x32xf32>
    %246 = arith.addf %245, %244 : vector<4x32xf32>
    %247 = arith.divf %245, %246 : vector<4x32xf32>
    %248 = vector.extract_strided_slice %235 {offsets = [0, 32], sizes = [4, 32], strides = [1, 1]} : vector<4x96xf32> to vector<4x32xf32>
    %249 = vector.extract_strided_slice %239 {offsets = [0, 32], sizes = [4, 32], strides = [1, 1]} : vector<4x96xf32> to vector<4x32xf32>
    %250 = arith.addf %248, %249 : vector<4x32xf32>
    %251 = arith.negf %250 : vector<4x32xf32>
    %252 = math.exp %251 : vector<4x32xf32>
    %cst_97 = arith.constant 1.000000e+00 : f32
    %253 = vector.broadcast %cst_97 : f32 to vector<4x32xf32>
    %254 = arith.addf %253, %252 : vector<4x32xf32>
    %255 = arith.divf %253, %254 : vector<4x32xf32>
    %256 = vector.extract_strided_slice %235 {offsets = [0, 64], sizes = [4, 32], strides = [1, 1]} : vector<4x96xf32> to vector<4x32xf32>
    %257 = vector.extract_strided_slice %239 {offsets = [0, 64], sizes = [4, 32], strides = [1, 1]} : vector<4x96xf32> to vector<4x32xf32>
    %258 = arith.mulf %247, %257 : vector<4x32xf32>
    %259 = arith.addf %256, %258 : vector<4x32xf32>
    %260 = math.tanh %259 : vector<4x32xf32>
    %cst_98 = arith.constant 1.000000e+00 : f32
    %261 = vector.broadcast %cst_98 : f32 to vector<4x32xf32>
    %262 = arith.subf %261, %255 : vector<4x32xf32>
    %263 = arith.mulf %262, %260 : vector<4x32xf32>
    %264 = arith.mulf %255, %191 : vector<4x32xf32>
    %265 = arith.addf %263, %264 : vector<4x32xf32>
    %c4 = arith.constant 4 : index
    %c0_99 = arith.constant 0 : index
    %266 = vector.load %arg44[%c4, %c0_99] : memref<32x32xf32, #tpu.memory_space<vmem>>, vector<2x32xf32>
    tpu.vector_store %arg44[%c4, %c0_99], %233 {strides = array<i32>} : memref<32x32xf32, #tpu.memory_space<vmem>>, vector<2x32xf32>,
    %267 = vector.extract_strided_slice %265 {offsets = [2, 0], sizes = [2, 32], strides = [1, 1]} : vector<4x32xf32> to vector<2x32xf32>
    %c4_100 = arith.constant 4 : index
    %c0_101 = arith.constant 0 : index
    %268 = vector.load %arg45[%c4_100, %c0_101] : memref<32x32xf32, #tpu.memory_space<vmem>>, vector<2x32xf32>
    tpu.vector_store %arg45[%c4_100, %c0_101], %267 {strides = array<i32>} : memref<32x32xf32, #tpu.memory_space<vmem>>, vector<2x32xf32>,
    %c2_i32 = arith.constant 2 : i32
    %269 = vector.broadcast %c2_i32 : i32 to vector<2x1xi32>
    %270 = arith.cmpi eq, %52, %269 : vector<2x1xi32>
    %271 = vector.extract_strided_slice %265 {offsets = [0, 0], sizes = [2, 32], strides = [1, 1]} : vector<4x32xf32> to vector<2x32xf32>
    %272 = vector.shape_cast %270 : vector<2x1xi1> to vector<2x1xi1>
    %273 = vector.broadcast %272 : vector<2x1xi1> to vector<2x32xi1>
    %274 = arith.select %273, %271, %200 : vector<2x32xi1>, vector<2x32xf32>
    %c0_102 = arith.constant 0 : index
    %c3 = arith.constant 3 : index
    %c0_103 = arith.constant 0 : index
    %c0_104 = arith.constant 0 : index
    %275 = vector.load %arg1[%c0_102, %c3, %c0_103, %c0_104] : memref<2x8x2x96xf32, #tpu.memory_space<vmem>>, vector<1x1x2x96xf32>
    %276 = vector.shape_cast %275 : vector<1x1x2x96xf32> to vector<2x96xf32>
    %277 = arith.addf %276, %49 : vector<2x96xf32>
    %278 = arith.truncf %233 : vector<2x32xf32> to vector<2x32xbf16>
    %cst_105 = arith.constant dense<0.000000e+00> : vector<2x96xf32>
    %279 = tpu.matmul %278, %13, %cst_105 {dimension_numbers = #tpu.dot_dimension_numbers<[1], [0], [0], [1], [0, 0, 1, 1], [], []>} : vector<2x32xbf16>, vector<32x96xbf16>, vector<2x96xf32> -> vector<2x96xf32>
    %280 = vector.broadcast %14 : vector<1x96xf32> to vector<2x96xf32>
    %281 = arith.addf %279, %280 : vector<2x96xf32>
    %282 = vector.extract_strided_slice %277 {offsets = [0, 0], sizes = [2, 32], strides = [1, 1]} : vector<2x96xf32> to vector<2x32xf32>
    %283 = vector.extract_strided_slice %281 {offsets = [0, 0], sizes = [2, 32], strides = [1, 1]} : vector<2x96xf32> to vector<2x32xf32>
    %284 = arith.addf %282, %283 : vector<2x32xf32>
    %285 = arith.negf %284 : vector<2x32xf32>
    %286 = math.exp %285 : vector<2x32xf32>
    %cst_106 = arith.constant 1.000000e+00 : f32
    %287 = vector.broadcast %cst_106 : f32 to vector<2x32xf32>
    %288 = arith.addf %287, %286 : vector<2x32xf32>
    %289 = arith.divf %287, %288 : vector<2x32xf32>
    %290 = vector.extract_strided_slice %277 {offsets = [0, 32], sizes = [2, 32], strides = [1, 1]} : vector<2x96xf32> to vector<2x32xf32>
    %291 = vector.extract_strided_slice %281 {offsets = [0, 32], sizes = [2, 32], strides = [1, 1]} : vector<2x96xf32> to vector<2x32xf32>
    %292 = arith.addf %290, %291 : vector<2x32xf32>
    %293 = arith.negf %292 : vector<2x32xf32>
    %294 = math.exp %293 : vector<2x32xf32>
    %cst_107 = arith.constant 1.000000e+00 : f32
    %295 = vector.broadcast %cst_107 : f32 to vector<2x32xf32>
    %296 = arith.addf %295, %294 : vector<2x32xf32>
    %297 = arith.divf %295, %296 : vector<2x32xf32>
    %298 = vector.extract_strided_slice %277 {offsets = [0, 64], sizes = [2, 32], strides = [1, 1]} : vector<2x96xf32> to vector<2x32xf32>
    %299 = vector.extract_strided_slice %281 {offsets = [0, 64], sizes = [2, 32], strides = [1, 1]} : vector<2x96xf32> to vector<2x32xf32>
    %300 = arith.mulf %289, %299 : vector<2x32xf32>
    %301 = arith.addf %298, %300 : vector<2x32xf32>
    %302 = math.tanh %301 : vector<2x32xf32>
    %cst_108 = arith.constant 1.000000e+00 : f32
    %303 = vector.broadcast %cst_108 : f32 to vector<2x32xf32>
    %304 = arith.subf %303, %297 : vector<2x32xf32>
    %305 = arith.mulf %304, %302 : vector<2x32xf32>
    %306 = arith.mulf %297, %233 : vector<2x32xf32>
    %307 = arith.addf %305, %306 : vector<2x32xf32>
    %c0_109 = arith.constant 0 : index
    %c3_110 = arith.constant 3 : index
    %c0_111 = arith.constant 0 : index
    %c0_112 = arith.constant 0 : index
    %308 = vector.load %arg2[%c0_109, %c3_110, %c0_111, %c0_112] : memref<2x8x4x96xf32, #tpu.memory_space<vmem>>, vector<1x1x4x96xf32>
    %309 = vector.shape_cast %308 : vector<1x1x4x96xf32> to vector<4x96xf32>
    %310 = arith.truncf %265 : vector<4x32xf32> to vector<4x32xbf16>
    %cst_113 = arith.constant dense<0.000000e+00> : vector<4x96xf32>
    %311 = tpu.matmul %310, %15, %cst_113 {dimension_numbers = #tpu.dot_dimension_numbers<[1], [0], [0], [1], [0, 0, 1, 1], [], []>} : vector<4x32xbf16>, vector<32x96xbf16>, vector<4x96xf32> -> vector<4x96xf32>
    %312 = vector.broadcast %16 : vector<1x96xf32> to vector<4x96xf32>
    %313 = arith.addf %311, %312 : vector<4x96xf32>
    %314 = vector.extract_strided_slice %309 {offsets = [0, 0], sizes = [4, 32], strides = [1, 1]} : vector<4x96xf32> to vector<4x32xf32>
    %315 = vector.extract_strided_slice %313 {offsets = [0, 0], sizes = [4, 32], strides = [1, 1]} : vector<4x96xf32> to vector<4x32xf32>
    %316 = arith.addf %314, %315 : vector<4x32xf32>
    %317 = arith.negf %316 : vector<4x32xf32>
    %318 = math.exp %317 : vector<4x32xf32>
    %cst_114 = arith.constant 1.000000e+00 : f32
    %319 = vector.broadcast %cst_114 : f32 to vector<4x32xf32>
    %320 = arith.addf %319, %318 : vector<4x32xf32>
    %321 = arith.divf %319, %320 : vector<4x32xf32>
    %322 = vector.extract_strided_slice %309 {offsets = [0, 32], sizes = [4, 32], strides = [1, 1]} : vector<4x96xf32> to vector<4x32xf32>
    %323 = vector.extract_strided_slice %313 {offsets = [0, 32], sizes = [4, 32], strides = [1, 1]} : vector<4x96xf32> to vector<4x32xf32>
    %324 = arith.addf %322, %323 : vector<4x32xf32>
    %325 = arith.negf %324 : vector<4x32xf32>
    %326 = math.exp %325 : vector<4x32xf32>
    %cst_115 = arith.constant 1.000000e+00 : f32
    %327 = vector.broadcast %cst_115 : f32 to vector<4x32xf32>
    %328 = arith.addf %327, %326 : vector<4x32xf32>
    %329 = arith.divf %327, %328 : vector<4x32xf32>
    %330 = vector.extract_strided_slice %309 {offsets = [0, 64], sizes = [4, 32], strides = [1, 1]} : vector<4x96xf32> to vector<4x32xf32>
    %331 = vector.extract_strided_slice %313 {offsets = [0, 64], sizes = [4, 32], strides = [1, 1]} : vector<4x96xf32> to vector<4x32xf32>
    %332 = arith.mulf %321, %331 : vector<4x32xf32>
    %333 = arith.addf %330, %332 : vector<4x32xf32>
    %334 = math.tanh %333 : vector<4x32xf32>
    %cst_116 = arith.constant 1.000000e+00 : f32
    %335 = vector.broadcast %cst_116 : f32 to vector<4x32xf32>
    %336 = arith.subf %335, %329 : vector<4x32xf32>
    %337 = arith.mulf %336, %334 : vector<4x32xf32>
    %338 = arith.mulf %329, %265 : vector<4x32xf32>
    %339 = arith.addf %337, %338 : vector<4x32xf32>
    %c6 = arith.constant 6 : index
    %c0_117 = arith.constant 0 : index
    %340 = vector.load %arg44[%c6, %c0_117] : memref<32x32xf32, #tpu.memory_space<vmem>>, vector<2x32xf32>
    tpu.vector_store %arg44[%c6, %c0_117], %307 {strides = array<i32>} : memref<32x32xf32, #tpu.memory_space<vmem>>, vector<2x32xf32>,
    %341 = vector.extract_strided_slice %339 {offsets = [2, 0], sizes = [2, 32], strides = [1, 1]} : vector<4x32xf32> to vector<2x32xf32>
    %c6_118 = arith.constant 6 : index
    %c0_119 = arith.constant 0 : index
    %342 = vector.load %arg45[%c6_118, %c0_119] : memref<32x32xf32, #tpu.memory_space<vmem>>, vector<2x32xf32>
    tpu.vector_store %arg45[%c6_118, %c0_119], %341 {strides = array<i32>} : memref<32x32xf32, #tpu.memory_space<vmem>>, vector<2x32xf32>,
    %c3_i32 = arith.constant 3 : i32
    %343 = vector.broadcast %c3_i32 : i32 to vector<2x1xi32>
    %344 = arith.cmpi eq, %52, %343 : vector<2x1xi32>
    %345 = vector.extract_strided_slice %339 {offsets = [0, 0], sizes = [2, 32], strides = [1, 1]} : vector<4x32xf32> to vector<2x32xf32>
    %346 = vector.shape_cast %344 : vector<2x1xi1> to vector<2x1xi1>
    %347 = vector.broadcast %346 : vector<2x1xi1> to vector<2x32xi1>
    %348 = arith.select %347, %345, %274 : vector<2x32xi1>, vector<2x32xf32>
    %c0_120 = arith.constant 0 : index
    %c4_121 = arith.constant 4 : index
    %c0_122 = arith.constant 0 : index
    %c0_123 = arith.constant 0 : index
    %349 = vector.load %arg1[%c0_120, %c4_121, %c0_122, %c0_123] : memref<2x8x2x96xf32, #tpu.memory_space<vmem>>, vector<1x1x2x96xf32>
    %350 = vector.shape_cast %349 : vector<1x1x2x96xf32> to vector<2x96xf32>
    %351 = arith.addf %350, %49 : vector<2x96xf32>
    %352 = arith.truncf %307 : vector<2x32xf32> to vector<2x32xbf16>
    %cst_124 = arith.constant dense<0.000000e+00> : vector<2x96xf32>
    %353 = tpu.matmul %352, %13, %cst_124 {dimension_numbers = #tpu.dot_dimension_numbers<[1], [0], [0], [1], [0, 0, 1, 1], [], []>} : vector<2x32xbf16>, vector<32x96xbf16>, vector<2x96xf32> -> vector<2x96xf32>
    %354 = vector.broadcast %14 : vector<1x96xf32> to vector<2x96xf32>
    %355 = arith.addf %353, %354 : vector<2x96xf32>
    %356 = vector.extract_strided_slice %351 {offsets = [0, 0], sizes = [2, 32], strides = [1, 1]} : vector<2x96xf32> to vector<2x32xf32>
    %357 = vector.extract_strided_slice %355 {offsets = [0, 0], sizes = [2, 32], strides = [1, 1]} : vector<2x96xf32> to vector<2x32xf32>
    %358 = arith.addf %356, %357 : vector<2x32xf32>
    %359 = arith.negf %358 : vector<2x32xf32>
    %360 = math.exp %359 : vector<2x32xf32>
    %cst_125 = arith.constant 1.000000e+00 : f32
    %361 = vector.broadcast %cst_125 : f32 to vector<2x32xf32>
    %362 = arith.addf %361, %360 : vector<2x32xf32>
    %363 = arith.divf %361, %362 : vector<2x32xf32>
    %364 = vector.extract_strided_slice %351 {offsets = [0, 32], sizes = [2, 32], strides = [1, 1]} : vector<2x96xf32> to vector<2x32xf32>
    %365 = vector.extract_strided_slice %355 {offsets = [0, 32], sizes = [2, 32], strides = [1, 1]} : vector<2x96xf32> to vector<2x32xf32>
    %366 = arith.addf %364, %365 : vector<2x32xf32>
    %367 = arith.negf %366 : vector<2x32xf32>
    %368 = math.exp %367 : vector<2x32xf32>
    %cst_126 = arith.constant 1.000000e+00 : f32
    %369 = vector.broadcast %cst_126 : f32 to vector<2x32xf32>
    %370 = arith.addf %369, %368 : vector<2x32xf32>
    %371 = arith.divf %369, %370 : vector<2x32xf32>
    %372 = vector.extract_strided_slice %351 {offsets = [0, 64], sizes = [2, 32], strides = [1, 1]} : vector<2x96xf32> to vector<2x32xf32>
    %373 = vector.extract_strided_slice %355 {offsets = [0, 64], sizes = [2, 32], strides = [1, 1]} : vector<2x96xf32> to vector<2x32xf32>
    %374 = arith.mulf %363, %373 : vector<2x32xf32>
    %375 = arith.addf %372, %374 : vector<2x32xf32>
    %376 = math.tanh %375 : vector<2x32xf32>
    %cst_127 = arith.constant 1.000000e+00 : f32
    %377 = vector.broadcast %cst_127 : f32 to vector<2x32xf32>
    %378 = arith.subf %377, %371 : vector<2x32xf32>
    %379 = arith.mulf %378, %376 : vector<2x32xf32>
    %380 = arith.mulf %371, %307 : vector<2x32xf32>
    %381 = arith.addf %379, %380 : vector<2x32xf32>
    %c0_128 = arith.constant 0 : index
    %c4_129 = arith.constant 4 : index
    %c0_130 = arith.constant 0 : index
    %c0_131 = arith.constant 0 : index
    %382 = vector.load %arg2[%c0_128, %c4_129, %c0_130, %c0_131] : memref<2x8x4x96xf32, #tpu.memory_space<vmem>>, vector<1x1x4x96xf32>
    %383 = vector.shape_cast %382 : vector<1x1x4x96xf32> to vector<4x96xf32>
    %384 = arith.truncf %339 : vector<4x32xf32> to vector<4x32xbf16>
    %cst_132 = arith.constant dense<0.000000e+00> : vector<4x96xf32>
    %385 = tpu.matmul %384, %15, %cst_132 {dimension_numbers = #tpu.dot_dimension_numbers<[1], [0], [0], [1], [0, 0, 1, 1], [], []>} : vector<4x32xbf16>, vector<32x96xbf16>, vector<4x96xf32> -> vector<4x96xf32>
    %386 = vector.broadcast %16 : vector<1x96xf32> to vector<4x96xf32>
    %387 = arith.addf %385, %386 : vector<4x96xf32>
    %388 = vector.extract_strided_slice %383 {offsets = [0, 0], sizes = [4, 32], strides = [1, 1]} : vector<4x96xf32> to vector<4x32xf32>
    %389 = vector.extract_strided_slice %387 {offsets = [0, 0], sizes = [4, 32], strides = [1, 1]} : vector<4x96xf32> to vector<4x32xf32>
    %390 = arith.addf %388, %389 : vector<4x32xf32>
    %391 = arith.negf %390 : vector<4x32xf32>
    %392 = math.exp %391 : vector<4x32xf32>
    %cst_133 = arith.constant 1.000000e+00 : f32
    %393 = vector.broadcast %cst_133 : f32 to vector<4x32xf32>
    %394 = arith.addf %393, %392 : vector<4x32xf32>
    %395 = arith.divf %393, %394 : vector<4x32xf32>
    %396 = vector.extract_strided_slice %383 {offsets = [0, 32], sizes = [4, 32], strides = [1, 1]} : vector<4x96xf32> to vector<4x32xf32>
    %397 = vector.extract_strided_slice %387 {offsets = [0, 32], sizes = [4, 32], strides = [1, 1]} : vector<4x96xf32> to vector<4x32xf32>
    %398 = arith.addf %396, %397 : vector<4x32xf32>
    %399 = arith.negf %398 : vector<4x32xf32>
    %400 = math.exp %399 : vector<4x32xf32>
    %cst_134 = arith.constant 1.000000e+00 : f32
    %401 = vector.broadcast %cst_134 : f32 to vector<4x32xf32>
    %402 = arith.addf %401, %400 : vector<4x32xf32>
    %403 = arith.divf %401, %402 : vector<4x32xf32>
    %404 = vector.extract_strided_slice %383 {offsets = [0, 64], sizes = [4, 32], strides = [1, 1]} : vector<4x96xf32> to vector<4x32xf32>
    %405 = vector.extract_strided_slice %387 {offsets = [0, 64], sizes = [4, 32], strides = [1, 1]} : vector<4x96xf32> to vector<4x32xf32>
    %406 = arith.mulf %395, %405 : vector<4x32xf32>
    %407 = arith.addf %404, %406 : vector<4x32xf32>
    %408 = math.tanh %407 : vector<4x32xf32>
    %cst_135 = arith.constant 1.000000e+00 : f32
    %409 = vector.broadcast %cst_135 : f32 to vector<4x32xf32>
    %410 = arith.subf %409, %403 : vector<4x32xf32>
    %411 = arith.mulf %410, %408 : vector<4x32xf32>
    %412 = arith.mulf %403, %339 : vector<4x32xf32>
    %413 = arith.addf %411, %412 : vector<4x32xf32>
    %c8 = arith.constant 8 : index
    %c0_136 = arith.constant 0 : index
    %414 = vector.load %arg44[%c8, %c0_136] : memref<32x32xf32, #tpu.memory_space<vmem>>, vector<2x32xf32>
    tpu.vector_store %arg44[%c8, %c0_136], %381 {strides = array<i32>} : memref<32x32xf32, #tpu.memory_space<vmem>>, vector<2x32xf32>,
    %415 = vector.extract_strided_slice %413 {offsets = [2, 0], sizes = [2, 32], strides = [1, 1]} : vector<4x32xf32> to vector<2x32xf32>
    %c8_137 = arith.constant 8 : index
    %c0_138 = arith.constant 0 : index
    %416 = vector.load %arg45[%c8_137, %c0_138] : memref<32x32xf32, #tpu.memory_space<vmem>>, vector<2x32xf32>
    tpu.vector_store %arg45[%c8_137, %c0_138], %415 {strides = array<i32>} : memref<32x32xf32, #tpu.memory_space<vmem>>, vector<2x32xf32>,
    %c4_i32 = arith.constant 4 : i32
    %417 = vector.broadcast %c4_i32 : i32 to vector<2x1xi32>
    %418 = arith.cmpi eq, %52, %417 : vector<2x1xi32>
    %419 = vector.extract_strided_slice %413 {offsets = [0, 0], sizes = [2, 32], strides = [1, 1]} : vector<4x32xf32> to vector<2x32xf32>
    %420 = vector.shape_cast %418 : vector<2x1xi1> to vector<2x1xi1>
    %421 = vector.broadcast %420 : vector<2x1xi1> to vector<2x32xi1>
    %422 = arith.select %421, %419, %348 : vector<2x32xi1>, vector<2x32xf32>
    %c0_139 = arith.constant 0 : index
    %c5 = arith.constant 5 : index
    %c0_140 = arith.constant 0 : index
    %c0_141 = arith.constant 0 : index
    %423 = vector.load %arg1[%c0_139, %c5, %c0_140, %c0_141] : memref<2x8x2x96xf32, #tpu.memory_space<vmem>>, vector<1x1x2x96xf32>
    %424 = vector.shape_cast %423 : vector<1x1x2x96xf32> to vector<2x96xf32>
    %425 = arith.addf %424, %49 : vector<2x96xf32>
    %426 = arith.truncf %381 : vector<2x32xf32> to vector<2x32xbf16>
    %cst_142 = arith.constant dense<0.000000e+00> : vector<2x96xf32>
    %427 = tpu.matmul %426, %13, %cst_142 {dimension_numbers = #tpu.dot_dimension_numbers<[1], [0], [0], [1], [0, 0, 1, 1], [], []>} : vector<2x32xbf16>, vector<32x96xbf16>, vector<2x96xf32> -> vector<2x96xf32>
    %428 = vector.broadcast %14 : vector<1x96xf32> to vector<2x96xf32>
    %429 = arith.addf %427, %428 : vector<2x96xf32>
    %430 = vector.extract_strided_slice %425 {offsets = [0, 0], sizes = [2, 32], strides = [1, 1]} : vector<2x96xf32> to vector<2x32xf32>
    %431 = vector.extract_strided_slice %429 {offsets = [0, 0], sizes = [2, 32], strides = [1, 1]} : vector<2x96xf32> to vector<2x32xf32>
    %432 = arith.addf %430, %431 : vector<2x32xf32>
    %433 = arith.negf %432 : vector<2x32xf32>
    %434 = math.exp %433 : vector<2x32xf32>
    %cst_143 = arith.constant 1.000000e+00 : f32
    %435 = vector.broadcast %cst_143 : f32 to vector<2x32xf32>
    %436 = arith.addf %435, %434 : vector<2x32xf32>
    %437 = arith.divf %435, %436 : vector<2x32xf32>
    %438 = vector.extract_strided_slice %425 {offsets = [0, 32], sizes = [2, 32], strides = [1, 1]} : vector<2x96xf32> to vector<2x32xf32>
    %439 = vector.extract_strided_slice %429 {offsets = [0, 32], sizes = [2, 32], strides = [1, 1]} : vector<2x96xf32> to vector<2x32xf32>
    %440 = arith.addf %438, %439 : vector<2x32xf32>
    %441 = arith.negf %440 : vector<2x32xf32>
    %442 = math.exp %441 : vector<2x32xf32>
    %cst_144 = arith.constant 1.000000e+00 : f32
    %443 = vector.broadcast %cst_144 : f32 to vector<2x32xf32>
    %444 = arith.addf %443, %442 : vector<2x32xf32>
    %445 = arith.divf %443, %444 : vector<2x32xf32>
    %446 = vector.extract_strided_slice %425 {offsets = [0, 64], sizes = [2, 32], strides = [1, 1]} : vector<2x96xf32> to vector<2x32xf32>
    %447 = vector.extract_strided_slice %429 {offsets = [0, 64], sizes = [2, 32], strides = [1, 1]} : vector<2x96xf32> to vector<2x32xf32>
    %448 = arith.mulf %437, %447 : vector<2x32xf32>
    %449 = arith.addf %446, %448 : vector<2x32xf32>
    %450 = math.tanh %449 : vector<2x32xf32>
    %cst_145 = arith.constant 1.000000e+00 : f32
    %451 = vector.broadcast %cst_145 : f32 to vector<2x32xf32>
    %452 = arith.subf %451, %445 : vector<2x32xf32>
    %453 = arith.mulf %452, %450 : vector<2x32xf32>
    %454 = arith.mulf %445, %381 : vector<2x32xf32>
    %455 = arith.addf %453, %454 : vector<2x32xf32>
    %c0_146 = arith.constant 0 : index
    %c5_147 = arith.constant 5 : index
    %c0_148 = arith.constant 0 : index
    %c0_149 = arith.constant 0 : index
    %456 = vector.load %arg2[%c0_146, %c5_147, %c0_148, %c0_149] : memref<2x8x4x96xf32, #tpu.memory_space<vmem>>, vector<1x1x4x96xf32>
    %457 = vector.shape_cast %456 : vector<1x1x4x96xf32> to vector<4x96xf32>
    %458 = arith.truncf %413 : vector<4x32xf32> to vector<4x32xbf16>
    %cst_150 = arith.constant dense<0.000000e+00> : vector<4x96xf32>
    %459 = tpu.matmul %458, %15, %cst_150 {dimension_numbers = #tpu.dot_dimension_numbers<[1], [0], [0], [1], [0, 0, 1, 1], [], []>} : vector<4x32xbf16>, vector<32x96xbf16>, vector<4x96xf32> -> vector<4x96xf32>
    %460 = vector.broadcast %16 : vector<1x96xf32> to vector<4x96xf32>
    %461 = arith.addf %459, %460 : vector<4x96xf32>
    %462 = vector.extract_strided_slice %457 {offsets = [0, 0], sizes = [4, 32], strides = [1, 1]} : vector<4x96xf32> to vector<4x32xf32>
    %463 = vector.extract_strided_slice %461 {offsets = [0, 0], sizes = [4, 32], strides = [1, 1]} : vector<4x96xf32> to vector<4x32xf32>
    %464 = arith.addf %462, %463 : vector<4x32xf32>
    %465 = arith.negf %464 : vector<4x32xf32>
    %466 = math.exp %465 : vector<4x32xf32>
    %cst_151 = arith.constant 1.000000e+00 : f32
    %467 = vector.broadcast %cst_151 : f32 to vector<4x32xf32>
    %468 = arith.addf %467, %466 : vector<4x32xf32>
    %469 = arith.divf %467, %468 : vector<4x32xf32>
    %470 = vector.extract_strided_slice %457 {offsets = [0, 32], sizes = [4, 32], strides = [1, 1]} : vector<4x96xf32> to vector<4x32xf32>
    %471 = vector.extract_strided_slice %461 {offsets = [0, 32], sizes = [4, 32], strides = [1, 1]} : vector<4x96xf32> to vector<4x32xf32>
    %472 = arith.addf %470, %471 : vector<4x32xf32>
    %473 = arith.negf %472 : vector<4x32xf32>
    %474 = math.exp %473 : vector<4x32xf32>
    %cst_152 = arith.constant 1.000000e+00 : f32
    %475 = vector.broadcast %cst_152 : f32 to vector<4x32xf32>
    %476 = arith.addf %475, %474 : vector<4x32xf32>
    %477 = arith.divf %475, %476 : vector<4x32xf32>
    %478 = vector.extract_strided_slice %457 {offsets = [0, 64], sizes = [4, 32], strides = [1, 1]} : vector<4x96xf32> to vector<4x32xf32>
    %479 = vector.extract_strided_slice %461 {offsets = [0, 64], sizes = [4, 32], strides = [1, 1]} : vector<4x96xf32> to vector<4x32xf32>
    %480 = arith.mulf %469, %479 : vector<4x32xf32>
    %481 = arith.addf %478, %480 : vector<4x32xf32>
    %482 = math.tanh %481 : vector<4x32xf32>
    %cst_153 = arith.constant 1.000000e+00 : f32
    %483 = vector.broadcast %cst_153 : f32 to vector<4x32xf32>
    %484 = arith.subf %483, %477 : vector<4x32xf32>
    %485 = arith.mulf %484, %482 : vector<4x32xf32>
    %486 = arith.mulf %477, %413 : vector<4x32xf32>
    %487 = arith.addf %485, %486 : vector<4x32xf32>
    %c10 = arith.constant 10 : index
    %c0_154 = arith.constant 0 : index
    %488 = vector.load %arg44[%c10, %c0_154] : memref<32x32xf32, #tpu.memory_space<vmem>>, vector<2x32xf32>
    tpu.vector_store %arg44[%c10, %c0_154], %455 {strides = array<i32>} : memref<32x32xf32, #tpu.memory_space<vmem>>, vector<2x32xf32>,
    %489 = vector.extract_strided_slice %487 {offsets = [2, 0], sizes = [2, 32], strides = [1, 1]} : vector<4x32xf32> to vector<2x32xf32>
    %c10_155 = arith.constant 10 : index
    %c0_156 = arith.constant 0 : index
    %490 = vector.load %arg45[%c10_155, %c0_156] : memref<32x32xf32, #tpu.memory_space<vmem>>, vector<2x32xf32>
    tpu.vector_store %arg45[%c10_155, %c0_156], %489 {strides = array<i32>} : memref<32x32xf32, #tpu.memory_space<vmem>>, vector<2x32xf32>,
    %c5_i32 = arith.constant 5 : i32
    %491 = vector.broadcast %c5_i32 : i32 to vector<2x1xi32>
    %492 = arith.cmpi eq, %52, %491 : vector<2x1xi32>
    %493 = vector.extract_strided_slice %487 {offsets = [0, 0], sizes = [2, 32], strides = [1, 1]} : vector<4x32xf32> to vector<2x32xf32>
    %494 = vector.shape_cast %492 : vector<2x1xi1> to vector<2x1xi1>
    %495 = vector.broadcast %494 : vector<2x1xi1> to vector<2x32xi1>
    %496 = arith.select %495, %493, %422 : vector<2x32xi1>, vector<2x32xf32>
    %c0_157 = arith.constant 0 : index
    %c6_158 = arith.constant 6 : index
    %c0_159 = arith.constant 0 : index
    %c0_160 = arith.constant 0 : index
    %497 = vector.load %arg1[%c0_157, %c6_158, %c0_159, %c0_160] : memref<2x8x2x96xf32, #tpu.memory_space<vmem>>, vector<1x1x2x96xf32>
    %498 = vector.shape_cast %497 : vector<1x1x2x96xf32> to vector<2x96xf32>
    %499 = arith.addf %498, %49 : vector<2x96xf32>
    %500 = arith.truncf %455 : vector<2x32xf32> to vector<2x32xbf16>
    %cst_161 = arith.constant dense<0.000000e+00> : vector<2x96xf32>
    %501 = tpu.matmul %500, %13, %cst_161 {dimension_numbers = #tpu.dot_dimension_numbers<[1], [0], [0], [1], [0, 0, 1, 1], [], []>} : vector<2x32xbf16>, vector<32x96xbf16>, vector<2x96xf32> -> vector<2x96xf32>
    %502 = vector.broadcast %14 : vector<1x96xf32> to vector<2x96xf32>
    %503 = arith.addf %501, %502 : vector<2x96xf32>
    %504 = vector.extract_strided_slice %499 {offsets = [0, 0], sizes = [2, 32], strides = [1, 1]} : vector<2x96xf32> to vector<2x32xf32>
    %505 = vector.extract_strided_slice %503 {offsets = [0, 0], sizes = [2, 32], strides = [1, 1]} : vector<2x96xf32> to vector<2x32xf32>
    %506 = arith.addf %504, %505 : vector<2x32xf32>
    %507 = arith.negf %506 : vector<2x32xf32>
    %508 = math.exp %507 : vector<2x32xf32>
    %cst_162 = arith.constant 1.000000e+00 : f32
    %509 = vector.broadcast %cst_162 : f32 to vector<2x32xf32>
    %510 = arith.addf %509, %508 : vector<2x32xf32>
    %511 = arith.divf %509, %510 : vector<2x32xf32>
    %512 = vector.extract_strided_slice %499 {offsets = [0, 32], sizes = [2, 32], strides = [1, 1]} : vector<2x96xf32> to vector<2x32xf32>
    %513 = vector.extract_strided_slice %503 {offsets = [0, 32], sizes = [2, 32], strides = [1, 1]} : vector<2x96xf32> to vector<2x32xf32>
    %514 = arith.addf %512, %513 : vector<2x32xf32>
    %515 = arith.negf %514 : vector<2x32xf32>
    %516 = math.exp %515 : vector<2x32xf32>
    %cst_163 = arith.constant 1.000000e+00 : f32
    %517 = vector.broadcast %cst_163 : f32 to vector<2x32xf32>
    %518 = arith.addf %517, %516 : vector<2x32xf32>
    %519 = arith.divf %517, %518 : vector<2x32xf32>
    %520 = vector.extract_strided_slice %499 {offsets = [0, 64], sizes = [2, 32], strides = [1, 1]} : vector<2x96xf32> to vector<2x32xf32>
    %521 = vector.extract_strided_slice %503 {offsets = [0, 64], sizes = [2, 32], strides = [1, 1]} : vector<2x96xf32> to vector<2x32xf32>
    %522 = arith.mulf %511, %521 : vector<2x32xf32>
    %523 = arith.addf %520, %522 : vector<2x32xf32>
    %524 = math.tanh %523 : vector<2x32xf32>
    %cst_164 = arith.constant 1.000000e+00 : f32
    %525 = vector.broadcast %cst_164 : f32 to vector<2x32xf32>
    %526 = arith.subf %525, %519 : vector<2x32xf32>
    %527 = arith.mulf %526, %524 : vector<2x32xf32>
    %528 = arith.mulf %519, %455 : vector<2x32xf32>
    %529 = arith.addf %527, %528 : vector<2x32xf32>
    %c0_165 = arith.constant 0 : index
    %c6_166 = arith.constant 6 : index
    %c0_167 = arith.constant 0 : index
    %c0_168 = arith.constant 0 : index
    %530 = vector.load %arg2[%c0_165, %c6_166, %c0_167, %c0_168] : memref<2x8x4x96xf32, #tpu.memory_space<vmem>>, vector<1x1x4x96xf32>
    %531 = vector.shape_cast %530 : vector<1x1x4x96xf32> to vector<4x96xf32>
    %532 = arith.truncf %487 : vector<4x32xf32> to vector<4x32xbf16>
    %cst_169 = arith.constant dense<0.000000e+00> : vector<4x96xf32>
    %533 = tpu.matmul %532, %15, %cst_169 {dimension_numbers = #tpu.dot_dimension_numbers<[1], [0], [0], [1], [0, 0, 1, 1], [], []>} : vector<4x32xbf16>, vector<32x96xbf16>, vector<4x96xf32> -> vector<4x96xf32>
    %534 = vector.broadcast %16 : vector<1x96xf32> to vector<4x96xf32>
    %535 = arith.addf %533, %534 : vector<4x96xf32>
    %536 = vector.extract_strided_slice %531 {offsets = [0, 0], sizes = [4, 32], strides = [1, 1]} : vector<4x96xf32> to vector<4x32xf32>
    %537 = vector.extract_strided_slice %535 {offsets = [0, 0], sizes = [4, 32], strides = [1, 1]} : vector<4x96xf32> to vector<4x32xf32>
    %538 = arith.addf %536, %537 : vector<4x32xf32>
    %539 = arith.negf %538 : vector<4x32xf32>
    %540 = math.exp %539 : vector<4x32xf32>
    %cst_170 = arith.constant 1.000000e+00 : f32
    %541 = vector.broadcast %cst_170 : f32 to vector<4x32xf32>
    %542 = arith.addf %541, %540 : vector<4x32xf32>
    %543 = arith.divf %541, %542 : vector<4x32xf32>
    %544 = vector.extract_strided_slice %531 {offsets = [0, 32], sizes = [4, 32], strides = [1, 1]} : vector<4x96xf32> to vector<4x32xf32>
    %545 = vector.extract_strided_slice %535 {offsets = [0, 32], sizes = [4, 32], strides = [1, 1]} : vector<4x96xf32> to vector<4x32xf32>
    %546 = arith.addf %544, %545 : vector<4x32xf32>
    %547 = arith.negf %546 : vector<4x32xf32>
    %548 = math.exp %547 : vector<4x32xf32>
    %cst_171 = arith.constant 1.000000e+00 : f32
    %549 = vector.broadcast %cst_171 : f32 to vector<4x32xf32>
    %550 = arith.addf %549, %548 : vector<4x32xf32>
    %551 = arith.divf %549, %550 : vector<4x32xf32>
    %552 = vector.extract_strided_slice %531 {offsets = [0, 64], sizes = [4, 32], strides = [1, 1]} : vector<4x96xf32> to vector<4x32xf32>
    %553 = vector.extract_strided_slice %535 {offsets = [0, 64], sizes = [4, 32], strides = [1, 1]} : vector<4x96xf32> to vector<4x32xf32>
    %554 = arith.mulf %543, %553 : vector<4x32xf32>
    %555 = arith.addf %552, %554 : vector<4x32xf32>
    %556 = math.tanh %555 : vector<4x32xf32>
    %cst_172 = arith.constant 1.000000e+00 : f32
    %557 = vector.broadcast %cst_172 : f32 to vector<4x32xf32>
    %558 = arith.subf %557, %551 : vector<4x32xf32>
    %559 = arith.mulf %558, %556 : vector<4x32xf32>
    %560 = arith.mulf %551, %487 : vector<4x32xf32>
    %561 = arith.addf %559, %560 : vector<4x32xf32>
    %c12 = arith.constant 12 : index
    %c0_173 = arith.constant 0 : index
    %562 = vector.load %arg44[%c12, %c0_173] : memref<32x32xf32, #tpu.memory_space<vmem>>, vector<2x32xf32>
    tpu.vector_store %arg44[%c12, %c0_173], %529 {strides = array<i32>} : memref<32x32xf32, #tpu.memory_space<vmem>>, vector<2x32xf32>,
    %563 = vector.extract_strided_slice %561 {offsets = [2, 0], sizes = [2, 32], strides = [1, 1]} : vector<4x32xf32> to vector<2x32xf32>
    %c12_174 = arith.constant 12 : index
    %c0_175 = arith.constant 0 : index
    %564 = vector.load %arg45[%c12_174, %c0_175] : memref<32x32xf32, #tpu.memory_space<vmem>>, vector<2x32xf32>
    tpu.vector_store %arg45[%c12_174, %c0_175], %563 {strides = array<i32>} : memref<32x32xf32, #tpu.memory_space<vmem>>, vector<2x32xf32>,
    %c6_i32 = arith.constant 6 : i32
    %565 = vector.broadcast %c6_i32 : i32 to vector<2x1xi32>
    %566 = arith.cmpi eq, %52, %565 : vector<2x1xi32>
    %567 = vector.extract_strided_slice %561 {offsets = [0, 0], sizes = [2, 32], strides = [1, 1]} : vector<4x32xf32> to vector<2x32xf32>
    %568 = vector.shape_cast %566 : vector<2x1xi1> to vector<2x1xi1>
    %569 = vector.broadcast %568 : vector<2x1xi1> to vector<2x32xi1>
    %570 = arith.select %569, %567, %496 : vector<2x32xi1>, vector<2x32xf32>
    %c0_176 = arith.constant 0 : index
    %c7 = arith.constant 7 : index
    %c0_177 = arith.constant 0 : index
    %c0_178 = arith.constant 0 : index
    %571 = vector.load %arg1[%c0_176, %c7, %c0_177, %c0_178] : memref<2x8x2x96xf32, #tpu.memory_space<vmem>>, vector<1x1x2x96xf32>
    %572 = vector.shape_cast %571 : vector<1x1x2x96xf32> to vector<2x96xf32>
    %573 = arith.addf %572, %49 : vector<2x96xf32>
    %574 = arith.truncf %529 : vector<2x32xf32> to vector<2x32xbf16>
    %cst_179 = arith.constant dense<0.000000e+00> : vector<2x96xf32>
    %575 = tpu.matmul %574, %13, %cst_179 {dimension_numbers = #tpu.dot_dimension_numbers<[1], [0], [0], [1], [0, 0, 1, 1], [], []>} : vector<2x32xbf16>, vector<32x96xbf16>, vector<2x96xf32> -> vector<2x96xf32>
    %576 = vector.broadcast %14 : vector<1x96xf32> to vector<2x96xf32>
    %577 = arith.addf %575, %576 : vector<2x96xf32>
    %578 = vector.extract_strided_slice %573 {offsets = [0, 0], sizes = [2, 32], strides = [1, 1]} : vector<2x96xf32> to vector<2x32xf32>
    %579 = vector.extract_strided_slice %577 {offsets = [0, 0], sizes = [2, 32], strides = [1, 1]} : vector<2x96xf32> to vector<2x32xf32>
    %580 = arith.addf %578, %579 : vector<2x32xf32>
    %581 = arith.negf %580 : vector<2x32xf32>
    %582 = math.exp %581 : vector<2x32xf32>
    %cst_180 = arith.constant 1.000000e+00 : f32
    %583 = vector.broadcast %cst_180 : f32 to vector<2x32xf32>
    %584 = arith.addf %583, %582 : vector<2x32xf32>
    %585 = arith.divf %583, %584 : vector<2x32xf32>
    %586 = vector.extract_strided_slice %573 {offsets = [0, 32], sizes = [2, 32], strides = [1, 1]} : vector<2x96xf32> to vector<2x32xf32>
    %587 = vector.extract_strided_slice %577 {offsets = [0, 32], sizes = [2, 32], strides = [1, 1]} : vector<2x96xf32> to vector<2x32xf32>
    %588 = arith.addf %586, %587 : vector<2x32xf32>
    %589 = arith.negf %588 : vector<2x32xf32>
    %590 = math.exp %589 : vector<2x32xf32>
    %cst_181 = arith.constant 1.000000e+00 : f32
    %591 = vector.broadcast %cst_181 : f32 to vector<2x32xf32>
    %592 = arith.addf %591, %590 : vector<2x32xf32>
    %593 = arith.divf %591, %592 : vector<2x32xf32>
    %594 = vector.extract_strided_slice %573 {offsets = [0, 64], sizes = [2, 32], strides = [1, 1]} : vector<2x96xf32> to vector<2x32xf32>
    %595 = vector.extract_strided_slice %577 {offsets = [0, 64], sizes = [2, 32], strides = [1, 1]} : vector<2x96xf32> to vector<2x32xf32>
    %596 = arith.mulf %585, %595 : vector<2x32xf32>
    %597 = arith.addf %594, %596 : vector<2x32xf32>
    %598 = math.tanh %597 : vector<2x32xf32>
    %cst_182 = arith.constant 1.000000e+00 : f32
    %599 = vector.broadcast %cst_182 : f32 to vector<2x32xf32>
    %600 = arith.subf %599, %593 : vector<2x32xf32>
    %601 = arith.mulf %600, %598 : vector<2x32xf32>
    %602 = arith.mulf %593, %529 : vector<2x32xf32>
    %603 = arith.addf %601, %602 : vector<2x32xf32>
    %c0_183 = arith.constant 0 : index
    %c7_184 = arith.constant 7 : index
    %c0_185 = arith.constant 0 : index
    %c0_186 = arith.constant 0 : index
    %604 = vector.load %arg2[%c0_183, %c7_184, %c0_185, %c0_186] : memref<2x8x4x96xf32, #tpu.memory_space<vmem>>, vector<1x1x4x96xf32>
    %605 = vector.shape_cast %604 : vector<1x1x4x96xf32> to vector<4x96xf32>
    %606 = arith.truncf %561 : vector<4x32xf32> to vector<4x32xbf16>
    %cst_187 = arith.constant dense<0.000000e+00> : vector<4x96xf32>
    %607 = tpu.matmul %606, %15, %cst_187 {dimension_numbers = #tpu.dot_dimension_numbers<[1], [0], [0], [1], [0, 0, 1, 1], [], []>} : vector<4x32xbf16>, vector<32x96xbf16>, vector<4x96xf32> -> vector<4x96xf32>
    %608 = vector.broadcast %16 : vector<1x96xf32> to vector<4x96xf32>
    %609 = arith.addf %607, %608 : vector<4x96xf32>
    %610 = vector.extract_strided_slice %605 {offsets = [0, 0], sizes = [4, 32], strides = [1, 1]} : vector<4x96xf32> to vector<4x32xf32>
    %611 = vector.extract_strided_slice %609 {offsets = [0, 0], sizes = [4, 32], strides = [1, 1]} : vector<4x96xf32> to vector<4x32xf32>
    %612 = arith.addf %610, %611 : vector<4x32xf32>
    %613 = arith.negf %612 : vector<4x32xf32>
    %614 = math.exp %613 : vector<4x32xf32>
    %cst_188 = arith.constant 1.000000e+00 : f32
    %615 = vector.broadcast %cst_188 : f32 to vector<4x32xf32>
    %616 = arith.addf %615, %614 : vector<4x32xf32>
    %617 = arith.divf %615, %616 : vector<4x32xf32>
    %618 = vector.extract_strided_slice %605 {offsets = [0, 32], sizes = [4, 32], strides = [1, 1]} : vector<4x96xf32> to vector<4x32xf32>
    %619 = vector.extract_strided_slice %609 {offsets = [0, 32], sizes = [4, 32], strides = [1, 1]} : vector<4x96xf32> to vector<4x32xf32>
    %620 = arith.addf %618, %619 : vector<4x32xf32>
    %621 = arith.negf %620 : vector<4x32xf32>
    %622 = math.exp %621 : vector<4x32xf32>
    %cst_189 = arith.constant 1.000000e+00 : f32
    %623 = vector.broadcast %cst_189 : f32 to vector<4x32xf32>
    %624 = arith.addf %623, %622 : vector<4x32xf32>
    %625 = arith.divf %623, %624 : vector<4x32xf32>
    %626 = vector.extract_strided_slice %605 {offsets = [0, 64], sizes = [4, 32], strides = [1, 1]} : vector<4x96xf32> to vector<4x32xf32>
    %627 = vector.extract_strided_slice %609 {offsets = [0, 64], sizes = [4, 32], strides = [1, 1]} : vector<4x96xf32> to vector<4x32xf32>
    %628 = arith.mulf %617, %627 : vector<4x32xf32>
    %629 = arith.addf %626, %628 : vector<4x32xf32>
    %630 = math.tanh %629 : vector<4x32xf32>
    %cst_190 = arith.constant 1.000000e+00 : f32
    %631 = vector.broadcast %cst_190 : f32 to vector<4x32xf32>
    %632 = arith.subf %631, %625 : vector<4x32xf32>
    %633 = arith.mulf %632, %630 : vector<4x32xf32>
    %634 = arith.mulf %625, %561 : vector<4x32xf32>
    %635 = arith.addf %633, %634 : vector<4x32xf32>
    %c14 = arith.constant 14 : index
    %c0_191 = arith.constant 0 : index
    %636 = vector.load %arg44[%c14, %c0_191] : memref<32x32xf32, #tpu.memory_space<vmem>>, vector<2x32xf32>
    tpu.vector_store %arg44[%c14, %c0_191], %603 {strides = array<i32>} : memref<32x32xf32, #tpu.memory_space<vmem>>, vector<2x32xf32>,
    %637 = vector.extract_strided_slice %635 {offsets = [2, 0], sizes = [2, 32], strides = [1, 1]} : vector<4x32xf32> to vector<2x32xf32>
    %c14_192 = arith.constant 14 : index
    %c0_193 = arith.constant 0 : index
    %638 = vector.load %arg45[%c14_192, %c0_193] : memref<32x32xf32, #tpu.memory_space<vmem>>, vector<2x32xf32>
    tpu.vector_store %arg45[%c14_192, %c0_193], %637 {strides = array<i32>} : memref<32x32xf32, #tpu.memory_space<vmem>>, vector<2x32xf32>,
    %c7_i32 = arith.constant 7 : i32
    %639 = vector.broadcast %c7_i32 : i32 to vector<2x1xi32>
    %640 = arith.cmpi eq, %52, %639 : vector<2x1xi32>
    %641 = vector.extract_strided_slice %635 {offsets = [0, 0], sizes = [2, 32], strides = [1, 1]} : vector<4x32xf32> to vector<2x32xf32>
    %642 = vector.shape_cast %640 : vector<2x1xi1> to vector<2x1xi1>
    %643 = vector.broadcast %642 : vector<2x1xi1> to vector<2x32xi1>
    %644 = arith.select %643, %641, %570 : vector<2x32xi1>, vector<2x32xf32>
    %645 = arith.truncf %644 : vector<2x32xf32> to vector<2x32xbf16>
    %c0_194 = arith.constant 0 : index
    %c0_195 = arith.constant 0 : index
    %646 = vector.load %arg17[%c0_194, %c0_195] : memref<32x96xbf16, #tpu.memory_space<vmem>>, vector<32x96xbf16>
    %cst_196 = arith.constant dense<0.000000e+00> : vector<2x96xf32>
    %647 = tpu.matmul %645, %646, %cst_196 {dimension_numbers = #tpu.dot_dimension_numbers<[1], [0], [0], [1], [0, 0, 1, 1], [], []>} : vector<2x32xbf16>, vector<32x96xbf16>, vector<2x96xf32> -> vector<2x96xf32>
    %c0_197 = arith.constant 0 : index
    %c0_198 = arith.constant 0 : index
    %648 = vector.load %arg18[%c0_197, %c0_198] : memref<1x96xf32, #tpu.memory_space<vmem>>, vector<1x96xf32>
    %649 = vector.broadcast %648 : vector<1x96xf32> to vector<2x96xf32>
    %650 = arith.addf %647, %649 : vector<2x96xf32>
    %c0_199 = arith.constant 0 : index
    %c0_200 = arith.constant 0 : index
    %651 = vector.load %arg19[%c0_199, %c0_200] : memref<32x96xbf16, #tpu.memory_space<vmem>>, vector<32x96xbf16>
    %c0_201 = arith.constant 0 : index
    %c0_202 = arith.constant 0 : index
    %652 = vector.load %arg20[%c0_201, %c0_202] : memref<1x96xf32, #tpu.memory_space<vmem>>, vector<1x96xf32>
    %653 = arith.truncf %17 : vector<2x32xf32> to vector<2x32xbf16>
    %cst_203 = arith.constant dense<0.000000e+00> : vector<2x96xf32>
    %654 = tpu.matmul %653, %651, %cst_203 {dimension_numbers = #tpu.dot_dimension_numbers<[1], [0], [0], [1], [0, 0, 1, 1], [], []>} : vector<2x32xbf16>, vector<32x96xbf16>, vector<2x96xf32> -> vector<2x96xf32>
    %655 = vector.broadcast %652 : vector<1x96xf32> to vector<2x96xf32>
    %656 = arith.addf %654, %655 : vector<2x96xf32>
    %657 = vector.extract_strided_slice %650 {offsets = [0, 0], sizes = [2, 32], strides = [1, 1]} : vector<2x96xf32> to vector<2x32xf32>
    %658 = vector.extract_strided_slice %656 {offsets = [0, 0], sizes = [2, 32], strides = [1, 1]} : vector<2x96xf32> to vector<2x32xf32>
    %659 = arith.addf %657, %658 : vector<2x32xf32>
    %660 = arith.negf %659 : vector<2x32xf32>
    %661 = math.exp %660 : vector<2x32xf32>
    %cst_204 = arith.constant 1.000000e+00 : f32
    %662 = vector.broadcast %cst_204 : f32 to vector<2x32xf32>
    %663 = arith.addf %662, %661 : vector<2x32xf32>
    %664 = arith.divf %662, %663 : vector<2x32xf32>
    %665 = vector.extract_strided_slice %650 {offsets = [0, 32], sizes = [2, 32], strides = [1, 1]} : vector<2x96xf32> to vector<2x32xf32>
    %666 = vector.extract_strided_slice %656 {offsets = [0, 32], sizes = [2, 32], strides = [1, 1]} : vector<2x96xf32> to vector<2x32xf32>
    %667 = arith.addf %665, %666 : vector<2x32xf32>
    %668 = arith.negf %667 : vector<2x32xf32>
    %669 = math.exp %668 : vector<2x32xf32>
    %cst_205 = arith.constant 1.000000e+00 : f32
    %670 = vector.broadcast %cst_205 : f32 to vector<2x32xf32>
    %671 = arith.addf %670, %669 : vector<2x32xf32>
    %672 = arith.divf %670, %671 : vector<2x32xf32>
    %673 = vector.extract_strided_slice %650 {offsets = [0, 64], sizes = [2, 32], strides = [1, 1]} : vector<2x96xf32> to vector<2x32xf32>
    %674 = vector.extract_strided_slice %656 {offsets = [0, 64], sizes = [2, 32], strides = [1, 1]} : vector<2x96xf32> to vector<2x32xf32>
    %675 = arith.mulf %664, %674 : vector<2x32xf32>
    %676 = arith.addf %673, %675 : vector<2x32xf32>
    %677 = math.tanh %676 : vector<2x32xf32>
    %cst_206 = arith.constant 1.000000e+00 : f32
    %678 = vector.broadcast %cst_206 : f32 to vector<2x32xf32>
    %679 = arith.subf %678, %672 : vector<2x32xf32>
    %680 = arith.mulf %679, %677 : vector<2x32xf32>
    %681 = arith.mulf %672, %17 : vector<2x32xf32>
    %682 = arith.addf %680, %681 : vector<2x32xf32>
    %cst_207 = arith.constant dense<0.000000e+00> : vector<2x32xf32>
    %683 = tpu.matmul %682, %10, %cst_207 {dimension_numbers = #tpu.dot_dimension_numbers<[1], [0], [0], [1], [0, 0, 1, 1], [], []>} : vector<2x32xf32>, vector<32x32xf32>, vector<2x32xf32> -> vector<2x32xf32>
    %cst_208 = arith.constant dense<0.000000e+00> : vector<14x32xf32>
    %684 = tpu.matmul %11, %683, %cst_208 {dimension_numbers = #tpu.dot_dimension_numbers<[1], [0], [0], [1], [0, 0, 1, 1], [], []>} : vector<14x2xf32>, vector<2x32xf32>, vector<14x32xf32> -> vector<14x32xf32>
    %685 = arith.addf %9, %684 : vector<14x32xf32>
    %c0_209 = arith.constant 0 : index
    %c0_210 = arith.constant 0 : index
    %686 = vector.load %arg24[%c0_209, %c0_210] : memref<1x32xf32, #tpu.memory_space<vmem>>, vector<1x32xf32>
    %687 = vector.broadcast %686 : vector<1x32xf32> to vector<14x32xf32>
    %688 = arith.addf %685, %687 : vector<14x32xf32>
    %689 = math.tanh %688 : vector<14x32xf32>
    %c0_211 = arith.constant 0 : index
    %c0_212 = arith.constant 0 : index
    %690 = vector.load %arg25[%c0_211, %c0_212] : memref<32x32xf32, #tpu.memory_space<vmem>>, vector<32x32xf32>
    %cst_213 = arith.constant dense<0.000000e+00> : vector<14x32xf32>
    %691 = tpu.matmul %689, %690, %cst_213 {dimension_numbers = #tpu.dot_dimension_numbers<[1], [0], [0], [1], [0, 0, 1, 1], [], []>} : vector<14x32xf32>, vector<32x32xf32>, vector<14x32xf32> -> vector<14x32xf32>
    %c0_214 = arith.constant 0 : index
    %c0_215 = arith.constant 0 : index
    %692 = vector.load %arg26[%c0_214, %c0_215] : memref<1x32xf32, #tpu.memory_space<vmem>>, vector<1x32xf32>
    %693 = vector.broadcast %692 : vector<1x32xf32> to vector<14x32xf32>
    %694 = arith.addf %691, %693 : vector<14x32xf32>
    %695 = math.tanh %694 : vector<14x32xf32>
    %c0_216 = arith.constant 0 : index
    %c0_217 = arith.constant 0 : index
    %696 = vector.load %arg27[%c0_216, %c0_217] : memref<32x1xf32, #tpu.memory_space<vmem>>, vector<32x1xf32>
    %cst_218 = arith.constant dense<0.000000e+00> : vector<14x1xf32>
    %697 = tpu.matmul %695, %696, %cst_218 {dimension_numbers = #tpu.dot_dimension_numbers<[1], [0], [0], [1], [0, 0, 1, 1], [], []>} : vector<14x32xf32>, vector<32x1xf32>, vector<14x1xf32> -> vector<14x1xf32>
    %c0_219 = arith.constant 0 : index
    %c0_220 = arith.constant 0 : index
    %698 = vector.load %arg28[%c0_219, %c0_220] : memref<1x1xf32, #tpu.memory_space<vmem>>, vector<1x1xf32>
    %699 = vector.broadcast %698 : vector<1x1xf32> to vector<14x1xf32>
    %700 = arith.addf %697, %699 : vector<14x1xf32>
    %cst_221 = arith.constant dense<0xFF800000> : vector<1xf32>
    %701 = vector.multi_reduction <maximumf>, %700, %cst_221 [0] : vector<14x1xf32> to vector<1xf32>
    %702 = vector.shape_cast %701 : vector<1xf32> to vector<1x1xf32>
    %703 = vector.broadcast %702 : vector<1x1xf32> to vector<14x1xf32>
    %704 = arith.subf %700, %703 : vector<14x1xf32>
    %705 = math.exp %704 : vector<14x1xf32>
    %cst_222 = arith.constant dense<0.000000e+00> : vector<2x1xf32>
    %706 = tpu.matmul %12, %705, %cst_222 {dimension_numbers = #tpu.dot_dimension_numbers<[1], [0], [0], [1], [0, 0, 1, 1], [], []>} : vector<2x14xf32>, vector<14x1xf32>, vector<2x1xf32> -> vector<2x1xf32>
    %cst_223 = arith.constant dense<0.000000e+00> : vector<14x1xf32>
    %707 = tpu.matmul %11, %706, %cst_223 {dimension_numbers = #tpu.dot_dimension_numbers<[1], [0], [0], [1], [0, 0, 1, 1], [], []>} : vector<14x2xf32>, vector<2x1xf32>, vector<14x1xf32> -> vector<14x1xf32>
    %708 = tpu.reciprocal %707 {approx = true} : vector<14x1xf32> -> vector<14x1xf32>
    %709 = arith.mulf %705, %708 : vector<14x1xf32>
    %710 = vector.broadcast %709 : vector<14x1xf32> to vector<14x32xf32>
    %711 = arith.mulf %710, %6 : vector<14x32xf32>
    %cst_224 = arith.constant dense<0.000000e+00> : vector<2x32xf32>
    %712 = tpu.matmul %12, %711, %cst_224 {dimension_numbers = #tpu.dot_dimension_numbers<[1], [0], [0], [1], [0, 0, 1, 1], [], []>} : vector<2x14xf32>, vector<14x32xf32>, vector<2x32xf32> -> vector<2x32xf32>
    %c0_225 = arith.constant 0 : index
    %c0_226 = arith.constant 0 : index
    %713 = vector.load %arg12[%c0_225, %c0_226] : memref<32x96xf32, #tpu.memory_space<vmem>>, vector<32x96xf32>
    %cst_227 = arith.constant dense<0.000000e+00> : vector<2x96xf32>
    %714 = tpu.matmul %712, %713, %cst_227 {dimension_numbers = #tpu.dot_dimension_numbers<[1], [0], [0], [1], [0, 0, 1, 1], [], []>} : vector<2x32xf32>, vector<32x96xf32>, vector<2x96xf32> -> vector<2x96xf32>
    %715 = tpu.concatenate %17, %682 in 0 : vector<2x32xf32>, vector<2x32xf32> -> vector<4x32xf32>
    %c1_228 = arith.constant 1 : index
    %c0_229 = arith.constant 0 : index
    %c0_230 = arith.constant 0 : index
    %716 = vector.load %arg3[%c1_228, %c0_229, %c0_230] : memref<2x2x1xi32, #tpu.memory_space<vmem>>, vector<1x2x1xi32>
    %717 = vector.shape_cast %716 : vector<1x2x1xi32> to vector<2x1xi32>
    %c1_231 = arith.constant 1 : index
    %c0_232 = arith.constant 0 : index
    %c0_233 = arith.constant 0 : index
    %c0_234 = arith.constant 0 : index
    %718 = vector.load %arg1[%c1_231, %c0_232, %c0_233, %c0_234] : memref<2x8x2x96xf32, #tpu.memory_space<vmem>>, vector<1x1x2x96xf32>
    %719 = vector.shape_cast %718 : vector<1x1x2x96xf32> to vector<2x96xf32>
    %720 = arith.addf %719, %714 : vector<2x96xf32>
    %721 = arith.truncf %682 : vector<2x32xf32> to vector<2x32xbf16>
    %cst_235 = arith.constant dense<0.000000e+00> : vector<2x96xf32>
    %722 = tpu.matmul %721, %13, %cst_235 {dimension_numbers = #tpu.dot_dimension_numbers<[1], [0], [0], [1], [0, 0, 1, 1], [], []>} : vector<2x32xbf16>, vector<32x96xbf16>, vector<2x96xf32> -> vector<2x96xf32>
    %723 = vector.broadcast %14 : vector<1x96xf32> to vector<2x96xf32>
    %724 = arith.addf %722, %723 : vector<2x96xf32>
    %725 = vector.extract_strided_slice %720 {offsets = [0, 0], sizes = [2, 32], strides = [1, 1]} : vector<2x96xf32> to vector<2x32xf32>
    %726 = vector.extract_strided_slice %724 {offsets = [0, 0], sizes = [2, 32], strides = [1, 1]} : vector<2x96xf32> to vector<2x32xf32>
    %727 = arith.addf %725, %726 : vector<2x32xf32>
    %728 = arith.negf %727 : vector<2x32xf32>
    %729 = math.exp %728 : vector<2x32xf32>
    %cst_236 = arith.constant 1.000000e+00 : f32
    %730 = vector.broadcast %cst_236 : f32 to vector<2x32xf32>
    %731 = arith.addf %730, %729 : vector<2x32xf32>
    %732 = arith.divf %730, %731 : vector<2x32xf32>
    %733 = vector.extract_strided_slice %720 {offsets = [0, 32], sizes = [2, 32], strides = [1, 1]} : vector<2x96xf32> to vector<2x32xf32>
    %734 = vector.extract_strided_slice %724 {offsets = [0, 32], sizes = [2, 32], strides = [1, 1]} : vector<2x96xf32> to vector<2x32xf32>
    %735 = arith.addf %733, %734 : vector<2x32xf32>
    %736 = arith.negf %735 : vector<2x32xf32>
    %737 = math.exp %736 : vector<2x32xf32>
    %cst_237 = arith.constant 1.000000e+00 : f32
    %738 = vector.broadcast %cst_237 : f32 to vector<2x32xf32>
    %739 = arith.addf %738, %737 : vector<2x32xf32>
    %740 = arith.divf %738, %739 : vector<2x32xf32>
    %741 = vector.extract_strided_slice %720 {offsets = [0, 64], sizes = [2, 32], strides = [1, 1]} : vector<2x96xf32> to vector<2x32xf32>
    %742 = vector.extract_strided_slice %724 {offsets = [0, 64], sizes = [2, 32], strides = [1, 1]} : vector<2x96xf32> to vector<2x32xf32>
    %743 = arith.mulf %732, %742 : vector<2x32xf32>
    %744 = arith.addf %741, %743 : vector<2x32xf32>
    %745 = math.tanh %744 : vector<2x32xf32>
    %cst_238 = arith.constant 1.000000e+00 : f32
    %746 = vector.broadcast %cst_238 : f32 to vector<2x32xf32>
    %747 = arith.subf %746, %740 : vector<2x32xf32>
    %748 = arith.mulf %747, %745 : vector<2x32xf32>
    %749 = arith.mulf %740, %682 : vector<2x32xf32>
    %750 = arith.addf %748, %749 : vector<2x32xf32>
    %c1_239 = arith.constant 1 : index
    %c0_240 = arith.constant 0 : index
    %c0_241 = arith.constant 0 : index
    %c0_242 = arith.constant 0 : index
    %751 = vector.load %arg2[%c1_239, %c0_240, %c0_241, %c0_242] : memref<2x8x4x96xf32, #tpu.memory_space<vmem>>, vector<1x1x4x96xf32>
    %752 = vector.shape_cast %751 : vector<1x1x4x96xf32> to vector<4x96xf32>
    %753 = arith.truncf %715 : vector<4x32xf32> to vector<4x32xbf16>
    %cst_243 = arith.constant dense<0.000000e+00> : vector<4x96xf32>
    %754 = tpu.matmul %753, %15, %cst_243 {dimension_numbers = #tpu.dot_dimension_numbers<[1], [0], [0], [1], [0, 0, 1, 1], [], []>} : vector<4x32xbf16>, vector<32x96xbf16>, vector<4x96xf32> -> vector<4x96xf32>
    %755 = vector.broadcast %16 : vector<1x96xf32> to vector<4x96xf32>
    %756 = arith.addf %754, %755 : vector<4x96xf32>
    %757 = vector.extract_strided_slice %752 {offsets = [0, 0], sizes = [4, 32], strides = [1, 1]} : vector<4x96xf32> to vector<4x32xf32>
    %758 = vector.extract_strided_slice %756 {offsets = [0, 0], sizes = [4, 32], strides = [1, 1]} : vector<4x96xf32> to vector<4x32xf32>
    %759 = arith.addf %757, %758 : vector<4x32xf32>
    %760 = arith.negf %759 : vector<4x32xf32>
    %761 = math.exp %760 : vector<4x32xf32>
    %cst_244 = arith.constant 1.000000e+00 : f32
    %762 = vector.broadcast %cst_244 : f32 to vector<4x32xf32>
    %763 = arith.addf %762, %761 : vector<4x32xf32>
    %764 = arith.divf %762, %763 : vector<4x32xf32>
    %765 = vector.extract_strided_slice %752 {offsets = [0, 32], sizes = [4, 32], strides = [1, 1]} : vector<4x96xf32> to vector<4x32xf32>
    %766 = vector.extract_strided_slice %756 {offsets = [0, 32], sizes = [4, 32], strides = [1, 1]} : vector<4x96xf32> to vector<4x32xf32>
    %767 = arith.addf %765, %766 : vector<4x32xf32>
    %768 = arith.negf %767 : vector<4x32xf32>
    %769 = math.exp %768 : vector<4x32xf32>
    %cst_245 = arith.constant 1.000000e+00 : f32
    %770 = vector.broadcast %cst_245 : f32 to vector<4x32xf32>
    %771 = arith.addf %770, %769 : vector<4x32xf32>
    %772 = arith.divf %770, %771 : vector<4x32xf32>
    %773 = vector.extract_strided_slice %752 {offsets = [0, 64], sizes = [4, 32], strides = [1, 1]} : vector<4x96xf32> to vector<4x32xf32>
    %774 = vector.extract_strided_slice %756 {offsets = [0, 64], sizes = [4, 32], strides = [1, 1]} : vector<4x96xf32> to vector<4x32xf32>
    %775 = arith.mulf %764, %774 : vector<4x32xf32>
    %776 = arith.addf %773, %775 : vector<4x32xf32>
    %777 = math.tanh %776 : vector<4x32xf32>
    %cst_246 = arith.constant 1.000000e+00 : f32
    %778 = vector.broadcast %cst_246 : f32 to vector<4x32xf32>
    %779 = arith.subf %778, %772 : vector<4x32xf32>
    %780 = arith.mulf %779, %777 : vector<4x32xf32>
    %781 = arith.mulf %772, %715 : vector<4x32xf32>
    %782 = arith.addf %780, %781 : vector<4x32xf32>
    %c16 = arith.constant 16 : index
    %c0_247 = arith.constant 0 : index
    %783 = vector.load %arg44[%c16, %c0_247] : memref<32x32xf32, #tpu.memory_space<vmem>>, vector<2x32xf32>
    tpu.vector_store %arg44[%c16, %c0_247], %750 {strides = array<i32>} : memref<32x32xf32, #tpu.memory_space<vmem>>, vector<2x32xf32>,
    %784 = vector.extract_strided_slice %782 {offsets = [2, 0], sizes = [2, 32], strides = [1, 1]} : vector<4x32xf32> to vector<2x32xf32>
    %c16_248 = arith.constant 16 : index
    %c0_249 = arith.constant 0 : index
    %785 = vector.load %arg45[%c16_248, %c0_249] : memref<32x32xf32, #tpu.memory_space<vmem>>, vector<2x32xf32>
    tpu.vector_store %arg45[%c16_248, %c0_249], %784 {strides = array<i32>} : memref<32x32xf32, #tpu.memory_space<vmem>>, vector<2x32xf32>,
    %c0_i32_250 = arith.constant 0 : i32
    %786 = vector.broadcast %c0_i32_250 : i32 to vector<2x1xi32>
    %787 = arith.cmpi eq, %717, %786 : vector<2x1xi32>
    %788 = vector.extract_strided_slice %782 {offsets = [0, 0], sizes = [2, 32], strides = [1, 1]} : vector<4x32xf32> to vector<2x32xf32>
    %789 = vector.shape_cast %787 : vector<2x1xi1> to vector<2x1xi1>
    %790 = vector.broadcast %789 : vector<2x1xi1> to vector<2x32xi1>
    %791 = arith.select %790, %788, %17 : vector<2x32xi1>, vector<2x32xf32>
    %c1_251 = arith.constant 1 : index
    %c1_252 = arith.constant 1 : index
    %c0_253 = arith.constant 0 : index
    %c0_254 = arith.constant 0 : index
    %792 = vector.load %arg1[%c1_251, %c1_252, %c0_253, %c0_254] : memref<2x8x2x96xf32, #tpu.memory_space<vmem>>, vector<1x1x2x96xf32>
    %793 = vector.shape_cast %792 : vector<1x1x2x96xf32> to vector<2x96xf32>
    %794 = arith.addf %793, %714 : vector<2x96xf32>
    %795 = arith.truncf %750 : vector<2x32xf32> to vector<2x32xbf16>
    %cst_255 = arith.constant dense<0.000000e+00> : vector<2x96xf32>
    %796 = tpu.matmul %795, %13, %cst_255 {dimension_numbers = #tpu.dot_dimension_numbers<[1], [0], [0], [1], [0, 0, 1, 1], [], []>} : vector<2x32xbf16>, vector<32x96xbf16>, vector<2x96xf32> -> vector<2x96xf32>
    %797 = vector.broadcast %14 : vector<1x96xf32> to vector<2x96xf32>
    %798 = arith.addf %796, %797 : vector<2x96xf32>
    %799 = vector.extract_strided_slice %794 {offsets = [0, 0], sizes = [2, 32], strides = [1, 1]} : vector<2x96xf32> to vector<2x32xf32>
    %800 = vector.extract_strided_slice %798 {offsets = [0, 0], sizes = [2, 32], strides = [1, 1]} : vector<2x96xf32> to vector<2x32xf32>
    %801 = arith.addf %799, %800 : vector<2x32xf32>
    %802 = arith.negf %801 : vector<2x32xf32>
    %803 = math.exp %802 : vector<2x32xf32>
    %cst_256 = arith.constant 1.000000e+00 : f32
    %804 = vector.broadcast %cst_256 : f32 to vector<2x32xf32>
    %805 = arith.addf %804, %803 : vector<2x32xf32>
    %806 = arith.divf %804, %805 : vector<2x32xf32>
    %807 = vector.extract_strided_slice %794 {offsets = [0, 32], sizes = [2, 32], strides = [1, 1]} : vector<2x96xf32> to vector<2x32xf32>
    %808 = vector.extract_strided_slice %798 {offsets = [0, 32], sizes = [2, 32], strides = [1, 1]} : vector<2x96xf32> to vector<2x32xf32>
    %809 = arith.addf %807, %808 : vector<2x32xf32>
    %810 = arith.negf %809 : vector<2x32xf32>
    %811 = math.exp %810 : vector<2x32xf32>
    %cst_257 = arith.constant 1.000000e+00 : f32
    %812 = vector.broadcast %cst_257 : f32 to vector<2x32xf32>
    %813 = arith.addf %812, %811 : vector<2x32xf32>
    %814 = arith.divf %812, %813 : vector<2x32xf32>
    %815 = vector.extract_strided_slice %794 {offsets = [0, 64], sizes = [2, 32], strides = [1, 1]} : vector<2x96xf32> to vector<2x32xf32>
    %816 = vector.extract_strided_slice %798 {offsets = [0, 64], sizes = [2, 32], strides = [1, 1]} : vector<2x96xf32> to vector<2x32xf32>
    %817 = arith.mulf %806, %816 : vector<2x32xf32>
    %818 = arith.addf %815, %817 : vector<2x32xf32>
    %819 = math.tanh %818 : vector<2x32xf32>
    %cst_258 = arith.constant 1.000000e+00 : f32
    %820 = vector.broadcast %cst_258 : f32 to vector<2x32xf32>
    %821 = arith.subf %820, %814 : vector<2x32xf32>
    %822 = arith.mulf %821, %819 : vector<2x32xf32>
    %823 = arith.mulf %814, %750 : vector<2x32xf32>
    %824 = arith.addf %822, %823 : vector<2x32xf32>
    %c1_259 = arith.constant 1 : index
    %c1_260 = arith.constant 1 : index
    %c0_261 = arith.constant 0 : index
    %c0_262 = arith.constant 0 : index
    %825 = vector.load %arg2[%c1_259, %c1_260, %c0_261, %c0_262] : memref<2x8x4x96xf32, #tpu.memory_space<vmem>>, vector<1x1x4x96xf32>
    %826 = vector.shape_cast %825 : vector<1x1x4x96xf32> to vector<4x96xf32>
    %827 = arith.truncf %782 : vector<4x32xf32> to vector<4x32xbf16>
    %cst_263 = arith.constant dense<0.000000e+00> : vector<4x96xf32>
    %828 = tpu.matmul %827, %15, %cst_263 {dimension_numbers = #tpu.dot_dimension_numbers<[1], [0], [0], [1], [0, 0, 1, 1], [], []>} : vector<4x32xbf16>, vector<32x96xbf16>, vector<4x96xf32> -> vector<4x96xf32>
    %829 = vector.broadcast %16 : vector<1x96xf32> to vector<4x96xf32>
    %830 = arith.addf %828, %829 : vector<4x96xf32>
    %831 = vector.extract_strided_slice %826 {offsets = [0, 0], sizes = [4, 32], strides = [1, 1]} : vector<4x96xf32> to vector<4x32xf32>
    %832 = vector.extract_strided_slice %830 {offsets = [0, 0], sizes = [4, 32], strides = [1, 1]} : vector<4x96xf32> to vector<4x32xf32>
    %833 = arith.addf %831, %832 : vector<4x32xf32>
    %834 = arith.negf %833 : vector<4x32xf32>
    %835 = math.exp %834 : vector<4x32xf32>
    %cst_264 = arith.constant 1.000000e+00 : f32
    %836 = vector.broadcast %cst_264 : f32 to vector<4x32xf32>
    %837 = arith.addf %836, %835 : vector<4x32xf32>
    %838 = arith.divf %836, %837 : vector<4x32xf32>
    %839 = vector.extract_strided_slice %826 {offsets = [0, 32], sizes = [4, 32], strides = [1, 1]} : vector<4x96xf32> to vector<4x32xf32>
    %840 = vector.extract_strided_slice %830 {offsets = [0, 32], sizes = [4, 32], strides = [1, 1]} : vector<4x96xf32> to vector<4x32xf32>
    %841 = arith.addf %839, %840 : vector<4x32xf32>
    %842 = arith.negf %841 : vector<4x32xf32>
    %843 = math.exp %842 : vector<4x32xf32>
    %cst_265 = arith.constant 1.000000e+00 : f32
    %844 = vector.broadcast %cst_265 : f32 to vector<4x32xf32>
    %845 = arith.addf %844, %843 : vector<4x32xf32>
    %846 = arith.divf %844, %845 : vector<4x32xf32>
    %847 = vector.extract_strided_slice %826 {offsets = [0, 64], sizes = [4, 32], strides = [1, 1]} : vector<4x96xf32> to vector<4x32xf32>
    %848 = vector.extract_strided_slice %830 {offsets = [0, 64], sizes = [4, 32], strides = [1, 1]} : vector<4x96xf32> to vector<4x32xf32>
    %849 = arith.mulf %838, %848 : vector<4x32xf32>
    %850 = arith.addf %847, %849 : vector<4x32xf32>
    %851 = math.tanh %850 : vector<4x32xf32>
    %cst_266 = arith.constant 1.000000e+00 : f32
    %852 = vector.broadcast %cst_266 : f32 to vector<4x32xf32>
    %853 = arith.subf %852, %846 : vector<4x32xf32>
    %854 = arith.mulf %853, %851 : vector<4x32xf32>
    %855 = arith.mulf %846, %782 : vector<4x32xf32>
    %856 = arith.addf %854, %855 : vector<4x32xf32>
    %c18 = arith.constant 18 : index
    %c0_267 = arith.constant 0 : index
    %857 = vector.load %arg44[%c18, %c0_267] : memref<32x32xf32, #tpu.memory_space<vmem>>, vector<2x32xf32>
    tpu.vector_store %arg44[%c18, %c0_267], %824 {strides = array<i32>} : memref<32x32xf32, #tpu.memory_space<vmem>>, vector<2x32xf32>,
    %858 = vector.extract_strided_slice %856 {offsets = [2, 0], sizes = [2, 32], strides = [1, 1]} : vector<4x32xf32> to vector<2x32xf32>
    %c18_268 = arith.constant 18 : index
    %c0_269 = arith.constant 0 : index
    %859 = vector.load %arg45[%c18_268, %c0_269] : memref<32x32xf32, #tpu.memory_space<vmem>>, vector<2x32xf32>
    tpu.vector_store %arg45[%c18_268, %c0_269], %858 {strides = array<i32>} : memref<32x32xf32, #tpu.memory_space<vmem>>, vector<2x32xf32>,
    %c1_i32_270 = arith.constant 1 : i32
    %860 = vector.broadcast %c1_i32_270 : i32 to vector<2x1xi32>
    %861 = arith.cmpi eq, %717, %860 : vector<2x1xi32>
    %862 = vector.extract_strided_slice %856 {offsets = [0, 0], sizes = [2, 32], strides = [1, 1]} : vector<4x32xf32> to vector<2x32xf32>
    %863 = vector.shape_cast %861 : vector<2x1xi1> to vector<2x1xi1>
    %864 = vector.broadcast %863 : vector<2x1xi1> to vector<2x32xi1>
    %865 = arith.select %864, %862, %791 : vector<2x32xi1>, vector<2x32xf32>
    %c1_271 = arith.constant 1 : index
    %c2_272 = arith.constant 2 : index
    %c0_273 = arith.constant 0 : index
    %c0_274 = arith.constant 0 : index
    %866 = vector.load %arg1[%c1_271, %c2_272, %c0_273, %c0_274] : memref<2x8x2x96xf32, #tpu.memory_space<vmem>>, vector<1x1x2x96xf32>
    %867 = vector.shape_cast %866 : vector<1x1x2x96xf32> to vector<2x96xf32>
    %868 = arith.addf %867, %714 : vector<2x96xf32>
    %869 = arith.truncf %824 : vector<2x32xf32> to vector<2x32xbf16>
    %cst_275 = arith.constant dense<0.000000e+00> : vector<2x96xf32>
    %870 = tpu.matmul %869, %13, %cst_275 {dimension_numbers = #tpu.dot_dimension_numbers<[1], [0], [0], [1], [0, 0, 1, 1], [], []>} : vector<2x32xbf16>, vector<32x96xbf16>, vector<2x96xf32> -> vector<2x96xf32>
    %871 = vector.broadcast %14 : vector<1x96xf32> to vector<2x96xf32>
    %872 = arith.addf %870, %871 : vector<2x96xf32>
    %873 = vector.extract_strided_slice %868 {offsets = [0, 0], sizes = [2, 32], strides = [1, 1]} : vector<2x96xf32> to vector<2x32xf32>
    %874 = vector.extract_strided_slice %872 {offsets = [0, 0], sizes = [2, 32], strides = [1, 1]} : vector<2x96xf32> to vector<2x32xf32>
    %875 = arith.addf %873, %874 : vector<2x32xf32>
    %876 = arith.negf %875 : vector<2x32xf32>
    %877 = math.exp %876 : vector<2x32xf32>
    %cst_276 = arith.constant 1.000000e+00 : f32
    %878 = vector.broadcast %cst_276 : f32 to vector<2x32xf32>
    %879 = arith.addf %878, %877 : vector<2x32xf32>
    %880 = arith.divf %878, %879 : vector<2x32xf32>
    %881 = vector.extract_strided_slice %868 {offsets = [0, 32], sizes = [2, 32], strides = [1, 1]} : vector<2x96xf32> to vector<2x32xf32>
    %882 = vector.extract_strided_slice %872 {offsets = [0, 32], sizes = [2, 32], strides = [1, 1]} : vector<2x96xf32> to vector<2x32xf32>
    %883 = arith.addf %881, %882 : vector<2x32xf32>
    %884 = arith.negf %883 : vector<2x32xf32>
    %885 = math.exp %884 : vector<2x32xf32>
    %cst_277 = arith.constant 1.000000e+00 : f32
    %886 = vector.broadcast %cst_277 : f32 to vector<2x32xf32>
    %887 = arith.addf %886, %885 : vector<2x32xf32>
    %888 = arith.divf %886, %887 : vector<2x32xf32>
    %889 = vector.extract_strided_slice %868 {offsets = [0, 64], sizes = [2, 32], strides = [1, 1]} : vector<2x96xf32> to vector<2x32xf32>
    %890 = vector.extract_strided_slice %872 {offsets = [0, 64], sizes = [2, 32], strides = [1, 1]} : vector<2x96xf32> to vector<2x32xf32>
    %891 = arith.mulf %880, %890 : vector<2x32xf32>
    %892 = arith.addf %889, %891 : vector<2x32xf32>
    %893 = math.tanh %892 : vector<2x32xf32>
    %cst_278 = arith.constant 1.000000e+00 : f32
    %894 = vector.broadcast %cst_278 : f32 to vector<2x32xf32>
    %895 = arith.subf %894, %888 : vector<2x32xf32>
    %896 = arith.mulf %895, %893 : vector<2x32xf32>
    %897 = arith.mulf %888, %824 : vector<2x32xf32>
    %898 = arith.addf %896, %897 : vector<2x32xf32>
    %c1_279 = arith.constant 1 : index
    %c2_280 = arith.constant 2 : index
    %c0_281 = arith.constant 0 : index
    %c0_282 = arith.constant 0 : index
    %899 = vector.load %arg2[%c1_279, %c2_280, %c0_281, %c0_282] : memref<2x8x4x96xf32, #tpu.memory_space<vmem>>, vector<1x1x4x96xf32>
    %900 = vector.shape_cast %899 : vector<1x1x4x96xf32> to vector<4x96xf32>
    %901 = arith.truncf %856 : vector<4x32xf32> to vector<4x32xbf16>
    %cst_283 = arith.constant dense<0.000000e+00> : vector<4x96xf32>
    %902 = tpu.matmul %901, %15, %cst_283 {dimension_numbers = #tpu.dot_dimension_numbers<[1], [0], [0], [1], [0, 0, 1, 1], [], []>} : vector<4x32xbf16>, vector<32x96xbf16>, vector<4x96xf32> -> vector<4x96xf32>
    %903 = vector.broadcast %16 : vector<1x96xf32> to vector<4x96xf32>
    %904 = arith.addf %902, %903 : vector<4x96xf32>
    %905 = vector.extract_strided_slice %900 {offsets = [0, 0], sizes = [4, 32], strides = [1, 1]} : vector<4x96xf32> to vector<4x32xf32>
    %906 = vector.extract_strided_slice %904 {offsets = [0, 0], sizes = [4, 32], strides = [1, 1]} : vector<4x96xf32> to vector<4x32xf32>
    %907 = arith.addf %905, %906 : vector<4x32xf32>
    %908 = arith.negf %907 : vector<4x32xf32>
    %909 = math.exp %908 : vector<4x32xf32>
    %cst_284 = arith.constant 1.000000e+00 : f32
    %910 = vector.broadcast %cst_284 : f32 to vector<4x32xf32>
    %911 = arith.addf %910, %909 : vector<4x32xf32>
    %912 = arith.divf %910, %911 : vector<4x32xf32>
    %913 = vector.extract_strided_slice %900 {offsets = [0, 32], sizes = [4, 32], strides = [1, 1]} : vector<4x96xf32> to vector<4x32xf32>
    %914 = vector.extract_strided_slice %904 {offsets = [0, 32], sizes = [4, 32], strides = [1, 1]} : vector<4x96xf32> to vector<4x32xf32>
    %915 = arith.addf %913, %914 : vector<4x32xf32>
    %916 = arith.negf %915 : vector<4x32xf32>
    %917 = math.exp %916 : vector<4x32xf32>
    %cst_285 = arith.constant 1.000000e+00 : f32
    %918 = vector.broadcast %cst_285 : f32 to vector<4x32xf32>
    %919 = arith.addf %918, %917 : vector<4x32xf32>
    %920 = arith.divf %918, %919 : vector<4x32xf32>
    %921 = vector.extract_strided_slice %900 {offsets = [0, 64], sizes = [4, 32], strides = [1, 1]} : vector<4x96xf32> to vector<4x32xf32>
    %922 = vector.extract_strided_slice %904 {offsets = [0, 64], sizes = [4, 32], strides = [1, 1]} : vector<4x96xf32> to vector<4x32xf32>
    %923 = arith.mulf %912, %922 : vector<4x32xf32>
    %924 = arith.addf %921, %923 : vector<4x32xf32>
    %925 = math.tanh %924 : vector<4x32xf32>
    %cst_286 = arith.constant 1.000000e+00 : f32
    %926 = vector.broadcast %cst_286 : f32 to vector<4x32xf32>
    %927 = arith.subf %926, %920 : vector<4x32xf32>
    %928 = arith.mulf %927, %925 : vector<4x32xf32>
    %929 = arith.mulf %920, %856 : vector<4x32xf32>
    %930 = arith.addf %928, %929 : vector<4x32xf32>
    %c20 = arith.constant 20 : index
    %c0_287 = arith.constant 0 : index
    %931 = vector.load %arg44[%c20, %c0_287] : memref<32x32xf32, #tpu.memory_space<vmem>>, vector<2x32xf32>
    tpu.vector_store %arg44[%c20, %c0_287], %898 {strides = array<i32>} : memref<32x32xf32, #tpu.memory_space<vmem>>, vector<2x32xf32>,
    %932 = vector.extract_strided_slice %930 {offsets = [2, 0], sizes = [2, 32], strides = [1, 1]} : vector<4x32xf32> to vector<2x32xf32>
    %c20_288 = arith.constant 20 : index
    %c0_289 = arith.constant 0 : index
    %933 = vector.load %arg45[%c20_288, %c0_289] : memref<32x32xf32, #tpu.memory_space<vmem>>, vector<2x32xf32>
    tpu.vector_store %arg45[%c20_288, %c0_289], %932 {strides = array<i32>} : memref<32x32xf32, #tpu.memory_space<vmem>>, vector<2x32xf32>,
    %c2_i32_290 = arith.constant 2 : i32
    %934 = vector.broadcast %c2_i32_290 : i32 to vector<2x1xi32>
    %935 = arith.cmpi eq, %717, %934 : vector<2x1xi32>
    %936 = vector.extract_strided_slice %930 {offsets = [0, 0], sizes = [2, 32], strides = [1, 1]} : vector<4x32xf32> to vector<2x32xf32>
    %937 = vector.shape_cast %935 : vector<2x1xi1> to vector<2x1xi1>
    %938 = vector.broadcast %937 : vector<2x1xi1> to vector<2x32xi1>
    %939 = arith.select %938, %936, %865 : vector<2x32xi1>, vector<2x32xf32>
    %c1_291 = arith.constant 1 : index
    %c3_292 = arith.constant 3 : index
    %c0_293 = arith.constant 0 : index
    %c0_294 = arith.constant 0 : index
    %940 = vector.load %arg1[%c1_291, %c3_292, %c0_293, %c0_294] : memref<2x8x2x96xf32, #tpu.memory_space<vmem>>, vector<1x1x2x96xf32>
    %941 = vector.shape_cast %940 : vector<1x1x2x96xf32> to vector<2x96xf32>
    %942 = arith.addf %941, %714 : vector<2x96xf32>
    %943 = arith.truncf %898 : vector<2x32xf32> to vector<2x32xbf16>
    %cst_295 = arith.constant dense<0.000000e+00> : vector<2x96xf32>
    %944 = tpu.matmul %943, %13, %cst_295 {dimension_numbers = #tpu.dot_dimension_numbers<[1], [0], [0], [1], [0, 0, 1, 1], [], []>} : vector<2x32xbf16>, vector<32x96xbf16>, vector<2x96xf32> -> vector<2x96xf32>
    %945 = vector.broadcast %14 : vector<1x96xf32> to vector<2x96xf32>
    %946 = arith.addf %944, %945 : vector<2x96xf32>
    %947 = vector.extract_strided_slice %942 {offsets = [0, 0], sizes = [2, 32], strides = [1, 1]} : vector<2x96xf32> to vector<2x32xf32>
    %948 = vector.extract_strided_slice %946 {offsets = [0, 0], sizes = [2, 32], strides = [1, 1]} : vector<2x96xf32> to vector<2x32xf32>
    %949 = arith.addf %947, %948 : vector<2x32xf32>
    %950 = arith.negf %949 : vector<2x32xf32>
    %951 = math.exp %950 : vector<2x32xf32>
    %cst_296 = arith.constant 1.000000e+00 : f32
    %952 = vector.broadcast %cst_296 : f32 to vector<2x32xf32>
    %953 = arith.addf %952, %951 : vector<2x32xf32>
    %954 = arith.divf %952, %953 : vector<2x32xf32>
    %955 = vector.extract_strided_slice %942 {offsets = [0, 32], sizes = [2, 32], strides = [1, 1]} : vector<2x96xf32> to vector<2x32xf32>
    %956 = vector.extract_strided_slice %946 {offsets = [0, 32], sizes = [2, 32], strides = [1, 1]} : vector<2x96xf32> to vector<2x32xf32>
    %957 = arith.addf %955, %956 : vector<2x32xf32>
    %958 = arith.negf %957 : vector<2x32xf32>
    %959 = math.exp %958 : vector<2x32xf32>
    %cst_297 = arith.constant 1.000000e+00 : f32
    %960 = vector.broadcast %cst_297 : f32 to vector<2x32xf32>
    %961 = arith.addf %960, %959 : vector<2x32xf32>
    %962 = arith.divf %960, %961 : vector<2x32xf32>
    %963 = vector.extract_strided_slice %942 {offsets = [0, 64], sizes = [2, 32], strides = [1, 1]} : vector<2x96xf32> to vector<2x32xf32>
    %964 = vector.extract_strided_slice %946 {offsets = [0, 64], sizes = [2, 32], strides = [1, 1]} : vector<2x96xf32> to vector<2x32xf32>
    %965 = arith.mulf %954, %964 : vector<2x32xf32>
    %966 = arith.addf %963, %965 : vector<2x32xf32>
    %967 = math.tanh %966 : vector<2x32xf32>
    %cst_298 = arith.constant 1.000000e+00 : f32
    %968 = vector.broadcast %cst_298 : f32 to vector<2x32xf32>
    %969 = arith.subf %968, %962 : vector<2x32xf32>
    %970 = arith.mulf %969, %967 : vector<2x32xf32>
    %971 = arith.mulf %962, %898 : vector<2x32xf32>
    %972 = arith.addf %970, %971 : vector<2x32xf32>
    %c1_299 = arith.constant 1 : index
    %c3_300 = arith.constant 3 : index
    %c0_301 = arith.constant 0 : index
    %c0_302 = arith.constant 0 : index
    %973 = vector.load %arg2[%c1_299, %c3_300, %c0_301, %c0_302] : memref<2x8x4x96xf32, #tpu.memory_space<vmem>>, vector<1x1x4x96xf32>
    %974 = vector.shape_cast %973 : vector<1x1x4x96xf32> to vector<4x96xf32>
    %975 = arith.truncf %930 : vector<4x32xf32> to vector<4x32xbf16>
    %cst_303 = arith.constant dense<0.000000e+00> : vector<4x96xf32>
    %976 = tpu.matmul %975, %15, %cst_303 {dimension_numbers = #tpu.dot_dimension_numbers<[1], [0], [0], [1], [0, 0, 1, 1], [], []>} : vector<4x32xbf16>, vector<32x96xbf16>, vector<4x96xf32> -> vector<4x96xf32>
    %977 = vector.broadcast %16 : vector<1x96xf32> to vector<4x96xf32>
    %978 = arith.addf %976, %977 : vector<4x96xf32>
    %979 = vector.extract_strided_slice %974 {offsets = [0, 0], sizes = [4, 32], strides = [1, 1]} : vector<4x96xf32> to vector<4x32xf32>
    %980 = vector.extract_strided_slice %978 {offsets = [0, 0], sizes = [4, 32], strides = [1, 1]} : vector<4x96xf32> to vector<4x32xf32>
    %981 = arith.addf %979, %980 : vector<4x32xf32>
    %982 = arith.negf %981 : vector<4x32xf32>
    %983 = math.exp %982 : vector<4x32xf32>
    %cst_304 = arith.constant 1.000000e+00 : f32
    %984 = vector.broadcast %cst_304 : f32 to vector<4x32xf32>
    %985 = arith.addf %984, %983 : vector<4x32xf32>
    %986 = arith.divf %984, %985 : vector<4x32xf32>
    %987 = vector.extract_strided_slice %974 {offsets = [0, 32], sizes = [4, 32], strides = [1, 1]} : vector<4x96xf32> to vector<4x32xf32>
    %988 = vector.extract_strided_slice %978 {offsets = [0, 32], sizes = [4, 32], strides = [1, 1]} : vector<4x96xf32> to vector<4x32xf32>
    %989 = arith.addf %987, %988 : vector<4x32xf32>
    %990 = arith.negf %989 : vector<4x32xf32>
    %991 = math.exp %990 : vector<4x32xf32>
    %cst_305 = arith.constant 1.000000e+00 : f32
    %992 = vector.broadcast %cst_305 : f32 to vector<4x32xf32>
    %993 = arith.addf %992, %991 : vector<4x32xf32>
    %994 = arith.divf %992, %993 : vector<4x32xf32>
    %995 = vector.extract_strided_slice %974 {offsets = [0, 64], sizes = [4, 32], strides = [1, 1]} : vector<4x96xf32> to vector<4x32xf32>
    %996 = vector.extract_strided_slice %978 {offsets = [0, 64], sizes = [4, 32], strides = [1, 1]} : vector<4x96xf32> to vector<4x32xf32>
    %997 = arith.mulf %986, %996 : vector<4x32xf32>
    %998 = arith.addf %995, %997 : vector<4x32xf32>
    %999 = math.tanh %998 : vector<4x32xf32>
    %cst_306 = arith.constant 1.000000e+00 : f32
    %1000 = vector.broadcast %cst_306 : f32 to vector<4x32xf32>
    %1001 = arith.subf %1000, %994 : vector<4x32xf32>
    %1002 = arith.mulf %1001, %999 : vector<4x32xf32>
    %1003 = arith.mulf %994, %930 : vector<4x32xf32>
    %1004 = arith.addf %1002, %1003 : vector<4x32xf32>
    %c22 = arith.constant 22 : index
    %c0_307 = arith.constant 0 : index
    %1005 = vector.load %arg44[%c22, %c0_307] : memref<32x32xf32, #tpu.memory_space<vmem>>, vector<2x32xf32>
    tpu.vector_store %arg44[%c22, %c0_307], %972 {strides = array<i32>} : memref<32x32xf32, #tpu.memory_space<vmem>>, vector<2x32xf32>,
    %1006 = vector.extract_strided_slice %1004 {offsets = [2, 0], sizes = [2, 32], strides = [1, 1]} : vector<4x32xf32> to vector<2x32xf32>
    %c22_308 = arith.constant 22 : index
    %c0_309 = arith.constant 0 : index
    %1007 = vector.load %arg45[%c22_308, %c0_309] : memref<32x32xf32, #tpu.memory_space<vmem>>, vector<2x32xf32>
    tpu.vector_store %arg45[%c22_308, %c0_309], %1006 {strides = array<i32>} : memref<32x32xf32, #tpu.memory_space<vmem>>, vector<2x32xf32>,
    %c3_i32_310 = arith.constant 3 : i32
    %1008 = vector.broadcast %c3_i32_310 : i32 to vector<2x1xi32>
    %1009 = arith.cmpi eq, %717, %1008 : vector<2x1xi32>
    %1010 = vector.extract_strided_slice %1004 {offsets = [0, 0], sizes = [2, 32], strides = [1, 1]} : vector<4x32xf32> to vector<2x32xf32>
    %1011 = vector.shape_cast %1009 : vector<2x1xi1> to vector<2x1xi1>
    %1012 = vector.broadcast %1011 : vector<2x1xi1> to vector<2x32xi1>
    %1013 = arith.select %1012, %1010, %939 : vector<2x32xi1>, vector<2x32xf32>
    %c1_311 = arith.constant 1 : index
    %c4_312 = arith.constant 4 : index
    %c0_313 = arith.constant 0 : index
    %c0_314 = arith.constant 0 : index
    %1014 = vector.load %arg1[%c1_311, %c4_312, %c0_313, %c0_314] : memref<2x8x2x96xf32, #tpu.memory_space<vmem>>, vector<1x1x2x96xf32>
    %1015 = vector.shape_cast %1014 : vector<1x1x2x96xf32> to vector<2x96xf32>
    %1016 = arith.addf %1015, %714 : vector<2x96xf32>
    %1017 = arith.truncf %972 : vector<2x32xf32> to vector<2x32xbf16>
    %cst_315 = arith.constant dense<0.000000e+00> : vector<2x96xf32>
    %1018 = tpu.matmul %1017, %13, %cst_315 {dimension_numbers = #tpu.dot_dimension_numbers<[1], [0], [0], [1], [0, 0, 1, 1], [], []>} : vector<2x32xbf16>, vector<32x96xbf16>, vector<2x96xf32> -> vector<2x96xf32>
    %1019 = vector.broadcast %14 : vector<1x96xf32> to vector<2x96xf32>
    %1020 = arith.addf %1018, %1019 : vector<2x96xf32>
    %1021 = vector.extract_strided_slice %1016 {offsets = [0, 0], sizes = [2, 32], strides = [1, 1]} : vector<2x96xf32> to vector<2x32xf32>
    %1022 = vector.extract_strided_slice %1020 {offsets = [0, 0], sizes = [2, 32], strides = [1, 1]} : vector<2x96xf32> to vector<2x32xf32>
    %1023 = arith.addf %1021, %1022 : vector<2x32xf32>
    %1024 = arith.negf %1023 : vector<2x32xf32>
    %1025 = math.exp %1024 : vector<2x32xf32>
    %cst_316 = arith.constant 1.000000e+00 : f32
    %1026 = vector.broadcast %cst_316 : f32 to vector<2x32xf32>
    %1027 = arith.addf %1026, %1025 : vector<2x32xf32>
    %1028 = arith.divf %1026, %1027 : vector<2x32xf32>
    %1029 = vector.extract_strided_slice %1016 {offsets = [0, 32], sizes = [2, 32], strides = [1, 1]} : vector<2x96xf32> to vector<2x32xf32>
    %1030 = vector.extract_strided_slice %1020 {offsets = [0, 32], sizes = [2, 32], strides = [1, 1]} : vector<2x96xf32> to vector<2x32xf32>
    %1031 = arith.addf %1029, %1030 : vector<2x32xf32>
    %1032 = arith.negf %1031 : vector<2x32xf32>
    %1033 = math.exp %1032 : vector<2x32xf32>
    %cst_317 = arith.constant 1.000000e+00 : f32
    %1034 = vector.broadcast %cst_317 : f32 to vector<2x32xf32>
    %1035 = arith.addf %1034, %1033 : vector<2x32xf32>
    %1036 = arith.divf %1034, %1035 : vector<2x32xf32>
    %1037 = vector.extract_strided_slice %1016 {offsets = [0, 64], sizes = [2, 32], strides = [1, 1]} : vector<2x96xf32> to vector<2x32xf32>
    %1038 = vector.extract_strided_slice %1020 {offsets = [0, 64], sizes = [2, 32], strides = [1, 1]} : vector<2x96xf32> to vector<2x32xf32>
    %1039 = arith.mulf %1028, %1038 : vector<2x32xf32>
    %1040 = arith.addf %1037, %1039 : vector<2x32xf32>
    %1041 = math.tanh %1040 : vector<2x32xf32>
    %cst_318 = arith.constant 1.000000e+00 : f32
    %1042 = vector.broadcast %cst_318 : f32 to vector<2x32xf32>
    %1043 = arith.subf %1042, %1036 : vector<2x32xf32>
    %1044 = arith.mulf %1043, %1041 : vector<2x32xf32>
    %1045 = arith.mulf %1036, %972 : vector<2x32xf32>
    %1046 = arith.addf %1044, %1045 : vector<2x32xf32>
    %c1_319 = arith.constant 1 : index
    %c4_320 = arith.constant 4 : index
    %c0_321 = arith.constant 0 : index
    %c0_322 = arith.constant 0 : index
    %1047 = vector.load %arg2[%c1_319, %c4_320, %c0_321, %c0_322] : memref<2x8x4x96xf32, #tpu.memory_space<vmem>>, vector<1x1x4x96xf32>
    %1048 = vector.shape_cast %1047 : vector<1x1x4x96xf32> to vector<4x96xf32>
    %1049 = arith.truncf %1004 : vector<4x32xf32> to vector<4x32xbf16>
    %cst_323 = arith.constant dense<0.000000e+00> : vector<4x96xf32>
    %1050 = tpu.matmul %1049, %15, %cst_323 {dimension_numbers = #tpu.dot_dimension_numbers<[1], [0], [0], [1], [0, 0, 1, 1], [], []>} : vector<4x32xbf16>, vector<32x96xbf16>, vector<4x96xf32> -> vector<4x96xf32>
    %1051 = vector.broadcast %16 : vector<1x96xf32> to vector<4x96xf32>
    %1052 = arith.addf %1050, %1051 : vector<4x96xf32>
    %1053 = vector.extract_strided_slice %1048 {offsets = [0, 0], sizes = [4, 32], strides = [1, 1]} : vector<4x96xf32> to vector<4x32xf32>
    %1054 = vector.extract_strided_slice %1052 {offsets = [0, 0], sizes = [4, 32], strides = [1, 1]} : vector<4x96xf32> to vector<4x32xf32>
    %1055 = arith.addf %1053, %1054 : vector<4x32xf32>
    %1056 = arith.negf %1055 : vector<4x32xf32>
    %1057 = math.exp %1056 : vector<4x32xf32>
    %cst_324 = arith.constant 1.000000e+00 : f32
    %1058 = vector.broadcast %cst_324 : f32 to vector<4x32xf32>
    %1059 = arith.addf %1058, %1057 : vector<4x32xf32>
    %1060 = arith.divf %1058, %1059 : vector<4x32xf32>
    %1061 = vector.extract_strided_slice %1048 {offsets = [0, 32], sizes = [4, 32], strides = [1, 1]} : vector<4x96xf32> to vector<4x32xf32>
    %1062 = vector.extract_strided_slice %1052 {offsets = [0, 32], sizes = [4, 32], strides = [1, 1]} : vector<4x96xf32> to vector<4x32xf32>
    %1063 = arith.addf %1061, %1062 : vector<4x32xf32>
    %1064 = arith.negf %1063 : vector<4x32xf32>
    %1065 = math.exp %1064 : vector<4x32xf32>
    %cst_325 = arith.constant 1.000000e+00 : f32
    %1066 = vector.broadcast %cst_325 : f32 to vector<4x32xf32>
    %1067 = arith.addf %1066, %1065 : vector<4x32xf32>
    %1068 = arith.divf %1066, %1067 : vector<4x32xf32>
    %1069 = vector.extract_strided_slice %1048 {offsets = [0, 64], sizes = [4, 32], strides = [1, 1]} : vector<4x96xf32> to vector<4x32xf32>
    %1070 = vector.extract_strided_slice %1052 {offsets = [0, 64], sizes = [4, 32], strides = [1, 1]} : vector<4x96xf32> to vector<4x32xf32>
    %1071 = arith.mulf %1060, %1070 : vector<4x32xf32>
    %1072 = arith.addf %1069, %1071 : vector<4x32xf32>
    %1073 = math.tanh %1072 : vector<4x32xf32>
    %cst_326 = arith.constant 1.000000e+00 : f32
    %1074 = vector.broadcast %cst_326 : f32 to vector<4x32xf32>
    %1075 = arith.subf %1074, %1068 : vector<4x32xf32>
    %1076 = arith.mulf %1075, %1073 : vector<4x32xf32>
    %1077 = arith.mulf %1068, %1004 : vector<4x32xf32>
    %1078 = arith.addf %1076, %1077 : vector<4x32xf32>
    %c24 = arith.constant 24 : index
    %c0_327 = arith.constant 0 : index
    %1079 = vector.load %arg44[%c24, %c0_327] : memref<32x32xf32, #tpu.memory_space<vmem>>, vector<2x32xf32>
    tpu.vector_store %arg44[%c24, %c0_327], %1046 {strides = array<i32>} : memref<32x32xf32, #tpu.memory_space<vmem>>, vector<2x32xf32>,
    %1080 = vector.extract_strided_slice %1078 {offsets = [2, 0], sizes = [2, 32], strides = [1, 1]} : vector<4x32xf32> to vector<2x32xf32>
    %c24_328 = arith.constant 24 : index
    %c0_329 = arith.constant 0 : index
    %1081 = vector.load %arg45[%c24_328, %c0_329] : memref<32x32xf32, #tpu.memory_space<vmem>>, vector<2x32xf32>
    tpu.vector_store %arg45[%c24_328, %c0_329], %1080 {strides = array<i32>} : memref<32x32xf32, #tpu.memory_space<vmem>>, vector<2x32xf32>,
    %c4_i32_330 = arith.constant 4 : i32
    %1082 = vector.broadcast %c4_i32_330 : i32 to vector<2x1xi32>
    %1083 = arith.cmpi eq, %717, %1082 : vector<2x1xi32>
    %1084 = vector.extract_strided_slice %1078 {offsets = [0, 0], sizes = [2, 32], strides = [1, 1]} : vector<4x32xf32> to vector<2x32xf32>
    %1085 = vector.shape_cast %1083 : vector<2x1xi1> to vector<2x1xi1>
    %1086 = vector.broadcast %1085 : vector<2x1xi1> to vector<2x32xi1>
    %1087 = arith.select %1086, %1084, %1013 : vector<2x32xi1>, vector<2x32xf32>
    %c1_331 = arith.constant 1 : index
    %c5_332 = arith.constant 5 : index
    %c0_333 = arith.constant 0 : index
    %c0_334 = arith.constant 0 : index
    %1088 = vector.load %arg1[%c1_331, %c5_332, %c0_333, %c0_334] : memref<2x8x2x96xf32, #tpu.memory_space<vmem>>, vector<1x1x2x96xf32>
    %1089 = vector.shape_cast %1088 : vector<1x1x2x96xf32> to vector<2x96xf32>
    %1090 = arith.addf %1089, %714 : vector<2x96xf32>
    %1091 = arith.truncf %1046 : vector<2x32xf32> to vector<2x32xbf16>
    %cst_335 = arith.constant dense<0.000000e+00> : vector<2x96xf32>
    %1092 = tpu.matmul %1091, %13, %cst_335 {dimension_numbers = #tpu.dot_dimension_numbers<[1], [0], [0], [1], [0, 0, 1, 1], [], []>} : vector<2x32xbf16>, vector<32x96xbf16>, vector<2x96xf32> -> vector<2x96xf32>
    %1093 = vector.broadcast %14 : vector<1x96xf32> to vector<2x96xf32>
    %1094 = arith.addf %1092, %1093 : vector<2x96xf32>
    %1095 = vector.extract_strided_slice %1090 {offsets = [0, 0], sizes = [2, 32], strides = [1, 1]} : vector<2x96xf32> to vector<2x32xf32>
    %1096 = vector.extract_strided_slice %1094 {offsets = [0, 0], sizes = [2, 32], strides = [1, 1]} : vector<2x96xf32> to vector<2x32xf32>
    %1097 = arith.addf %1095, %1096 : vector<2x32xf32>
    %1098 = arith.negf %1097 : vector<2x32xf32>
    %1099 = math.exp %1098 : vector<2x32xf32>
    %cst_336 = arith.constant 1.000000e+00 : f32
    %1100 = vector.broadcast %cst_336 : f32 to vector<2x32xf32>
    %1101 = arith.addf %1100, %1099 : vector<2x32xf32>
    %1102 = arith.divf %1100, %1101 : vector<2x32xf32>
    %1103 = vector.extract_strided_slice %1090 {offsets = [0, 32], sizes = [2, 32], strides = [1, 1]} : vector<2x96xf32> to vector<2x32xf32>
    %1104 = vector.extract_strided_slice %1094 {offsets = [0, 32], sizes = [2, 32], strides = [1, 1]} : vector<2x96xf32> to vector<2x32xf32>
    %1105 = arith.addf %1103, %1104 : vector<2x32xf32>
    %1106 = arith.negf %1105 : vector<2x32xf32>
    %1107 = math.exp %1106 : vector<2x32xf32>
    %cst_337 = arith.constant 1.000000e+00 : f32
    %1108 = vector.broadcast %cst_337 : f32 to vector<2x32xf32>
    %1109 = arith.addf %1108, %1107 : vector<2x32xf32>
    %1110 = arith.divf %1108, %1109 : vector<2x32xf32>
    %1111 = vector.extract_strided_slice %1090 {offsets = [0, 64], sizes = [2, 32], strides = [1, 1]} : vector<2x96xf32> to vector<2x32xf32>
    %1112 = vector.extract_strided_slice %1094 {offsets = [0, 64], sizes = [2, 32], strides = [1, 1]} : vector<2x96xf32> to vector<2x32xf32>
    %1113 = arith.mulf %1102, %1112 : vector<2x32xf32>
    %1114 = arith.addf %1111, %1113 : vector<2x32xf32>
    %1115 = math.tanh %1114 : vector<2x32xf32>
    %cst_338 = arith.constant 1.000000e+00 : f32
    %1116 = vector.broadcast %cst_338 : f32 to vector<2x32xf32>
    %1117 = arith.subf %1116, %1110 : vector<2x32xf32>
    %1118 = arith.mulf %1117, %1115 : vector<2x32xf32>
    %1119 = arith.mulf %1110, %1046 : vector<2x32xf32>
    %1120 = arith.addf %1118, %1119 : vector<2x32xf32>
    %c1_339 = arith.constant 1 : index
    %c5_340 = arith.constant 5 : index
    %c0_341 = arith.constant 0 : index
    %c0_342 = arith.constant 0 : index
    %1121 = vector.load %arg2[%c1_339, %c5_340, %c0_341, %c0_342] : memref<2x8x4x96xf32, #tpu.memory_space<vmem>>, vector<1x1x4x96xf32>
    %1122 = vector.shape_cast %1121 : vector<1x1x4x96xf32> to vector<4x96xf32>
    %1123 = arith.truncf %1078 : vector<4x32xf32> to vector<4x32xbf16>
    %cst_343 = arith.constant dense<0.000000e+00> : vector<4x96xf32>
    %1124 = tpu.matmul %1123, %15, %cst_343 {dimension_numbers = #tpu.dot_dimension_numbers<[1], [0], [0], [1], [0, 0, 1, 1], [], []>} : vector<4x32xbf16>, vector<32x96xbf16>, vector<4x96xf32> -> vector<4x96xf32>
    %1125 = vector.broadcast %16 : vector<1x96xf32> to vector<4x96xf32>
    %1126 = arith.addf %1124, %1125 : vector<4x96xf32>
    %1127 = vector.extract_strided_slice %1122 {offsets = [0, 0], sizes = [4, 32], strides = [1, 1]} : vector<4x96xf32> to vector<4x32xf32>
    %1128 = vector.extract_strided_slice %1126 {offsets = [0, 0], sizes = [4, 32], strides = [1, 1]} : vector<4x96xf32> to vector<4x32xf32>
    %1129 = arith.addf %1127, %1128 : vector<4x32xf32>
    %1130 = arith.negf %1129 : vector<4x32xf32>
    %1131 = math.exp %1130 : vector<4x32xf32>
    %cst_344 = arith.constant 1.000000e+00 : f32
    %1132 = vector.broadcast %cst_344 : f32 to vector<4x32xf32>
    %1133 = arith.addf %1132, %1131 : vector<4x32xf32>
    %1134 = arith.divf %1132, %1133 : vector<4x32xf32>
    %1135 = vector.extract_strided_slice %1122 {offsets = [0, 32], sizes = [4, 32], strides = [1, 1]} : vector<4x96xf32> to vector<4x32xf32>
    %1136 = vector.extract_strided_slice %1126 {offsets = [0, 32], sizes = [4, 32], strides = [1, 1]} : vector<4x96xf32> to vector<4x32xf32>
    %1137 = arith.addf %1135, %1136 : vector<4x32xf32>
    %1138 = arith.negf %1137 : vector<4x32xf32>
    %1139 = math.exp %1138 : vector<4x32xf32>
    %cst_345 = arith.constant 1.000000e+00 : f32
    %1140 = vector.broadcast %cst_345 : f32 to vector<4x32xf32>
    %1141 = arith.addf %1140, %1139 : vector<4x32xf32>
    %1142 = arith.divf %1140, %1141 : vector<4x32xf32>
    %1143 = vector.extract_strided_slice %1122 {offsets = [0, 64], sizes = [4, 32], strides = [1, 1]} : vector<4x96xf32> to vector<4x32xf32>
    %1144 = vector.extract_strided_slice %1126 {offsets = [0, 64], sizes = [4, 32], strides = [1, 1]} : vector<4x96xf32> to vector<4x32xf32>
    %1145 = arith.mulf %1134, %1144 : vector<4x32xf32>
    %1146 = arith.addf %1143, %1145 : vector<4x32xf32>
    %1147 = math.tanh %1146 : vector<4x32xf32>
    %cst_346 = arith.constant 1.000000e+00 : f32
    %1148 = vector.broadcast %cst_346 : f32 to vector<4x32xf32>
    %1149 = arith.subf %1148, %1142 : vector<4x32xf32>
    %1150 = arith.mulf %1149, %1147 : vector<4x32xf32>
    %1151 = arith.mulf %1142, %1078 : vector<4x32xf32>
    %1152 = arith.addf %1150, %1151 : vector<4x32xf32>
    %c26 = arith.constant 26 : index
    %c0_347 = arith.constant 0 : index
    %1153 = vector.load %arg44[%c26, %c0_347] : memref<32x32xf32, #tpu.memory_space<vmem>>, vector<2x32xf32>
    tpu.vector_store %arg44[%c26, %c0_347], %1120 {strides = array<i32>} : memref<32x32xf32, #tpu.memory_space<vmem>>, vector<2x32xf32>,
    %1154 = vector.extract_strided_slice %1152 {offsets = [2, 0], sizes = [2, 32], strides = [1, 1]} : vector<4x32xf32> to vector<2x32xf32>
    %c26_348 = arith.constant 26 : index
    %c0_349 = arith.constant 0 : index
    %1155 = vector.load %arg45[%c26_348, %c0_349] : memref<32x32xf32, #tpu.memory_space<vmem>>, vector<2x32xf32>
    tpu.vector_store %arg45[%c26_348, %c0_349], %1154 {strides = array<i32>} : memref<32x32xf32, #tpu.memory_space<vmem>>, vector<2x32xf32>,
    %c5_i32_350 = arith.constant 5 : i32
    %1156 = vector.broadcast %c5_i32_350 : i32 to vector<2x1xi32>
    %1157 = arith.cmpi eq, %717, %1156 : vector<2x1xi32>
    %1158 = vector.extract_strided_slice %1152 {offsets = [0, 0], sizes = [2, 32], strides = [1, 1]} : vector<4x32xf32> to vector<2x32xf32>
    %1159 = vector.shape_cast %1157 : vector<2x1xi1> to vector<2x1xi1>
    %1160 = vector.broadcast %1159 : vector<2x1xi1> to vector<2x32xi1>
    %1161 = arith.select %1160, %1158, %1087 : vector<2x32xi1>, vector<2x32xf32>
    %c1_351 = arith.constant 1 : index
    %c6_352 = arith.constant 6 : index
    %c0_353 = arith.constant 0 : index
    %c0_354 = arith.constant 0 : index
    %1162 = vector.load %arg1[%c1_351, %c6_352, %c0_353, %c0_354] : memref<2x8x2x96xf32, #tpu.memory_space<vmem>>, vector<1x1x2x96xf32>
    %1163 = vector.shape_cast %1162 : vector<1x1x2x96xf32> to vector<2x96xf32>
    %1164 = arith.addf %1163, %714 : vector<2x96xf32>
    %1165 = arith.truncf %1120 : vector<2x32xf32> to vector<2x32xbf16>
    %cst_355 = arith.constant dense<0.000000e+00> : vector<2x96xf32>
    %1166 = tpu.matmul %1165, %13, %cst_355 {dimension_numbers = #tpu.dot_dimension_numbers<[1], [0], [0], [1], [0, 0, 1, 1], [], []>} : vector<2x32xbf16>, vector<32x96xbf16>, vector<2x96xf32> -> vector<2x96xf32>
    %1167 = vector.broadcast %14 : vector<1x96xf32> to vector<2x96xf32>
    %1168 = arith.addf %1166, %1167 : vector<2x96xf32>
    %1169 = vector.extract_strided_slice %1164 {offsets = [0, 0], sizes = [2, 32], strides = [1, 1]} : vector<2x96xf32> to vector<2x32xf32>
    %1170 = vector.extract_strided_slice %1168 {offsets = [0, 0], sizes = [2, 32], strides = [1, 1]} : vector<2x96xf32> to vector<2x32xf32>
    %1171 = arith.addf %1169, %1170 : vector<2x32xf32>
    %1172 = arith.negf %1171 : vector<2x32xf32>
    %1173 = math.exp %1172 : vector<2x32xf32>
    %cst_356 = arith.constant 1.000000e+00 : f32
    %1174 = vector.broadcast %cst_356 : f32 to vector<2x32xf32>
    %1175 = arith.addf %1174, %1173 : vector<2x32xf32>
    %1176 = arith.divf %1174, %1175 : vector<2x32xf32>
    %1177 = vector.extract_strided_slice %1164 {offsets = [0, 32], sizes = [2, 32], strides = [1, 1]} : vector<2x96xf32> to vector<2x32xf32>
    %1178 = vector.extract_strided_slice %1168 {offsets = [0, 32], sizes = [2, 32], strides = [1, 1]} : vector<2x96xf32> to vector<2x32xf32>
    %1179 = arith.addf %1177, %1178 : vector<2x32xf32>
    %1180 = arith.negf %1179 : vector<2x32xf32>
    %1181 = math.exp %1180 : vector<2x32xf32>
    %cst_357 = arith.constant 1.000000e+00 : f32
    %1182 = vector.broadcast %cst_357 : f32 to vector<2x32xf32>
    %1183 = arith.addf %1182, %1181 : vector<2x32xf32>
    %1184 = arith.divf %1182, %1183 : vector<2x32xf32>
    %1185 = vector.extract_strided_slice %1164 {offsets = [0, 64], sizes = [2, 32], strides = [1, 1]} : vector<2x96xf32> to vector<2x32xf32>
    %1186 = vector.extract_strided_slice %1168 {offsets = [0, 64], sizes = [2, 32], strides = [1, 1]} : vector<2x96xf32> to vector<2x32xf32>
    %1187 = arith.mulf %1176, %1186 : vector<2x32xf32>
    %1188 = arith.addf %1185, %1187 : vector<2x32xf32>
    %1189 = math.tanh %1188 : vector<2x32xf32>
    %cst_358 = arith.constant 1.000000e+00 : f32
    %1190 = vector.broadcast %cst_358 : f32 to vector<2x32xf32>
    %1191 = arith.subf %1190, %1184 : vector<2x32xf32>
    %1192 = arith.mulf %1191, %1189 : vector<2x32xf32>
    %1193 = arith.mulf %1184, %1120 : vector<2x32xf32>
    %1194 = arith.addf %1192, %1193 : vector<2x32xf32>
    %c1_359 = arith.constant 1 : index
    %c6_360 = arith.constant 6 : index
    %c0_361 = arith.constant 0 : index
    %c0_362 = arith.constant 0 : index
    %1195 = vector.load %arg2[%c1_359, %c6_360, %c0_361, %c0_362] : memref<2x8x4x96xf32, #tpu.memory_space<vmem>>, vector<1x1x4x96xf32>
    %1196 = vector.shape_cast %1195 : vector<1x1x4x96xf32> to vector<4x96xf32>
    %1197 = arith.truncf %1152 : vector<4x32xf32> to vector<4x32xbf16>
    %cst_363 = arith.constant dense<0.000000e+00> : vector<4x96xf32>
    %1198 = tpu.matmul %1197, %15, %cst_363 {dimension_numbers = #tpu.dot_dimension_numbers<[1], [0], [0], [1], [0, 0, 1, 1], [], []>} : vector<4x32xbf16>, vector<32x96xbf16>, vector<4x96xf32> -> vector<4x96xf32>
    %1199 = vector.broadcast %16 : vector<1x96xf32> to vector<4x96xf32>
    %1200 = arith.addf %1198, %1199 : vector<4x96xf32>
    %1201 = vector.extract_strided_slice %1196 {offsets = [0, 0], sizes = [4, 32], strides = [1, 1]} : vector<4x96xf32> to vector<4x32xf32>
    %1202 = vector.extract_strided_slice %1200 {offsets = [0, 0], sizes = [4, 32], strides = [1, 1]} : vector<4x96xf32> to vector<4x32xf32>
    %1203 = arith.addf %1201, %1202 : vector<4x32xf32>
    %1204 = arith.negf %1203 : vector<4x32xf32>
    %1205 = math.exp %1204 : vector<4x32xf32>
    %cst_364 = arith.constant 1.000000e+00 : f32
    %1206 = vector.broadcast %cst_364 : f32 to vector<4x32xf32>
    %1207 = arith.addf %1206, %1205 : vector<4x32xf32>
    %1208 = arith.divf %1206, %1207 : vector<4x32xf32>
    %1209 = vector.extract_strided_slice %1196 {offsets = [0, 32], sizes = [4, 32], strides = [1, 1]} : vector<4x96xf32> to vector<4x32xf32>
    %1210 = vector.extract_strided_slice %1200 {offsets = [0, 32], sizes = [4, 32], strides = [1, 1]} : vector<4x96xf32> to vector<4x32xf32>
    %1211 = arith.addf %1209, %1210 : vector<4x32xf32>
    %1212 = arith.negf %1211 : vector<4x32xf32>
    %1213 = math.exp %1212 : vector<4x32xf32>
    %cst_365 = arith.constant 1.000000e+00 : f32
    %1214 = vector.broadcast %cst_365 : f32 to vector<4x32xf32>
    %1215 = arith.addf %1214, %1213 : vector<4x32xf32>
    %1216 = arith.divf %1214, %1215 : vector<4x32xf32>
    %1217 = vector.extract_strided_slice %1196 {offsets = [0, 64], sizes = [4, 32], strides = [1, 1]} : vector<4x96xf32> to vector<4x32xf32>
    %1218 = vector.extract_strided_slice %1200 {offsets = [0, 64], sizes = [4, 32], strides = [1, 1]} : vector<4x96xf32> to vector<4x32xf32>
    %1219 = arith.mulf %1208, %1218 : vector<4x32xf32>
    %1220 = arith.addf %1217, %1219 : vector<4x32xf32>
    %1221 = math.tanh %1220 : vector<4x32xf32>
    %cst_366 = arith.constant 1.000000e+00 : f32
    %1222 = vector.broadcast %cst_366 : f32 to vector<4x32xf32>
    %1223 = arith.subf %1222, %1216 : vector<4x32xf32>
    %1224 = arith.mulf %1223, %1221 : vector<4x32xf32>
    %1225 = arith.mulf %1216, %1152 : vector<4x32xf32>
    %1226 = arith.addf %1224, %1225 : vector<4x32xf32>
    %c28 = arith.constant 28 : index
    %c0_367 = arith.constant 0 : index
    %1227 = vector.load %arg44[%c28, %c0_367] : memref<32x32xf32, #tpu.memory_space<vmem>>, vector<2x32xf32>
    tpu.vector_store %arg44[%c28, %c0_367], %1194 {strides = array<i32>} : memref<32x32xf32, #tpu.memory_space<vmem>>, vector<2x32xf32>,
    %1228 = vector.extract_strided_slice %1226 {offsets = [2, 0], sizes = [2, 32], strides = [1, 1]} : vector<4x32xf32> to vector<2x32xf32>
    %c28_368 = arith.constant 28 : index
    %c0_369 = arith.constant 0 : index
    %1229 = vector.load %arg45[%c28_368, %c0_369] : memref<32x32xf32, #tpu.memory_space<vmem>>, vector<2x32xf32>
    tpu.vector_store %arg45[%c28_368, %c0_369], %1228 {strides = array<i32>} : memref<32x32xf32, #tpu.memory_space<vmem>>, vector<2x32xf32>,
    %c6_i32_370 = arith.constant 6 : i32
    %1230 = vector.broadcast %c6_i32_370 : i32 to vector<2x1xi32>
    %1231 = arith.cmpi eq, %717, %1230 : vector<2x1xi32>
    %1232 = vector.extract_strided_slice %1226 {offsets = [0, 0], sizes = [2, 32], strides = [1, 1]} : vector<4x32xf32> to vector<2x32xf32>
    %1233 = vector.shape_cast %1231 : vector<2x1xi1> to vector<2x1xi1>
    %1234 = vector.broadcast %1233 : vector<2x1xi1> to vector<2x32xi1>
    %1235 = arith.select %1234, %1232, %1161 : vector<2x32xi1>, vector<2x32xf32>
    %c1_371 = arith.constant 1 : index
    %c7_372 = arith.constant 7 : index
    %c0_373 = arith.constant 0 : index
    %c0_374 = arith.constant 0 : index
    %1236 = vector.load %arg1[%c1_371, %c7_372, %c0_373, %c0_374] : memref<2x8x2x96xf32, #tpu.memory_space<vmem>>, vector<1x1x2x96xf32>
    %1237 = vector.shape_cast %1236 : vector<1x1x2x96xf32> to vector<2x96xf32>
    %1238 = arith.addf %1237, %714 : vector<2x96xf32>
    %1239 = arith.truncf %1194 : vector<2x32xf32> to vector<2x32xbf16>
    %cst_375 = arith.constant dense<0.000000e+00> : vector<2x96xf32>
    %1240 = tpu.matmul %1239, %13, %cst_375 {dimension_numbers = #tpu.dot_dimension_numbers<[1], [0], [0], [1], [0, 0, 1, 1], [], []>} : vector<2x32xbf16>, vector<32x96xbf16>, vector<2x96xf32> -> vector<2x96xf32>
    %1241 = vector.broadcast %14 : vector<1x96xf32> to vector<2x96xf32>
    %1242 = arith.addf %1240, %1241 : vector<2x96xf32>
    %1243 = vector.extract_strided_slice %1238 {offsets = [0, 0], sizes = [2, 32], strides = [1, 1]} : vector<2x96xf32> to vector<2x32xf32>
    %1244 = vector.extract_strided_slice %1242 {offsets = [0, 0], sizes = [2, 32], strides = [1, 1]} : vector<2x96xf32> to vector<2x32xf32>
    %1245 = arith.addf %1243, %1244 : vector<2x32xf32>
    %1246 = arith.negf %1245 : vector<2x32xf32>
    %1247 = math.exp %1246 : vector<2x32xf32>
    %cst_376 = arith.constant 1.000000e+00 : f32
    %1248 = vector.broadcast %cst_376 : f32 to vector<2x32xf32>
    %1249 = arith.addf %1248, %1247 : vector<2x32xf32>
    %1250 = arith.divf %1248, %1249 : vector<2x32xf32>
    %1251 = vector.extract_strided_slice %1238 {offsets = [0, 32], sizes = [2, 32], strides = [1, 1]} : vector<2x96xf32> to vector<2x32xf32>
    %1252 = vector.extract_strided_slice %1242 {offsets = [0, 32], sizes = [2, 32], strides = [1, 1]} : vector<2x96xf32> to vector<2x32xf32>
    %1253 = arith.addf %1251, %1252 : vector<2x32xf32>
    %1254 = arith.negf %1253 : vector<2x32xf32>
    %1255 = math.exp %1254 : vector<2x32xf32>
    %cst_377 = arith.constant 1.000000e+00 : f32
    %1256 = vector.broadcast %cst_377 : f32 to vector<2x32xf32>
    %1257 = arith.addf %1256, %1255 : vector<2x32xf32>
    %1258 = arith.divf %1256, %1257 : vector<2x32xf32>
    %1259 = vector.extract_strided_slice %1238 {offsets = [0, 64], sizes = [2, 32], strides = [1, 1]} : vector<2x96xf32> to vector<2x32xf32>
    %1260 = vector.extract_strided_slice %1242 {offsets = [0, 64], sizes = [2, 32], strides = [1, 1]} : vector<2x96xf32> to vector<2x32xf32>
    %1261 = arith.mulf %1250, %1260 : vector<2x32xf32>
    %1262 = arith.addf %1259, %1261 : vector<2x32xf32>
    %1263 = math.tanh %1262 : vector<2x32xf32>
    %cst_378 = arith.constant 1.000000e+00 : f32
    %1264 = vector.broadcast %cst_378 : f32 to vector<2x32xf32>
    %1265 = arith.subf %1264, %1258 : vector<2x32xf32>
    %1266 = arith.mulf %1265, %1263 : vector<2x32xf32>
    %1267 = arith.mulf %1258, %1194 : vector<2x32xf32>
    %1268 = arith.addf %1266, %1267 : vector<2x32xf32>
    %c1_379 = arith.constant 1 : index
    %c7_380 = arith.constant 7 : index
    %c0_381 = arith.constant 0 : index
    %c0_382 = arith.constant 0 : index
    %1269 = vector.load %arg2[%c1_379, %c7_380, %c0_381, %c0_382] : memref<2x8x4x96xf32, #tpu.memory_space<vmem>>, vector<1x1x4x96xf32>
    %1270 = vector.shape_cast %1269 : vector<1x1x4x96xf32> to vector<4x96xf32>
    %1271 = arith.truncf %1226 : vector<4x32xf32> to vector<4x32xbf16>
    %cst_383 = arith.constant dense<0.000000e+00> : vector<4x96xf32>
    %1272 = tpu.matmul %1271, %15, %cst_383 {dimension_numbers = #tpu.dot_dimension_numbers<[1], [0], [0], [1], [0, 0, 1, 1], [], []>} : vector<4x32xbf16>, vector<32x96xbf16>, vector<4x96xf32> -> vector<4x96xf32>
    %1273 = vector.broadcast %16 : vector<1x96xf32> to vector<4x96xf32>
    %1274 = arith.addf %1272, %1273 : vector<4x96xf32>
    %1275 = vector.extract_strided_slice %1270 {offsets = [0, 0], sizes = [4, 32], strides = [1, 1]} : vector<4x96xf32> to vector<4x32xf32>
    %1276 = vector.extract_strided_slice %1274 {offsets = [0, 0], sizes = [4, 32], strides = [1, 1]} : vector<4x96xf32> to vector<4x32xf32>
    %1277 = arith.addf %1275, %1276 : vector<4x32xf32>
    %1278 = arith.negf %1277 : vector<4x32xf32>
    %1279 = math.exp %1278 : vector<4x32xf32>
    %cst_384 = arith.constant 1.000000e+00 : f32
    %1280 = vector.broadcast %cst_384 : f32 to vector<4x32xf32>
    %1281 = arith.addf %1280, %1279 : vector<4x32xf32>
    %1282 = arith.divf %1280, %1281 : vector<4x32xf32>
    %1283 = vector.extract_strided_slice %1270 {offsets = [0, 32], sizes = [4, 32], strides = [1, 1]} : vector<4x96xf32> to vector<4x32xf32>
    %1284 = vector.extract_strided_slice %1274 {offsets = [0, 32], sizes = [4, 32], strides = [1, 1]} : vector<4x96xf32> to vector<4x32xf32>
    %1285 = arith.addf %1283, %1284 : vector<4x32xf32>
    %1286 = arith.negf %1285 : vector<4x32xf32>
    %1287 = math.exp %1286 : vector<4x32xf32>
    %cst_385 = arith.constant 1.000000e+00 : f32
    %1288 = vector.broadcast %cst_385 : f32 to vector<4x32xf32>
    %1289 = arith.addf %1288, %1287 : vector<4x32xf32>
    %1290 = arith.divf %1288, %1289 : vector<4x32xf32>
    %1291 = vector.extract_strided_slice %1270 {offsets = [0, 64], sizes = [4, 32], strides = [1, 1]} : vector<4x96xf32> to vector<4x32xf32>
    %1292 = vector.extract_strided_slice %1274 {offsets = [0, 64], sizes = [4, 32], strides = [1, 1]} : vector<4x96xf32> to vector<4x32xf32>
    %1293 = arith.mulf %1282, %1292 : vector<4x32xf32>
    %1294 = arith.addf %1291, %1293 : vector<4x32xf32>
    %1295 = math.tanh %1294 : vector<4x32xf32>
    %cst_386 = arith.constant 1.000000e+00 : f32
    %1296 = vector.broadcast %cst_386 : f32 to vector<4x32xf32>
    %1297 = arith.subf %1296, %1290 : vector<4x32xf32>
    %1298 = arith.mulf %1297, %1295 : vector<4x32xf32>
    %1299 = arith.mulf %1290, %1226 : vector<4x32xf32>
    %1300 = arith.addf %1298, %1299 : vector<4x32xf32>
    %c30 = arith.constant 30 : index
    %c0_387 = arith.constant 0 : index
    %1301 = vector.load %arg44[%c30, %c0_387] : memref<32x32xf32, #tpu.memory_space<vmem>>, vector<2x32xf32>
    tpu.vector_store %arg44[%c30, %c0_387], %1268 {strides = array<i32>} : memref<32x32xf32, #tpu.memory_space<vmem>>, vector<2x32xf32>,
    %1302 = vector.extract_strided_slice %1300 {offsets = [2, 0], sizes = [2, 32], strides = [1, 1]} : vector<4x32xf32> to vector<2x32xf32>
    %c30_388 = arith.constant 30 : index
    %c0_389 = arith.constant 0 : index
    %1303 = vector.load %arg45[%c30_388, %c0_389] : memref<32x32xf32, #tpu.memory_space<vmem>>, vector<2x32xf32>
    tpu.vector_store %arg45[%c30_388, %c0_389], %1302 {strides = array<i32>} : memref<32x32xf32, #tpu.memory_space<vmem>>, vector<2x32xf32>,
    %c7_i32_390 = arith.constant 7 : i32
    %1304 = vector.broadcast %c7_i32_390 : i32 to vector<2x1xi32>
    %1305 = arith.cmpi eq, %717, %1304 : vector<2x1xi32>
    %1306 = vector.extract_strided_slice %1300 {offsets = [0, 0], sizes = [2, 32], strides = [1, 1]} : vector<4x32xf32> to vector<2x32xf32>
    %1307 = vector.shape_cast %1305 : vector<2x1xi1> to vector<2x1xi1>
    %1308 = vector.broadcast %1307 : vector<2x1xi1> to vector<2x32xi1>
    %1309 = arith.select %1308, %1306, %1235 : vector<2x32xi1>, vector<2x32xf32>
    %1310 = arith.truncf %1309 : vector<2x32xf32> to vector<2x32xbf16>
    %c0_391 = arith.constant 0 : index
    %c0_392 = arith.constant 0 : index
    %1311 = vector.load %arg17[%c0_391, %c0_392] : memref<32x96xbf16, #tpu.memory_space<vmem>>, vector<32x96xbf16>
    %cst_393 = arith.constant dense<0.000000e+00> : vector<2x96xf32>
    %1312 = tpu.matmul %1310, %1311, %cst_393 {dimension_numbers = #tpu.dot_dimension_numbers<[1], [0], [0], [1], [0, 0, 1, 1], [], []>} : vector<2x32xbf16>, vector<32x96xbf16>, vector<2x96xf32> -> vector<2x96xf32>
    %c0_394 = arith.constant 0 : index
    %c0_395 = arith.constant 0 : index
    %1313 = vector.load %arg18[%c0_394, %c0_395] : memref<1x96xf32, #tpu.memory_space<vmem>>, vector<1x96xf32>
    %1314 = vector.broadcast %1313 : vector<1x96xf32> to vector<2x96xf32>
    %1315 = arith.addf %1312, %1314 : vector<2x96xf32>
    %c0_396 = arith.constant 0 : index
    %c0_397 = arith.constant 0 : index
    %1316 = vector.load %arg19[%c0_396, %c0_397] : memref<32x96xbf16, #tpu.memory_space<vmem>>, vector<32x96xbf16>
    %c0_398 = arith.constant 0 : index
    %c0_399 = arith.constant 0 : index
    %1317 = vector.load %arg20[%c0_398, %c0_399] : memref<1x96xf32, #tpu.memory_space<vmem>>, vector<1x96xf32>
    %1318 = arith.truncf %682 : vector<2x32xf32> to vector<2x32xbf16>
    %cst_400 = arith.constant dense<0.000000e+00> : vector<2x96xf32>
    %1319 = tpu.matmul %1318, %1316, %cst_400 {dimension_numbers = #tpu.dot_dimension_numbers<[1], [0], [0], [1], [0, 0, 1, 1], [], []>} : vector<2x32xbf16>, vector<32x96xbf16>, vector<2x96xf32> -> vector<2x96xf32>
    %1320 = vector.broadcast %1317 : vector<1x96xf32> to vector<2x96xf32>
    %1321 = arith.addf %1319, %1320 : vector<2x96xf32>
    %1322 = vector.extract_strided_slice %1315 {offsets = [0, 0], sizes = [2, 32], strides = [1, 1]} : vector<2x96xf32> to vector<2x32xf32>
    %1323 = vector.extract_strided_slice %1321 {offsets = [0, 0], sizes = [2, 32], strides = [1, 1]} : vector<2x96xf32> to vector<2x32xf32>
    %1324 = arith.addf %1322, %1323 : vector<2x32xf32>
    %1325 = arith.negf %1324 : vector<2x32xf32>
    %1326 = math.exp %1325 : vector<2x32xf32>
    %cst_401 = arith.constant 1.000000e+00 : f32
    %1327 = vector.broadcast %cst_401 : f32 to vector<2x32xf32>
    %1328 = arith.addf %1327, %1326 : vector<2x32xf32>
    %1329 = arith.divf %1327, %1328 : vector<2x32xf32>
    %1330 = vector.extract_strided_slice %1315 {offsets = [0, 32], sizes = [2, 32], strides = [1, 1]} : vector<2x96xf32> to vector<2x32xf32>
    %1331 = vector.extract_strided_slice %1321 {offsets = [0, 32], sizes = [2, 32], strides = [1, 1]} : vector<2x96xf32> to vector<2x32xf32>
    %1332 = arith.addf %1330, %1331 : vector<2x32xf32>
    %1333 = arith.negf %1332 : vector<2x32xf32>
    %1334 = math.exp %1333 : vector<2x32xf32>
    %cst_402 = arith.constant 1.000000e+00 : f32
    %1335 = vector.broadcast %cst_402 : f32 to vector<2x32xf32>
    %1336 = arith.addf %1335, %1334 : vector<2x32xf32>
    %1337 = arith.divf %1335, %1336 : vector<2x32xf32>
    %1338 = vector.extract_strided_slice %1315 {offsets = [0, 64], sizes = [2, 32], strides = [1, 1]} : vector<2x96xf32> to vector<2x32xf32>
    %1339 = vector.extract_strided_slice %1321 {offsets = [0, 64], sizes = [2, 32], strides = [1, 1]} : vector<2x96xf32> to vector<2x32xf32>
    %1340 = arith.mulf %1329, %1339 : vector<2x32xf32>
    %1341 = arith.addf %1338, %1340 : vector<2x32xf32>
    %1342 = math.tanh %1341 : vector<2x32xf32>
    %cst_403 = arith.constant 1.000000e+00 : f32
    %1343 = vector.broadcast %cst_403 : f32 to vector<2x32xf32>
    %1344 = arith.subf %1343, %1337 : vector<2x32xf32>
    %1345 = arith.mulf %1344, %1342 : vector<2x32xf32>
    %1346 = arith.mulf %1337, %682 : vector<2x32xf32>
    %1347 = arith.addf %1345, %1346 : vector<2x32xf32>
    %c0_404 = arith.constant 0 : index
    %c0_405 = arith.constant 0 : index
    %1348 = vector.load %arg44[%c0_404, %c0_405] : memref<32x32xf32, #tpu.memory_space<vmem>>, vector<32x32xf32>
    %c0_406 = arith.constant 0 : index
    %c0_407 = arith.constant 0 : index
    %1349 = vector.load %arg21[%c0_406, %c0_407] : memref<32x64xf32, #tpu.memory_space<vmem>>, vector<32x64xf32>
    %cst_408 = arith.constant dense<0.000000e+00> : vector<32x64xf32>
    %1350 = tpu.matmul %1348, %1349, %cst_408 {dimension_numbers = #tpu.dot_dimension_numbers<[1], [0], [0], [1], [0, 0, 1, 1], [], []>} : vector<32x32xf32>, vector<32x64xf32>, vector<32x64xf32> -> vector<32x64xf32>
    %c0_409 = arith.constant 0 : index
    %c0_410 = arith.constant 0 : index
    %1351 = vector.load %arg22[%c0_409, %c0_410] : memref<1x64xf32, #tpu.memory_space<vmem>>, vector<1x64xf32>
    %1352 = vector.broadcast %1351 : vector<1x64xf32> to vector<32x64xf32>
    %1353 = arith.addf %1350, %1352 : vector<32x64xf32>
    %c0_411 = arith.constant 0 : index
    %c0_412 = arith.constant 0 : index
    %1354 = vector.load %arg41[%c0_411, %c0_412] : memref<32x64xf32, #tpu.memory_space<vmem>>, vector<32x64xf32>
    tpu.vector_store %arg41[%c0_411, %c0_412], %1353 {strides = array<i32>} : memref<32x64xf32, #tpu.memory_space<vmem>>, vector<32x64xf32>,
    %c0_413 = arith.constant 0 : index
    %c0_414 = arith.constant 0 : index
    %1355 = vector.load %arg4[%c0_413, %c0_414] : memref<18x1xi32, #tpu.memory_space<vmem>>, vector<18x1xi32>
    %1356 = tpu.iota {dimensions = array<i32: 1>} : vector<18x32xi32>
    %1357 = vector.broadcast %1355 : vector<18x1xi32> to vector<18x32xi32>
    %1358 = arith.cmpi eq, %1356, %1357 : vector<18x32xi32>
    %1359 = arith.extui %1358 : vector<18x32xi1> to vector<18x32xi32>
    %1360 = arith.sitofp %1359 : vector<18x32xi32> to vector<18x32xf32>
    %c0_415 = arith.constant 0 : index
    %c0_416 = arith.constant 0 : index
    %1361 = vector.load %arg45[%c0_415, %c0_416] : memref<32x32xf32, #tpu.memory_space<vmem>>, vector<32x32xf32>
    %cst_417 = arith.constant dense<0.000000e+00> : vector<18x32xf32>
    %1362 = tpu.matmul %1360, %1361, %cst_417 {dimension_numbers = #tpu.dot_dimension_numbers<[1], [0], [0], [1], [0, 0, 1, 1], [], []>} : vector<18x32xf32>, vector<32x32xf32>, vector<18x32xf32> -> vector<18x32xf32>
    %c0_418 = arith.constant 0 : index
    %c0_419 = arith.constant 0 : index
    %1363 = vector.load %arg9[%c0_418, %c0_419] : memref<6x18xf32, #tpu.memory_space<vmem>>, vector<6x18xf32>
    %cst_420 = arith.constant dense<0.000000e+00> : vector<6x32xf32>
    %1364 = tpu.matmul %1363, %1362, %cst_420 {dimension_numbers = #tpu.dot_dimension_numbers<[1], [0], [0], [1], [0, 0, 1, 1], [], []>} : vector<6x18xf32>, vector<18x32xf32>, vector<6x32xf32> -> vector<6x32xf32>
    %c0_421 = arith.constant 0 : index
    %c0_422 = arith.constant 0 : index
    %1365 = vector.load %arg35[%c0_421, %c0_422] : memref<64x32xf32, #tpu.memory_space<vmem>>, vector<64x32xf32>
    %c0_423 = arith.constant 0 : index
    %c0_424 = arith.constant 0 : index
    %1366 = vector.load %arg7[%c0_423, %c0_424] : memref<42x14xf32, #tpu.memory_space<vmem>>, vector<42x14xf32>
    %1367 = vector.extract_strided_slice %1365 {offsets = [0, 0], sizes = [32, 32], strides = [1, 1]} : vector<64x32xf32> to vector<32x32xf32>
    %cst_425 = arith.constant dense<0.000000e+00> : vector<14x32xf32>
    %1368 = tpu.matmul %6, %1367, %cst_425 {dimension_numbers = #tpu.dot_dimension_numbers<[1], [0], [0], [1], [0, 0, 1, 1], [], []>} : vector<14x32xf32>, vector<32x32xf32>, vector<14x32xf32> -> vector<14x32xf32>
    %cst_426 = arith.constant dense<0.000000e+00> : vector<42x32xf32>
    %1369 = tpu.matmul %1366, %1368, %cst_426 {dimension_numbers = #tpu.dot_dimension_numbers<[1], [0], [0], [1], [0, 0, 1, 1], [], []>} : vector<42x14xf32>, vector<14x32xf32>, vector<42x32xf32> -> vector<42x32xf32>
    %c0_427 = arith.constant 0 : index
    %c0_428 = arith.constant 0 : index
    %1370 = vector.load %arg8[%c0_427, %c0_428] : memref<42x6xf32, #tpu.memory_space<vmem>>, vector<42x6xf32>
    %1371 = vector.extract_strided_slice %1365 {offsets = [32, 0], sizes = [32, 32], strides = [1, 1]} : vector<64x32xf32> to vector<32x32xf32>
    %cst_429 = arith.constant dense<0.000000e+00> : vector<6x32xf32>
    %1372 = tpu.matmul %1364, %1371, %cst_429 {dimension_numbers = #tpu.dot_dimension_numbers<[1], [0], [0], [1], [0, 0, 1, 1], [], []>} : vector<6x32xf32>, vector<32x32xf32>, vector<6x32xf32> -> vector<6x32xf32>
    %cst_430 = arith.constant dense<0.000000e+00> : vector<42x32xf32>
    %1373 = tpu.matmul %1370, %1372, %cst_430 {dimension_numbers = #tpu.dot_dimension_numbers<[1], [0], [0], [1], [0, 0, 1, 1], [], []>} : vector<42x6xf32>, vector<6x32xf32>, vector<42x32xf32> -> vector<42x32xf32>
    %1374 = arith.addf %1369, %1373 : vector<42x32xf32>
    %c0_431 = arith.constant 0 : index
    %c0_432 = arith.constant 0 : index
    %1375 = vector.load %arg36[%c0_431, %c0_432] : memref<1x32xf32, #tpu.memory_space<vmem>>, vector<1x32xf32>
    %1376 = vector.broadcast %1375 : vector<1x32xf32> to vector<42x32xf32>
    %1377 = arith.addf %1374, %1376 : vector<42x32xf32>
    %1378 = math.tanh %1377 : vector<42x32xf32>
    %c0_433 = arith.constant 0 : index
    %c0_434 = arith.constant 0 : index
    %1379 = vector.load %arg37[%c0_433, %c0_434] : memref<32x32xf32, #tpu.memory_space<vmem>>, vector<32x32xf32>
    %cst_435 = arith.constant dense<0.000000e+00> : vector<42x32xf32>
    %1380 = tpu.matmul %1378, %1379, %cst_435 {dimension_numbers = #tpu.dot_dimension_numbers<[1], [0], [0], [1], [0, 0, 1, 1], [], []>} : vector<42x32xf32>, vector<32x32xf32>, vector<42x32xf32> -> vector<42x32xf32>
    %c0_436 = arith.constant 0 : index
    %c0_437 = arith.constant 0 : index
    %1381 = vector.load %arg38[%c0_436, %c0_437] : memref<1x32xf32, #tpu.memory_space<vmem>>, vector<1x32xf32>
    %1382 = vector.broadcast %1381 : vector<1x32xf32> to vector<42x32xf32>
    %1383 = arith.addf %1380, %1382 : vector<42x32xf32>
    %1384 = math.tanh %1383 : vector<42x32xf32>
    %c0_438 = arith.constant 0 : index
    %c0_439 = arith.constant 0 : index
    %1385 = vector.load %arg39[%c0_438, %c0_439] : memref<32x1xf32, #tpu.memory_space<vmem>>, vector<32x1xf32>
    %cst_440 = arith.constant dense<0.000000e+00> : vector<42x1xf32>
    %1386 = tpu.matmul %1384, %1385, %cst_440 {dimension_numbers = #tpu.dot_dimension_numbers<[1], [0], [0], [1], [0, 0, 1, 1], [], []>} : vector<42x32xf32>, vector<32x1xf32>, vector<42x1xf32> -> vector<42x1xf32>
    %c0_441 = arith.constant 0 : index
    %c0_442 = arith.constant 0 : index
    %1387 = vector.load %arg40[%c0_441, %c0_442] : memref<1x1xf32, #tpu.memory_space<vmem>>, vector<1x1xf32>
    %1388 = vector.broadcast %1387 : vector<1x1xf32> to vector<42x1xf32>
    %1389 = arith.addf %1386, %1388 : vector<42x1xf32>
    %c0_443 = arith.constant 0 : index
    %c0_444 = arith.constant 0 : index
    %1390 = vector.load %arg42[%c0_443, %c0_444] : memref<42x1xf32, #tpu.memory_space<vmem>>, vector<42x1xf32>
    tpu.vector_store %arg42[%c0_443, %c0_444], %1389 {strides = array<i32>} : memref<42x1xf32, #tpu.memory_space<vmem>>, vector<42x1xf32>,
    %c0_445 = arith.constant 0 : index
    %c0_446 = arith.constant 0 : index
    %1391 = vector.load %arg29[%c0_445, %c0_446] : memref<64x32xf32, #tpu.memory_space<vmem>>, vector<64x32xf32>
    %1392 = vector.extract_strided_slice %1391 {offsets = [0, 0], sizes = [32, 32], strides = [1, 1]} : vector<64x32xf32> to vector<32x32xf32>
    %cst_447 = arith.constant dense<0.000000e+00> : vector<14x32xf32>
    %1393 = tpu.matmul %6, %1392, %cst_447 {dimension_numbers = #tpu.dot_dimension_numbers<[1], [0], [0], [1], [0, 0, 1, 1], [], []>} : vector<14x32xf32>, vector<32x32xf32>, vector<14x32xf32> -> vector<14x32xf32>
    %1394 = vector.extract_strided_slice %1391 {offsets = [32, 0], sizes = [32, 32], strides = [1, 1]} : vector<64x32xf32> to vector<32x32xf32>
    %cst_448 = arith.constant dense<0.000000e+00> : vector<2x32xf32>
    %1395 = tpu.matmul %1347, %1394, %cst_448 {dimension_numbers = #tpu.dot_dimension_numbers<[1], [0], [0], [1], [0, 0, 1, 1], [], []>} : vector<2x32xf32>, vector<32x32xf32>, vector<2x32xf32> -> vector<2x32xf32>
    %cst_449 = arith.constant dense<0.000000e+00> : vector<14x32xf32>
    %1396 = tpu.matmul %11, %1395, %cst_449 {dimension_numbers = #tpu.dot_dimension_numbers<[1], [0], [0], [1], [0, 0, 1, 1], [], []>} : vector<14x2xf32>, vector<2x32xf32>, vector<14x32xf32> -> vector<14x32xf32>
    %1397 = arith.addf %1393, %1396 : vector<14x32xf32>
    %c0_450 = arith.constant 0 : index
    %c0_451 = arith.constant 0 : index
    %1398 = vector.load %arg30[%c0_450, %c0_451] : memref<1x32xf32, #tpu.memory_space<vmem>>, vector<1x32xf32>
    %1399 = vector.broadcast %1398 : vector<1x32xf32> to vector<14x32xf32>
    %1400 = arith.addf %1397, %1399 : vector<14x32xf32>
    %1401 = math.tanh %1400 : vector<14x32xf32>
    %c0_452 = arith.constant 0 : index
    %c0_453 = arith.constant 0 : index
    %1402 = vector.load %arg31[%c0_452, %c0_453] : memref<32x32xf32, #tpu.memory_space<vmem>>, vector<32x32xf32>
    %cst_454 = arith.constant dense<0.000000e+00> : vector<14x32xf32>
    %1403 = tpu.matmul %1401, %1402, %cst_454 {dimension_numbers = #tpu.dot_dimension_numbers<[1], [0], [0], [1], [0, 0, 1, 1], [], []>} : vector<14x32xf32>, vector<32x32xf32>, vector<14x32xf32> -> vector<14x32xf32>
    %c0_455 = arith.constant 0 : index
    %c0_456 = arith.constant 0 : index
    %1404 = vector.load %arg32[%c0_455, %c0_456] : memref<1x32xf32, #tpu.memory_space<vmem>>, vector<1x32xf32>
    %1405 = vector.broadcast %1404 : vector<1x32xf32> to vector<14x32xf32>
    %1406 = arith.addf %1403, %1405 : vector<14x32xf32>
    %1407 = math.tanh %1406 : vector<14x32xf32>
    %c0_457 = arith.constant 0 : index
    %c0_458 = arith.constant 0 : index
    %1408 = vector.load %arg33[%c0_457, %c0_458] : memref<32x1xf32, #tpu.memory_space<vmem>>, vector<32x1xf32>
    %cst_459 = arith.constant dense<0.000000e+00> : vector<14x1xf32>
    %1409 = tpu.matmul %1407, %1408, %cst_459 {dimension_numbers = #tpu.dot_dimension_numbers<[1], [0], [0], [1], [0, 0, 1, 1], [], []>} : vector<14x32xf32>, vector<32x1xf32>, vector<14x1xf32> -> vector<14x1xf32>
    %c0_460 = arith.constant 0 : index
    %c0_461 = arith.constant 0 : index
    %1410 = vector.load %arg34[%c0_460, %c0_461] : memref<1x1xf32, #tpu.memory_space<vmem>>, vector<1x1xf32>
    %1411 = vector.broadcast %1410 : vector<1x1xf32> to vector<14x1xf32>
    %1412 = arith.addf %1409, %1411 : vector<14x1xf32>
    %c0_462 = arith.constant 0 : index
    %c0_463 = arith.constant 0 : index
    %1413 = vector.load %arg43[%c0_462, %c0_463] : memref<14x1xf32, #tpu.memory_space<vmem>>, vector<14x1xf32>
    tpu.vector_store %arg43[%c0_462, %c0_463], %1412 {strides = array<i32>} : memref<14x1xf32, #tpu.memory_space<vmem>>, vector<14x1xf32>,
    return
  }
}

</mosaic_0001>

<bundles_post_ra>
// kernel: forward.1
= control target key start
LH: loop header
LB: loop body
LE: loop exit
PB: predicated region body
PF: predicated region fallthrough
CT: control target
= control target key end

     0   :  { %s7746_s3 = smov 10   ;;  %v7747_v0 = vmov 0.0   ;;  %vm7748_vm0 = vmmov 0   ;;  %s7749_s10 = smov 23   ;;  %vm199_vm1 = vcmask 1043456   ;;  %vm192_vm2 = vcmask 31744   ;;  %s9102_s0 = inlined_call_operand.smem [shape: u32[44], index: -1, kind: input, shape index: {}] }
   0x1   :  { %s6259_s6 = sld [smem:[%s9102_s0 + %s7746_s3]]   ;;  %6802 = vmatprep.subr.mxu0 %v7747_v0  ;;  %6810 = vmatprep.mubr.msk.f32.mxu0 %vm7748_vm0, %v7747_v0  ;;  %s7750_s14 = smov 11   ;;  %vm463_vm3 = vcmask 1041408   ;;  %vm288_vm4 = vcmask 261120   ;;  %vm456_vm5 = vcmask 15360   ;;  %vm743_vm6 = vcmask 5120  }
   0x2   :  { %s1_s9 = sld [smem:[%s9102_s0]]   ;;  %s7751_s18 = smov 5   ;;  %vm741_vm7 = vcmask 7168   ;;  %vm762_vm8 = vcmask 1045504   ;;  %vm758_vm9 = vcmask 113664  }
   0x3   :  { %s7812_s13 = sld [smem:[%s9102_s0 + %s7749_s10]]   ;;  %s7752_s22 = smov 25  }
   0x4   :  { %s6260_s17 = sld [smem:[%s9102_s0 + %s7750_s14]]   ;;  %s7753_s26 = smov 24  }
   0x5   :  { %s7833_s21 = sld [smem:[%s9102_s0 + %s7751_s18]]   ;;  %s7754_s30 = smov 27  }
   0x6   :  { %s7857_s25 = sld [smem:[%s9102_s0 + %s7752_s22]]   ;;  %s7755_s4 = smov 28  }
   0x7   :  { %v184_v1 = vld [vmem:[%s6259_s6] sm:$0xf]  ;;  %s7867_s29 = sld [smem:[%s9102_s0 + %s7753_s26]]   ;;  %s7756_s8 = smov 26  }
   0x8   :  { %6786 = vmatprep.subr.msk.mxu1 %vm199_vm1, %v184_v1  ;;  %v182_v2 = vld [vmem:[%s1_s9] sm:$0xff]  ;;  %v183_v3 = vld [vmem:[%s1_s9 + $0x8] sm:$0x3f]  ;;  %s7883_s3 = sld [smem:[%s9102_s0 + %s7754_s30]]   ;;  %s7757_s12 = smov 6  }
   0x9   :  { %6787 = vmatpush3.msk.msra.mxu1 %vm199_vm1, %v184_v1  ;;  %6788 = vmatprep.mubr.msk.f32.mxu1 %vm192_vm2, %v182_v2  ;;  %v287_v4 = vld [vmem:[%s7812_s13 + $0x38] sm:$0xff]  ;;  %v286_v5 = vld [vmem:[%s7812_s13 + $0x30] sm:$0xff]  ;;  %v285_v6 = vld [vmem:[%s7812_s13 + $0x28] sm:$0xff]  ;;  %s6277_s7 = sld [smem:[%s9102_s0 + %s7755_s4]]   ;;  %s7760_s22 = smov 13  }
   0xa   :  { %6789 = vmatmul.mubr.msk.f32.vlgmr.msra.gmra.mxu1 %vm192_vm2, %v183_v3  ;;  %6803 = vmatpush3.msra.mxu0 %v287_v4  ;;  %v284_v7 = vld [vmem:[%s7812_s13 + $0x20] sm:$0xff]  ;;  %v283_v8 = vld [vmem:[%s7812_s13 + $0x18] sm:$0xff]  ;;  %v282_v9 = vld [vmem:[%s7812_s13 + $0x10] sm:$0xff]  ;;  %s7895_s11 = sld [smem:[%s9102_s0 + %s7756_s8]]   ;;  %s7761_s27 = smov 15  }
   0xb   :  { %6804 = vmatprep.subr.mxu0 %v7747_v0  ;;  %6791 = vmatprep.subr.mxu1 %v283_v8  ;;  %v281_v10 = vld [vmem:[%s7812_s13 + $0x8] sm:$0xff]  ;;  %v280_v11 = vld [vmem:[%s7812_s13] sm:$0xff]  ;;  %s7907_s16 = sld [smem:[%s9102_s0 + %s7757_s12]]   ;;  %s7763_s2 = smov 16  }
   0xc   :  { %6805 = vmatpush3.msra.mxu0 %v286_v5  ;;  %6792 = vmatpush3.msra.mxu1 %v283_v8  ;;  %v6293_v12 = vld [vmem:[%s6260_s17] ss:$0 sm:$0xff]  ;;  %v7850_v22 = vld [vmem:[%s7833_s21 + $0x8] sm:$0x3f]  ;;  %v558_v23 = vld [vmem:[%s7857_s25 + $0x18] sm:$0xff]  ;;  %s7759_s17 = smov 12   ;;  %s7933_s26 = sld [smem:[%s9102_s0 + %s7760_s22]]  }
   0xd   :  { %6806 = vmatprep.subr.mxu0 %v7747_v0  ;;  %6793 = vmatprep.subr.mxu1 %v282_v9  ;;  %v7838_v20 = vld [vmem:[%s7833_s21] sm:$0xff]  ;;  %v557_v24 = vld [vmem:[%s7857_s25 + $0x10] sm:$0xff]  ;;  %v556_v25 = vld [vmem:[%s7857_s25 + $0x8] sm:$0xff]  ;;  %s7928_s20 = sld [smem:[%s9102_s0 + %s7759_s17]]   ;;  %s7765_s8 = smov 2  }
   0xe   :  { %6807 = vmatpush3.msra.mxu0 %v285_v6  ;;  %6794 = vmatpush3.msra.mxu1 %v282_v9  ;;  %v555_v26 = vld [vmem:[%s7857_s25] sm:$0xff]  ;;  %v652_v38 = vld [vmem:[%s7883_s3 + $0x18] sm:$0xff]  ;;  %v651_v39 = vld [vmem:[%s7883_s3 + $0x10] sm:$0xff]  ;;  %s7971_s1 = sld [smem:[%s9102_s0 + %s7761_s27]]   ;;  %s7766_s14 = smov 14  }
   0xf   :  { %6808 = vmatprep.subr.mxu0 %v7747_v0  ;;  %6795 = vmatprep.subr.mxu1 %v281_v10  ;;  %v6302_v31 = vld [vmem:[%s7867_s29] ss:$0 sm:$0xff]  ;;  %v650_v40 = vld [vmem:[%s7883_s3 + $0x8] sm:$0xff]  ;;  %v93_v42 = vstv %s6277_s7  ;;  %s7995_s6 = sld [smem:[%s9102_s0 + %s7763_s2]]   ;;  %s7764_s7 = smov 64  }
  0x10   :  { %6809 = vmatpush3.msra.mxu0 %v284_v7  ;;  %6796 = vmatpush3.msra.mxu1 %v281_v10  ;;  %v649_v41 = vld [vmem:[%s7883_s3] sm:$0xff]  ;;  %94 = vst [vmem:[#allocation4] sm:$0x1] %v93_v42  ;;  %v7758_v10 = vmov 0   ;;  %s8007_s12 = sld [smem:[%s9102_s0 + %s7765_s8]]   ;;  %s7767_s19 = smov 32  }
  0x11   :  { %6811 = vmatmul.mubr.f32.vlgmr.msra.gmra.mxu0 %v7747_v0  ;;  %6797 = vmatprep.subr.mxu1 %v280_v11  ;;  %v6303_v43 = vld [vmem:[%s7895_s11] ss:$0 sm:$0xff]  ;;  %s8013_s18 = sld [smem:[%s9102_s0 + %s7766_s14]]   ;;  %s7768_s22 = smov 1  }
  0x12   :  { %6798 = vmatpush3.msra.mxu1 %v280_v11  ;;  %6818 = vmatprep.subr.mxu0 %v558_v23  ;;  %v372_v6 = vld [vmem:[%s7907_s16] sm:$0x3]  ;;  %s8026_s27 = sld [smem:[%s9102_s0 + %s7768_s22]]   ;;  %s7769_s28 = smov 96  }
  0x13   :  { %6819 = vmatpush3.msra.mxu0 %v558_v23  ;;  %7444 = vset.pattern.permute.xlu0 %v7758_v10  ;;  %s7770_s30 = smov 3   ;;  %s7771_s8 = smov 19  }
  0x14   :  { %6820 = vmatprep.subr.mxu0 %v557_v24  ;;  %7445 = vset.pattern.permute.xlu1 %v7758_v10  ;;  %s8253_s5 = sld [smem:[%s9102_s0 + %s7770_s30]]   ;;  %s7772_s15 = smov 17  }
  0x15   :  { %6821 = vmatpush3.msra.mxu0 %v557_v24  ;;  %v8000_v42 = vld [vmem:[%s7995_s6] ss:$0 sm:$0xff]  ;;  %s8286_s14 = sld [smem:[%s9102_s0 + %s7771_s8]]   ;;  %s7773_s24 = smov 20  }
  0x16   :  { %6822 = vmatprep.subr.mxu0 %v556_v25  ;;  %s8291_s23 = sld [smem:[%s9102_s0 + %s7772_s15]]   ;;  %s7774_s8 = smov 18  }
  0x17   :  { %6823 = vmatpush3.msra.mxu0 %v556_v25  ;;  %v6306_v50 = vld [vmem:[#allocation4] ss:$0 sm:$0xff]  ;;  %s8328_s4 = sld [smem:[%s9102_s0 + %s7773_s24]]   ;;  %s7779_s22 = smov 22  }
  0x18   :  { %6824 = vmatprep.subr.mxu0 %v555_v26  ;;  %s8347_s15 = sld [smem:[%s9102_s0 + %s7774_s8]]   ;;  %s7780_s2 = smov 41  }
  0x19   :  { %6825 = vmatpush3.msra.mxu0 %v555_v26  ;;  %s6271_s30 = sld [smem:[%s9102_s0 + %s7779_s22]]   ;;  %s7786_s22 = smov 39  }
  0x1a   :  { %6840 = vmatprep.subr.mxu0 %v7747_v0  ;;  %s6290_s9 = sld [smem:[%s9102_s0 + %s7780_s2]]   ;;  %s7787_s2 = smov 40  }
  0x1b   :  { %s7794_s8 = smov 43  }
  0x1c   :  { %s6292_s10 = sld [smem:[%s9102_s0 + %s7794_s8]]  }
  0xca   :  { %v6790_v13 = vpop.f32.mrf.mxu1 }
  0xcb   :  { %v275_v14 = vadd.f32 %v6790_v13, %v6293_v12 }
  0xcc   :  { %v269_v15 = vpop.f32.mrf.mxu1 }
  0xcd   :  { %v270_v16 = vadd.f32 %v6293_v12, %v269_v15 }
  0xcf   :  { %7458 = vtanh.f32 %v270_v16 }
  0xd0   :  { %7460 = vtanh.f32 %v275_v14 }
  0xd1   :  { %v452_v17 = vpop.f32.mrf.mxu0 }
  0xd2   :  { %6813 = vmatprep.subr.msk.mxu1 %vm463_vm3, %v452_v17 }
  0xd3   :  { %v6812_v18 = vpop.f32.mrf.mxu0 }
  0xd4   :  { %v1005_v18 = vld [vmem:[%s7928_s20 + $0x10] sm:$0xff] }
  0xdc   :  { %v7835_v19 = vpop.eup %7458 }
  0xdd   :  { %v7840_v21 = vpop.eup %7460  ;;  %6799 = vmatprep.mubr.msk.f32.mxu1 %vm288_vm4, %v7835_v19 }
  0xde   :  { %6800 = vmatmul.mubr.msk.f32.vlgmr.msra.gmra.mxu1 %vm288_vm4, %v7840_v21 }
  0xdf   :  { %6814 = vmatpush3.msk.msra.mxu1 %vm463_vm3, %v452_v17  ;;  %6815 = vmatprep.mubr.msk.f32.mxu1 %vm456_vm5, %v7838_v20  ;;  %v1006_v17 = vld [vmem:[%s7928_s20 + $0x18] sm:$0xff] }
  0xe0   :  { %6829 = vmatprep.subr.mxu1 %v652_v38 }
  0xe2   :  { %6816 = vmatmul.mubr.msk.f32.vlgmr.msra.gmra.mxu1 %vm456_vm5, %v7850_v22 }
  0xe3   :  { %6830 = vmatpush3.msra.mxu1 %v652_v38 }
  0xe4   :  { %6831 = vmatprep.subr.mxu1 %v651_v39 }
  0xe5   :  { %6832 = vmatpush3.msra.mxu1 %v651_v39 }
  0xe6   :  { %6833 = vmatprep.subr.mxu1 %v650_v40 }
  0xe7   :  { %6834 = vmatpush3.msra.mxu1 %v650_v40 }
  0xe8   :  { %6835 = vmatprep.subr.mxu1 %v649_v41 }
  0xe9   :  { %6836 = vmatpush3.msra.mxu1 %v649_v41 }
 0x19e   :  { %v7869_v27 = vpop.f32.mrf.mxu1 }
 0x1a0   :  { %v7871_v28 = vpop.f32.mrf.mxu1 }
 0x1a2   :  { %v6817_v29 = vpop.f32.mrf.mxu1 }
 0x1a3   :  { %v543_v30 = vadd.f32 %v6817_v29, %v7869_v27  ;;  %v7948_v29 = vld [vmem:[%s7933_s26 + $0x8] sm:$0xff]  }
 0x1a4   :  { %v533_v32 = vpop.f32.mrf.mxu1 }
 0x1a5   :  { %v542_v33 = vadd.f32 %v533_v32, %v7871_v28  ;;  %v552_v34 = vadd.f32 %v6302_v31, %v543_v30  ;;  %v7954_v30 = vld [vmem:[%s7933_s26] sm:$0xff]  }
 0x1a7   :  { %v551_v35 = vadd.f32 %v6302_v31, %v542_v33  ;;  %v7974_v31 = vld [vmem:[%s7971_s1 + $0x8] sm:$0xff]  }
 0x1a9   :  { %7462 = vtanh.f32 %v551_v35  ;;  %v7762_v35 = vmov 0.0|0.0  }
 0x1aa   :  { %7464 = vtanh.f32 %v552_v34  ;;  %v7979_v34 = vld [vmem:[%s7971_s1] sm:$0xff]  }
 0x1b6   :  { %v7463_v36 = vpop.eup %7462 }
 0x1b7   :  { %v7465_v37 = vpop.eup %7464  ;;  %6826 = vmatprep.mubr.msk.f32.mxu0 %vm288_vm4, %v7463_v36 }
 0x1b8   :  { %6827 = vmatmul.mubr.msk.f32.vlgmr.msra.gmra.mxu0 %vm288_vm4, %v7465_v37 }
 0x1b9   :  { %6844 = vmatprep.mubr.msk.f32.mxu0 %vm7748_vm0, %v7747_v0 }
 0x278   :  { %v6828_v44 = vpop.f32.mrf.mxu0 }
 0x279   :  { %v644_v45 = vadd.f32 %v6828_v44, %v6303_v43 }
 0x27a   :  { %v638_v46 = vpop.f32.mrf.mxu0 }
 0x27b   :  { %v639_v47 = vadd.f32 %v6303_v43, %v638_v46 }
 0x27d   :  { %7466 = vtanh.f32 %v639_v47 }
 0x27e   :  { %7468 = vtanh.f32 %v644_v45 }
 0x28a   :  { %v7467_v48 = vpop.eup %7466 }
 0x28b   :  { %v7469_v49 = vpop.eup %7468  ;;  %6837 = vmatprep.mubr.msk.f32.mxu1 %vm288_vm4, %v7467_v48  ;;  %v1170_v48 = vld [vmem:[%s8007_s12] sm:$0xf] }
 0x28c   :  { %6838 = vmatmul.mubr.msk.f32.vlgmr.msra.gmra.mxu1 %vm288_vm4, %v7469_v49 }
 0x28d   :  { %6849 = vmatprep.mubr.msk.f32.mxu1 %vm456_vm5, %v7838_v20  ;;  %v1004_v20 = vld [vmem:[%s7928_s20 + $0x8] sm:$0xff] }
 0x34c   :  { %v6839_v51 = vpop.f32.mrf.mxu1 }
 0x34d   :  { %v738_v52 = vadd.f32 %v6839_v51, %v6306_v50 }
 0x34e   :  { %v732_v53 = vpop.f32.mrf.mxu1 }
 0x34f   :  { %v733_v54 = vadd.f32 %v6306_v50, %v732_v53  ;;  %v744_v55 = vsel %vm743_vm6, %v738_v52, -inf }
 0x351   :  { %v742_v56 = vsel %vm741_vm7, %v733_v54, -inf }
 0x352   :  { %v745_v57 = vmax.f32 %v742_v56, %v744_v55  ;;  %v8017_v56 = vld [vmem:[%s8013_s18] ss:$0 sm:$0xff] }
 0x354   :  { %v746_v58 = vrot.slane %v745_v57, 4 }
 0x356   :  { %v747_v59 = vmax.f32 %v745_v57, %v746_v58  ;;  %v1081_v58 = vld [vmem:[%s8026_s27] sm:$0x3] }
 0x358   :  { %v748_v60 = vrot.slane %v747_v59, 2 }
 0x35a   :  { %v749_v61 = vmax.f32 %v747_v59, %v748_v60 }
 0x35c   :  { %v750_v62 = vrot.slane %v749_v61, 1 }
 0x35e   :  { %v751_v63 = vmax.f32 %v749_v61, %v750_v62 }
 0x360   :  { %v752_v1 = vsub.f32 %v733_v54, %v751_v63  ;;  %v753_v2 = vsub.f32 %v738_v52, %v751_v63 }
 0x362   :  { %v756_v3 = vmul.f32 1.442695, %v753_v2  ;;  %v754_v4 = vmul.f32 1.442695, %v752_v1 }
 0x364   :  { %7470 = vpow2.f32 %v756_v3 }
 0x365   :  { %7472 = vpow2.f32 %v754_v4 }
 0x371   :  { %v7471_v5 = vpop.eup %7470 }
 0x372   :  { %6841 = vmatpush3.msk.msra.mxu0 %vm762_vm8, %v7471_v5  ;;  %v7473_v7 = vpop.eup %7472 }
 0x373   :  { %6842 = vmatprep.subr.mxu0 %v7747_v0 }
 0x374   :  { %6843 = vmatpush3.msra.mxu0 %v7473_v7 }
 0x375   :  { %6845 = vmatmul.mubr.msk.f32.vlgmr.msra.gmra.mxu0 %vm758_vm9, %v372_v6  ;;  %6852 = vmatprep.subr.mxu0 %v7747_v0 }
 0x376   :  { %6856 = vmatprep.mubr.msk.f32.mxu0 %vm7748_vm0, %v7747_v0 }
 0x435   :  { %v832_v8 = vpop.f32.mrf.mxu0 }
 0x436   :  { %6847 = vmatprep.subr.msk.mxu1 %vm463_vm3, %v832_v8 }
 0x437   :  { %v6846_v9 = vpop.f32.mrf.mxu0  ;;  %6848 = vmatpush3.msk.msra.mxu1 %vm463_vm3, %v832_v8 }
 0x438   :  { %6850 = vmatmul.mubr.msk.f32.vlgmr.msra.gmra.mxu1 %vm456_vm5, %v7850_v22  ;;  %6859 = vmatprep.subr.mxu1 %v7747_v0  ;;  %v1003_v22 = vld [vmem:[%s7928_s20] sm:$0xff] }
 0x439   :  { %6867 = vmatprep.mubr.msk.f32.mxu1 %vm7748_vm0, %v7747_v0  ;;  %6860 = vmatpush3.msra.mxu1 %v1006_v17 }
 0x43a   :  { %6861 = vmatprep.subr.mxu1 %v7747_v0 }
 0x43b   :  { %6862 = vmatpush3.msra.mxu1 %v1005_v18 }
 0x43c   :  { %6863 = vmatprep.subr.mxu1 %v7747_v0 }
 0x43d   :  { %6864 = vmatpush3.msra.mxu1 %v1004_v20 }
 0x43e   :  { %6865 = vmatprep.subr.mxu1 %v7747_v0 }
 0x43f   :  { %6866 = vmatpush3.msra.mxu1 %v1003_v22 }
 0x440   :  { %6878 = vmatprep.subr.bf16.mxu1 %v7747_v0 }
 0x4f8   :  { %v6851_v11 = vpop.f32.mrf.mxu1 }
 0x4f9   :  { %7474 = vrcp.f32 %v6851_v11 }
 0x4fa   :  { %v905_v12 = vpop.f32.mrf.mxu1 }
 0x4fb   :  { %7476 = vrcp.f32 %v905_v12 }
 0x506   :  { %v7475_v13 = vpop.eup %7474 }
 0x507   :  { %v917_v14 = vmul.f32 %v7475_v13, %v7471_v5 }
 0x508   :  { %v7477_v15 = vpop.eup %7476 }
 0x509   :  { %925 = vperm.xlu0 %7444, %v917_v14   ;;  %v916_v16 = vmul.f32 %v7477_v15, %v7473_v7 }
 0x50d   :  { %920 = vperm.xlu0 %7444, %v916_v16  }
 0x584   :  { %v926_v23 = vpop.permute.xlu0 %925 }
 0x585   :  { %v929_v24 = vmul.f32 %v7840_v21, %v926_v23 }
 0x587   :  { %6853 = vmatpush3.msk.msra.mxu0 %vm762_vm8, %v929_v24 }
 0x588   :  { %v921_v25 = vpop.permute.xlu0 %920  ;;  %6854 = vmatprep.subr.mxu0 %v7747_v0 }
 0x589   :  { %v928_v26 = vmul.f32 %v7835_v19, %v921_v25 }
 0x58b   :  { %6855 = vmatpush3.msra.mxu0 %v928_v26 }
 0x58c   :  { %6857 = vmatmul.mubr.msk.f32.vlgmr.msra.gmra.mxu0 %vm758_vm9, %v372_v6  ;;  %6870 = vmatprep.subr.bf16.mxu0 %v7747_v0 }
 0x58d   :  { %6871 = vmatpush3.bf16.msra.mxu0 %v7948_v29  ;;  %6874 = vmatprep.mubr.msk.bf16.mxu0 %vm7748_vm0, %v7747_v0 }
 0x58e   :  { %6872 = vmatprep.subr.bf16.mxu0 %v7747_v0 }
 0x591   :  { %6873 = vmatpush3.bf16.msra.mxu0 %v7954_v30 }
 0x592   :  { %6886 = vmatprep.subr.bf16.mxu0 %v7747_v0 }
 0x594   :  { %6875 = vmatmul.mubr.bf16.vlgmr.msra.gmra.mxu0 %v7758_v10 }
 0x595   :  { %6887 = vmatpush3.bf16.msra.mxu0 %v7948_v29  ;;  %6890 = vmatprep.mubr.msk.bf16.mxu0 %vm7748_vm0, %v7747_v0 }
 0x596   :  { %6888 = vmatprep.subr.bf16.mxu0 %v7747_v0 }
 0x599   :  { %6889 = vmatpush3.bf16.msra.mxu0 %v7954_v30 }
 0x59a   :  { %6902 = vmatprep.subr.bf16.mxu0 %v7747_v0 }
 0x64c   :  { %v999_v32 = vpop.f32.mrf.mxu0 }
 0x64d   :  { %6868 = vmatmul.mubr.msk.f32.vlgmr.msra.gmra.mxu1 %vm288_vm4, %v999_v32 }
 0x64e   :  { %6879 = vmatpush3.bf16.msra.mxu1 %v7974_v31  ;;  %v6858_v33 = vpop.f32.mrf.mxu0  ;;  %6882 = vmatprep.mubr.msk.bf16.mxu1 %vm7748_vm0, %v7747_v0 }
 0x64f   :  { %6880 = vmatprep.subr.bf16.mxu1 %v7747_v0 }
 0x652   :  { %6881 = vmatpush3.bf16.msra.mxu1 %v7979_v34 }
 0x653   :  { %6894 = vmatprep.subr.bf16.mxu1 %v7747_v0 }
 0x654   :  { %v1138_v36 = vpop.f32.mrf.mxu0 }
 0x655   :  { %6883 = vmatmul.mubr.bf16.vlgmr.msra.gmra.mxu1 %v7762_v35  ;;  %v1139_v57 = vadd.f32 %v8017_v56, %v1138_v36 }
 0x656   :  { %6895 = vmatpush3.bf16.msra.mxu1 %v7974_v31  ;;  %6898 = vmatprep.mubr.msk.bf16.mxu1 %vm7748_vm0, %v7747_v0  ;;  %v6876_v37 = vpop.f32.mrf.mxu0 }
 0x657   :  { %6896 = vmatprep.subr.bf16.mxu1 %v7747_v0 }
 0x658   :  { %v1141_v38 = vpop.f32.mrf.mxu0 }
 0x65a   :  { %6897 = vmatpush3.bf16.msra.mxu1 %v7979_v34  ;;  %v6877_v39 = vpop.f32.mrf.mxu0 }
 0x65b   :  { %6910 = vmatprep.subr.bf16.mxu1 %v7747_v0  ;;  %v6328_v39 = vld [vmem:[%s8007_s12 + $0x4] sm:$0xf] }
 0x70d   :  { %v7997_v40 = vpop.f32.mrf.mxu1 }
 0x70e   :  { %v1082_v59 = vadd.f32 %v1081_v58, %v7997_v40 }
 0x70f   :  { %v6869_v41 = vpop.f32.mrf.mxu1 }
 0x710   :  { %v1144_v60 = vadd.f32 %v1139_v57, %v1082_v59 }
 0x712   :  { %v6320_v61 = vmul.f32 -1.442695, %v1144_v60 }
 0x715   :  { %v1227_v43 = vpop.f32.mrf.mxu1 }
 0x716   :  { %v1228_v44 = vadd.f32 %v8000_v42, %v1227_v43 }
 0x717   :  { %v6884_v45 = vpop.f32.mrf.mxu1 }
 0x718   :  { %1241 = vrot.lane.b32.xlu1 %v1228_v44, %s7764_s7  ;;  %v1233_v49 = vadd.f32 %v1228_v44, %v1170_v48 }
 0x719   :  { %v1230_v46 = vpop.f32.mrf.mxu1 }
 0x71a   :  { %v6324_v50 = vmul.f32 -1.442695, %v1233_v49 }
 0x71b   :  { %v6885_v47 = vpop.f32.mrf.mxu1 }
 0x71c   :  { %7478 = vpow2.f32 %v6324_v50 }
 0x729   :  { %v7479_v51 = vpop.eup %7478 }
 0x72a   :  { %v1237_v52 = vadd.f32 1.0, %v7479_v51 }
 0x72c   :  { %7480 = vrcp.f32 %v1237_v52 }
 0x72d   :  { %7482 = vpow2.f32 %v6320_v61 }
 0x739   :  { %v7481_v53 = vpop.eup %7480 }
 0x73a   :  { %v7483_v62 = vpop.eup %7482  ;;  %v1251_v11 = vsub.f32 1.0, %v7481_v53 }
 0x73b   :  { %v1148_v63 = vadd.f32 1.0, %v7483_v62 }
 0x73d   :  { %7484 = vrcp.f32 %v1148_v63 }
 0x74a   :  { %v7485_v4 = vpop.eup %7484 }
 0x74b   :  { %v1162_v20 = vsub.f32 1.0, %v7485_v4  ;;  %v1168_v23 = vmul.f32 0.0, %v7485_v4 }
 0x78a   :  { %v1242_v54 = vpop.permute.xlu1 %1241 }
 0x78b   :  { %v1244_v55 = vmul.f32 %v7481_v53, %v1242_v54  ;;  %v6325_v54 = vld [vmem:[%s8026_s27 + $0x2] sm:$0x3] }
 0x78d   :  { %1246 = vrot.lane.b32.xlu1 %v1244_v55, %s7764_s7  ;;  %v1283_v55 = vadd.f32 %v6325_v54, %v7997_v40 }
 0x791   :  { %1257 = vrot.lane.b32.xlu1 %v7747_v0, %s7767_s19 }
 0x795   :  { %1152 = vrot.lane.b32.xlu1 %v1139_v57, %s7764_s7 }
 0x7ff   :  { %v1247_v1 = vpop.permute.xlu1 %1246 }
 0x800   :  { %v1249_v2 = vadd.f32 %v1247_v1, %v1170_v48 }
 0x802   :  { %7486 = vtanh.f32 %v1249_v2 }
 0x803   :  { %v1258_v3 = vpop.permute.xlu1 %1257 }
 0x804   :  { %v1260_v13 = vmul.f32 %v7481_v53, %v1258_v3 }
 0x807   :  { %v1153_v5 = vpop.permute.xlu1 %1152 }
 0x808   :  { %v1155_v6 = vmul.f32 %v7485_v4, %v1153_v5 }
 0x80a   :  { %1157 = vrot.lane.b32.xlu1 %v1155_v6, %s7764_s7 }
 0x80f   :  { %v7487_v7 = vpop.eup %7486 }
 0x810   :  { %1253 = vrot.lane.b32.xlu0 %v7487_v7, %s7769_s28 }
 0x87c   :  { %v1158_v8 = vpop.permute.xlu1 %1157 }
 0x87d   :  { %v1160_v9 = vadd.f32 %v1158_v8, %v1082_v59 }
 0x87f   :  { %7488 = vtanh.f32 %v1160_v9 }
 0x882   :  { %v1254_v12 = vpop.permute.xlu0 %1253 }
 0x883   :  { %v1256_v14 = vmul.f32 %v1254_v12, %v1251_v11 }
 0x885   :  { %v8032_v15 = vadd.f32 %v1260_v13, %v1256_v14 }
 0x887   :  { %v1359_v16 = vpack.c.bf16 %v8032_v15, %v8032_v15 }
 0x889   :  { %1361 = vrot.lane.b32.xlu0 %v1359_v16, %s7769_s28 }
 0x88c   :  { %v7489_v17 = vpop.eup %7488 }
 0x88d   :  { %1164 = vrot.lane.b32.xlu1 %v7489_v17, %s7769_s28 }
 0x8fb   :  { %v1362_v18 = vpop.permute.xlu0 %1361 }
 0x8fc   :  { %6899 = vmatmul.mubr.msk.bf16.vlgmr.msra.gmra.mxu1 %vm288_vm4, %v1362_v18 }
 0x8fd   :  { %6911 = vmatpush3.bf16.msra.mxu1 %v7974_v31  ;;  %6914 = vmatprep.mubr.msk.bf16.mxu1 %vm7748_vm0, %v7747_v0 }
 0x8fe   :  { %6912 = vmatprep.subr.bf16.mxu1 %v7747_v0 }
 0x8ff   :  { %v1165_v22 = vpop.permute.xlu1 %1164 }
 0x900   :  { %v1167_v24 = vmul.f32 %v1165_v22, %v1162_v20 }
 0x901   :  { %6913 = vmatpush3.bf16.msra.mxu1 %v7979_v34 }
 0x902   :  { %v8044_v25 = vadd.f32 %v1168_v23, %v1167_v24  ;;  %6926 = vmatprep.subr.bf16.mxu1 %v7747_v0 }
 0x904   :  { %v1284_v26 = vpack.c.bf16 %v8044_v25, %v8044_v25 }
 0x906   :  { %1286 = vrot.lane.b32.xlu1 %v1284_v26, %s7769_s28 }
 0x978   :  { %v1287_v32 = vpop.permute.xlu1 %1286 }
 0x979   :  { %6891 = vmatmul.mubr.msk.bf16.vlgmr.msra.gmra.mxu0 %vm288_vm4, %v1287_v32 }
 0x97a   :  { %6903 = vmatpush3.bf16.msra.mxu0 %v7948_v29  ;;  %6906 = vmatprep.mubr.msk.bf16.mxu0 %vm7748_vm0, %v7747_v0 }
 0x97b   :  { %6904 = vmatprep.subr.bf16.mxu0 %v7747_v0 }
 0x97e   :  { %6905 = vmatpush3.bf16.msra.mxu0 %v7954_v30 }
 0x97f   :  { %6918 = vmatprep.subr.bf16.mxu0 %v7747_v0 }
 0x9bc   :  { %v1400_v33 = vpop.f32.mrf.mxu1 }
 0x9bd   :  { %v1401_v35 = vadd.f32 %v8000_v42, %v1400_v33 }
 0x9be   :  { %v6900_v36 = vpop.f32.mrf.mxu1 }
 0x9bf   :  { %1414 = vrot.lane.b32.xlu0 %v1401_v35, %s7764_s7  ;;  %v1406_v41 = vadd.f32 %v6328_v39, %v1401_v35 }
 0x9c0   :  { %v1403_v37 = vpop.f32.mrf.mxu1 }
 0x9c1   :  { %v6330_v43 = vmul.f32 -1.442695, %v1406_v41  ;;  %v6334_v37 = vld [vmem:[%s8007_s12 + $0x8] sm:$0xf] }
 0x9c2   :  { %v6901_v38 = vpop.f32.mrf.mxu1 }
 0x9c3   :  { %7490 = vpow2.f32 %v6330_v43 }
 0x9d0   :  { %v7491_v44 = vpop.eup %7490 }
 0x9d1   :  { %v1410_v45 = vadd.f32 1.0, %v7491_v44 }
 0x9d3   :  { %7492 = vrcp.f32 %v1410_v45 }
 0x9e0   :  { %v7493_v46 = vpop.eup %7492 }
 0x9e1   :  { %v1424_v6 = vsub.f32 1.0, %v7493_v46  ;;  %v1430_v8 = vmul.f32 %v7493_v46, %v8032_v15 }
 0xa31   :  { %v1415_v47 = vpop.permute.xlu0 %1414 }
 0xa32   :  { %v1417_v48 = vmul.f32 %v7493_v46, %v1415_v47 }
 0xa34   :  { %1419 = vrot.lane.b32.xlu0 %v1417_v48, %s7764_s7 }
 0xa39   :  { %v1325_v49 = vpop.f32.mrf.mxu0 }
 0xa3a   :  { %v1326_v50 = vadd.f32 %v8017_v56, %v1325_v49 }
 0xa3b   :  { %v6892_v51 = vpop.f32.mrf.mxu0 }
 0xa3c   :  { %1339 = vrot.lane.b32.xlu1 %v1326_v50, %s7764_s7  ;;  %v1331_v57 = vadd.f32 %v1326_v50, %v1283_v55 }
 0xa3d   :  { %v1328_v52 = vpop.f32.mrf.mxu0 }
 0xa3e   :  { %v6327_v58 = vmul.f32 -1.442695, %v1331_v57  ;;  %v6331_v52 = vld [vmem:[%s8026_s27 + $0x4] sm:$0x3] }
 0xa3f   :  { %v6893_v53 = vpop.f32.mrf.mxu0 }
 0xa40   :  { %7494 = vpow2.f32 %v6327_v58  ;;  %v1451_v53 = vadd.f32 %v6331_v52, %v7997_v40  ;;  %v6337_v52 = vld [vmem:[%s8026_s27 + $0x6] sm:$0x3] }
 0xa4d   :  { %v7495_v59 = vpop.eup %7494 }
 0xa4e   :  { %v1335_v60 = vadd.f32 1.0, %v7495_v59 }
 0xa50   :  { %7496 = vrcp.f32 %v1335_v60 }
 0xa5d   :  { %v7497_v63 = vpop.eup %7496 }
 0xa5e   :  { %v1349_v16 = vsub.f32 1.0, %v7497_v63  ;;  %v1355_v18 = vmul.f32 %v7497_v63, %v8044_v25 }
 0xaa6   :  { %v1420_v61 = vpop.permute.xlu0 %1419 }
 0xaa7   :  { %v1422_v62 = vadd.f32 %v6328_v39, %v1420_v61 }
 0xaa9   :  { %7498 = vtanh.f32 %v1422_v62 }
 0xaae   :  { %v1340_v1 = vpop.permute.xlu1 %1339 }
 0xaaf   :  { %v1342_v2 = vmul.f32 %v7497_v63, %v1340_v1 }
 0xab1   :  { %1344 = vrot.lane.b32.xlu1 %v1342_v2, %s7764_s7 }
 0xab6   :  { %v7499_v3 = vpop.eup %7498 }
 0xab7   :  { %1426 = vrot.lane.b32.xlu0 %v7499_v3, %s7769_s28 }
 0xb23   :  { %v1345_v4 = vpop.permute.xlu1 %1344 }
 0xb24   :  { %v1347_v5 = vadd.f32 %v1345_v4, %v1283_v55 }
 0xb26   :  { %7500 = vtanh.f32 %v1347_v5 }
 0xb29   :  { %v1427_v7 = vpop.permute.xlu0 %1426 }
 0xb2a   :  { %v1429_v9 = vmul.f32 %v1427_v7, %v1424_v6 }
 0xb2c   :  { %v8068_v11 = vadd.f32 %v1430_v8, %v1429_v9 }
 0xb2e   :  { %v1527_v12 = vpack.c.bf16 %v8068_v11, %v8068_v11 }
 0xb30   :  { %1529 = vrot.lane.b32.xlu0 %v1527_v12, %s7769_s28 }
 0xb33   :  { %v7501_v13 = vpop.eup %7500 }
 0xb34   :  { %1351 = vrot.lane.b32.xlu1 %v7501_v13, %s7769_s28 }
 0xba2   :  { %v1530_v14 = vpop.permute.xlu0 %1529 }
 0xba3   :  { %6915 = vmatmul.mubr.msk.bf16.vlgmr.msra.gmra.mxu1 %vm288_vm4, %v1530_v14 }
 0xba4   :  { %6927 = vmatpush3.bf16.msra.mxu1 %v7974_v31  ;;  %6930 = vmatprep.mubr.msk.bf16.mxu1 %vm7748_vm0, %v7747_v0 }
 0xba5   :  { %6928 = vmatprep.subr.bf16.mxu1 %v7747_v0 }
 0xba6   :  { %v1352_v17 = vpop.permute.xlu1 %1351 }
 0xba7   :  { %v1354_v20 = vmul.f32 %v1352_v17, %v1349_v16 }
 0xba8   :  { %6929 = vmatpush3.bf16.msra.mxu1 %v7979_v34 }
 0xba9   :  { %v8081_v22 = vadd.f32 %v1355_v18, %v1354_v20  ;;  %6942 = vmatprep.subr.bf16.mxu1 %v7747_v0 }
 0xbab   :  { %v1452_v23 = vpack.c.bf16 %v8081_v22, %v8081_v22 }
 0xbad   :  { %1454 = vrot.lane.b32.xlu1 %v1452_v23, %s7769_s28 }
 0xc1f   :  { %v1455_v24 = vpop.permute.xlu1 %1454 }
 0xc20   :  { %6907 = vmatmul.mubr.msk.bf16.vlgmr.msra.gmra.mxu0 %vm288_vm4, %v1455_v24 }
 0xc21   :  { %6919 = vmatpush3.bf16.msra.mxu0 %v7948_v29  ;;  %6922 = vmatprep.mubr.msk.bf16.mxu0 %vm7748_vm0, %v7747_v0 }
 0xc22   :  { %6920 = vmatprep.subr.bf16.mxu0 %v7747_v0 }
 0xc25   :  { %6921 = vmatpush3.bf16.msra.mxu0 %v7954_v30 }
 0xc26   :  { %6934 = vmatprep.subr.bf16.mxu0 %v7747_v0 }
 0xc63   :  { %v1568_v26 = vpop.f32.mrf.mxu1 }
 0xc64   :  { %v1569_v32 = vadd.f32 %v8000_v42, %v1568_v26 }
 0xc65   :  { %v6916_v33 = vpop.f32.mrf.mxu1 }
 0xc66   :  { %1582 = vrot.lane.b32.xlu0 %v1569_v32, %s7764_s7  ;;  %v1574_v38 = vadd.f32 %v6334_v37, %v1569_v32 }
 0xc67   :  { %v1571_v35 = vpop.f32.mrf.mxu1 }
 0xc68   :  { %v6336_v39 = vmul.f32 -1.442695, %v1574_v38 }
 0xc69   :  { %v6917_v36 = vpop.f32.mrf.mxu1 }
 0xc6a   :  { %7502 = vpow2.f32 %v6336_v39 }
 0xc77   :  { %v7503_v41 = vpop.eup %7502 }
 0xc78   :  { %v1578_v43 = vadd.f32 1.0, %v7503_v41 }
 0xc7a   :  { %7504 = vrcp.f32 %v1578_v43 }
 0xc87   :  { %v7505_v44 = vpop.eup %7504 }
 0xc88   :  { %v1592_v4 = vsub.f32 1.0, %v7505_v44  ;;  %v1598_v6 = vmul.f32 %v7505_v44, %v8068_v11 }
 0xcd8   :  { %v1583_v45 = vpop.permute.xlu0 %1582 }
 0xcd9   :  { %v1585_v46 = vmul.f32 %v7505_v44, %v1583_v45 }
 0xcdb   :  { %1587 = vrot.lane.b32.xlu0 %v1585_v46, %s7764_s7 }
 0xce0   :  { %v1493_v47 = vpop.f32.mrf.mxu0 }
 0xce1   :  { %v1494_v48 = vadd.f32 %v8017_v56, %v1493_v47 }
 0xce2   :  { %v6908_v49 = vpop.f32.mrf.mxu0 }
 0xce3   :  { %1507 = vrot.lane.b32.xlu1 %v1494_v48, %s7764_s7  ;;  %v1499_v54 = vadd.f32 %v1494_v48, %v1451_v53 }
 0xce4   :  { %v1496_v50 = vpop.f32.mrf.mxu0 }
 0xce5   :  { %v6333_v55 = vmul.f32 -1.442695, %v1499_v54 }
 0xce6   :  { %v6909_v51 = vpop.f32.mrf.mxu0 }
 0xce7   :  { %7506 = vpow2.f32 %v6333_v55 }
 0xcf4   :  { %v7507_v57 = vpop.eup %7506 }
 0xcf5   :  { %v1503_v58 = vadd.f32 1.0, %v7507_v57 }
 0xcf7   :  { %7508 = vrcp.f32 %v1503_v58 }
 0xd04   :  { %v7509_v61 = vpop.eup %7508 }
 0xd05   :  { %v1517_v14 = vsub.f32 1.0, %v7509_v61  ;;  %v1523_v17 = vmul.f32 %v7509_v61, %v8081_v22 }
 0xd4d   :  { %v1588_v59 = vpop.permute.xlu0 %1587 }
 0xd4e   :  { %v1590_v60 = vadd.f32 %v6334_v37, %v1588_v59  ;;  %v6340_v37 = vld [vmem:[%s8007_s12 + $0xc] sm:$0xf] }
 0xd50   :  { %7510 = vtanh.f32 %v1590_v60 }
 0xd55   :  { %v1508_v62 = vpop.permute.xlu1 %1507 }
 0xd56   :  { %v1510_v63 = vmul.f32 %v7509_v61, %v1508_v62 }
 0xd58   :  { %1512 = vrot.lane.b32.xlu1 %v1510_v63, %s7764_s7 }
 0xd5d   :  { %v7511_v1 = vpop.eup %7510 }
 0xd5e   :  { %1594 = vrot.lane.b32.xlu0 %v7511_v1, %s7769_s28 }
 0xdca   :  { %v1513_v2 = vpop.permute.xlu1 %1512 }
 0xdcb   :  { %v1515_v3 = vadd.f32 %v1513_v2, %v1451_v53  ;;  %v1619_v53 = vadd.f32 %v6337_v52, %v7997_v40 }
 0xdcd   :  { %7512 = vtanh.f32 %v1515_v3 }
 0xdd0   :  { %v1595_v5 = vpop.permute.xlu0 %1594 }
 0xdd1   :  { %v1597_v7 = vmul.f32 %v1595_v5, %v1592_v4 }
 0xdd3   :  { %v8105_v8 = vadd.f32 %v1598_v6, %v1597_v7 }
 0xdd5   :  { %v1695_v9 = vpack.c.bf16 %v8105_v8, %v8105_v8 }
 0xdd7   :  { %1697 = vrot.lane.b32.xlu0 %v1695_v9, %s7769_s28 }
 0xdda   :  { %v7513_v12 = vpop.eup %7512 }
 0xddb   :  { %1519 = vrot.lane.b32.xlu1 %v7513_v12, %s7769_s28 }
 0xe49   :  { %v1698_v13 = vpop.permute.xlu0 %1697 }
 0xe4a   :  { %6931 = vmatmul.mubr.msk.bf16.vlgmr.msra.gmra.mxu1 %vm288_vm4, %v1698_v13 }
 0xe4b   :  { %6943 = vmatpush3.bf16.msra.mxu1 %v7974_v31  ;;  %6946 = vmatprep.mubr.msk.bf16.mxu1 %vm7748_vm0, %v7747_v0 }
 0xe4c   :  { %6944 = vmatprep.subr.bf16.mxu1 %v7747_v0 }
 0xe4d   :  { %v1520_v16 = vpop.permute.xlu1 %1519 }
 0xe4e   :  { %v1522_v18 = vmul.f32 %v1520_v16, %v1517_v14 }
 0xe4f   :  { %6945 = vmatpush3.bf16.msra.mxu1 %v7979_v34 }
 0xe50   :  { %v8118_v20 = vadd.f32 %v1523_v17, %v1522_v18  ;;  %6958 = vmatprep.subr.bf16.mxu1 %v7747_v0 }
 0xe52   :  { %v1620_v23 = vpack.c.bf16 %v8118_v20, %v8118_v20 }
 0xe54   :  { %1622 = vrot.lane.b32.xlu1 %v1620_v23, %s7769_s28 }
 0xec6   :  { %v1623_v24 = vpop.permute.xlu1 %1622 }
 0xec7   :  { %6923 = vmatmul.mubr.msk.bf16.vlgmr.msra.gmra.mxu0 %vm288_vm4, %v1623_v24 }
 0xec8   :  { %6935 = vmatpush3.bf16.msra.mxu0 %v7948_v29  ;;  %6938 = vmatprep.mubr.msk.bf16.mxu0 %vm7748_vm0, %v7747_v0 }
 0xec9   :  { %6936 = vmatprep.subr.bf16.mxu0 %v7747_v0 }
 0xecc   :  { %6937 = vmatpush3.bf16.msra.mxu0 %v7954_v30 }
 0xecd   :  { %6950 = vmatprep.subr.bf16.mxu0 %v7747_v0 }
 0xf0a   :  { %v1736_v26 = vpop.f32.mrf.mxu1 }
 0xf0b   :  { %v1737_v32 = vadd.f32 %v8000_v42, %v1736_v26 }
 0xf0c   :  { %v6932_v33 = vpop.f32.mrf.mxu1 }
 0xf0d   :  { %1750 = vrot.lane.b32.xlu0 %v1737_v32, %s7764_s7  ;;  %v1742_v38 = vadd.f32 %v6340_v37, %v1737_v32 }
 0xf0e   :  { %v1739_v35 = vpop.f32.mrf.mxu1 }
 0xf0f   :  { %v6342_v39 = vmul.f32 -1.442695, %v1742_v38 }
 0xf10   :  { %v6933_v36 = vpop.f32.mrf.mxu1 }
 0xf11   :  { %7514 = vpow2.f32 %v6342_v39  ;;  %v6346_v39 = vld [vmem:[%s8007_s12 + $0x10] sm:$0xf] }
 0xf1e   :  { %v7515_v41 = vpop.eup %7514 }
 0xf1f   :  { %v1746_v43 = vadd.f32 1.0, %v7515_v41 }
 0xf21   :  { %7516 = vrcp.f32 %v1746_v43 }
 0xf2e   :  { %v7517_v44 = vpop.eup %7516 }
 0xf2f   :  { %v1760_v4 = vsub.f32 1.0, %v7517_v44  ;;  %v1766_v6 = vmul.f32 %v7517_v44, %v8105_v8 }
 0xf7f   :  { %v1751_v45 = vpop.permute.xlu0 %1750 }
 0xf80   :  { %v1753_v46 = vmul.f32 %v7517_v44, %v1751_v45 }
 0xf82   :  { %1755 = vrot.lane.b32.xlu0 %v1753_v46, %s7764_s7 }
 0xf87   :  { %v1661_v47 = vpop.f32.mrf.mxu0 }
 0xf88   :  { %v1662_v48 = vadd.f32 %v8017_v56, %v1661_v47 }
 0xf89   :  { %v6924_v49 = vpop.f32.mrf.mxu0 }
 0xf8a   :  { %1675 = vrot.lane.b32.xlu1 %v1662_v48, %s7764_s7  ;;  %v1667_v54 = vadd.f32 %v1662_v48, %v1619_v53 }
 0xf8b   :  { %v1664_v50 = vpop.f32.mrf.mxu0 }
 0xf8c   :  { %v6339_v55 = vmul.f32 -1.442695, %v1667_v54  ;;  %v6343_v54 = vld [vmem:[%s8026_s27 + $0x8] sm:$0x3] }
 0xf8d   :  { %v6925_v51 = vpop.f32.mrf.mxu0 }
 0xf8e   :  { %7518 = vpow2.f32 %v6339_v55  ;;  %v1787_v55 = vadd.f32 %v6343_v54, %v7997_v40 }
 0xf9b   :  { %v7519_v57 = vpop.eup %7518 }
 0xf9c   :  { %v1671_v58 = vadd.f32 1.0, %v7519_v57 }
 0xf9e   :  { %7520 = vrcp.f32 %v1671_v58 }
 0xfab   :  { %v7521_v61 = vpop.eup %7520 }
 0xfac   :  { %v1685_v16 = vsub.f32 1.0, %v7521_v61  ;;  %v1691_v18 = vmul.f32 %v7521_v61, %v8118_v20 }
 0xff4   :  { %v1756_v59 = vpop.permute.xlu0 %1755 }
 0xff5   :  { %v1758_v60 = vadd.f32 %v6340_v37, %v1756_v59 }
 0xff7   :  { %7522 = vtanh.f32 %v1758_v60 }
 0xffc   :  { %v1676_v62 = vpop.permute.xlu1 %1675 }
 0xffd   :  { %v1678_v63 = vmul.f32 %v7521_v61, %v1676_v62 }
 0xfff   :  { %1680 = vrot.lane.b32.xlu1 %v1678_v63, %s7764_s7 }
0x1004   :  { %v7523_v1 = vpop.eup %7522 }
0x1005   :  { %1762 = vrot.lane.b32.xlu0 %v7523_v1, %s7769_s28 }
0x1071   :  { %v1681_v2 = vpop.permute.xlu1 %1680 }
0x1072   :  { %v1683_v3 = vadd.f32 %v1681_v2, %v1619_v53 }
0x1074   :  { %7524 = vtanh.f32 %v1683_v3 }
0x1077   :  { %v1763_v5 = vpop.permute.xlu0 %1762 }
0x1078   :  { %v1765_v7 = vmul.f32 %v1763_v5, %v1760_v4 }
0x107a   :  { %v8142_v9 = vadd.f32 %v1766_v6, %v1765_v7 }
0x107c   :  { %v1863_v12 = vpack.c.bf16 %v8142_v9, %v8142_v9 }
0x107e   :  { %1865 = vrot.lane.b32.xlu0 %v1863_v12, %s7769_s28 }
0x1081   :  { %v7525_v13 = vpop.eup %7524 }
0x1082   :  { %1687 = vrot.lane.b32.xlu1 %v7525_v13, %s7769_s28 }
0x10f0   :  { %v1866_v14 = vpop.permute.xlu0 %1865 }
0x10f1   :  { %6947 = vmatmul.mubr.msk.bf16.vlgmr.msra.gmra.mxu1 %vm288_vm4, %v1866_v14 }
0x10f2   :  { %6959 = vmatpush3.bf16.msra.mxu1 %v7974_v31  ;;  %6962 = vmatprep.mubr.msk.bf16.mxu1 %vm7748_vm0, %v7747_v0 }
0x10f3   :  { %6960 = vmatprep.subr.bf16.mxu1 %v7747_v0 }
0x10f4   :  { %v1688_v17 = vpop.permute.xlu1 %1687 }
0x10f5   :  { %v1690_v23 = vmul.f32 %v1688_v17, %v1685_v16 }
0x10f6   :  { %6961 = vmatpush3.bf16.msra.mxu1 %v7979_v34 }
0x10f7   :  { %v8155_v24 = vadd.f32 %v1691_v18, %v1690_v23  ;;  %6974 = vmatprep.subr.bf16.mxu1 %v7747_v0 }
0x10f9   :  { %v1788_v26 = vpack.c.bf16 %v8155_v24, %v8155_v24 }
0x10fb   :  { %1790 = vrot.lane.b32.xlu1 %v1788_v26, %s7769_s28 }
0x116d   :  { %v1791_v32 = vpop.permute.xlu1 %1790 }
0x116e   :  { %6939 = vmatmul.mubr.msk.bf16.vlgmr.msra.gmra.mxu0 %vm288_vm4, %v1791_v32 }
0x116f   :  { %6951 = vmatpush3.bf16.msra.mxu0 %v7948_v29  ;;  %6954 = vmatprep.mubr.msk.bf16.mxu0 %vm7748_vm0, %v7747_v0 }
0x1170   :  { %6952 = vmatprep.subr.bf16.mxu0 %v7747_v0 }
0x1173   :  { %6953 = vmatpush3.bf16.msra.mxu0 %v7954_v30 }
0x1174   :  { %6966 = vmatprep.subr.bf16.mxu0 %v7747_v0 }
0x11b1   :  { %v1904_v33 = vpop.f32.mrf.mxu1 }
0x11b2   :  { %v1905_v35 = vadd.f32 %v8000_v42, %v1904_v33 }
0x11b3   :  { %v6948_v36 = vpop.f32.mrf.mxu1 }
0x11b4   :  { %1918 = vrot.lane.b32.xlu0 %v1905_v35, %s7764_s7  ;;  %v1910_v41 = vadd.f32 %v6346_v39, %v1905_v35 }
0x11b5   :  { %v1907_v37 = vpop.f32.mrf.mxu1 }
0x11b6   :  { %v6348_v43 = vmul.f32 -1.442695, %v1910_v41 }
0x11b7   :  { %v6949_v38 = vpop.f32.mrf.mxu1 }
0x11b8   :  { %7526 = vpow2.f32 %v6348_v43 }
0x11c5   :  { %v7527_v44 = vpop.eup %7526 }
0x11c6   :  { %v1914_v45 = vadd.f32 1.0, %v7527_v44 }
0x11c8   :  { %7528 = vrcp.f32 %v1914_v45  ;;  %v6352_v45 = vld [vmem:[%s8007_s12 + $0x14] sm:$0xf] }
0x11d5   :  { %v7529_v46 = vpop.eup %7528 }
0x11d6   :  { %v1928_v6 = vsub.f32 1.0, %v7529_v46  ;;  %v1934_v12 = vmul.f32 %v7529_v46, %v8142_v9 }
0x1226   :  { %v1919_v47 = vpop.permute.xlu0 %1918 }
0x1227   :  { %v1921_v48 = vmul.f32 %v7529_v46, %v1919_v47 }
0x1229   :  { %1923 = vrot.lane.b32.xlu0 %v1921_v48, %s7764_s7 }
0x122e   :  { %v1829_v49 = vpop.f32.mrf.mxu0 }
0x122f   :  { %v1830_v50 = vadd.f32 %v8017_v56, %v1829_v49 }
0x1230   :  { %v6940_v51 = vpop.f32.mrf.mxu0 }
0x1231   :  { %1843 = vrot.lane.b32.xlu1 %v1830_v50, %s7764_s7  ;;  %v1835_v57 = vadd.f32 %v1830_v50, %v1787_v55 }
0x1232   :  { %v1832_v52 = vpop.f32.mrf.mxu0 }
0x1233   :  { %v6345_v58 = vmul.f32 -1.442695, %v1835_v57 }
0x1234   :  { %v6941_v53 = vpop.f32.mrf.mxu0 }
0x1235   :  { %7530 = vpow2.f32 %v6345_v58 }
0x1242   :  { %v7531_v59 = vpop.eup %7530 }
0x1243   :  { %v1839_v60 = vadd.f32 1.0, %v7531_v59  ;;  %v6349_v59 = vld [vmem:[%s8026_s27 + $0xa] sm:$0x3] }
0x1245   :  { %7532 = vrcp.f32 %v1839_v60  ;;  %v1955_v60 = vadd.f32 %v6349_v59, %v7997_v40 }
0x1252   :  { %v7533_v63 = vpop.eup %7532 }
0x1253   :  { %v1853_v23 = vsub.f32 1.0, %v7533_v63  ;;  %v1859_v32 = vmul.f32 %v7533_v63, %v8155_v24 }
0x129b   :  { %v1924_v61 = vpop.permute.xlu0 %1923 }
0x129c   :  { %v1926_v62 = vadd.f32 %v6346_v39, %v1924_v61 }
0x129e   :  { %7534 = vtanh.f32 %v1926_v62 }
0x12a3   :  { %v1844_v1 = vpop.permute.xlu1 %1843 }
0x12a4   :  { %v1846_v2 = vmul.f32 %v7533_v63, %v1844_v1 }
0x12a6   :  { %1848 = vrot.lane.b32.xlu1 %v1846_v2, %s7764_s7 }
0x12ab   :  { %v7535_v3 = vpop.eup %7534 }
0x12ac   :  { %1930 = vrot.lane.b32.xlu0 %v7535_v3, %s7769_s28 }
0x1318   :  { %v1849_v4 = vpop.permute.xlu1 %1848 }
0x1319   :  { %v1851_v5 = vadd.f32 %v1849_v4, %v1787_v55 }
0x131b   :  { %7536 = vtanh.f32 %v1851_v5 }
0x131e   :  { %v1931_v7 = vpop.permute.xlu0 %1930 }
0x131f   :  { %v1933_v13 = vmul.f32 %v1931_v7, %v1928_v6 }
0x1321   :  { %v8179_v14 = vadd.f32 %v1934_v12, %v1933_v13 }
0x1323   :  { %v2031_v16 = vpack.c.bf16 %v8179_v14, %v8179_v14 }
0x1325   :  { %2033 = vrot.lane.b32.xlu0 %v2031_v16, %s7769_s28 }
0x1328   :  { %v7537_v17 = vpop.eup %7536 }
0x1329   :  { %1855 = vrot.lane.b32.xlu1 %v7537_v17, %s7769_s28 }
0x1397   :  { %v2034_v18 = vpop.permute.xlu0 %2033 }
0x1398   :  { %6963 = vmatmul.mubr.msk.bf16.vlgmr.msra.gmra.mxu1 %vm288_vm4, %v2034_v18 }
0x1399   :  { %6975 = vmatpush3.bf16.msra.mxu1 %v7974_v31  ;;  %6978 = vmatprep.mubr.msk.bf16.mxu1 %vm7748_vm0, %v7747_v0 }
0x139a   :  { %6976 = vmatprep.subr.bf16.mxu1 %v7747_v0 }
0x139b   :  { %v1856_v26 = vpop.permute.xlu1 %1855 }
0x139c   :  { %v1858_v33 = vmul.f32 %v1856_v26, %v1853_v23 }
0x139d   :  { %6977 = vmatpush3.bf16.msra.mxu1 %v7979_v34 }
0x139e   :  { %v8192_v35 = vadd.f32 %v1859_v32, %v1858_v33  ;;  %6990 = vmatprep.subr.bf16.mxu1 %v7747_v0 }
0x13a0   :  { %v1956_v36 = vpack.c.bf16 %v8192_v35, %v8192_v35 }
0x13a2   :  { %1958 = vrot.lane.b32.xlu1 %v1956_v36, %s7769_s28 }
0x1414   :  { %v1959_v37 = vpop.permute.xlu1 %1958 }
0x1415   :  { %6955 = vmatmul.mubr.msk.bf16.vlgmr.msra.gmra.mxu0 %vm288_vm4, %v1959_v37 }
0x1416   :  { %6967 = vmatpush3.bf16.msra.mxu0 %v7948_v29  ;;  %6970 = vmatprep.mubr.msk.bf16.mxu0 %vm7748_vm0, %v7747_v0 }
0x1417   :  { %6968 = vmatprep.subr.bf16.mxu0 %v7747_v0 }
0x141a   :  { %6969 = vmatpush3.bf16.msra.mxu0 %v7954_v30 }
0x141b   :  { %6982 = vmatprep.subr.bf16.mxu0 %v7747_v0 }
0x1458   :  { %v2072_v38 = vpop.f32.mrf.mxu1 }
0x1459   :  { %v2073_v39 = vadd.f32 %v8000_v42, %v2072_v38 }
0x145a   :  { %v6964_v41 = vpop.f32.mrf.mxu1 }
0x145b   :  { %2086 = vrot.lane.b32.xlu0 %v2073_v39, %s7764_s7  ;;  %v2078_v46 = vadd.f32 %v6352_v45, %v2073_v39 }
0x145c   :  { %v2075_v43 = vpop.f32.mrf.mxu1 }
0x145d   :  { %v6354_v47 = vmul.f32 -1.442695, %v2078_v46 }
0x145e   :  { %v6965_v44 = vpop.f32.mrf.mxu1 }
0x145f   :  { %7538 = vpow2.f32 %v6354_v47 }
0x146c   :  { %v7539_v48 = vpop.eup %7538 }
0x146d   :  { %v2082_v49 = vadd.f32 1.0, %v7539_v48 }
0x146f   :  { %7540 = vrcp.f32 %v2082_v49  ;;  %v6358_v49 = vld [vmem:[%s8007_s12 + $0x18] sm:$0xf] }
0x147c   :  { %v7541_v50 = vpop.eup %7540 }
0x147d   :  { %v2096_v16 = vsub.f32 1.0, %v7541_v50  ;;  %v2102_v18 = vmul.f32 %v7541_v50, %v8179_v14 }
0x14cd   :  { %v2087_v51 = vpop.permute.xlu0 %2086 }
0x14ce   :  { %v2089_v52 = vmul.f32 %v7541_v50, %v2087_v51 }
0x14d0   :  { %2091 = vrot.lane.b32.xlu0 %v2089_v52, %s7764_s7 }
0x14d5   :  { %v1997_v53 = vpop.f32.mrf.mxu0 }
0x14d6   :  { %v1998_v54 = vadd.f32 %v8017_v56, %v1997_v53 }
0x14d7   :  { %v6956_v55 = vpop.f32.mrf.mxu0 }
0x14d8   :  { %2011 = vrot.lane.b32.xlu1 %v1998_v54, %s7764_s7  ;;  %v2003_v61 = vadd.f32 %v1998_v54, %v1955_v60 }
0x14d9   :  { %v2000_v57 = vpop.f32.mrf.mxu0 }
0x14da   :  { %v6351_v62 = vmul.f32 -1.442695, %v2003_v61  ;;  %v6355_v61 = vld [vmem:[%s8026_s27 + $0xc] sm:$0x3] }
0x14db   :  { %v6957_v58 = vpop.f32.mrf.mxu0 }
0x14dc   :  { %7542 = vpow2.f32 %v6351_v62  ;;  %v2123_v62 = vadd.f32 %v6355_v61, %v7997_v40 }
0x14e9   :  { %v7543_v63 = vpop.eup %7542 }
0x14ea   :  { %v2007_v1 = vadd.f32 1.0, %v7543_v63 }
0x14ec   :  { %7544 = vrcp.f32 %v2007_v1 }
0x14f9   :  { %v7545_v4 = vpop.eup %7544 }
0x14fa   :  { %v2021_v37 = vsub.f32 1.0, %v7545_v4  ;;  %v2027_v39 = vmul.f32 %v7545_v4, %v8192_v35 }
0x1542   :  { %v2092_v2 = vpop.permute.xlu0 %2091 }
0x1543   :  { %v2094_v3 = vadd.f32 %v6352_v45, %v2092_v2 }
0x1545   :  { %7546 = vtanh.f32 %v2094_v3 }
0x154a   :  { %v2012_v5 = vpop.permute.xlu1 %2011 }
0x154b   :  { %v2014_v6 = vmul.f32 %v7545_v4, %v2012_v5  ;;  %v1080_v5 = vld [vmem:[%s8253_s5] sm:$0x3] }
0x154c   :  { %vm1274_vm10 = vcmp.eq.s32.totalorder %v1080_v5, 0  ;;  %vm1610_vm11 = vcmp.eq.s32.totalorder %v1080_v5, 2  ;;  %vm1778_vm12 = vcmp.eq.s32.totalorder %v1080_v5, 3  ;;  %vm2114_vm13 = vcmp.eq.s32.totalorder %v1080_v5, 5 }
0x154d   :  { %2016 = vrot.lane.b32.xlu1 %v2014_v6, %s7764_s7  ;;  %vm2450_vm14 = vcmp.eq.s32.totalorder %v1080_v5, 7  ;;  %vm1442_vm15 = vcmp.eq.s32.totalorder %v1080_v5, 1  ;;  %vm1946_vm1 = vcmp.eq.s32.totalorder %v1080_v5, 4  ;;  %vm2282_vm2 = vcmp.eq.s32.totalorder %v1080_v5, 6 }
0x1552   :  { %v7547_v7 = vpop.eup %7546 }
0x1553   :  { %2098 = vrot.lane.b32.xlu0 %v7547_v7, %s7769_s28 }
0x15bf   :  { %v2017_v12 = vpop.permute.xlu1 %2016 }
0x15c0   :  { %v2019_v13 = vadd.f32 %v2017_v12, %v1955_v60 }
0x15c2   :  { %7548 = vtanh.f32 %v2019_v13  ;;  %v1275_v13 = vsel %vm1274_vm10, 1, %v7758_v10 }
0x15c5   :  { %v2099_v17 = vpop.permute.xlu0 %2098 }
0x15c6   :  { %v2101_v23 = vmul.f32 %v2099_v17, %v2096_v16 }
0x15c8   :  { %v8216_v26 = vadd.f32 %v2102_v18, %v2101_v23 }
0x15ca   :  { %v2199_v32 = vpack.c.bf16 %v8216_v26, %v8216_v26 }
0x15cc   :  { %2201 = vrot.lane.b32.xlu0 %v2199_v32, %s7769_s28 }
0x15cf   :  { %v7549_v33 = vpop.eup %7548 }
0x15d0   :  { %2023 = vrot.lane.b32.xlu1 %v7549_v33, %s7769_s28 }
0x163e   :  { %v2202_v36 = vpop.permute.xlu0 %2201 }
0x163f   :  { %6979 = vmatmul.mubr.msk.bf16.vlgmr.msra.gmra.mxu1 %vm288_vm4, %v2202_v36 }
0x1640   :  { %6991 = vmatpush3.bf16.msra.mxu1 %v7974_v31  ;;  %6994 = vmatprep.mubr.msk.bf16.mxu1 %vm7748_vm0, %v7747_v0 }
0x1641   :  { %6992 = vmatprep.subr.bf16.mxu1 %v7747_v0 }
0x1642   :  { %v2024_v38 = vpop.permute.xlu1 %2023 }
0x1643   :  { %v2026_v41 = vmul.f32 %v2024_v38, %v2021_v37  ;;  %v1611_v38 = vsel %vm1610_vm11, 1, %v7758_v10 }
0x1644   :  { %6993 = vmatpush3.bf16.msra.mxu1 %v7979_v34 }
0x1645   :  { %v8229_v43 = vadd.f32 %v2027_v39, %v2026_v41  ;;  %7006 = vmatprep.subr.bf16.mxu1 %v7747_v0  ;;  %v1779_v39 = vsel %vm1778_vm12, 1, %v7758_v10 }
0x1647   :  { %v2124_v31 = vpack.c.bf16 %v8229_v43, %v8229_v43 }
0x1649   :  { %2126 = vrot.lane.b32.xlu1 %v2124_v31, %s7769_s28 }
0x16bb   :  { %v2127_v44 = vpop.permute.xlu1 %2126 }
0x16bc   :  { %6971 = vmatmul.mubr.msk.bf16.vlgmr.msra.gmra.mxu0 %vm288_vm4, %v2127_v44 }
0x16bd   :  { %6983 = vmatpush3.bf16.msra.mxu0 %v7948_v29  ;;  %6986 = vmatprep.mubr.msk.bf16.mxu0 %vm7748_vm0, %v7747_v0 }
0x16be   :  { %6984 = vmatprep.subr.bf16.mxu0 %v7747_v0 }
0x16c1   :  { %6985 = vmatpush3.bf16.msra.mxu0 %v7954_v30 }
0x16c2   :  { %6998 = vmatprep.subr.bf16.mxu0 %v7747_v0 }
0x16ff   :  { %v2240_v34 = vpop.f32.mrf.mxu1 }
0x1700   :  { %v2241_v45 = vadd.f32 %v8000_v42, %v2240_v34 }
0x1701   :  { %v6980_v46 = vpop.f32.mrf.mxu1 }
0x1702   :  { %2254 = vrot.lane.b32.xlu0 %v2241_v45, %s7764_s7  ;;  %v2246_v50 = vadd.f32 %v6358_v49, %v2241_v45  ;;  %v2115_v45 = vsel %vm2114_vm13, 1, %v7758_v10 }
0x1703   :  { %v2243_v47 = vpop.f32.mrf.mxu1 }
0x1704   :  { %v6360_v29 = vmul.f32 -1.442695, %v2246_v50  ;;  %v2451_v47 = vsel %vm2450_vm14, 1, %v7758_v10 }
0x1705   :  { %v6981_v48 = vpop.f32.mrf.mxu1 }
0x1706   :  { %7550 = vpow2.f32 %v6360_v29  ;;  %v6364_v48 = vld [vmem:[%s8007_s12 + $0x1c] sm:$0xf] }
0x1713   :  { %v7551_v51 = vpop.eup %7550 }
0x1714   :  { %v2250_v52 = vadd.f32 1.0, %v7551_v51 }
0x1716   :  { %7552 = vrcp.f32 %v2250_v52 }
0x1723   :  { %v7553_v53 = vpop.eup %7552 }
0x1724   :  { %v2264_v17 = vsub.f32 1.0, %v7553_v53  ;;  %v2270_v23 = vmul.f32 %v7553_v53, %v8216_v26 }
0x1774   :  { %v2255_v30 = vpop.permute.xlu0 %2254 }
0x1775   :  { %v2257_v54 = vmul.f32 %v7553_v53, %v2255_v30 }
0x1777   :  { %2259 = vrot.lane.b32.xlu0 %v2257_v54, %s7764_s7 }
0x177c   :  { %v2165_v55 = vpop.f32.mrf.mxu0 }
0x177d   :  { %v2166_v57 = vadd.f32 %v8017_v56, %v2165_v55  ;;  %v1443_v55 = vsel %vm1442_vm15, 1, %v7758_v10 }
0x177e   :  { %v6972_v58 = vpop.f32.mrf.mxu0 }
0x177f   :  { %2179 = vrot.lane.b32.xlu1 %v2166_v57, %s7764_s7  ;;  %v2171_v63 = vadd.f32 %v2166_v57, %v2123_v62  ;;  %v1947_v58 = vsel %vm1946_vm1, 1, %v7758_v10 }
0x1780   :  { %v2168_v59 = vpop.f32.mrf.mxu0 }
0x1781   :  { %v6357_v1 = vmul.f32 -1.442695, %v2171_v63  ;;  %v2283_v59 = vsel %vm2282_vm2, 1, %v7758_v10 }
0x1782   :  { %v6973_v60 = vpop.f32.mrf.mxu0 }
0x1783   :  { %7554 = vpow2.f32 %v6357_v1 }
0x1790   :  { %v7555_v2 = vpop.eup %7554 }
0x1791   :  { %v2175_v3 = vadd.f32 1.0, %v7555_v2 }
0x1793   :  { %7556 = vrcp.f32 %v2175_v3 }
0x17a0   :  { %v8256_v6 = vpop.eup %7556 }
0x17a1   :  { %v2189_v1 = vsub.f32 1.0, %v8256_v6  ;;  %v2195_v3 = vmul.f32 %v8256_v6, %v8229_v43 }
0x17e9   :  { %v2260_v56 = vpop.permute.xlu0 %2259 }
0x17ea   :  { %v2262_v4 = vadd.f32 %v6358_v49, %v2260_v56 }
0x17ec   :  { %7558 = vtanh.f32 %v2262_v4  ;;  %v7450_v4 = vld [vmem:[%s8286_s14 + $0x8] sm:$0xff]  }
0x17f1   :  { %v2180_v7 = vpop.permute.xlu1 %2179 }
0x17f2   :  { %v2182_v12 = vmul.f32 %v8256_v6, %v2180_v7  ;;  %v7451_v7 = vld [vmem:[%s8286_s14] sm:$0xff]  }
0x17f4   :  { %2184 = vrot.lane.b32.xlu1 %v2182_v12, %s7764_s7 }
0x17f8   :  { %1277 = vperm.xlu1 %7445, %v1275_v13  }
0x17f9   :  { %v7559_v16 = vpop.eup %7558 }
0x17fa   :  { %2266 = vrot.lane.b32.xlu0 %v7559_v16, %s7769_s28 }
0x17fc   :  { %1613 = vperm.xlu1 %7445, %v1611_v38  }
0x1800   :  { %1781 = vperm.xlu1 %7445, %v1779_v39  }
0x1804   :  { %2117 = vperm.xlu1 %7445, %v2115_v45  }
0x1808   :  { %2453 = vperm.xlu1 %7445, %v2451_v47  }
0x186c   :  { %v2267_v18 = vpop.permute.xlu0 %2266 }
0x186d   :  { %v2269_v32 = vmul.f32 %v2267_v18, %v2264_v17 }
0x186f   :  { %v8263_v33 = vadd.f32 %v2270_v23, %v2269_v32 }
0x1871   :  { %v2367_v36 = vpack.c.bf16 %v8263_v33, %v8263_v33 }
0x1873   :  { %2369 = vrot.lane.b32.xlu0 %v2367_v36, %s7769_s28 }
0x18e5   :  { %v2370_v37 = vpop.permute.xlu0 %2369 }
0x18e6   :  { %6995 = vmatmul.mubr.msk.bf16.vlgmr.msra.gmra.mxu1 %vm288_vm4, %v2370_v37 }
0x18e7   :  { %7010 = vmatprep.mubr.msk.bf16.mxu1 %vm7748_vm0, %v7747_v0  ;;  %7007 = vmatpush3.bf16.msra.mxu1 %v7450_v4 }
0x18e8   :  { %7008 = vmatprep.subr.bf16.mxu1 %v7747_v0 }
0x18eb   :  { %7009 = vmatpush3.bf16.msra.mxu1 %v7451_v7 }
0x18ee   :  { %7011 = vmatmul.mubr.bf16.vlgmr.msra.gmra.mxu1 %v7758_v10 }
0x19a6   :  { %v2408_v41 = vpop.f32.mrf.mxu1 }
0x19a7   :  { %v2409_v31 = vadd.f32 %v8000_v42, %v2408_v41  ;;  %v2185_v42 = vpop.permute.xlu1 %2184 }
0x19a8   :  { %v6996_v44 = vpop.f32.mrf.mxu1  ;;  %v2187_v52 = vadd.f32 %v2185_v42, %v2123_v62  ;;  %v7453_v42 = vld [vmem:[%s8291_s23] sm:$0xff]  }
0x19a9   :  { %2422 = vrot.lane.b32.xlu0 %v2409_v31, %s7764_s7  ;;  %v2414_v49 = vadd.f32 %v6364_v48, %v2409_v31 }
0x19aa   :  { %v2411_v34 = vpop.f32.mrf.mxu1 }
0x19ab   :  { %v6366_v50 = vmul.f32 -1.442695, %v2414_v49  ;;  %v1278_v13 = vpop.permute.xlu1 %1277 }
0x19ac   :  { %v6997_v46 = vpop.f32.mrf.mxu1  ;;  %vm1279_vm10 = vcmp.eq.s32.totalorder %v1278_v13, 1 }
0x19ad   :  { %7560 = vpow2.f32 %v6366_v50  ;;  %v1280_v17 = vsel %vm1279_vm10, %v8032_v15, 0.0  ;;  %v7452_v50 = vld [vmem:[%s8291_s23 + $0x8] sm:$0xff]   ;;  %vm1272_vm10 = vcmask 257026  }
0x19af   :  { %v1614_v16 = vpop.permute.xlu1 %1613 }
0x19b0   :  { %vm1615_vm12 = vcmp.eq.s32.totalorder %v1614_v16, 1 }
0x19b3   :  { %v1782_v23 = vpop.permute.xlu1 %1781 }
0x19b4   :  { %vm1783_vm13 = vcmp.eq.s32.totalorder %v1782_v23, 1 }
0x19b7   :  { %v2118_v37 = vpop.permute.xlu1 %2117 }
0x19b8   :  { %vm2119_vm15 = vcmp.eq.s32.totalorder %v2118_v37, 1 }
0x19ba   :  { %v7561_v29 = vpop.eup %7560 }
0x19bb   :  { %v2418_v51 = vadd.f32 1.0, %v7561_v29  ;;  %v2454_v44 = vpop.permute.xlu1 %2453 }
0x19bc   :  { %vm2455_vm2 = vcmp.eq.s32.totalorder %v2454_v44, 1 }
0x19bd   :  { %7562 = vrcp.f32 %v2418_v51 }
0x19be   :  { %7564 = vtanh.f32 %v2187_v52  ;;  %v2584_v52 = vpop.f32.mrf.mxu1 }
0x19ca   :  { %v7563_v53 = vpop.eup %7562 }
0x19cb   :  { %v7565_v57 = vpop.eup %7564  ;;  %v2432_v39 = vsub.f32 1.0, %v7563_v53  ;;  %v2438_v34 = vmul.f32 %v7563_v53, %v8263_v33 }
0x1a1b   :  { %v2423_v30 = vpop.permute.xlu0 %2422 }
0x1a1c   :  { %v2425_v54 = vmul.f32 %v7563_v53, %v2423_v30  ;;  %v7012_v53 = vpop.f32.mrf.mxu1 }
0x1a1d   :  { %v2783_v53 = vld [vmem:[%s7857_s25 + $0x8] sm:$0xff] }
0x1a1e   :  { %2427 = vrot.lane.b32.xlu0 %v2425_v54, %s7764_s7  ;;  %v2587_v30 = vpop.f32.mrf.mxu1 }
0x1a1f   :  { %v2782_v30 = vld [vmem:[%s7857_s25] sm:$0xff] }
0x1a20   :  { %v7013_v54 = vpop.f32.mrf.mxu1 }
0x1a22   :  { %1445 = vperm.xlu0 %7444, %v1443_v55   ;;  %v6371_v55 = vld [vmem:[%s8328_s4] ss:$0 sm:$0xff] }
0x1a26   :  { %2191 = vrot.lane.b32.xlu0 %v7565_v57, %s7769_s28  ;;  %v2585_v57 = vadd.f32 %v6371_v55, %v2584_v52  ;;  %v2784_v52 = vld [vmem:[%s7857_s25 + $0x10] sm:$0xff] }
0x1a2a   :  { %1949 = vperm.xlu0 %7444, %v1947_v58  }
0x1a2e   :  { %2285 = vperm.xlu0 %7444, %v2283_v59   ;;  %v7730_v59 = vld [vmem:[%s7812_s13 + $0x38] sm:$0xff] }
0x1a90   :  { %v2428_v60 = vpop.permute.xlu0 %2427 }
0x1a91   :  { %v2430_v61 = vadd.f32 %v6364_v48, %v2428_v60  ;;  %v7731_v60 = vld [vmem:[%s7812_s13 + $0x30] sm:$0xff] }
0x1a93   :  { %7566 = vtanh.f32 %v2430_v61  ;;  %v7732_v61 = vld [vmem:[%s7812_s13 + $0x28] sm:$0xff] }
0x1a9d   :  { %v1446_v62 = vpop.permute.xlu0 %1445 }
0x1a9e   :  { %vm1447_vm11 = vcmp.eq.s32.totalorder %v1446_v62, 1  ;;  %v7733_v62 = vld [vmem:[%s7812_s13 + $0x20] sm:$0xff]  ;;  %s7775_s13 = smov 4  }
0x1a9f   :  { %v1448_v18 = vsel %vm1447_vm11, %v8068_v11, %v1280_v17 }
0x1aa0   :  { %v7567_v63 = vpop.eup %7566  ;;  %v1616_v32 = vsel %vm1615_vm12, %v8105_v8, %v1448_v18 }
0x1aa1   :  { %2434 = vrot.lane.b32.xlu0 %v7567_v63, %s7769_s28  ;;  %v2192_v2 = vpop.permute.xlu0 %2191  ;;  %v1784_v38 = vsel %vm1783_vm13, %v8142_v9, %v1616_v32 }
0x1aa2   :  { %v2194_v56 = vmul.f32 %v2192_v2, %v2189_v1 }
0x1aa4   :  { %v8298_v5 = vadd.f32 %v2195_v3, %v2194_v56  ;;  %v6367_v56 = vld [vmem:[%s8347_s15] ss:$0 sm:$0xff] }
0x1aa5   :  { %v1950_v6 = vpop.permute.xlu0 %1949 }
0x1aa6   :  { %v2292_v12 = vpack.c.bf16 %v8298_v5, %v8298_v5  ;;  %vm1951_vm14 = vcmp.eq.s32.totalorder %v1950_v6, 1 }
0x1aa7   :  { %v1952_v41 = vsel %vm1951_vm14, %v8179_v14, %v1784_v38 }
0x1aa8   :  { %2294 = vrot.lane.b32.xlu1 %v2292_v12, %s7769_s28  ;;  %v2120_v46 = vsel %vm2119_vm15, %v8216_v26, %v1952_v41 }
0x1aa9   :  { %v2286_v36 = vpop.permute.xlu0 %2285 }
0x1aaa   :  { %vm2287_vm1 = vcmp.eq.s32.totalorder %v2286_v36, 1 }
0x1aab   :  { %v2288_v48 = vsel %vm2287_vm1, %v8263_v33, %v2120_v46 }
0x1aac   :  { %2598 = vrot.lane.b32.xlu1 %v2585_v57, %s7764_s7 }
0x1b13   :  { %v2435_v31 = vpop.permute.xlu0 %2434 }
0x1b14   :  { %v2437_v45 = vmul.f32 %v2435_v31, %v2432_v39 }
0x1b16   :  { %v8313_v47 = vadd.f32 %v2438_v34, %v2437_v45 }
0x1b18   :  { %v2456_v49 = vsel %vm2455_vm2, %v8313_v47, %v2288_v48 }
0x1b19   :  { %v2457_v29 = vpack.c.bf16 %v2456_v49, %v2456_v49  ;;  %v8358_v49 = vld [vmem:[%s7833_s21] sm:$0xff] }
0x1b1a   :  { %v2295_v51 = vpop.permute.xlu1 %2294 }
0x1b1b   :  { %2470 = vrot.lane.b32.xlu0 %v2457_v29, %s7769_s28  ;;  %6987 = vmatmul.mubr.msk.bf16.vlgmr.msra.gmra.mxu0 %vm288_vm4, %v2295_v51  ;;  %v8365_v51 = vld [vmem:[%s7833_s21 + $0x8] sm:$0x3f] }
0x1b1c   :  { %6999 = vmatpush3.bf16.msra.mxu0 %v7452_v50  ;;  %7002 = vmatprep.mubr.msk.bf16.mxu0 %vm7748_vm0, %v7747_v0 }
0x1b1d   :  { %7000 = vmatprep.subr.bf16.mxu0 %v7747_v0 }
0x1b1e   :  { %v2599_v32 = vpop.permute.xlu1 %2598 }
0x1b20   :  { %7001 = vmatpush3.bf16.msra.mxu0 %v7453_v42  ;;  %v2785_v42 = vld [vmem:[%s7857_s25 + $0x18] sm:$0xff]  ;;  %s7782_s25 = smov 8  }
0x1b21   :  { %7014 = vmatprep.subr.mxu0 %v7747_v0  ;;  %7030 = vmatprep.subr.mxu1 %v2785_v42 }
0x1b22   :  { %7031 = vmatpush3.msra.mxu1 %v2785_v42 }
0x1b23   :  { %7032 = vmatprep.subr.mxu1 %v2784_v52 }
0x1b24   :  { %7033 = vmatpush3.msra.mxu1 %v2784_v52 }
0x1b25   :  { %7034 = vmatprep.subr.mxu1 %v2783_v53 }
0x1b26   :  { %7035 = vmatpush3.msra.mxu1 %v2783_v53 }
0x1b27   :  { %7036 = vmatprep.subr.mxu1 %v2782_v30 }
0x1b28   :  { %7037 = vmatpush3.msra.mxu1 %v2782_v30 }
0x1b29   :  { %7052 = vmatprep.subr.mxu1 %v7747_v0 }
0x1b8d   :  { %v2471_v58 = vpop.permute.xlu0 %2470 }
0x1b8e   :  { %7003 = vmatmul.mubr.msk.bf16.vlgmr.msra.gmra.mxu0 %vm288_vm4, %v2471_v58 }
0x1b8f   :  { %7015 = vmatpush3.msra.mxu0 %v7730_v59  ;;  %7022 = vmatprep.mubr.msk.f32.mxu0 %vm7748_vm0, %v7747_v0 }
0x1b90   :  { %7016 = vmatprep.subr.mxu0 %v7747_v0 }
0x1b91   :  { %7017 = vmatpush3.msra.mxu0 %v7731_v60 }
0x1b92   :  { %7018 = vmatprep.subr.mxu0 %v7747_v0 }
0x1b93   :  { %7019 = vmatpush3.msra.mxu0 %v7732_v61 }
0x1b94   :  { %7020 = vmatprep.subr.mxu0 %v7747_v0 }
0x1b95   :  { %7021 = vmatpush3.msra.mxu0 %v7733_v62 }
0x1bdb   :  { %v8342_v63 = vpop.f32.mrf.mxu0 }
0x1bdd   :  { %v6988_v1 = vpop.f32.mrf.mxu0 }
0x1bdf   :  { %v2336_v2 = vpop.f32.mrf.mxu0 }
0x1be0   :  { %v2878_v2 = vld [vmem:[%s7883_s3 + $0x10] sm:$0xff] }
0x1be1   :  { %v6989_v3 = vpop.f32.mrf.mxu0 }
0x1be2   :  { %v2876_v3 = vld [vmem:[%s7883_s3] sm:$0xff] }
0x1c4e   :  { %v2521_v4 = vpop.f32.mrf.mxu0 }
0x1c4f   :  { %v2522_v7 = vadd.f32 %v6367_v56, %v2521_v4  ;;  %v6380_v56 = vld [vmem:[%s7895_s11] ss:$0 sm:$0xff]  ;;  %s7776_s11 = smov 21  }
0x1c50   :  { %v7004_v12 = vpop.f32.mrf.mxu0 }
0x1c51   :  { %v2590_v13 = vadd.f32 %v2585_v57, %v2522_v7  ;;  %v6379_v57 = vld [vmem:[%s7867_s29] ss:$0 sm:$0xff] }
0x1c52   :  { %v2524_v16 = vpop.f32.mrf.mxu0 }
0x1c53   :  { %v6374_v6 = vmul.f32 -1.442695, %v2590_v13 }
0x1c54   :  { %v7005_v17 = vpop.f32.mrf.mxu0 }
0x1c55   :  { %7568 = vpow2.f32 %v6374_v6  ;;  %v6383_v17 = vld [vmem:[#allocation4] ss:$0 sm:$0xff] }
0x1c62   :  { %v7569_v18 = vpop.eup %7568 }
0x1c63   :  { %v2594_v23 = vadd.f32 1.0, %v7569_v18 }
0x1c65   :  { %7570 = vrcp.f32 %v2594_v23 }
0x1c72   :  { %v7571_v36 = vpop.eup %7570 }
0x1c73   :  { %v2601_v37 = vmul.f32 %v7571_v36, %v2599_v32  ;;  %v2608_v31 = vsub.f32 1.0, %v7571_v36  ;;  %v2614_v34 = vmul.f32 0.0, %v7571_v36 }
0x1c75   :  { %2603 = vrot.lane.b32.xlu0 %v2601_v37, %s7764_s7 }
0x1ce7   :  { %v2604_v38 = vpop.permute.xlu0 %2603 }
0x1ce8   :  { %v2606_v39 = vadd.f32 %v2604_v38, %v2522_v7 }
0x1cea   :  { %7572 = vtanh.f32 %v2606_v39 }
0x1cf7   :  { %v7573_v41 = vpop.eup %7572 }
0x1cf8   :  { %2610 = vrot.lane.b32.xlu1 %v7573_v41, %s7769_s28 }
0x1d6a   :  { %v2611_v44 = vpop.permute.xlu1 %2610 }
0x1d6b   :  { %v2613_v45 = vmul.f32 %v2611_v44, %v2608_v31 }
0x1d6d   :  { %v8352_v46 = vadd.f32 %v2614_v34, %v2613_v45 }
0x1d6f   :  { %2617 = vrot.lane.b32.xlu0 %v8352_v46, %s7769_s28 }
0x1de1   :  { %v2618_v48 = vpop.permute.xlu0 %2617 }
0x1de2   :  { %7023 = vmatmul.mubr.msk.f32.vlgmr.msra.gmra.mxu0 %vm288_vm4, %v2618_v48 }
0x1de3   :  { %7027 = vmatprep.mubr.msk.f32.mxu0 %vm456_vm5, %v8358_v49 }
0x1ea2   :  { %v2687_v50 = vpop.f32.mrf.mxu0 }
0x1ea3   :  { %7025 = vmatprep.subr.msk.mxu0 %vm463_vm3, %v2687_v50 }
0x1ea4   :  { %v7024_v29 = vpop.f32.mrf.mxu0  ;;  %7026 = vmatpush3.msk.msra.mxu0 %vm463_vm3, %v2687_v50 }
0x1ea5   :  { %7028 = vmatmul.mubr.msk.f32.vlgmr.msra.gmra.mxu0 %vm456_vm5, %v8365_v51 }
0x1f65   :  { %v7029_v54 = vpop.f32.mrf.mxu0 }
0x1f66   :  { %v2770_v55 = vadd.f32 %v7029_v54, %v7869_v27  ;;  %v2879_v27 = vld [vmem:[%s7883_s3 + $0x18] sm:$0xff]  ;;  %v7736_v54 = vld [vmem:[%s7907_s16] sm:$0x3] }
0x1f67   :  { %v2760_v58 = vpop.f32.mrf.mxu0  ;;  %7041 = vmatprep.subr.mxu0 %v2879_v27 }
0x1f68   :  { %v2769_v59 = vadd.f32 %v2760_v58, %v7871_v28  ;;  %v2779_v60 = vadd.f32 %v6379_v57, %v2770_v55  ;;  %7042 = vmatpush3.msra.mxu0 %v2879_v27  ;;  %v2877_v28 = vld [vmem:[%s7883_s3 + $0x8] sm:$0xff]  ;;  %v3226_v27 = vld [vmem:[%s7928_s20 + $0x18] sm:$0xff]  ;;  %s6253_s3 = sld [smem:[%s9102_s0 + %s7775_s13]]  }
0x1f69   :  { %7043 = vmatprep.subr.mxu0 %v2878_v2 }
0x1f6a   :  { %v2778_v61 = vadd.f32 %v6379_v57, %v2769_v59  ;;  %7044 = vmatpush3.msra.mxu0 %v2878_v2  ;;  %v3225_v2 = vld [vmem:[%s7928_s20 + $0x10] sm:$0xff] }
0x1f6b   :  { %7045 = vmatprep.subr.mxu0 %v2877_v28 }
0x1f6c   :  { %7574 = vtanh.f32 %v2778_v61  ;;  %7046 = vmatpush3.msra.mxu0 %v2877_v28  ;;  %v3224_v28 = vld [vmem:[%s7928_s20 + $0x8] sm:$0xff] }
0x1f6d   :  { %7576 = vtanh.f32 %v2779_v60  ;;  %7047 = vmatprep.subr.mxu0 %v2876_v3 }
0x1f6e   :  { %7048 = vmatpush3.msra.mxu0 %v2876_v3  ;;  %v3223_v3 = vld [vmem:[%s7928_s20] sm:$0xff] }
0x1f6f   :  { %7064 = vmatprep.subr.mxu0 %v7747_v0 }
0x1f79   :  { %v7575_v62 = vpop.eup %7574 }
0x1f7a   :  { %v7577_v1 = vpop.eup %7576  ;;  %7038 = vmatprep.mubr.msk.f32.mxu1 %vm288_vm4, %v7575_v62 }
0x1f7b   :  { %7039 = vmatmul.mubr.msk.f32.vlgmr.msra.gmra.mxu1 %vm288_vm4, %v7577_v1  ;;  %v3310_v1 = vpack.c.bf16 %v8352_v46, %v8352_v46 }
0x1f7c   :  { %7056 = vmatprep.mubr.msk.f32.mxu1 %vm7748_vm0, %v7747_v0 }
0x203b   :  { %v7040_v4 = vpop.f32.mrf.mxu1 }
0x203c   :  { %v2871_v7 = vadd.f32 %v7040_v4, %v6380_v56 }
0x203d   :  { %v2865_v12 = vpop.f32.mrf.mxu1 }
0x203e   :  { %v2866_v13 = vadd.f32 %v6380_v56, %v2865_v12 }
0x2040   :  { %7578 = vtanh.f32 %v2866_v13  ;;  %v8426_v13 = vld [vmem:[%s7933_s26 + $0x8] sm:$0xff]  }
0x2041   :  { %7580 = vtanh.f32 %v2871_v7 }
0x204d   :  { %v7579_v16 = vpop.eup %7578 }
0x204e   :  { %v7581_v6 = vpop.eup %7580  ;;  %7049 = vmatprep.mubr.msk.f32.mxu0 %vm288_vm4, %v7579_v16  ;;  %v8433_v16 = vld [vmem:[%s7933_s26] sm:$0xff]   ;;  %s8873_s26 = sld [smem:[%s9102_s0 + %s7776_s11]]  }
0x204f   :  { %7050 = vmatmul.mubr.msk.f32.vlgmr.msra.gmra.mxu0 %vm288_vm4, %v7581_v6  ;;  %s8988_s11 = sld [smem:[%s9102_s0 + %s7782_s25]]   ;;  %s7789_s25 = smov 31  }
0x2050   :  { %7068 = vmatprep.mubr.msk.f32.mxu0 %vm7748_vm0, %v7747_v0 }
0x210f   :  { %v7051_v18 = vpop.f32.mrf.mxu0 }
0x2110   :  { %v2965_v23 = vadd.f32 %v7051_v18, %v6383_v17 }
0x2111   :  { %v2959_v32 = vpop.f32.mrf.mxu0 }
0x2112   :  { %v2960_v36 = vadd.f32 %v6383_v17, %v2959_v32  ;;  %v2969_v37 = vsel %vm743_vm6, %v2965_v23, -inf }
0x2114   :  { %v2968_v38 = vsel %vm741_vm7, %v2960_v36, -inf }
0x2115   :  { %v2970_v39 = vmax.f32 %v2968_v38, %v2969_v37  ;;  %v8457_v37 = vld [vmem:[%s7971_s1] sm:$0xff]  }
0x2117   :  { %v2971_v41 = vrot.slane %v2970_v39, 4 }
0x2119   :  { %v2972_v31 = vmax.f32 %v2970_v39, %v2971_v41 }
0x211b   :  { %v2973_v44 = vrot.slane %v2972_v31, 2 }
0x211d   :  { %v2974_v34 = vmax.f32 %v2972_v31, %v2973_v44 }
0x211f   :  { %v2975_v45 = vrot.slane %v2974_v34, 1 }
0x2121   :  { %v2976_v48 = vmax.f32 %v2974_v34, %v2975_v45 }
0x2123   :  { %v2977_v50 = vsub.f32 %v2960_v36, %v2976_v48  ;;  %v2978_v29 = vsub.f32 %v2965_v23, %v2976_v48  ;;  %v8449_v23 = vld [vmem:[%s7971_s1 + $0x8] sm:$0xff]   ;;  %s7777_s1 = smov 35  }
0x2125   :  { %v2981_v42 = vmul.f32 1.442695, %v2978_v29  ;;  %v2979_v52 = vmul.f32 1.442695, %v2977_v50  ;;  %v8471_v50 = vld [vmem:[%s7995_s6] ss:$0 sm:$0xff] }
0x2127   :  { %7582 = vpow2.f32 %v2981_v42 }
0x2128   :  { %7584 = vpow2.f32 %v2979_v52 }
0x2134   :  { %v7583_v53 = vpop.eup %7582 }
0x2135   :  { %7053 = vmatpush3.msk.msra.mxu1 %vm762_vm8, %v7583_v53  ;;  %v7585_v30 = vpop.eup %7584 }
0x2136   :  { %7054 = vmatprep.subr.mxu1 %v7747_v0 }
0x2137   :  { %7055 = vmatpush3.msra.mxu1 %v7585_v30 }
0x2138   :  { %7057 = vmatmul.mubr.msk.f32.vlgmr.msra.gmra.mxu1 %vm758_vm9, %v7736_v54 }
0x2139   :  { %7061 = vmatprep.mubr.msk.f32.mxu1 %vm456_vm5, %v8358_v49 }
0x21f8   :  { %v3052_v55 = vpop.f32.mrf.mxu1 }
0x21f9   :  { %7059 = vmatprep.subr.msk.mxu1 %vm463_vm3, %v3052_v55 }
0x21fa   :  { %v7058_v57 = vpop.f32.mrf.mxu1  ;;  %7060 = vmatpush3.msk.msra.mxu1 %vm463_vm3, %v3052_v55 }
0x21fb   :  { %7062 = vmatmul.mubr.msk.f32.vlgmr.msra.gmra.mxu1 %vm456_vm5, %v8365_v51  ;;  %7071 = vmatprep.subr.mxu1 %v7747_v0  ;;  %v3300_v51 = vrot.slane %v8352_v46, 6 }
0x21fc   :  { %7079 = vmatprep.mubr.msk.f32.mxu1 %vm7748_vm0, %v7747_v0  ;;  %7072 = vmatpush3.msra.mxu1 %v3226_v27 }
0x21fd   :  { %7073 = vmatprep.subr.mxu1 %v7747_v0 }
0x21fe   :  { %7074 = vmatpush3.msra.mxu1 %v3225_v2  ;;  %v6395_v2 = vld [vmem:[%s8026_s27 + $0x10] sm:$0x3] }
0x21ff   :  { %7075 = vmatprep.subr.mxu1 %v7747_v0 }
0x2200   :  { %7076 = vmatpush3.msra.mxu1 %v3224_v28 }
0x2201   :  { %7077 = vmatprep.subr.mxu1 %v7747_v0 }
0x2202   :  { %7078 = vmatpush3.msra.mxu1 %v3223_v3 }
0x2203   :  { %7090 = vmatprep.subr.bf16.mxu1 %v7747_v0 }
0x22bb   :  { %v7063_v58 = vpop.f32.mrf.mxu1 }
0x22bc   :  { %7586 = vrcp.f32 %v7063_v58 }
0x22bd   :  { %v3125_v59 = vpop.f32.mrf.mxu1 }
0x22be   :  { %7588 = vrcp.f32 %v3125_v59 }
0x22c9   :  { %v7587_v49 = vpop.eup %7586 }
0x22ca   :  { %v3137_v60 = vmul.f32 %v7587_v49, %v7583_v53 }
0x22cb   :  { %v7589_v61 = vpop.eup %7588 }
0x22cc   :  { %3145 = vperm.xlu1 %7445, %v3137_v60   ;;  %v3136_v62 = vmul.f32 %v7589_v61, %v7585_v30  ;;  %v6398_v30 = vld [vmem:[%s8007_s12 + $0x20] sm:$0xf] }
0x22cd   :  { %v8479_v61 = vld [vmem:[%s8013_s18] ss:$0 sm:$0xff] }
0x22ce   :  { %3140 = vperm.xlu0 %7444, %v3136_v62  }
0x22d0   :  { %3301 = vrot.lane.b32.xlu1 %v3300_v51, %s7769_s28 }
0x22d2   :  { %3312 = vrot.lane.b32.xlu0 %v3310_v1, %s7769_s28 }
0x2347   :  { %v3146_v56 = vpop.permute.xlu1 %3145 }
0x2348   :  { %v3149_v4 = vmul.f32 %v7840_v21, %v3146_v56 }
0x2349   :  { %v3141_v7 = vpop.permute.xlu0 %3140 }
0x234a   :  { %v3148_v12 = vmul.f32 %v7835_v19, %v3141_v7  ;;  %7065 = vmatpush3.msk.msra.mxu0 %vm762_vm8, %v3149_v4 }
0x234b   :  { %7066 = vmatprep.subr.mxu0 %v7747_v0  ;;  %v3302_v18 = vpop.permute.xlu1 %3301 }
0x234c   :  { %7067 = vmatpush3.msra.mxu0 %v3148_v12  ;;  %v3304_v36 = vsel %vm463_vm3, 0.0, %v3302_v18 }
0x234d   :  { %7069 = vmatmul.mubr.msk.f32.vlgmr.msra.gmra.mxu0 %vm758_vm9, %v7736_v54  ;;  %7082 = vmatprep.subr.bf16.mxu0 %v7747_v0  ;;  %v8437_v6 = vpop.permute.xlu0 %3312  ;;  %v3385_v38 = vpack.c.bf16 %v3304_v36, %v3304_v36 }
0x234e   :  { %7083 = vmatpush3.bf16.msra.mxu0 %v8426_v13  ;;  %7086 = vmatprep.mubr.msk.bf16.mxu0 %vm7748_vm0, %v7747_v0 }
0x234f   :  { %7084 = vmatprep.subr.bf16.mxu0 %v7747_v0 }
0x2352   :  { %7085 = vmatpush3.bf16.msra.mxu0 %v8433_v16 }
0x2353   :  { %7098 = vmatprep.subr.bf16.mxu0 %v7747_v0 }
0x2355   :  { %7087 = vmatmul.mubr.msk.bf16.vlgmr.msra.gmra.mxu0 %vm288_vm4, %v8437_v6 }
0x2356   :  { %7099 = vmatpush3.bf16.msra.mxu0 %v8426_v13  ;;  %7102 = vmatprep.mubr.msk.bf16.mxu0 %vm7748_vm0, %v7747_v0 }
0x2357   :  { %7100 = vmatprep.subr.bf16.mxu0 %v7747_v0 }
0x235a   :  { %7101 = vmatpush3.bf16.msra.mxu0 %v8433_v16 }
0x235b   :  { %7114 = vmatprep.subr.bf16.mxu0 %v7747_v0 }
0x240d   :  { %v3219_v17 = vpop.f32.mrf.mxu0 }
0x240e   :  { %7080 = vmatmul.mubr.msk.f32.vlgmr.msra.gmra.mxu1 %vm288_vm4, %v3219_v17 }
0x240f   :  { %7091 = vmatpush3.bf16.msra.mxu1 %v8449_v23  ;;  %v7070_v32 = vpop.f32.mrf.mxu0  ;;  %7094 = vmatprep.mubr.msk.bf16.mxu1 %vm7748_vm0, %v7747_v0 }
0x2410   :  { %7092 = vmatprep.subr.bf16.mxu1 %v7747_v0 }
0x2413   :  { %7093 = vmatpush3.bf16.msra.mxu1 %v8457_v37 }
0x2414   :  { %7106 = vmatprep.subr.bf16.mxu1 %v7747_v0 }
0x2415   :  { %v3351_v39 = vpop.f32.mrf.mxu0 }
0x2416   :  { %7095 = vmatmul.mubr.msk.bf16.vlgmr.msra.gmra.mxu1 %vm288_vm4, %v3385_v38  ;;  %v3352_v62 = vadd.f32 %v8479_v61, %v3351_v39 }
0x2417   :  { %v7088_v41 = vpop.f32.mrf.mxu0  ;;  %7107 = vmatpush3.bf16.msra.mxu1 %v8449_v23  ;;  %7110 = vmatprep.mubr.msk.bf16.mxu1 %vm7748_vm0, %v7747_v0 }
0x2418   :  { %7108 = vmatprep.subr.bf16.mxu1 %v7747_v0 }
0x2419   :  { %v3354_v31 = vpop.f32.mrf.mxu0 }
0x241b   :  { %v7089_v44 = vpop.f32.mrf.mxu0  ;;  %7109 = vmatpush3.bf16.msra.mxu1 %v8457_v37 }
0x241c   :  { %7122 = vmatprep.subr.bf16.mxu1 %v7747_v0 }
0x24ce   :  { %v8468_v34 = vpop.f32.mrf.mxu1 }
0x24cf   :  { %v3309_v28 = vadd.f32 %v6395_v2, %v8468_v34 }
0x24d0   :  { %v7081_v45 = vpop.f32.mrf.mxu1 }
0x24d1   :  { %v3357_v3 = vadd.f32 %v3352_v62, %v3309_v28 }
0x24d3   :  { %v6397_v56 = vmul.f32 -1.442695, %v3357_v3 }
0x24d6   :  { %v3423_v48 = vpop.f32.mrf.mxu1 }
0x24d7   :  { %v3424_v29 = vadd.f32 %v8471_v50, %v3423_v48 }
0x24d8   :  { %v7096_v42 = vpop.f32.mrf.mxu1 }
0x24d9   :  { %3437 = vrot.lane.b32.xlu1 %v3424_v29, %s7764_s7  ;;  %v3429_v54 = vadd.f32 %v6398_v30, %v3424_v29 }
0x24da   :  { %v3426_v52 = vpop.f32.mrf.mxu1 }
0x24db   :  { %v6400_v55 = vmul.f32 -1.442695, %v3429_v54 }
0x24dc   :  { %v7097_v53 = vpop.f32.mrf.mxu1 }
0x24dd   :  { %7590 = vpow2.f32 %v6400_v55 }
0x24ea   :  { %v7591_v57 = vpop.eup %7590 }
0x24eb   :  { %v3433_v58 = vadd.f32 1.0, %v7591_v57 }
0x24ed   :  { %7592 = vrcp.f32 %v3433_v58 }
0x24fa   :  { %v7593_v59 = vpop.eup %7592 }
0x24fb   :  { %v3447_v17 = vsub.f32 1.0, %v7593_v59 }
0x254b   :  { %v3438_v49 = vpop.permute.xlu1 %3437 }
0x254c   :  { %v3440_v60 = vmul.f32 %v7593_v59, %v3438_v49 }
0x254e   :  { %3442 = vrot.lane.b32.xlu0 %v3440_v60, %s7764_s7 }
0x2552   :  { %3454 = vrot.lane.b32.xlu0 %v3304_v36, %s7767_s19 }
0x2556   :  { %3365 = vrot.lane.b32.xlu0 %v3352_v62, %s7764_s7 }
0x25c0   :  { %v3443_v51 = vpop.permute.xlu0 %3442 }
0x25c1   :  { %v3445_v1 = vadd.f32 %v6398_v30, %v3443_v51 }
0x25c3   :  { %7594 = vtanh.f32 %v3445_v1  ;;  %v6404_v1 = vld [vmem:[%s8007_s12 + $0x24] sm:$0xf] }
0x25c4   :  { %7596 = vpow2.f32 %v6397_v56  ;;  %v3455_v12 = vpop.permute.xlu0 %3454 }
0x25c5   :  { %v3457_v32 = vmul.f32 %v7593_v59, %v3455_v12 }
0x25c8   :  { %v3366_v41 = vpop.permute.xlu0 %3365 }
0x25d0   :  { %v7595_v27 = vpop.eup %7594 }
0x25d1   :  { %3449 = vrot.lane.b32.xlu1 %v7595_v27, %s7769_s28  ;;  %v7597_v4 = vpop.eup %7596 }
0x25d2   :  { %v3361_v7 = vadd.f32 1.0, %v7597_v4 }
0x25d4   :  { %7598 = vrcp.f32 %v3361_v7 }
0x25e1   :  { %v7599_v31 = vpop.eup %7598 }
0x25e2   :  { %v3368_v44 = vmul.f32 %v7599_v31, %v3366_v41  ;;  %v3375_v52 = vsub.f32 1.0, %v7599_v31  ;;  %v3381_v30 = vmul.f32 %v7599_v31, %v8352_v46 }
0x2643   :  { %v3450_v18 = vpop.permute.xlu1 %3449 }
0x2644   :  { %v3452_v36 = vmul.f32 %v3450_v18, %v3447_v17 }
0x2646   :  { %v8486_v38 = vadd.f32 %v3457_v32, %v3452_v36 }
0x2648   :  { %v3554_v39 = vpack.c.bf16 %v8486_v38, %v8486_v38 }
0x264a   :  { %3556 = vrot.lane.b32.xlu1 %v3554_v39, %s7769_s28 }
0x264e   :  { %3370 = vrot.lane.b32.xlu1 %v3368_v44, %s7764_s7  ;;  %v6401_v44 = vld [vmem:[%s8026_s27 + $0x12] sm:$0x3] }
0x26bc   :  { %v3557_v45 = vpop.permute.xlu1 %3556 }
0x26bd   :  { %7111 = vmatmul.mubr.msk.bf16.vlgmr.msra.gmra.mxu1 %vm288_vm4, %v3557_v45  ;;  %v3478_v45 = vadd.f32 %v6401_v44, %v8468_v34 }
0x26be   :  { %7123 = vmatpush3.bf16.msra.mxu1 %v8449_v23  ;;  %7126 = vmatprep.mubr.msk.bf16.mxu1 %vm7748_vm0, %v7747_v0 }
0x26bf   :  { %7124 = vmatprep.subr.bf16.mxu1 %v7747_v0 }
0x26c0   :  { %v3371_v48 = vpop.permute.xlu1 %3370 }
0x26c1   :  { %v3373_v29 = vadd.f32 %v3371_v48, %v3309_v28 }
0x26c2   :  { %7125 = vmatpush3.bf16.msra.mxu1 %v8457_v37 }
0x26c3   :  { %7600 = vtanh.f32 %v3373_v29  ;;  %7138 = vmatprep.subr.bf16.mxu1 %v7747_v0 }
0x26d0   :  { %v7601_v42 = vpop.eup %7600 }
0x26d1   :  { %3377 = vrot.lane.b32.xlu0 %v7601_v42, %s7769_s28 }
0x2743   :  { %v3378_v53 = vpop.permute.xlu0 %3377 }
0x2744   :  { %v3380_v54 = vmul.f32 %v3378_v53, %v3375_v52 }
0x2746   :  { %v8501_v55 = vadd.f32 %v3381_v30, %v3380_v54 }
0x2748   :  { %v3479_v57 = vpack.c.bf16 %v8501_v55, %v8501_v55 }
0x274a   :  { %3481 = vrot.lane.b32.xlu1 %v3479_v57, %s7769_s28 }
0x277d   :  { %v3595_v58 = vpop.f32.mrf.mxu1 }
0x277e   :  { %v3596_v59 = vadd.f32 %v8471_v50, %v3595_v58 }
0x277f   :  { %v7112_v49 = vpop.f32.mrf.mxu1 }
0x2780   :  { %3609 = vrot.lane.b32.xlu0 %v3596_v59, %s7764_s7  ;;  %v3601_v27 = vadd.f32 %v6404_v1, %v3596_v59 }
0x2781   :  { %v3598_v60 = vpop.f32.mrf.mxu1 }
0x2782   :  { %v6406_v2 = vmul.f32 -1.442695, %v3601_v27 }
0x2783   :  { %v7113_v62 = vpop.f32.mrf.mxu1 }
0x2784   :  { %7602 = vpow2.f32 %v6406_v2 }
0x2791   :  { %v7603_v28 = vpop.eup %7602 }
0x2792   :  { %v3605_v3 = vadd.f32 1.0, %v7603_v28 }
0x2794   :  { %7604 = vrcp.f32 %v3605_v3 }
0x27a1   :  { %v7605_v56 = vpop.eup %7604 }
0x27a2   :  { %v3619_v53 = vsub.f32 1.0, %v7605_v56  ;;  %v3625_v54 = vmul.f32 %v7605_v56, %v8486_v38 }
0x27bc   :  { %v3482_v51 = vpop.permute.xlu1 %3481 }
0x27bd   :  { %7103 = vmatmul.mubr.msk.bf16.vlgmr.msra.gmra.mxu0 %vm288_vm4, %v3482_v51 }
0x27be   :  { %7115 = vmatpush3.bf16.msra.mxu0 %v8426_v13  ;;  %7118 = vmatprep.mubr.msk.bf16.mxu0 %vm7748_vm0, %v7747_v0 }
0x27bf   :  { %7116 = vmatprep.subr.bf16.mxu0 %v7747_v0 }
0x27c2   :  { %7117 = vmatpush3.bf16.msra.mxu0 %v8433_v16 }
0x27c3   :  { %7130 = vmatprep.subr.bf16.mxu0 %v7747_v0 }
0x27f2   :  { %v3610_v4 = vpop.permute.xlu0 %3609 }
0x27f3   :  { %v3612_v7 = vmul.f32 %v7605_v56, %v3610_v4 }
0x27f5   :  { %3614 = vrot.lane.b32.xlu1 %v3612_v7, %s7764_s7 }
0x2867   :  { %v3615_v12 = vpop.permute.xlu1 %3614 }
0x2868   :  { %v3617_v17 = vadd.f32 %v6404_v1, %v3615_v12 }
0x286a   :  { %7606 = vtanh.f32 %v3617_v17 }
0x2877   :  { %v7607_v18 = vpop.eup %7606 }
0x2878   :  { %3621 = vrot.lane.b32.xlu0 %v7607_v18, %s7769_s28 }
0x287d   :  { %v3520_v32 = vpop.f32.mrf.mxu0 }
0x287e   :  { %v3521_v36 = vadd.f32 %v8479_v61, %v3520_v32 }
0x287f   :  { %v7104_v39 = vpop.f32.mrf.mxu0 }
0x2880   :  { %3534 = vrot.lane.b32.xlu0 %v3521_v36, %s7764_s7  ;;  %v3526_v48 = vadd.f32 %v3521_v36, %v3478_v45 }
0x2881   :  { %v3523_v41 = vpop.f32.mrf.mxu0 }
0x2882   :  { %v6403_v29 = vmul.f32 -1.442695, %v3526_v48 }
0x2883   :  { %v7105_v31 = vpop.f32.mrf.mxu0 }
0x2884   :  { %7608 = vpow2.f32 %v6403_v29  ;;  %v6410_v31 = vld [vmem:[%s8007_s12 + $0x28] sm:$0xf] }
0x2891   :  { %v7609_v42 = vpop.eup %7608 }
0x2892   :  { %v3530_v52 = vadd.f32 1.0, %v7609_v42 }
0x2894   :  { %7610 = vrcp.f32 %v3530_v52 }
0x28a1   :  { %v7611_v49 = vpop.eup %7610 }
0x28a2   :  { %v3544_v28 = vsub.f32 1.0, %v7611_v49  ;;  %v3550_v56 = vmul.f32 %v7611_v49, %v8501_v55 }
0x28ea   :  { %v3622_v30 = vpop.permute.xlu0 %3621 }
0x28eb   :  { %v3624_v57 = vmul.f32 %v3622_v30, %v3619_v53 }
0x28ed   :  { %v8523_v58 = vadd.f32 %v3625_v54, %v3624_v57 }
0x28ef   :  { %v3722_v59 = vpack.c.bf16 %v8523_v58, %v8523_v58 }
0x28f1   :  { %3724 = vrot.lane.b32.xlu1 %v3722_v59, %s7769_s28 }
0x28f2   :  { %v3535_v60 = vpop.permute.xlu0 %3534 }
0x28f3   :  { %v3537_v62 = vmul.f32 %v7611_v49, %v3535_v60 }
0x28f5   :  { %3539 = vrot.lane.b32.xlu1 %v3537_v62, %s7764_s7 }
0x2963   :  { %v3725_v51 = vpop.permute.xlu1 %3724 }
0x2964   :  { %7127 = vmatmul.mubr.msk.bf16.vlgmr.msra.gmra.mxu1 %vm288_vm4, %v3725_v51 }
0x2965   :  { %7139 = vmatpush3.bf16.msra.mxu1 %v8449_v23  ;;  %7142 = vmatprep.mubr.msk.bf16.mxu1 %vm7748_vm0, %v7747_v0 }
0x2966   :  { %7140 = vmatprep.subr.bf16.mxu1 %v7747_v0 }
0x2967   :  { %v3540_v1 = vpop.permute.xlu1 %3539 }
0x2968   :  { %v3542_v27 = vadd.f32 %v3540_v1, %v3478_v45  ;;  %v6407_v1 = vld [vmem:[%s8026_s27 + $0x14] sm:$0x3] }
0x2969   :  { %7141 = vmatpush3.bf16.msra.mxu1 %v8457_v37 }
0x296a   :  { %7612 = vtanh.f32 %v3542_v27  ;;  %7154 = vmatprep.subr.bf16.mxu1 %v7747_v0  ;;  %v3646_v27 = vadd.f32 %v6407_v1, %v8468_v34 }
0x2977   :  { %v7613_v2 = vpop.eup %7612 }
0x2978   :  { %3546 = vrot.lane.b32.xlu0 %v7613_v2, %s7769_s28 }
0x29ea   :  { %v3547_v3 = vpop.permute.xlu0 %3546 }
0x29eb   :  { %v3549_v4 = vmul.f32 %v3547_v3, %v3544_v28 }
0x29ed   :  { %v8538_v7 = vadd.f32 %v3550_v56, %v3549_v4 }
0x29ef   :  { %v3647_v12 = vpack.c.bf16 %v8538_v7, %v8538_v7 }
0x29f1   :  { %3649 = vrot.lane.b32.xlu1 %v3647_v12, %s7769_s28 }
0x2a24   :  { %v3763_v17 = vpop.f32.mrf.mxu1 }
0x2a25   :  { %v3764_v18 = vadd.f32 %v8471_v50, %v3763_v17 }
0x2a26   :  { %v7128_v32 = vpop.f32.mrf.mxu1 }
0x2a27   :  { %3777 = vrot.lane.b32.xlu0 %v3764_v18, %s7764_s7  ;;  %v3769_v44 = vadd.f32 %v6410_v31, %v3764_v18 }
0x2a28   :  { %v3766_v36 = vpop.f32.mrf.mxu1 }
0x2a29   :  { %v6412_v45 = vmul.f32 -1.442695, %v3769_v44 }
0x2a2a   :  { %v7129_v39 = vpop.f32.mrf.mxu1 }
0x2a2b   :  { %7614 = vpow2.f32 %v6412_v45 }
0x2a38   :  { %v7615_v48 = vpop.eup %7614 }
0x2a39   :  { %v3773_v29 = vadd.f32 1.0, %v7615_v48 }
0x2a3b   :  { %7616 = vrcp.f32 %v3773_v29 }
0x2a48   :  { %v7617_v42 = vpop.eup %7616 }
0x2a49   :  { %v3787_v4 = vsub.f32 1.0, %v7617_v42  ;;  %v3793_v17 = vmul.f32 %v7617_v42, %v8523_v58 }
0x2a63   :  { %v3650_v41 = vpop.permute.xlu1 %3649 }
0x2a64   :  { %7119 = vmatmul.mubr.msk.bf16.vlgmr.msra.gmra.mxu0 %vm288_vm4, %v3650_v41 }
0x2a65   :  { %7131 = vmatpush3.bf16.msra.mxu0 %v8426_v13  ;;  %7134 = vmatprep.mubr.msk.bf16.mxu0 %vm7748_vm0, %v7747_v0 }
0x2a66   :  { %7132 = vmatprep.subr.bf16.mxu0 %v7747_v0 }
0x2a69   :  { %7133 = vmatpush3.bf16.msra.mxu0 %v8433_v16 }
0x2a6a   :  { %7146 = vmatprep.subr.bf16.mxu0 %v7747_v0 }
0x2a99   :  { %v3778_v52 = vpop.permute.xlu0 %3777 }
0x2a9a   :  { %v3780_v53 = vmul.f32 %v7617_v42, %v3778_v52 }
0x2a9c   :  { %3782 = vrot.lane.b32.xlu1 %v3780_v53, %s7764_s7 }
0x2b0e   :  { %v3783_v30 = vpop.permute.xlu1 %3782 }
0x2b0f   :  { %v3785_v54 = vadd.f32 %v6410_v31, %v3783_v30 }
0x2b11   :  { %7618 = vtanh.f32 %v3785_v54 }
0x2b1e   :  { %v7619_v57 = vpop.eup %7618 }
0x2b1f   :  { %3789 = vrot.lane.b32.xlu0 %v7619_v57, %s7769_s28 }
0x2b24   :  { %v3688_v59 = vpop.f32.mrf.mxu0 }
0x2b25   :  { %v3689_v49 = vadd.f32 %v8479_v61, %v3688_v59 }
0x2b26   :  { %v7120_v60 = vpop.f32.mrf.mxu0 }
0x2b27   :  { %3702 = vrot.lane.b32.xlu0 %v3689_v49, %s7764_s7  ;;  %v3694_v2 = vadd.f32 %v3689_v49, %v3646_v27 }
0x2b28   :  { %v3691_v62 = vpop.f32.mrf.mxu0 }
0x2b29   :  { %v6409_v28 = vmul.f32 -1.442695, %v3694_v2 }
0x2b2a   :  { %v7121_v51 = vpop.f32.mrf.mxu0 }
0x2b2b   :  { %7620 = vpow2.f32 %v6409_v28 }
0x2b38   :  { %v7621_v3 = vpop.eup %7620 }
0x2b39   :  { %v3698_v56 = vadd.f32 1.0, %v7621_v3 }
0x2b3b   :  { %7622 = vrcp.f32 %v3698_v56 }
0x2b48   :  { %v7623_v39 = vpop.eup %7622 }
0x2b49   :  { %v3712_v42 = vsub.f32 1.0, %v7623_v39  ;;  %v3718_v53 = vmul.f32 %v7623_v39, %v8538_v7 }
0x2b91   :  { %v3790_v12 = vpop.permute.xlu0 %3789 }
0x2b92   :  { %v3792_v18 = vmul.f32 %v3790_v12, %v3787_v4 }
0x2b94   :  { %v8560_v32 = vadd.f32 %v3793_v17, %v3792_v18 }
0x2b96   :  { %v3890_v36 = vpack.c.bf16 %v8560_v32, %v8560_v32 }
0x2b98   :  { %3892 = vrot.lane.b32.xlu1 %v3890_v36, %s7769_s28 }
0x2b99   :  { %v3703_v41 = vpop.permute.xlu0 %3702 }
0x2b9a   :  { %v3705_v31 = vmul.f32 %v7623_v39, %v3703_v41 }
0x2b9c   :  { %3707 = vrot.lane.b32.xlu1 %v3705_v31, %s7764_s7 }
0x2c0a   :  { %v3893_v44 = vpop.permute.xlu1 %3892 }
0x2c0b   :  { %7143 = vmatmul.mubr.msk.bf16.vlgmr.msra.gmra.mxu1 %vm288_vm4, %v3893_v44 }
0x2c0c   :  { %7155 = vmatpush3.bf16.msra.mxu1 %v8449_v23  ;;  %7158 = vmatprep.mubr.msk.bf16.mxu1 %vm7748_vm0, %v7747_v0 }
0x2c0d   :  { %7156 = vmatprep.subr.bf16.mxu1 %v7747_v0 }
0x2c0e   :  { %v3708_v45 = vpop.permute.xlu1 %3707 }
0x2c0f   :  { %v3710_v48 = vadd.f32 %v3708_v45, %v3646_v27  ;;  %v6416_v27 = vld [vmem:[%s8007_s12 + $0x2c] sm:$0xf] }
0x2c10   :  { %7157 = vmatpush3.bf16.msra.mxu1 %v8457_v37 }
0x2c11   :  { %7624 = vtanh.f32 %v3710_v48  ;;  %7170 = vmatprep.subr.bf16.mxu1 %v7747_v0 }
0x2c1e   :  { %v7625_v29 = vpop.eup %7624 }
0x2c1f   :  { %3714 = vrot.lane.b32.xlu0 %v7625_v29, %s7769_s28  ;;  %v6413_v29 = vld [vmem:[%s8026_s27 + $0x16] sm:$0x3] }
0x2c91   :  { %v3715_v52 = vpop.permute.xlu0 %3714 }
0x2c92   :  { %v3717_v30 = vmul.f32 %v3715_v52, %v3712_v42  ;;  %v3814_v42 = vadd.f32 %v6413_v29, %v8468_v34 }
0x2c94   :  { %v8575_v54 = vadd.f32 %v3718_v53, %v3717_v30 }
0x2c96   :  { %v3815_v57 = vpack.c.bf16 %v8575_v54, %v8575_v54 }
0x2c98   :  { %3817 = vrot.lane.b32.xlu1 %v3815_v57, %s7769_s28 }
0x2ccb   :  { %v3931_v59 = vpop.f32.mrf.mxu1 }
0x2ccc   :  { %v3932_v49 = vadd.f32 %v8471_v50, %v3931_v59 }
0x2ccd   :  { %v7144_v60 = vpop.f32.mrf.mxu1 }
0x2cce   :  { %3945 = vrot.lane.b32.xlu0 %v3932_v49, %s7764_s7  ;;  %v3937_v2 = vadd.f32 %v6416_v27, %v3932_v49 }
0x2ccf   :  { %v3934_v62 = vpop.f32.mrf.mxu1 }
0x2cd0   :  { %v6418_v28 = vmul.f32 -1.442695, %v3937_v2 }
0x2cd1   :  { %v7145_v51 = vpop.f32.mrf.mxu1 }
0x2cd2   :  { %7626 = vpow2.f32 %v6418_v28 }
0x2cdf   :  { %v7627_v3 = vpop.eup %7626 }
0x2ce0   :  { %v3941_v56 = vadd.f32 1.0, %v7627_v3 }
0x2ce2   :  { %7628 = vrcp.f32 %v3941_v56 }
0x2cef   :  { %v7629_v4 = vpop.eup %7628 }
0x2cf0   :  { %v3955_v59 = vsub.f32 1.0, %v7629_v4  ;;  %v3961_v60 = vmul.f32 %v7629_v4, %v8560_v32 }
0x2d0a   :  { %v3818_v1 = vpop.permute.xlu1 %3817 }
0x2d0b   :  { %7135 = vmatmul.mubr.msk.bf16.vlgmr.msra.gmra.mxu0 %vm288_vm4, %v3818_v1 }
0x2d0c   :  { %7147 = vmatpush3.bf16.msra.mxu0 %v8426_v13  ;;  %7150 = vmatprep.mubr.msk.bf16.mxu0 %vm7748_vm0, %v7747_v0 }
0x2d0d   :  { %7148 = vmatprep.subr.bf16.mxu0 %v7747_v0 }
0x2d10   :  { %7149 = vmatpush3.bf16.msra.mxu0 %v8433_v16 }
0x2d11   :  { %7162 = vmatprep.subr.bf16.mxu0 %v7747_v0 }
0x2d40   :  { %v3946_v12 = vpop.permute.xlu0 %3945 }
0x2d41   :  { %v3948_v17 = vmul.f32 %v7629_v4, %v3946_v12 }
0x2d43   :  { %3950 = vrot.lane.b32.xlu1 %v3948_v17, %s7764_s7 }
0x2db5   :  { %v3951_v18 = vpop.permute.xlu1 %3950 }
0x2db6   :  { %v3953_v36 = vadd.f32 %v6416_v27, %v3951_v18 }
0x2db8   :  { %7630 = vtanh.f32 %v3953_v36 }
0x2dc5   :  { %v7631_v39 = vpop.eup %7630 }
0x2dc6   :  { %3957 = vrot.lane.b32.xlu0 %v7631_v39, %s7769_s28 }
0x2dcb   :  { %v3856_v41 = vpop.f32.mrf.mxu0 }
0x2dcc   :  { %v3857_v31 = vadd.f32 %v8479_v61, %v3856_v41 }
0x2dcd   :  { %v7136_v44 = vpop.f32.mrf.mxu0 }
0x2dce   :  { %3870 = vrot.lane.b32.xlu0 %v3857_v31, %s7764_s7  ;;  %v3862_v52 = vadd.f32 %v3857_v31, %v3814_v42 }
0x2dcf   :  { %v3859_v45 = vpop.f32.mrf.mxu0 }
0x2dd0   :  { %v6415_v53 = vmul.f32 -1.442695, %v3862_v52 }
0x2dd1   :  { %v7137_v48 = vpop.f32.mrf.mxu0 }
0x2dd2   :  { %7632 = vpow2.f32 %v6415_v53  ;;  %v6422_v53 = vld [vmem:[%s8007_s12 + $0x30] sm:$0xf] }
0x2ddf   :  { %v7633_v30 = vpop.eup %7632 }
0x2de0   :  { %v3866_v57 = vadd.f32 1.0, %v7633_v30 }
0x2de2   :  { %7634 = vrcp.f32 %v3866_v57 }
0x2def   :  { %v7635_v27 = vpop.eup %7634 }
0x2df0   :  { %v3880_v17 = vsub.f32 1.0, %v7635_v27  ;;  %v3886_v36 = vmul.f32 %v7635_v27, %v8575_v54 }
0x2e38   :  { %v3958_v49 = vpop.permute.xlu0 %3957 }
0x2e39   :  { %v3960_v62 = vmul.f32 %v3958_v49, %v3955_v59 }
0x2e3b   :  { %v8597_v51 = vadd.f32 %v3961_v60, %v3960_v62 }
0x2e3d   :  { %v4058_v1 = vpack.c.bf16 %v8597_v51, %v8597_v51 }
0x2e3f   :  { %4060 = vrot.lane.b32.xlu1 %v4058_v1, %s7769_s28 }
0x2e40   :  { %v3871_v2 = vpop.permute.xlu0 %3870 }
0x2e41   :  { %v3873_v28 = vmul.f32 %v7635_v27, %v3871_v2 }
0x2e43   :  { %3875 = vrot.lane.b32.xlu1 %v3873_v28, %s7764_s7 }
0x2eb1   :  { %v4061_v3 = vpop.permute.xlu1 %4060 }
0x2eb2   :  { %7159 = vmatmul.mubr.msk.bf16.vlgmr.msra.gmra.mxu1 %vm288_vm4, %v4061_v3 }
0x2eb3   :  { %7171 = vmatpush3.bf16.msra.mxu1 %v8449_v23  ;;  %7174 = vmatprep.mubr.msk.bf16.mxu1 %vm7748_vm0, %v7747_v0 }
0x2eb4   :  { %7172 = vmatprep.subr.bf16.mxu1 %v7747_v0 }
0x2eb5   :  { %v3876_v56 = vpop.permute.xlu1 %3875 }
0x2eb6   :  { %v3878_v4 = vadd.f32 %v3876_v56, %v3814_v42 }
0x2eb7   :  { %7173 = vmatpush3.bf16.msra.mxu1 %v8457_v37 }
0x2eb8   :  { %7636 = vtanh.f32 %v3878_v4  ;;  %7186 = vmatprep.subr.bf16.mxu1 %v7747_v0 }
0x2ec5   :  { %v7637_v12 = vpop.eup %7636 }
0x2ec6   :  { %3882 = vrot.lane.b32.xlu0 %v7637_v12, %s7769_s28 }
0x2f38   :  { %v3883_v18 = vpop.permute.xlu0 %3882 }
0x2f39   :  { %v3885_v39 = vmul.f32 %v3883_v18, %v3880_v17  ;;  %v6419_v18 = vld [vmem:[%s8026_s27 + $0x18] sm:$0x3] }
0x2f3b   :  { %v8612_v41 = vadd.f32 %v3886_v36, %v3885_v39  ;;  %v3982_v36 = vadd.f32 %v6419_v18, %v8468_v34 }
0x2f3d   :  { %v3983_v31 = vpack.c.bf16 %v8612_v41, %v8612_v41 }
0x2f3f   :  { %3985 = vrot.lane.b32.xlu1 %v3983_v31, %s7769_s28 }
0x2f72   :  { %v4099_v44 = vpop.f32.mrf.mxu1 }
0x2f73   :  { %v4100_v45 = vadd.f32 %v8471_v50, %v4099_v44 }
0x2f74   :  { %v7160_v48 = vpop.f32.mrf.mxu1 }
0x2f75   :  { %4113 = vrot.lane.b32.xlu0 %v4100_v45, %s7764_s7  ;;  %v4105_v30 = vadd.f32 %v6422_v53, %v4100_v45 }
0x2f76   :  { %v4102_v29 = vpop.f32.mrf.mxu1 }
0x2f77   :  { %v6424_v57 = vmul.f32 -1.442695, %v4105_v30 }
0x2f78   :  { %v7161_v42 = vpop.f32.mrf.mxu1 }
0x2f79   :  { %7638 = vpow2.f32 %v6424_v57 }
0x2f86   :  { %v7639_v59 = vpop.eup %7638 }
0x2f87   :  { %v4109_v49 = vadd.f32 1.0, %v7639_v59 }
0x2f89   :  { %7640 = vrcp.f32 %v4109_v49 }
0x2f96   :  { %v7641_v60 = vpop.eup %7640 }
0x2f97   :  { %v4123_v48 = vsub.f32 1.0, %v7641_v60  ;;  %v4129_v42 = vmul.f32 %v7641_v60, %v8597_v51 }
0x2fb1   :  { %v3986_v52 = vpop.permute.xlu1 %3985 }
0x2fb2   :  { %7151 = vmatmul.mubr.msk.bf16.vlgmr.msra.gmra.mxu0 %vm288_vm4, %v3986_v52 }
0x2fb3   :  { %7163 = vmatpush3.bf16.msra.mxu0 %v8426_v13  ;;  %7166 = vmatprep.mubr.msk.bf16.mxu0 %vm7748_vm0, %v7747_v0 }
0x2fb4   :  { %7164 = vmatprep.subr.bf16.mxu0 %v7747_v0 }
0x2fb7   :  { %7165 = vmatpush3.bf16.msra.mxu0 %v8433_v16 }
0x2fb8   :  { %7178 = vmatprep.subr.bf16.mxu0 %v7747_v0 }
0x2fe7   :  { %v4114_v62 = vpop.permute.xlu0 %4113 }
0x2fe8   :  { %v4116_v1 = vmul.f32 %v7641_v60, %v4114_v62 }
0x2fea   :  { %4118 = vrot.lane.b32.xlu1 %v4116_v1, %s7764_s7 }
0x305c   :  { %v4119_v27 = vpop.permute.xlu1 %4118 }
0x305d   :  { %v4121_v2 = vadd.f32 %v6422_v53, %v4119_v27 }
0x305f   :  { %7642 = vtanh.f32 %v4121_v2 }
0x306c   :  { %v7643_v28 = vpop.eup %7642 }
0x306d   :  { %4125 = vrot.lane.b32.xlu0 %v7643_v28, %s7769_s28 }
0x3072   :  { %v4024_v3 = vpop.f32.mrf.mxu0 }
0x3073   :  { %v4025_v56 = vadd.f32 %v8479_v61, %v4024_v3 }
0x3074   :  { %v7152_v4 = vpop.f32.mrf.mxu0 }
0x3075   :  { %4038 = vrot.lane.b32.xlu0 %v4025_v56, %s7764_s7  ;;  %v4030_v39 = vadd.f32 %v4025_v56, %v3982_v36 }
0x3076   :  { %v4027_v12 = vpop.f32.mrf.mxu0 }
0x3077   :  { %v6421_v31 = vmul.f32 -1.442695, %v4030_v39 }
0x3078   :  { %v7153_v17 = vpop.f32.mrf.mxu0 }
0x3079   :  { %7644 = vpow2.f32 %v6421_v31 }
0x3086   :  { %v7645_v44 = vpop.eup %7644 }
0x3087   :  { %v4034_v45 = vadd.f32 1.0, %v7645_v44 }
0x3089   :  { %7646 = vrcp.f32 %v4034_v45  ;;  %v6428_v45 = vld [vmem:[%s8007_s12 + $0x34] sm:$0xf] }
0x3096   :  { %v7647_v57 = vpop.eup %7646 }
0x3097   :  { %v4048_v2 = vsub.f32 1.0, %v7647_v57  ;;  %v4054_v3 = vmul.f32 %v7647_v57, %v8612_v41 }
0x30df   :  { %v4126_v29 = vpop.permute.xlu0 %4125 }
0x30e0   :  { %v4128_v52 = vmul.f32 %v4126_v29, %v4123_v48 }
0x30e2   :  { %v8634_v53 = vadd.f32 %v4129_v42, %v4128_v52 }
0x30e4   :  { %v4226_v30 = vpack.c.bf16 %v8634_v53, %v8634_v53 }
0x30e6   :  { %4228 = vrot.lane.b32.xlu1 %v4226_v30, %s7769_s28 }
0x30e7   :  { %v4039_v59 = vpop.permute.xlu0 %4038 }
0x30e8   :  { %v4041_v49 = vmul.f32 %v7647_v57, %v4039_v59 }
0x30ea   :  { %4043 = vrot.lane.b32.xlu1 %v4041_v49, %s7764_s7 }
0x3158   :  { %v4229_v62 = vpop.permute.xlu1 %4228 }
0x3159   :  { %7175 = vmatmul.mubr.msk.bf16.vlgmr.msra.gmra.mxu1 %vm288_vm4, %v4229_v62 }
0x315a   :  { %7187 = vmatpush3.bf16.msra.mxu1 %v8449_v23  ;;  %7190 = vmatprep.mubr.msk.bf16.mxu1 %vm7748_vm0, %v7747_v0 }
0x315b   :  { %7188 = vmatprep.subr.bf16.mxu1 %v7747_v0 }
0x315c   :  { %v4044_v60 = vpop.permute.xlu1 %4043 }
0x315d   :  { %v4046_v1 = vadd.f32 %v4044_v60, %v3982_v36 }
0x315e   :  { %7189 = vmatpush3.bf16.msra.mxu1 %v8457_v37 }
0x315f   :  { %7648 = vtanh.f32 %v4046_v1  ;;  %7202 = vmatprep.subr.bf16.mxu1 %v7747_v0 }
0x316c   :  { %v7649_v27 = vpop.eup %7648 }
0x316d   :  { %4050 = vrot.lane.b32.xlu0 %v7649_v27, %s7769_s28 }
0x31df   :  { %v4051_v28 = vpop.permute.xlu0 %4050 }
0x31e0   :  { %v4053_v56 = vmul.f32 %v4051_v28, %v4048_v2 }
0x31e2   :  { %v8649_v4 = vadd.f32 %v4054_v3, %v4053_v56  ;;  %v6425_v56 = vld [vmem:[%s8026_s27 + $0x1a] sm:$0x3] }
0x31e4   :  { %v4151_v12 = vpack.c.bf16 %v8649_v4, %v8649_v4 }
0x31e6   :  { %4153 = vrot.lane.b32.xlu1 %v4151_v12, %s7769_s28  ;;  %v4150_v12 = vadd.f32 %v6425_v56, %v8468_v34 }
0x3219   :  { %v4267_v17 = vpop.f32.mrf.mxu1 }
0x321a   :  { %v4268_v18 = vadd.f32 %v8471_v50, %v4267_v17 }
0x321b   :  { %v7176_v36 = vpop.f32.mrf.mxu1 }
0x321c   :  { %4281 = vrot.lane.b32.xlu0 %v4268_v18, %s7764_s7  ;;  %v4273_v48 = vadd.f32 %v6428_v45, %v4268_v18 }
0x321d   :  { %v4270_v39 = vpop.f32.mrf.mxu1 }
0x321e   :  { %v6430_v29 = vmul.f32 -1.442695, %v4273_v48 }
0x321f   :  { %v7177_v31 = vpop.f32.mrf.mxu1 }
0x3220   :  { %7650 = vpow2.f32 %v6430_v29 }
0x322d   :  { %v7651_v42 = vpop.eup %7650 }
0x322e   :  { %v4277_v52 = vadd.f32 1.0, %v7651_v42 }
0x3230   :  { %7652 = vrcp.f32 %v4277_v52 }
0x323d   :  { %v7653_v30 = vpop.eup %7652 }
0x323e   :  { %v4291_v31 = vsub.f32 1.0, %v7653_v30 }
0x3258   :  { %v4154_v44 = vpop.permute.xlu1 %4153 }
0x3259   :  { %7167 = vmatmul.mubr.msk.bf16.vlgmr.msra.gmra.mxu0 %vm288_vm4, %v4154_v44 }
0x325a   :  { %7179 = vmatpush3.bf16.msra.mxu0 %v8426_v13  ;;  %7182 = vmatprep.mubr.msk.bf16.mxu0 %vm7748_vm0, %v7747_v0 }
0x325b   :  { %7180 = vmatprep.subr.bf16.mxu0 %v7747_v0 }
0x325e   :  { %7181 = vmatpush3.bf16.msra.mxu0 %v8433_v16 }
0x325f   :  { %7194 = vmatprep.subr.bf16.mxu0 %v7747_v0 }
0x328e   :  { %v4282_v57 = vpop.permute.xlu0 %4281 }
0x328f   :  { %v4284_v59 = vmul.f32 %v7653_v30, %v4282_v57 }
0x3291   :  { %4286 = vrot.lane.b32.xlu1 %v4284_v59, %s7764_s7 }
0x3303   :  { %v4287_v49 = vpop.permute.xlu1 %4286 }
0x3304   :  { %v4289_v62 = vadd.f32 %v6428_v45, %v4287_v49  ;;  %v4297_v45 = vmul.f32 %v7653_v30, %v8634_v53 }
0x3306   :  { %7654 = vtanh.f32 %v4289_v62 }
0x3313   :  { %v7655_v60 = vpop.eup %7654 }
0x3314   :  { %4293 = vrot.lane.b32.xlu0 %v7655_v60, %s7769_s28 }
0x3319   :  { %v4192_v1 = vpop.f32.mrf.mxu0 }
0x331a   :  { %v4193_v27 = vadd.f32 %v8479_v61, %v4192_v1 }
0x331b   :  { %v7168_v2 = vpop.f32.mrf.mxu0 }
0x331c   :  { %4206 = vrot.lane.b32.xlu0 %v4193_v27, %s7764_s7  ;;  %v4198_v17 = vadd.f32 %v4193_v27, %v4150_v12 }
0x331d   :  { %v4195_v28 = vpop.f32.mrf.mxu0 }
0x331e   :  { %v6427_v18 = vmul.f32 -1.442695, %v4198_v17 }
0x331f   :  { %v7169_v3 = vpop.f32.mrf.mxu0 }
0x3320   :  { %7656 = vpow2.f32 %v6427_v18 }
0x332d   :  { %v7657_v36 = vpop.eup %7656 }
0x332e   :  { %v4202_v39 = vadd.f32 1.0, %v7657_v36 }
0x3330   :  { %7658 = vrcp.f32 %v4202_v39  ;;  %v6434_v39 = vld [vmem:[%s8007_s12 + $0x38] sm:$0xf] }
0x333d   :  { %v7659_v52 = vpop.eup %7658 }
0x333e   :  { %v4216_v1 = vsub.f32 1.0, %v7659_v52  ;;  %v4222_v2 = vmul.f32 %v7659_v52, %v8649_v4 }
0x3386   :  { %v4294_v44 = vpop.permute.xlu0 %4293 }
0x3387   :  { %v4296_v48 = vmul.f32 %v4294_v44, %v4291_v31 }
0x3389   :  { %v8671_v29 = vadd.f32 %v4297_v45, %v4296_v48 }
0x338b   :  { %v4394_v42 = vpack.c.bf16 %v8671_v29, %v8671_v29 }
0x338d   :  { %4396 = vrot.lane.b32.xlu1 %v4394_v42, %s7769_s28 }
0x338e   :  { %v4207_v57 = vpop.permute.xlu0 %4206 }
0x338f   :  { %v4209_v59 = vmul.f32 %v7659_v52, %v4207_v57 }
0x3391   :  { %4211 = vrot.lane.b32.xlu1 %v4209_v59, %s7764_s7 }
0x33ff   :  { %v4397_v49 = vpop.permute.xlu1 %4396 }
0x3400   :  { %7191 = vmatmul.mubr.msk.bf16.vlgmr.msra.gmra.mxu1 %vm288_vm4, %v4397_v49 }
0x3401   :  { %7203 = vmatpush3.bf16.msra.mxu1 %v8449_v23  ;;  %7206 = vmatprep.mubr.msk.bf16.mxu1 %vm7748_vm0, %v7747_v0 }
0x3402   :  { %7204 = vmatprep.subr.bf16.mxu1 %v7747_v0 }
0x3403   :  { %v4212_v30 = vpop.permute.xlu1 %4211 }
0x3404   :  { %v4214_v62 = vadd.f32 %v4212_v30, %v4150_v12 }
0x3405   :  { %7205 = vmatpush3.bf16.msra.mxu1 %v8457_v37 }
0x3406   :  { %7660 = vtanh.f32 %v4214_v62  ;;  %7218 = vmatprep.subr.bf16.mxu1 %v7747_v0 }
0x3413   :  { %v7661_v60 = vpop.eup %7660 }
0x3414   :  { %4218 = vrot.lane.b32.xlu0 %v7661_v60, %s7769_s28 }
0x3486   :  { %v4219_v27 = vpop.permute.xlu0 %4218 }
0x3487   :  { %v4221_v23 = vmul.f32 %v4219_v27, %v4216_v1  ;;  %v6431_v27 = vld [vmem:[%s8026_s27 + $0x1c] sm:$0x3] }
0x3489   :  { %v8686_v28 = vadd.f32 %v4222_v2, %v4221_v23  ;;  %v4318_v2 = vadd.f32 %v6431_v27, %v8468_v34 }
0x348b   :  { %v4319_v3 = vpack.c.bf16 %v8686_v28, %v8686_v28 }
0x348d   :  { %4321 = vrot.lane.b32.xlu1 %v4319_v3, %s7769_s28 }
0x34c0   :  { %v4435_v37 = vpop.f32.mrf.mxu1 }
0x34c1   :  { %v4436_v56 = vadd.f32 %v8471_v50, %v4435_v37 }
0x34c2   :  { %v7192_v12 = vpop.f32.mrf.mxu1 }
0x34c3   :  { %4449 = vrot.lane.b32.xlu0 %v4436_v56, %s7764_s7  ;;  %v4441_v31 = vadd.f32 %v6434_v39, %v4436_v56 }
0x34c4   :  { %v4438_v17 = vpop.f32.mrf.mxu1 }
0x34c5   :  { %v6436_v44 = vmul.f32 -1.442695, %v4441_v31 }
0x34c6   :  { %v7193_v18 = vpop.f32.mrf.mxu1 }
0x34c7   :  { %7662 = vpow2.f32 %v6436_v44 }
0x34d4   :  { %v7663_v45 = vpop.eup %7662 }
0x34d5   :  { %v4445_v48 = vadd.f32 1.0, %v7663_v45 }
0x34d7   :  { %7664 = vrcp.f32 %v4445_v48  ;;  %v7454_v48 = vld [vmem:[%s8286_s14 + $0x8] sm:$0xff]  }
0x34e4   :  { %v7665_v42 = vpop.eup %7664 }
0x34e5   :  { %v4459_v12 = vsub.f32 1.0, %v7665_v42 }
0x34ff   :  { %v4322_v36 = vpop.permute.xlu1 %4321 }
0x3500   :  { %7183 = vmatmul.mubr.msk.bf16.vlgmr.msra.gmra.mxu0 %vm288_vm4, %v4322_v36 }
0x3501   :  { %7195 = vmatpush3.bf16.msra.mxu0 %v8426_v13  ;;  %7198 = vmatprep.mubr.msk.bf16.mxu0 %vm7748_vm0, %v7747_v0 }
0x3502   :  { %7196 = vmatprep.subr.bf16.mxu0 %v7747_v0 }
0x3505   :  { %7197 = vmatpush3.bf16.msra.mxu0 %v8433_v16 }
0x3506   :  { %7210 = vmatprep.subr.bf16.mxu0 %v7747_v0 }
0x3535   :  { %v4450_v52 = vpop.permute.xlu0 %4449 }
0x3536   :  { %v4452_v13 = vmul.f32 %v7665_v42, %v4450_v52 }
0x3538   :  { %4454 = vrot.lane.b32.xlu1 %v4452_v13, %s7764_s7  ;;  %v7455_v13 = vld [vmem:[%s8286_s14] sm:$0xff]  }
0x35aa   :  { %v4455_v57 = vpop.permute.xlu1 %4454 }
0x35ab   :  { %v4457_v59 = vadd.f32 %v6434_v39, %v4455_v57 }
0x35ad   :  { %7666 = vtanh.f32 %v4457_v59 }
0x35ba   :  { %v7667_v49 = vpop.eup %7666 }
0x35bb   :  { %4461 = vrot.lane.b32.xlu0 %v7667_v49, %s7769_s28 }
0x35c0   :  { %v4360_v16 = vpop.f32.mrf.mxu0 }
0x35c1   :  { %v4361_v30 = vadd.f32 %v8479_v61, %v4360_v16  ;;  %v4465_v61 = vmul.f32 %v7665_v42, %v8671_v29 }
0x35c2   :  { %v7184_v62 = vpop.f32.mrf.mxu0 }
0x35c3   :  { %4374 = vrot.lane.b32.xlu0 %v4361_v30, %s7764_s7  ;;  %v4366_v23 = vadd.f32 %v4361_v30, %v4318_v2 }
0x35c4   :  { %v4363_v60 = vpop.f32.mrf.mxu0 }
0x35c5   :  { %v6433_v3 = vmul.f32 -1.442695, %v4366_v23 }
0x35c6   :  { %v7185_v1 = vpop.f32.mrf.mxu0 }
0x35c7   :  { %7668 = vpow2.f32 %v6433_v3 }
0x35d4   :  { %v7669_v37 = vpop.eup %7668 }
0x35d5   :  { %v4370_v56 = vadd.f32 1.0, %v7669_v37 }
0x35d7   :  { %7670 = vrcp.f32 %v4370_v56 }
0x35e4   :  { %v7671_v31 = vpop.eup %7670 }
0x35e5   :  { %v4384_v49 = vsub.f32 1.0, %v7671_v31  ;;  %v4390_v30 = vmul.f32 %v7671_v31, %v8686_v28 }
0x362d   :  { %v4462_v17 = vpop.permute.xlu0 %4461 }
0x362e   :  { %v4464_v18 = vmul.f32 %v4462_v17, %v4459_v12 }
0x3630   :  { %v8708_v36 = vadd.f32 %v4465_v61, %v4464_v18  ;;  %v6440_v18 = vld [vmem:[%s8007_s12 + $0x3c] sm:$0xf] }
0x3632   :  { %v4562_v39 = vpack.c.bf16 %v8708_v36, %v8708_v36 }
0x3634   :  { %4564 = vrot.lane.b32.xlu1 %v4562_v39, %s7769_s28 }
0x3635   :  { %v4375_v44 = vpop.permute.xlu0 %4374 }
0x3636   :  { %v4377_v45 = vmul.f32 %v7671_v31, %v4375_v44 }
0x3638   :  { %4379 = vrot.lane.b32.xlu1 %v4377_v45, %s7764_s7 }
0x36a6   :  { %v4565_v52 = vpop.permute.xlu1 %4564 }
0x36a7   :  { %7207 = vmatmul.mubr.msk.bf16.vlgmr.msra.gmra.mxu1 %vm288_vm4, %v4565_v52 }
0x36a8   :  { %7219 = vmatpush3.bf16.msra.mxu1 %v7454_v48  ;;  %7222 = vmatprep.mubr.msk.bf16.mxu1 %vm7748_vm0, %v7747_v0 }
0x36a9   :  { %7220 = vmatprep.subr.bf16.mxu1 %v7747_v0 }
0x36aa   :  { %v4380_v42 = vpop.permute.xlu1 %4379 }
0x36ab   :  { %v4382_v57 = vadd.f32 %v4380_v42, %v4318_v2  ;;  %v4929_v42 = vld [vmem:[%s6253_s3 + $0x8] sm:$0xff] }
0x36ac   :  { %7221 = vmatpush3.bf16.msra.mxu1 %v7455_v13  ;;  %v4928_v13 = vld [vmem:[%s6253_s3] sm:$0xff] }
0x36ad   :  { %7672 = vtanh.f32 %v4382_v57  ;;  %7240 = vmatprep.subr.mxu1 %v7747_v0  ;;  %v4930_v57 = vld [vmem:[%s6253_s3 + $0x10] sm:$0x3] }
0x36af   :  { %7223 = vmatmul.mubr.msk.bf16.vlgmr.msra.gmra.mxu1 %vm288_vm4, %v8437_v6 }
0x36b0   :  { %7248 = vmatprep.mubr.msk.f32.mxu1 %vm7748_vm0, %v7747_v0 }
0x36ba   :  { %v7673_v59 = vpop.eup %7672 }
0x36bb   :  { %4386 = vrot.lane.b32.xlu0 %v7673_v59, %s7769_s28 }
0x372d   :  { %v4387_v16 = vpop.permute.xlu0 %4386 }
0x372e   :  { %v4389_v62 = vmul.f32 %v4387_v16, %v4384_v49 }
0x3730   :  { %v8727_v60 = vadd.f32 %v4390_v30, %v4389_v62 }
0x3732   :  { %v4487_v1 = vpack.c.bf16 %v8727_v60, %v8727_v60 }
0x3734   :  { %4489 = vrot.lane.b32.xlu1 %v4487_v1, %s7769_s28 }
0x3767   :  { %v4603_v6 = vpop.f32.mrf.mxu1 }
0x3768   :  { %v4604_v27 = vadd.f32 %v8471_v50, %v4603_v6 }
0x3769   :  { %v7208_v2 = vpop.f32.mrf.mxu1 }
0x376a   :  { %4617 = vrot.lane.b32.xlu0 %v4604_v27, %s7764_s7  ;;  %v4609_v39 = vadd.f32 %v6440_v18, %v4604_v27 }
0x376b   :  { %v4606_v23 = vpop.f32.mrf.mxu1 }
0x376c   :  { %v6442_v31 = vmul.f32 -1.442695, %v4609_v39 }
0x376d   :  { %v7209_v3 = vpop.f32.mrf.mxu1 }
0x376e   :  { %7674 = vpow2.f32 %v6442_v31 }
0x376f   :  { %v8734_v37 = vpop.f32.mrf.mxu1 }
0x3771   :  { %v7224_v56 = vpop.f32.mrf.mxu1 }
0x3773   :  { %v4782_v12 = vpop.f32.mrf.mxu1 }
0x3775   :  { %v7225_v17 = vpop.f32.mrf.mxu1 }
0x377b   :  { %v7675_v50 = vpop.eup %7674 }
0x377c   :  { %v4613_v44 = vadd.f32 1.0, %v7675_v50 }
0x377e   :  { %7676 = vrcp.f32 %v4613_v44 }
0x378b   :  { %v7677_v45 = vpop.eup %7676 }
0x378c   :  { %v4627_v56 = vsub.f32 1.0, %v7677_v45  ;;  %v4633_v17 = vmul.f32 %v7677_v45, %v8708_v36 }
0x37a6   :  { %v4490_v61 = vpop.permute.xlu1 %4489 }
0x37a7   :  { %7199 = vmatmul.mubr.msk.bf16.vlgmr.msra.gmra.mxu0 %vm288_vm4, %v4490_v61 }
0x37a8   :  { %7214 = vmatprep.mubr.msk.bf16.mxu0 %vm7748_vm0, %v7747_v0 }
0x37dc   :  { %v4618_v48 = vpop.permute.xlu0 %4617 }
0x37dd   :  { %v4620_v52 = vmul.f32 %v7677_v45, %v4618_v48 }
0x37df   :  { %4622 = vrot.lane.b32.xlu1 %v4620_v52, %s7764_s7 }
0x37e3   :  { %4137 = vrot.lane.b32.xlu1 %v8634_v53, %s7769_s28 }
0x37e7   :  { %4473 = vrot.lane.b32.xlu1 %v8708_v36, %s7769_s28 }
0x37eb   :  { %3465 = vrot.lane.b32.xlu1 %v8486_v38, %s7769_s28 }
0x37ef   :  { %3801 = vrot.lane.b32.xlu1 %v8560_v32, %s7769_s28 }
0x37f3   :  { %1942 = vrot.lane.b32.xlu1 %v8179_v14, %s7769_s28 }
0x37f7   :  { %2278 = vrot.lane.b32.xlu1 %v8263_v33, %s7769_s28 }
0x37fb   :  { %1269 = vrot.lane.b32.xlu1 %v8032_v15, %s7769_s28 }
0x37ff   :  { %1606 = vrot.lane.b32.xlu1 %v8105_v8, %s7769_s28 }
0x3803   :  { %4934 = vperm.xlu1 %7445, %v4928_v13   ;;  %v6437_v13 = vld [vmem:[%s8026_s27 + $0x1e] sm:$0x3] }
0x3807   :  { %4937 = vperm.xlu1 %7445, %v4929_v42  }
0x380b   :  { %4940 = vperm.xlu1 %7445, %v4930_v57  }
0x3851   :  { %v4623_v14 = vpop.permute.xlu1 %4622 }
0x3852   :  { %v4625_v59 = vadd.f32 %v6440_v18, %v4623_v14 }
0x3854   :  { %7678 = vtanh.f32 %v4625_v59 }
0x3855   :  { %v4138_v33 = vpop.permute.xlu1 %4137 }
0x3856   :  { %4140 = vst.msk [vmem:[#allocation3 + $0x16] sm:$0xc] %vm1272_vm10, %v4138_v33 }
0x3859   :  { %v4474_v49 = vpop.permute.xlu1 %4473 }
0x385a   :  { %4476 = vst.msk [vmem:[#allocation3 + $0x1a] sm:$0xc] %vm1272_vm10, %v4474_v49 }
0x385d   :  { %v3466_v15 = vpop.permute.xlu1 %3465 }
0x385e   :  { %3468 = vst.msk [vmem:[#allocation3 + $0xe] sm:$0xc] %vm1272_vm10, %v3466_v15 }
0x3861   :  { %v7679_v8 = vpop.eup %7678  ;;  %v3802_v16 = vpop.permute.xlu1 %3801 }
0x3862   :  { %3804 = vst.msk [vmem:[#allocation3 + $0x12] sm:$0xc] %vm1272_vm10, %v3802_v16  ;;  %4629 = vrot.lane.b32.xlu0 %v7679_v8, %s7769_s28 }
0x3865   :  { %v1943_v30 = vpop.permute.xlu1 %1942 }
0x3866   :  { %1945 = vst.msk [vmem:[#allocation3 + $0x6] sm:$0xc] %vm1272_vm10, %v1943_v30  ;;  %4305 = vrot.lane.b32.xlu0 %v8671_v29, %s7769_s28 }
0x3867   :  { %v4528_v62 = vpop.f32.mrf.mxu0 }
0x3869   :  { %v7200_v1 = vpop.f32.mrf.mxu0  ;;  %v2279_v6 = vpop.permute.xlu1 %2278 }
0x386a   :  { %2281 = vst.msk [vmem:[#allocation3 + $0xa] sm:$0xc] %vm1272_vm10, %v2279_v6  ;;  %3633 = vrot.lane.b32.xlu0 %v8523_v58, %s7769_s28 }
0x386b   :  { %v4531_v27 = vpop.f32.mrf.mxu0 }
0x386c   :  { %v6394_v27 = vld [vmem:[%s8253_s5 + $0x2] sm:$0x3] }
0x386d   :  { %v7201_v2 = vpop.f32.mrf.mxu0  ;;  %v1270_v23 = vpop.permute.xlu1 %1269  ;;  %vm3469_vm11 = vcmp.eq.s32.totalorder %v6394_v27, 0  ;;  %vm3805_vm13 = vcmp.eq.s32.totalorder %v6394_v27, 2  ;;  %vm3637_vm14 = vcmp.eq.s32.totalorder %v6394_v27, 1  ;;  %vm4141_vm1 = vcmp.eq.s32.totalorder %v6394_v27, 4 }
0x386e   :  { %1273 = vst.msk [vmem:[#allocation3 - $0x2] sm:$0xc] %vm1272_vm10, %v1270_v23  ;;  %3969 = vrot.lane.b32.xlu0 %v8597_v51, %s7769_s28  ;;  %vm3973_vm2 = vcmp.eq.s32.totalorder %v6394_v27, 3 }
0x3871   :  { %v1607_v3 = vpop.permute.xlu1 %1606 }
0x3872   :  { %1609 = vst.msk [vmem:[#allocation3 + $0x2] sm:$0xc] %vm1272_vm10, %v1607_v3  ;;  %2110 = vrot.lane.b32.xlu0 %v8216_v26, %s7769_s28 }
0x3876   :  { %2446 = vrot.lane.b32.xlu0 %v8313_v47, %s7769_s28  ;;  %v7743_v47 = vld [vmem:[%s8013_s18] ss:$0 sm:$0xff]  ;;  %s8933_s18 = sld [smem:[%s9102_s0 + %s7777_s1]]   ;;  %s7784_s1 = smov 36  }
0x3877   :  { %v2334_v50 = vadd.f32 %v7743_v47, %v8342_v63  ;;  %v4529_v45 = vadd.f32 %v7743_v47, %v4528_v62  ;;  %v8804_v63 = vadd.f32 %v6437_v13, %v8468_v34  ;;  %v4931_v34 = vlaneseq }
0x3878   :  { %v3974_v13 = vsel %vm3973_vm2, 1, %v7758_v10 }
0x3879   :  { %v4534_v57 = vadd.f32 %v4529_v45, %v8804_v63  ;;  %v4932_v1 = vand.u32 127, %v4931_v34 }
0x387b   :  { %v6439_v14 = vmul.f32 -1.442695, %v4534_v57 }
0x387e   :  { %v4935_v16 = vpop.permute.xlu1 %4934 }
0x387f   :  { %vm4942_vm12 = vcmp.eq.s32.totalorder %v4932_v1, %v4935_v16 }
0x38d4   :  { %v4630_v12 = vpop.permute.xlu0 %4629 }
0x38d5   :  { %v4632_v61 = vmul.f32 %v4630_v12, %v4627_v56  ;;  %v4938_v56 = vpop.permute.xlu1 %4937 }
0x38d6   :  { %vm4943_vm15 = vcmp.eq.s32.totalorder %v4932_v1, %v4938_v56 }
0x38d7   :  { %v8780_v18 = vadd.f32 %v4633_v17, %v4632_v61 }
0x38d8   :  { %v4306_v39 = vpop.permute.xlu0 %4305 }
0x38d9   :  { %4308 = vst.msk [vmem:[#allocation3 + $0x18] sm:$0xc] %vm1272_vm10, %v4306_v39  ;;  %4641 = vrot.lane.b32.xlu0 %v8780_v18, %s7769_s28 }
0x38dc   :  { %v3634_v31 = vpop.permute.xlu0 %3633 }
0x38dd   :  { %3636 = vst.msk [vmem:[#allocation3 + $0x10] sm:$0xc] %vm1272_vm10, %v3634_v31  ;;  %1438 = vrot.lane.b32.xlu0 %v8068_v11, %s7769_s28  ;;  %v6361_v11 = vld [vmem:[%s8026_s27 + $0xe] sm:$0x3]  ;;  %v3470_v31 = vsel %vm3469_vm11, 1, %v7758_v10  ;;  %vm4477_vm11 = vcmp.eq.s32.totalorder %v6394_v27, 6 }
0x38de   :  { %v8799_v52 = vadd.f32 %v6361_v11, %v7997_v40  ;;  %v4142_v11 = vsel %vm4141_vm1, 1, %v7758_v10  ;;  %s7778_s27 = smov 9  }
0x38df   :  { %s6258_s17 = sld [smem:[%s9102_s0 + %s7778_s27]]   ;;  %s7785_s27 = smov 29  }
0x38e0   :  { %v3970_v26 = vpop.permute.xlu0 %3969 }
0x38e1   :  { %3972 = vst.msk [vmem:[#allocation3 + $0x14] sm:$0xc] %vm1272_vm10, %v3970_v26  ;;  %1774 = vrot.lane.b32.xlu0 %v8142_v9, %s7769_s28  ;;  %v2339_v9 = vadd.f32 %v2334_v50, %v8799_v52  ;;  %v6457_v26 = vsel %vm4942_vm12, 1.0, %v7747_v0  ;;  %vm4309_vm12 = vcmp.eq.s32.totalorder %v6394_v27, 5 }
0x38e2   :  { %v4310_v57 = vsel %vm4309_vm12, 1, %v7758_v10 }
0x38e3   :  { %v6363_v42 = vmul.f32 -1.442695, %v2339_v9 }
0x38e4   :  { %v2111_v44 = vpop.permute.xlu0 %2110 }
0x38e5   :  { %2113 = vst.msk [vmem:[#allocation3 + $0x8] sm:$0xc] %vm1272_vm10, %v2111_v44  ;;  %2347 = vrot.lane.b32.xlu0 %v2334_v50, %s7764_s7  ;;  %7680 = vpow2.f32 %v6363_v42  ;;  %v4941_v50 = vpop.permute.xlu1 %4940  ;;  %v3806_v44 = vsel %vm3805_vm13, 1, %v7758_v10  ;;  %v4478_v42 = vsel %vm4477_vm11, 1, %v7758_v10  ;;  %vm4645_vm13 = vcmp.eq.s32.totalorder %v6394_v27, 7 }
0x38e6   :  { %7682 = vpow2.f32 %v6439_v14  ;;  %v4646_v14 = vsel %vm4645_vm13, 1, %v7758_v10 }
0x38e8   :  { %v2447_v48 = vpop.permute.xlu0 %2446  ;;  %v4953_v6 = vld [vmem:[#allocation3 + $0x10] sm:$0xff] }
0x38e9   :  { %2449 = vst.msk [vmem:[#allocation3 + $0xc] sm:$0xc] %vm1272_vm10, %v2447_v48  ;;  %4542 = vrot.lane.b32.xlu0 %v4529_v45, %s7764_s7  ;;  %v3638_v45 = vsel %vm3637_vm14, 1, %v7758_v10  ;;  %v6458_v48 = vsel %vm4943_vm15, 1.0, %v7747_v0 }
0x38f0   :  { %v4952_v3 = vld [vmem:[#allocation3 + $0x8] sm:$0xff] }
0x38f2   :  { %v7681_v59 = vpop.eup %7680 }
0x38f3   :  { %v2343_v33 = vadd.f32 1.0, %v7681_v59  ;;  %v7683_v49 = vpop.eup %7682 }
0x38f4   :  { %v4538_v15 = vadd.f32 1.0, %v7683_v49 }
0x38f5   :  { %7684 = vrcp.f32 %v2343_v33 }
0x38f6   :  { %7686 = vrcp.f32 %v4538_v15 }
0x3902   :  { %v8812_v2 = vpop.eup %7684 }
0x3903   :  { %v8818_v17 = vpop.eup %7686  ;;  %v2363_v56 = vmul.f32 %v8812_v2, %v8298_v5 }
0x394b   :  { %v4642_v40 = vpop.permute.xlu0 %4641 }
0x394c   :  { %4644 = vst.msk [vmem:[#allocation3 + $0x1c] sm:$0xc] %vm1272_vm10, %v4642_v40 }
0x394f   :  { %v1439_v8 = vpop.permute.xlu0 %1438 }
0x3950   :  { %1441 = vst.msk [vmem:[#allocation3] sm:$0xc] %vm1272_vm10, %v1439_v8 }
0x3953   :  { %v1775_v30 = vpop.permute.xlu0 %1774  ;;  %v4954_v62 = vld [vmem:[#allocation3 + $0x18] sm:$0xff] }
0x3954   :  { %1777 = vst.msk [vmem:[#allocation3 + $0x4] sm:$0xc] %vm1272_vm10, %v1775_v30  ;;  %7241 = vmatpush3.msra.mxu1 %v4954_v62  ;;  %vm4944_vm10 = vcmp.eq.s32.totalorder %v4932_v1, %v4941_v50  ;;  %v4818_v1 = vld [vmem:[%s8873_s26 + $0x18] sm:$0xff] }
0x3955   :  { %7242 = vmatprep.subr.mxu1 %v7747_v0  ;;  %v6459_v9 = vsel %vm4944_vm10, 1.0, %v7747_v0 }
0x3956   :  { %7243 = vmatpush3.msra.mxu1 %v4953_v6 }
0x3957   :  { %v2348_v23 = vpop.permute.xlu0 %2347  ;;  %7244 = vmatprep.subr.mxu1 %v7747_v0 }
0x3958   :  { %v2350_v12 = vmul.f32 %v8812_v2, %v2348_v23  ;;  %7245 = vmatpush3.msra.mxu1 %v4952_v3 }
0x3959   :  { %7246 = vmatprep.subr.mxu1 %v7747_v0 }
0x395a   :  { %2352 = vrot.lane.b32.xlu0 %v2350_v12, %s7764_s7 }
0x395b   :  { %v4543_v61 = vpop.permute.xlu0 %4542  ;;  %v4951_v39 = vld [vmem:[#allocation3] sm:$0xff] }
0x395c   :  { %v4545_v47 = vmul.f32 %v8818_v17, %v4543_v61  ;;  %7247 = vmatpush3.msra.mxu1 %v4951_v39  ;;  %v4552_v61 = vsub.f32 1.0, %v8818_v17 }
0x395d   :  { %7249 = vmatmul.mubr.msk.f32.vlgmr.msra.gmra.mxu1 %vm288_vm4, %v6457_v26  ;;  %7277 = vmatprep.subr.mxu1 %v7747_v0  ;;  %v4558_v26 = vmul.f32 %v8818_v17, %v8727_v60 }
0x395e   :  { %3472 = vperm.xlu0 %7444, %v3470_v31   ;;  %4547 = vrot.lane.b32.xlu1 %v4545_v47, %s7764_s7 }
0x395f   :  { %7251 = vmatprep.mubr.msk.f32.mxu1 %vm7748_vm0, %v7747_v0 }
0x3961   :  { %7252 = vmatmul.mubr.msk.f32.gmra.mxu1 %vm288_vm4, %v6458_v48 }
0x3962   :  { %3808 = vperm.xlu0 %7444, %v3806_v44   ;;  %3640 = vperm.xlu1 %7445, %v3638_v45  }
0x3963   :  { %7254 = vmatprep.mubr.msk.f32.mxu1 %vm7748_vm0, %v7747_v0 }
0x3965   :  { %7255 = vmatmul.mubr.msk.f32.gmra.mxu1 %vm288_vm4, %v6459_v9 }
0x3966   :  { %4144 = vperm.xlu0 %7444, %v4142_v11   ;;  %3976 = vperm.xlu1 %7445, %v3974_v13  }
0x3967   :  { %7285 = vmatprep.mubr.msk.f32.mxu1 %vm7748_vm0, %v7747_v0 }
0x396a   :  { %4480 = vperm.xlu0 %7444, %v4478_v42   ;;  %4312 = vperm.xlu1 %7445, %v4310_v57   ;;  %v4817_v42 = vld [vmem:[%s8873_s26 + $0x10] sm:$0xff] }
0x396e   :  { %4648 = vperm.xlu1 %7445, %v4646_v14  }
0x39cc   :  { %v2353_v59 = vpop.permute.xlu0 %2352 }
0x39cd   :  { %v2355_v33 = vadd.f32 %v2353_v59, %v8799_v52 }
0x39cf   :  { %7688 = vtanh.f32 %v2355_v33 }
0x39d0   :  { %v4548_v49 = vpop.permute.xlu1 %4547 }
0x39d1   :  { %v4550_v15 = vadd.f32 %v4548_v49, %v8804_v63  ;;  %v7456_v63 = vld [vmem:[%s8291_s23 + $0x8] sm:$0xff]  }
0x39d2   :  { %7211 = vmatpush3.bf16.msra.mxu0 %v7456_v63  ;;  %v5124_v63 = vld [vmem:[%s8933_s18 + $0x10] sm:$0xff] }
0x39d3   :  { %7690 = vtanh.f32 %v4550_v15  ;;  %7212 = vmatprep.subr.bf16.mxu0 %v7747_v0 }
0x39d9   :  { %v3473_v8 = vpop.permute.xlu0 %3472 }
0x39da   :  { %vm3474_vm14 = vcmp.eq.s32.totalorder %v3473_v8, 1  ;;  %v5125_v8 = vld [vmem:[%s8933_s18 + $0x18] sm:$0xff] }
0x39dc   :  { %v7689_v40 = vpop.eup %7688 }
0x39dd   :  { %2359 = vrot.lane.b32.xlu0 %v7689_v40, %s7769_s28  ;;  %v3641_v16 = vpop.permute.xlu1 %3640  ;;  %v3809_v10 = vpop.permute.xlu0 %3808 }
0x39de   :  { %vm3642_vm15 = vcmp.eq.s32.totalorder %v3641_v16, 1  ;;  %vm3810_vm1 = vcmp.eq.s32.totalorder %v3809_v10, 1 }
0x39e0   :  { %v7691_v34 = vpop.eup %7690 }
0x39e1   :  { %1263 = vrot.lane.b32.xlu0 %v8044_v25, %s7769_s28  ;;  %4554 = vrot.lane.b32.xlu1 %v7691_v34, %s7769_s28  ;;  %v3977_v52 = vpop.permute.xlu1 %3976  ;;  %v3475_v25 = vsel %vm3474_vm14, %v8486_v38, 0.0  ;;  %v4145_v30 = vpop.permute.xlu0 %4144  ;;  %vm1266_vm14 = vcmask 254976  }
0x39e2   :  { %vm3978_vm2 = vcmp.eq.s32.totalorder %v3977_v52, 1  ;;  %vm4146_vm10 = vcmp.eq.s32.totalorder %v4145_v30, 1  ;;  %v5044_v52 = vld [vmem:[%s6258_s17] sm:$0x3f]  ;;  %s9022_s17 = sld [smem:[%s9102_s0 + %s7785_s27]]  }
0x39e3   :  { %v5122_v30 = vld [vmem:[%s8933_s18] sm:$0xff] }
0x39e5   :  { %1601 = vrot.lane.b32.xlu0 %v8118_v20, %s7769_s28  ;;  %1433 = vrot.lane.b32.xlu1 %v8081_v22, %s7769_s28  ;;  %v7457_v20 = vld [vmem:[%s8291_s23] sm:$0xff]   ;;  %v3643_v22 = vsel %vm3642_vm15, %v8523_v58, %v3475_v25  ;;  %v4313_v62 = vpop.permute.xlu1 %4312  ;;  %v4481_v38 = vpop.permute.xlu0 %4480  ;;  %vm5045_vm15 = vcmask 146432   ;;  %v5123_v25 = vld [vmem:[%s8933_s18 + $0x8] sm:$0xff] }
0x39e6   :  { %7213 = vmatpush3.bf16.msra.mxu0 %v7457_v20  ;;  %vm4314_vm11 = vcmp.eq.s32.totalorder %v4313_v62, 1  ;;  %vm4482_vm12 = vcmp.eq.s32.totalorder %v4481_v38, 1  ;;  %v5129_v20 = vld [vmem:[%s8933_s18 + $0x38] sm:$0xff]  ;;  %v5127_v62 = vld [vmem:[%s8933_s18 + $0x28] sm:$0xff] }
0x39e7   :  { %7226 = vmatprep.subr.mxu0 %v4818_v1  ;;  %7278 = vmatpush3.msra.mxu1 %v5129_v20 }
0x39e8   :  { %7279 = vmatprep.subr.mxu1 %v7747_v0 }
0x39e9   :  { %1937 = vrot.lane.b32.xlu0 %v8192_v35, %s7769_s28  ;;  %1769 = vrot.lane.b32.xlu1 %v8155_v24, %s7769_s28  ;;  %v3811_v24 = vsel %vm3810_vm1, %v8560_v32, %v3643_v22  ;;  %v4649_v58 = vpop.permute.xlu1 %4648  ;;  %v5128_v22 = vld [vmem:[%s8933_s18 + $0x30] sm:$0xff]  ;;  %vm4923_vm1 = vcmask 523264  }
0x39ea   :  { %v3979_v35 = vsel %vm3978_vm2, %v8597_v51, %v3811_v24  ;;  %vm4650_vm13 = vcmp.eq.s32.totalorder %v4649_v58, 1  ;;  %7280 = vmatpush3.msra.mxu1 %v5128_v22  ;;  %v5126_v24 = vld [vmem:[%s8933_s18 + $0x20] sm:$0xff]  ;;  %vm5290_vm2 = vcmask 48128   ;;  %s6285_s18 = sld [smem:[%s9102_s0 + %s7784_s1]]  }
0x39eb   :  { %7281 = vmatprep.subr.mxu1 %v7747_v0 }
0x39ec   :  { %7282 = vmatpush3.msra.mxu1 %v5127_v62 }
0x39ed   :  { %2273 = vrot.lane.b32.xlu0 %v8298_v5, %s7769_s28  ;;  %2105 = vrot.lane.b32.xlu1 %v8229_v43, %s7769_s28  ;;  %v4147_v43 = vsel %vm4146_vm10, %v8634_v53, %v3979_v35  ;;  %v6443_v35 = vld [vmem:[%s8347_s15] ss:$0 sm:$0xff] }
0x39ee   :  { %v4315_v32 = vsel %vm4314_vm11, %v8671_v29, %v4147_v43  ;;  %7283 = vmatprep.subr.mxu1 %v7747_v0 }
0x39ef   :  { %v4483_v51 = vsel %vm4482_vm12, %v8708_v36, %v4315_v32  ;;  %v2357_v36 = vsub.f32 1.0, %v8812_v2  ;;  %7284 = vmatpush3.msra.mxu1 %v5126_v24 }
0x39f0   :  { %v6482_v20 = vld [vmem:[%s6285_s18] ss:$0 sm:$0xff]  ;;  %s7792_s18 = smov 33  }
0x39f1   :  { %3628 = vrot.lane.b32.xlu0 %v8538_v7, %s7769_s28  ;;  %v4651_v7 = vsel %vm4650_vm13, %v8780_v18, %v4483_v51  ;;  %s6282_s14 = sld [smem:[%s9102_s0 + %s7792_s18]]  }
0x39f2   :  { %v4652_v6 = vpack.c.bf16 %v4651_v7, %v4651_v7 }
0x39f5   :  { %3964 = vrot.lane.b32.xlu0 %v8612_v41, %s7769_s28 }
0x39f9   :  { %4300 = vrot.lane.b32.xlu0 %v8686_v28, %s7769_s28 }
0x39fd   :  { %4665 = vrot.lane.b32.xlu0 %v4652_v6, %s7769_s28 }
0x3a1d   :  { %v8885_v53 = vpop.f32.mrf.mxu1 }
0x3a1f   :  { %v7250_v27 = vpop.f32.mrf.mxu1 }
0x3a21   :  { %v8887_v29 = vpop.f32.mrf.mxu1 }
0x3a23   :  { %v7253_v23 = vpop.f32.mrf.mxu1 }
0x3a25   :  { %v8889_v3 = vpop.f32.mrf.mxu1 }
0x3a27   :  { %v7256_v41 = vpop.f32.mrf.mxu1 }
0x3a4f   :  { %v2360_v18 = vpop.permute.xlu0 %2359 }
0x3a50   :  { %v2362_v28 = vmul.f32 %v2360_v18, %v2357_v36 }
0x3a52   :  { %v2364_v12 = vadd.f32 %v2363_v56, %v2362_v28 }
0x3a53   :  { %v1264_v39 = vpop.permute.xlu0 %1263  ;;  %v4555_v31 = vpop.permute.xlu1 %4554 }
0x3a54   :  { %1267 = vst.msk [vmem:[#allocation2] sm:$0x3] %vm1266_vm14, %v1264_v39  ;;  %v4557_v47 = vmul.f32 %v4555_v31, %v4552_v61  ;;  %2441 = vrot.lane.b32.xlu1 %v2364_v12, %s7769_s28 }
0x3a56   :  { %v4559_v50 = vadd.f32 %v4558_v26, %v4557_v47 }
0x3a57   :  { %v1602_v44 = vpop.permute.xlu0 %1601  ;;  %v1434_v45 = vpop.permute.xlu1 %1433 }
0x3a58   :  { %1604 = vst.msk [vmem:[#allocation2 + $0x4] sm:$0x3] %vm1266_vm14, %v1602_v44  ;;  %1436 = vst.msk [vmem:[#allocation2 + $0x2] sm:$0x3] %vm1266_vm14, %v1434_v45  ;;  %3460 = vrot.lane.b32.xlu1 %v8501_v55, %s7769_s28  ;;  %4636 = vrot.lane.b32.xlu0 %v4559_v50, %s7769_s28  ;;  %v6447_v55 = vld [vmem:[%s8328_s4] ss:$0 sm:$0xff]  ;;  %s6281_s4 = sld [smem:[%s9102_s0 + %s7767_s19]]  }
0x3a5b   :  { %v1938_v5 = vpop.permute.xlu0 %1937  ;;  %v1770_v2 = vpop.permute.xlu1 %1769 }
0x3a5c   :  { %1940 = vst.msk [vmem:[#allocation2 + $0x8] sm:$0x3] %vm1266_vm14, %v1938_v5  ;;  %1772 = vst.msk [vmem:[#allocation2 + $0x6] sm:$0x3] %vm1266_vm14, %v1770_v2  ;;  %3796 = vrot.lane.b32.xlu1 %v8575_v54, %s7769_s28  ;;  %v8917_v54 = vadd.f32 %v6447_v55, %v8734_v37  ;;  %v4815_v37 = vld [vmem:[%s8873_s26] sm:$0xff] }
0x3a5f   :  { %v2274_v17 = vpop.permute.xlu0 %2273  ;;  %v2106_v48 = vpop.permute.xlu1 %2105 }
0x3a60   :  { %2276 = vst.msk [vmem:[#allocation2 + $0xc] sm:$0x3] %vm1266_vm14, %v2274_v17  ;;  %2108 = vst.msk [vmem:[#allocation2 + $0xa] sm:$0x3] %vm1266_vm14, %v2106_v48  ;;  %4132 = vrot.lane.b32.xlu1 %v8649_v4, %s7769_s28  ;;  %v5211_v48 = vld [vmem:[%s8988_s11] sm:$0xff] }
0x3a63   :  { %v3629_v11 = vpop.permute.xlu0 %3628  ;;  %v4811_v57 = vld [vmem:[#allocation2] sm:$0xff] }
0x3a64   :  { %3631 = vst.msk [vmem:[#allocation2 + $0x12] sm:$0x3] %vm1266_vm14, %v3629_v11  ;;  %4468 = vrot.lane.b32.xlu1 %v8727_v60, %s7769_s28  ;;  %v4816_v60 = vld [vmem:[%s8873_s26 + $0x8] sm:$0xff] }
0x3a67   :  { %v3965_v13 = vpop.permute.xlu0 %3964 }
0x3a68   :  { %3967 = vst.msk [vmem:[#allocation2 + $0x16] sm:$0x3] %vm1266_vm14, %v3965_v13  ;;  %4793 = vrot.lane.b32.xlu1 %v8917_v54, %s7764_s7 }
0x3a6b   :  { %v4301_v9 = vpop.permute.xlu0 %4300 }
0x3a6c   :  { %4303 = vst.msk [vmem:[#allocation2 + $0x1a] sm:$0x3] %vm1266_vm14, %v4301_v9 }
0x3a6f   :  { %v4666_v4 = vpop.permute.xlu0 %4665 }
0x3a70   :  { %7215 = vmatmul.mubr.msk.bf16.vlgmr.msra.gmra.mxu0 %vm288_vm4, %v4666_v4 }
0x3a71   :  { %7234 = vmatprep.mubr.msk.f32.mxu0 %vm288_vm4, %v4811_v57  ;;  %7227 = vmatpush3.msra.mxu0 %v4818_v1 }
0x3a72   :  { %7228 = vmatprep.subr.mxu0 %v4817_v42 }
0x3a73   :  { %7229 = vmatpush3.msra.mxu0 %v4817_v42 }
0x3a74   :  { %7230 = vmatprep.subr.mxu0 %v4816_v60 }
0x3a75   :  { %7231 = vmatpush3.msra.mxu0 %v4816_v60 }
0x3a76   :  { %7232 = vmatprep.subr.mxu0 %v4815_v37 }
0x3a77   :  { %7233 = vmatpush3.msra.mxu0 %v4815_v37 }
0x3a78   :  { %7257 = vmatprep.subr.mxu0 %v7747_v0 }
0x3ac6   :  { %v2442_v14 = vpop.permute.xlu1 %2441 }
0x3ac7   :  { %2444 = vst.msk [vmem:[#allocation2 + $0xe] sm:$0x3] %vm1266_vm14, %v2442_v14  ;;  %v5212_v14 = vld [vmem:[%s8988_s11 + $0x8] sm:$0xff] }
0x3aca   :  { %v4637_v59 = vpop.permute.xlu0 %4636  ;;  %v3461_v33 = vpop.permute.xlu1 %3460 }
0x3acb   :  { %4639 = vst.msk [vmem:[#allocation2 + $0x1e] sm:$0x3] %vm1266_vm14, %v4637_v59  ;;  %3463 = vst.msk [vmem:[#allocation2 + $0x10] sm:$0x3] %vm1266_vm14, %v3461_v33  ;;  %v5213_v59 = vld [vmem:[%s8988_s11 + $0x10] sm:$0xff] }
0x3ace   :  { %v3797_v49 = vpop.permute.xlu1 %3796  ;;  %v4812_v15 = vld [vmem:[#allocation2 + $0x8] sm:$0xff] }
0x3acf   :  { %3799 = vst.msk [vmem:[#allocation2 + $0x14] sm:$0x3] %vm1266_vm14, %v3797_v49  ;;  %7235 = vmatmul.mubr.msk.f32.vlgmr.msra.gmra.mxu0 %vm288_vm4, %v4812_v15  ;;  %v5214_v49 = vld [vmem:[%s8988_s11 + $0x18] sm:$0xff]  ;;  %v5215_v15 = vld [vmem:[%s8988_s11 + $0x20] sm:$0xff] }
0x3ad0   :  { %7258 = vmatpush3.msk.msra.mxu0 %vm463_vm3, %v8889_v3  ;;  %v6452_v3 = vld [vmem:[%s6271_s30] ss:$0 sm:$0xff]  ;;  %s6288_s30 = sld [smem:[%s9102_s0 + %s7786_s22]]  }
0x3ad1   :  { %7259 = vmatprep.subr.mxu0 %v7747_v0 }
0x3ad2   :  { %7260 = vmatpush3.msra.mxu0 %v8887_v29  ;;  %v4133_v40 = vpop.permute.xlu1 %4132 }
0x3ad3   :  { %7261 = vmatprep.subr.mxu0 %v7747_v0  ;;  %4135 = vst.msk [vmem:[#allocation2 + $0x18] sm:$0x3] %vm1266_vm14, %v4133_v40 }
0x3ad4   :  { %7262 = vmatpush3.msra.mxu0 %v8885_v53 }
0x3ad5   :  { %7266 = vmatprep.subr.mxu0 %v5125_v8 }
0x3ad6   :  { %v4469_v34 = vpop.permute.xlu1 %4468  ;;  %v4813_v16 = vld [vmem:[#allocation2 + $0x10] sm:$0xff] }
0x3ad7   :  { %4471 = vst.msk [vmem:[#allocation2 + $0x1c] sm:$0x3] %vm1266_vm14, %v4469_v34  ;;  %7237 = vmatprep.mubr.msk.f32.mxu0 %vm288_vm4, %v4813_v16 }
0x3ada   :  { %v4794_v29 = vpop.permute.xlu1 %4793 }
0x3ade   :  { %v4814_v10 = vld [vmem:[#allocation2 + $0x18] sm:$0xff] }
0x3adf   :  { %7238 = vmatmul.mubr.msk.f32.gmra.mxu0 %vm288_vm4, %v4814_v10 }
0x3ae0   :  { %7263 = vmatprep.mubr.msk.f32.mxu0 %vm7748_vm0, %v7747_v0 }
0x3ae3   :  { %7264 = vmatmul.mubr.msk.f32.vlgmr.msra.gmra.mxu0 %vm5045_vm15, %v5044_v52 }
0x3ae4   :  { %7267 = vmatpush3.msra.mxu0 %v5125_v8  ;;  %7274 = vmatprep.mubr.msk.f32.mxu0 %vm288_vm4, %v7835_v19 }
0x3ae5   :  { %7268 = vmatprep.subr.mxu0 %v5124_v63 }
0x3ae6   :  { %7269 = vmatpush3.msra.mxu0 %v5124_v63 }
0x3ae7   :  { %7270 = vmatprep.subr.mxu0 %v5123_v25 }
0x3ae8   :  { %7271 = vmatpush3.msra.mxu0 %v5123_v25 }
0x3ae9   :  { %7272 = vmatprep.subr.mxu0 %v5122_v30 }
0x3aea   :  { %7273 = vmatpush3.msra.mxu0 %v5122_v30 }
0x3aeb   :  { %7275 = vmatmul.mubr.msk.f32.vlgmr.msra.gmra.mxu0 %vm288_vm4, %v7840_v21 }
0x3aec   :  { %7290 = vmatprep.mubr.msk.f32.mxu0 %vm5290_vm2, %v5211_v48  ;;  %v5673_v48 = vld [vmem:[%s6288_s30 + $0x8] sm:$0xff] }
0x3b30   :  { %v4716_v38 = vpop.f32.mrf.mxu0 }
0x3b31   :  { %v4717_v58 = vadd.f32 %v6443_v35, %v4716_v38 }
0x3b32   :  { %v7216_v43 = vpop.f32.mrf.mxu0 }
0x3b33   :  { %v4785_v32 = vadd.f32 %v8917_v54, %v4717_v58 }
0x3b34   :  { %v4719_v51 = vpop.f32.mrf.mxu0 }
0x3b35   :  { %v6451_v7 = vmul.f32 -1.442695, %v4785_v32 }
0x3b36   :  { %v7217_v1 = vpop.f32.mrf.mxu0 }
0x3b37   :  { %7692 = vpow2.f32 %v6451_v7 }
0x3b44   :  { %v7693_v6 = vpop.eup %7692 }
0x3b45   :  { %v4789_v53 = vadd.f32 1.0, %v7693_v6 }
0x3b47   :  { %7694 = vrcp.f32 %v4789_v53 }
0x3b54   :  { %v7695_v27 = vpop.eup %7694 }
0x3b55   :  { %v4796_v23 = vmul.f32 %v7695_v27, %v4794_v29  ;;  %v4803_v9 = vsub.f32 1.0, %v7695_v27  ;;  %v4809_v42 = vmul.f32 %v7695_v27, %v8352_v46  ;;  %v5216_v46 = vld [vmem:[%s8988_s11 + $0x28] sm:$0x3]  ;;  %s6280_s11 = sld [smem:[%s9102_s0 + %s7789_s25]]  }
0x3b57   :  { %4798 = vrot.lane.b32.xlu0 %v4796_v23, %s7764_s7  ;;  %s7781_s7 = smov 7  }
0x3b58   :  { %s6256_s13 = sld [smem:[%s9102_s0 + %s7781_s7]]   ;;  %s7788_s7 = smov 38  }
0x3b5e   :  { %v5130_v2 = vld [vmem:[%s6256_s13] sm:$0xff]  ;;  %v5131_v17 = vld [vmem:[%s6256_s13 + $0x8] sm:$0xff]  ;;  %v5132_v55 = vld [vmem:[%s6256_s13 + $0x10] sm:$0xff] }
0x3b5f   :  { %v5133_v11 = vld [vmem:[%s6256_s13 + $0x18] sm:$0xff]  ;;  %v5134_v54 = vld [vmem:[%s6256_s13 + $0x20] sm:$0xff]  ;;  %v5135_v13 = vld [vmem:[%s6256_s13 + $0x28] sm:$0x3]  ;;  %s6287_s13 = sld [smem:[%s9102_s0 + %s7788_s7]]  }
0x3b8f   :  { %v7236_v41 = vpop.f32.mrf.mxu0 }
0x3b90   :  { %v4910_v36 = vadd.f32 %v7236_v41, %v6452_v3 }
0x3b91   :  { %v4904_v18 = vpop.f32.mrf.mxu0 }
0x3b92   :  { %4925 = vst.msk [vmem:[%s6290_s9 + $0x8] sm:$0xff] %vm4923_vm1, %v4910_v36  ;;  %v4905_v56 = vadd.f32 %v6452_v3, %v4904_v18 }
0x3b94   :  { %4924 = vst.msk [vmem:[%s6290_s9] sm:$0xff] %vm4923_vm1, %v4905_v56  ;;  %v5810_v56 = vld [vmem:[%s9022_s17 + $0x38] sm:$0xff] }
0x3b9f   :  { %v7239_v28 = vpop.f32.mrf.mxu0 }
0x3ba0   :  { %v4920_v12 = vadd.f32 %v7239_v28, %v6452_v3 }
0x3ba1   :  { %v4914_v61 = vpop.f32.mrf.mxu0 }
0x3ba2   :  { %4927 = vst.msk [vmem:[%s6290_s9 + $0x18] sm:$0xff] %vm4923_vm1, %v4920_v12  ;;  %v4915_v39 = vadd.f32 %v6452_v3, %v4914_v61  ;;  %v5809_v12 = vld [vmem:[%s9022_s17 + $0x30] sm:$0xff] }
0x3ba3   :  { %v5118_v31 = vpop.f32.mrf.mxu0 }
0x3ba4   :  { %4926 = vst.msk [vmem:[%s6290_s9 + $0x10] sm:$0xff] %vm4923_vm1, %v4915_v39  ;;  %7286 = vmatmul.mubr.msk.f32.vlgmr.msra.gmra.mxu1 %vm288_vm4, %v5118_v31  ;;  %v5808_v39 = vld [vmem:[%s9022_s17 + $0x28] sm:$0xff]  ;;  %s6289_s9 = sld [smem:[%s9102_s0 + %s7787_s2]]  }
0x3ba5   :  { %v7265_v26 = vpop.f32.mrf.mxu0  ;;  %7303 = vmatprep.mubr.msk.f32.mxu1 %vm758_vm9, %v5130_v2  ;;  %v5804_v2 = vld [vmem:[%s9022_s17 + $0x8] sm:$0xff] }
0x3ba6   :  { %v5807_v26 = vld [vmem:[%s9022_s17 + $0x20] sm:$0xff] }
0x3bab   :  { %v7276_v47 = vpop.f32.mrf.mxu0 }
0x3bac   :  { %7299 = vmatprep.subr.msk.mxu1 %vm762_vm8, %v7276_v47 }
0x3bad   :  { %v5202_v50 = vpop.f32.mrf.mxu0  ;;  %7300 = vmatpush3.msk.msra.mxu1 %vm762_vm8, %v7276_v47  ;;  %v5806_v47 = vld [vmem:[%s9022_s17 + $0x18] sm:$0xff] }
0x3bae   :  { %7301 = vmatprep.subr.mxu1 %v5202_v50 }
0x3baf   :  { %7302 = vmatpush3.msra.mxu1 %v5202_v50 }
0x3bb0   :  { %7304 = vmatmul.mubr.msk.f32.vlgmr.msra.gmra.mxu1 %vm758_vm9, %v5131_v17  ;;  %v5803_v17 = vld [vmem:[%s9022_s17] sm:$0xff] }
0x3bb1   :  { %7306 = vmatprep.mubr.msk.f32.mxu1 %vm758_vm9, %v5132_v55  ;;  %v5672_v55 = vld [vmem:[%s6288_s30] sm:$0xff] }
0x3bb4   :  { %7307 = vmatmul.mubr.msk.f32.gmra.mxu1 %vm758_vm9, %v5133_v11  ;;  %v6483_v11 = vld [vmem:[%s6287_s13] ss:$0 sm:$0xff] }
0x3bb5   :  { %7309 = vmatprep.mubr.msk.f32.mxu1 %vm758_vm9, %v5134_v54 }
0x3bb8   :  { %7310 = vmatmul.mubr.msk.f32.gmra.mxu1 %vm758_vm9, %v5135_v13 }
0x3bc9   :  { %v4799_v44 = vpop.permute.xlu0 %4798 }
0x3bca   :  { %v4801_v45 = vadd.f32 %v4799_v44, %v4717_v58 }
0x3bcc   :  { %7696 = vtanh.f32 %v4801_v45 }
0x3bd9   :  { %v7697_v5 = vpop.eup %7696 }
0x3bda   :  { %4805 = vrot.lane.b32.xlu1 %v7697_v5, %s7769_s28  ;;  %v5805_v5 = vld [vmem:[%s9022_s17 + $0x10] sm:$0xff]  ;;  %s7793_s17 = smov 34  }
0x3bdb   :  { %s6283_s24 = sld [smem:[%s9102_s0 + %s7793_s17]]  }
0x3c4c   :  { %v4806_v4 = vpop.permute.xlu1 %4805 }
0x3c4d   :  { %v4808_v57 = vmul.f32 %v4806_v4, %v4803_v9 }
0x3c4f   :  { %v4810_v60 = vadd.f32 %v4809_v42, %v4808_v57 }
0x3c51   :  { %5812 = vrot.lane.b32.xlu0 %v4810_v60, %s7769_s28  ;;  %s7783_s28 = smov 37  }
0x3c52   :  { %s6286_s26 = sld [smem:[%s9102_s0 + %s7783_s28]]  }
0x3c58   :  { %v5545_v40 = vld [vmem:[%s6286_s26 + $0x18] sm:$0xff]  ;;  %v5544_v8 = vld [vmem:[%s6286_s26 + $0x10] sm:$0xff]  ;;  %v5543_v34 = vld [vmem:[%s6286_s26 + $0x8] sm:$0xff] }
0x3c59   :  { %v5542_v16 = vld [vmem:[%s6286_s26] sm:$0xff]  ;;  %s7791_s26 = smov 30  }
0x3c5a   :  { %s6279_s12 = sld [smem:[%s9102_s0 + %s7791_s26]]  }
0x3c64   :  { %v5286_v37 = vpop.f32.mrf.mxu1 }
0x3c65   :  { %7288 = vmatprep.subr.msk.mxu0 %vm762_vm8, %v5286_v37 }
0x3c66   :  { %v7287_v33 = vpop.f32.mrf.mxu1  ;;  %7289 = vmatpush3.msk.msra.mxu0 %vm762_vm8, %v5286_v37 }
0x3c67   :  { %7291 = vmatmul.mubr.msk.f32.vlgmr.msra.gmra.mxu0 %vm5290_vm2, %v5212_v14  ;;  %7312 = vmatprep.subr.mxu0 %v5545_v40 }
0x3c68   :  { %7293 = vmatprep.mubr.msk.f32.mxu0 %vm5290_vm2, %v5213_v59  ;;  %7313 = vmatpush3.msra.mxu0 %v5545_v40 }
0x3c69   :  { %7314 = vmatprep.subr.mxu0 %v5544_v8 }
0x3c6a   :  { %7315 = vmatpush3.msra.mxu0 %v5544_v8 }
0x3c6b   :  { %7294 = vmatmul.mubr.msk.f32.gmra.mxu0 %vm5290_vm2, %v5214_v49  ;;  %7316 = vmatprep.subr.mxu0 %v5543_v34 }
0x3c6c   :  { %7296 = vmatprep.mubr.msk.f32.mxu0 %vm5290_vm2, %v5215_v15  ;;  %7317 = vmatpush3.msra.mxu0 %v5543_v34 }
0x3c6d   :  { %7318 = vmatprep.subr.mxu0 %v5542_v16 }
0x3c6e   :  { %7319 = vmatpush3.msra.mxu0 %v5542_v16 }
0x3c6f   :  { %7297 = vmatmul.mubr.msk.f32.gmra.mxu0 %vm5290_vm2, %v5216_v46  ;;  %7346 = vmatprep.subr.mxu0 %v7747_v0 }
0x3c70   :  { %v7305_v10 = vpop.f32.mrf.mxu1 }
0x3c72   :  { %v5494_v52 = vpop.f32.mrf.mxu1 }
0x3c74   :  { %v7308_v63 = vpop.f32.mrf.mxu1 }
0x3c76   :  { %v5504_v62 = vpop.f32.mrf.mxu1 }
0x3c78   :  { %v7311_v51 = vpop.f32.mrf.mxu1 }
0x3c7a   :  { %v5514_v23 = vpop.f32.mrf.mxu1 }
0x3cc3   :  { %v5813_v45 = vpop.permute.xlu0 %5812 }
0x3d27   :  { %v7292_v25 = vpop.f32.mrf.mxu0 }
0x3d28   :  { %v5500_v30 = vadd.f32 %v7305_v10, %v7292_v25  ;;  %v7745_v25 = vld [vmem:[%s7833_s21 + $0x8] sm:$0x3f] }
0x3d29   :  { %v5378_v22 = vpop.f32.mrf.mxu0 }
0x3d2a   :  { %v5495_v24 = vadd.f32 %v5494_v52, %v5378_v22  ;;  %v5531_v35 = vadd.f32 %v6482_v20, %v5500_v30  ;;  %v6053_v30 = vld [vmem:[%s6280_s11 + $0x18] sm:$0xff]  ;;  %v6051_v22 = vld [vmem:[%s6280_s11 + $0x8] sm:$0xff] }
0x3d2b   :  { %v7295_v38 = vpop.f32.mrf.mxu0 }
0x3d2c   :  { %v5530_v58 = vadd.f32 %v6482_v20, %v5495_v24  ;;  %v5510_v43 = vadd.f32 %v7308_v63, %v7295_v38  ;;  %v7744_v63 = vld [vmem:[%s7833_s21] sm:$0xff]  ;;  %s7790_s21 = smov 42  }
0x3d2d   :  { %v5388_v32 = vpop.f32.mrf.mxu0  ;;  %s6291_s20 = sld [smem:[%s9102_s0 + %s7790_s21]]  }
0x3d2e   :  { %7698 = vtanh.f32 %v5530_v58  ;;  %v5505_v7 = vadd.f32 %v5504_v62, %v5388_v32  ;;  %v5533_v1 = vadd.f32 %v6482_v20, %v5510_v43  ;;  %v6050_v62 = vld [vmem:[%s6280_s11] sm:$0xff] }
0x3d2f   :  { %7700 = vtanh.f32 %v5531_v35  ;;  %v7298_v6 = vpop.f32.mrf.mxu0 }
0x3d30   :  { %v5532_v53 = vadd.f32 %v6482_v20, %v5505_v7  ;;  %v5520_v27 = vadd.f32 %v7311_v51, %v7298_v6 }
0x3d31   :  { %v5398_v29 = vpop.f32.mrf.mxu0 }
0x3d32   :  { %7702 = vtanh.f32 %v5532_v53  ;;  %v5515_v3 = vadd.f32 %v5514_v23, %v5398_v29  ;;  %v5535_v41 = vadd.f32 %v6482_v20, %v5520_v27 }
0x3d33   :  { %7704 = vtanh.f32 %v5533_v1 }
0x3d34   :  { %v5534_v36 = vadd.f32 %v6482_v20, %v5515_v3  ;;  %v6052_v20 = vld [vmem:[%s6280_s11 + $0x10] sm:$0xff] }
0x3d36   :  { %7706 = vtanh.f32 %v5534_v36  ;;  %v6503_v36 = vld [vmem:[%s6279_s12] ss:$0 sm:$0xff] }
0x3d37   :  { %7708 = vtanh.f32 %v5535_v41 }
0x3d3b   :  { %v7699_v18 = vpop.eup %7698 }
0x3d3c   :  { %v7701_v28 = vpop.eup %7700  ;;  %7320 = vmatprep.mubr.msk.f32.mxu0 %vm288_vm4, %v7699_v18 }
0x3d3d   :  { %7321 = vmatmul.mubr.msk.f32.vlgmr.msra.gmra.mxu0 %vm288_vm4, %v7701_v28 }
0x3d3e   :  { %7347 = vmatpush3.msra.mxu0 %v5810_v56 }
0x3d3f   :  { %v7703_v61 = vpop.eup %7702  ;;  %7348 = vmatprep.subr.mxu0 %v7747_v0 }
0x3d40   :  { %v7705_v31 = vpop.eup %7704  ;;  %7323 = vmatprep.mubr.msk.f32.mxu0 %vm288_vm4, %v7703_v61  ;;  %7349 = vmatpush3.msra.mxu0 %v5809_v12 }
0x3d41   :  { %7324 = vmatmul.mubr.msk.f32.gmra.mxu0 %vm288_vm4, %v7705_v31  ;;  %7350 = vmatprep.subr.mxu0 %v7747_v0 }
0x3d42   :  { %7351 = vmatpush3.msra.mxu0 %v5808_v39 }
0x3d43   :  { %v7707_v50 = vpop.eup %7706  ;;  %7352 = vmatprep.subr.mxu0 %v7747_v0 }
0x3d44   :  { %v7709_v44 = vpop.eup %7708  ;;  %7326 = vmatprep.mubr.msk.f32.mxu0 %vm288_vm4, %v7707_v50  ;;  %7353 = vmatpush3.msra.mxu0 %v5807_v26  ;;  %v6147_v26 = vld [vmem:[%s6282_s14 + $0x18] sm:$0xff]  ;;  %v6145_v50 = vld [vmem:[%s6282_s14 + $0x8] sm:$0xff] }
0x3d45   :  { %7327 = vmatmul.mubr.msk.f32.gmra.mxu0 %vm288_vm4, %v7709_v44  ;;  %7362 = vmatprep.subr.mxu0 %v5806_v47  ;;  %v6144_v44 = vld [vmem:[%s6282_s14] sm:$0xff] }
0x3d46   :  { %7354 = vmatprep.mubr.msk.f32.mxu0 %vm7748_vm0, %v7747_v0  ;;  %v5675_v0 = vld [vmem:[%s6288_s30 + $0x18] sm:$0xff]  ;;  %vm5801_vm0 = vcmask 1024  }
0x3d47   :  { %7329 = vmatprep.subr.mxu1 %v5675_v0 }
0x3d48   :  { %7330 = vmatpush3.msra.mxu1 %v5675_v0 }
0x3d49   :  { %7355 = vmatmul.mubr.msk.f32.vlgmr.msra.gmra.mxu0 %vm288_vm4, %v5813_v45  ;;  %v95_v45 = vstv %s6283_s24 }
0x3d4a   :  { %7363 = vmatpush3.msra.mxu0 %v5806_v47  ;;  %7370 = vmatprep.mubr.msk.f32.mxu0 %vm288_vm4, %v7835_v19  ;;  %v5674_v19 = vld [vmem:[%s6288_s30 + $0x10] sm:$0xff]  ;;  %96 = vst [vmem:[#allocation5] sm:$0x1] %v95_v45 }
0x3d4b   :  { %7364 = vmatprep.subr.mxu0 %v5805_v5  ;;  %7331 = vmatprep.subr.mxu1 %v5674_v19  ;;  %v6146_v47 = vld [vmem:[%s6282_s14 + $0x10] sm:$0xff] }
0x3d4c   :  { %7365 = vmatpush3.msra.mxu0 %v5805_v5  ;;  %7332 = vmatpush3.msra.mxu1 %v5674_v19  ;;  %v6504_v5 = vld [vmem:[%s6281_s4] ss:$0 sm:$0xff] }
0x3d4d   :  { %7366 = vmatprep.subr.mxu0 %v5804_v2  ;;  %7333 = vmatprep.subr.mxu1 %v5673_v48 }
0x3d4e   :  { %7367 = vmatpush3.msra.mxu0 %v5804_v2  ;;  %7334 = vmatpush3.msra.mxu1 %v5673_v48 }
0x3d4f   :  { %7368 = vmatprep.subr.mxu0 %v5803_v17  ;;  %7335 = vmatprep.subr.mxu1 %v5672_v55 }
0x3d50   :  { %7369 = vmatpush3.msra.mxu0 %v5803_v17  ;;  %7336 = vmatpush3.msra.mxu1 %v5672_v55 }
0x3d51   :  { %7371 = vmatmul.mubr.msk.f32.vlgmr.msra.gmra.mxu0 %vm288_vm4, %v7840_v21  ;;  %v97_v21 = vstv %s6289_s9  ;;  %7384 = vmatprep.subr.mxu0 %v6147_v26 }
0x3d52   :  { %98 = vst [vmem:[#allocation6] sm:$0x1] %v97_v21  ;;  %7385 = vmatpush3.msra.mxu0 %v6147_v26  ;;  %v6507_v21 = vld [vmem:[#allocation5] ss:$0 sm:$0xff] }
0x3d53   :  { %7386 = vmatprep.subr.mxu0 %v6146_v47 }
0x3d54   :  { %7387 = vmatpush3.msra.mxu0 %v6146_v47 }
0x3d55   :  { %7388 = vmatprep.subr.mxu0 %v6145_v50 }
0x3d56   :  { %7389 = vmatpush3.msra.mxu0 %v6145_v50 }
0x3d57   :  { %7390 = vmatprep.subr.mxu0 %v6144_v44 }
0x3d58   :  { %7391 = vmatpush3.msra.mxu0 %v6144_v44 }
0x3d59   :  { %v6490_v24 = vld [vmem:[#allocation6] ss:$0 sm:$0xff] }
0x3dfd   :  { %v7322_v54 = vpop.f32.mrf.mxu0 }
0x3dfe   :  { %v5643_v13 = vadd.f32 %v7322_v54, %v6483_v11 }
0x3dff   :  { %v5637_v9 = vpop.f32.mrf.mxu0 }
0x3e00   :  { %v5638_v4 = vadd.f32 %v6483_v11, %v5637_v9 }
0x3e01   :  { %v7325_v42 = vpop.f32.mrf.mxu0 }
0x3e02   :  { %7710 = vtanh.f32 %v5638_v4  ;;  %v5653_v57 = vadd.f32 %v7325_v42, %v6483_v11 }
0x3e03   :  { %7712 = vtanh.f32 %v5643_v13  ;;  %v5647_v60 = vpop.f32.mrf.mxu0 }
0x3e04   :  { %v5648_v37 = vadd.f32 %v6483_v11, %v5647_v60 }
0x3e05   :  { %v7328_v14 = vpop.f32.mrf.mxu0 }
0x3e06   :  { %7714 = vtanh.f32 %v5648_v37  ;;  %v5663_v59 = vadd.f32 %v7328_v14, %v6483_v11 }
0x3e07   :  { %7716 = vtanh.f32 %v5653_v57  ;;  %v5657_v33 = vpop.f32.mrf.mxu0 }
0x3e08   :  { %v5658_v49 = vadd.f32 %v6483_v11, %v5657_v33 }
0x3e09   :  { %v5882_v15 = vpop.f32.mrf.mxu0 }
0x3e0a   :  { %7718 = vtanh.f32 %v5658_v49  ;;  %7357 = vmatprep.subr.msk.mxu1 %vm463_vm3, %v5882_v15 }
0x3e0b   :  { %7720 = vtanh.f32 %v5663_v59  ;;  %v7356_v46 = vpop.f32.mrf.mxu0 }
0x3e0f   :  { %v7711_v40 = vpop.eup %7710 }
0x3e10   :  { %v7713_v8 = vpop.eup %7712  ;;  %7337 = vmatprep.mubr.msk.f32.mxu1 %vm288_vm4, %v7711_v40 }
0x3e11   :  { %7338 = vmatmul.mubr.msk.f32.vlgmr.msra.gmra.mxu1 %vm288_vm4, %v7713_v8  ;;  %v7372_v27 = vpop.f32.mrf.mxu0 }
0x3e12   :  { %7358 = vmatpush3.msk.msra.mxu1 %vm463_vm3, %v5882_v15 }
0x3e13   :  { %v7715_v34 = vpop.eup %7714  ;;  %7373 = vmatprep.subr.mxu1 %v6053_v30  ;;  %v6030_v18 = vpop.f32.mrf.mxu0 }
0x3e14   :  { %v7717_v16 = vpop.eup %7716  ;;  %7340 = vmatprep.mubr.msk.f32.mxu1 %vm288_vm4, %v7715_v34 }
0x3e15   :  { %7341 = vmatmul.mubr.msk.f32.gmra.mxu1 %vm288_vm4, %v7717_v16 }
0x3e17   :  { %v7719_v10 = vpop.eup %7718 }
0x3e18   :  { %v7721_v52 = vpop.eup %7720  ;;  %7343 = vmatprep.mubr.msk.f32.mxu1 %vm288_vm4, %v7719_v10 }
0x3e19   :  { %7344 = vmatmul.mubr.msk.f32.gmra.mxu1 %vm288_vm4, %v7721_v52 }
0x3e1a   :  { %7359 = vmatprep.mubr.msk.f32.mxu1 %vm456_vm5, %v7744_v63 }
0x3e1d   :  { %7360 = vmatmul.mubr.msk.f32.vlgmr.msra.gmra.mxu1 %vm456_vm5, %v7745_v25 }
0x3e1e   :  { %7374 = vmatpush3.msra.mxu1 %v6053_v30 }
0x3e1f   :  { %7375 = vmatprep.subr.mxu1 %v6052_v20 }
0x3e20   :  { %7376 = vmatpush3.msra.mxu1 %v6052_v20 }
0x3e21   :  { %7377 = vmatprep.subr.mxu1 %v6051_v22 }
0x3e22   :  { %7378 = vmatpush3.msra.mxu1 %v6051_v22 }
0x3e23   :  { %7379 = vmatprep.subr.mxu1 %v6050_v62 }
0x3e24   :  { %7380 = vmatpush3.msra.mxu1 %v6050_v62 }
0x3ed1   :  { %v7339_v35 = vpop.f32.mrf.mxu1 }
0x3ed2   :  { %v5773_v38 = vadd.f32 %v7339_v35, %v6490_v24 }
0x3ed3   :  { %v5767_v58 = vpop.f32.mrf.mxu1 }
0x3ed4   :  { %5797 = vst.msk [vmem:[%s6291_s20 + $0x8] sm:$0xff] %vm741_vm7, %v5773_v38  ;;  %v5768_v43 = vadd.f32 %v6490_v24, %v5767_v58 }
0x3ed5   :  { %v7342_v32 = vpop.f32.mrf.mxu1 }
0x3ed6   :  { %5796 = vst.msk [vmem:[%s6291_s20] sm:$0xff] %vm741_vm7, %v5768_v43  ;;  %v5783_v51 = vadd.f32 %v7342_v32, %v6490_v24 }
0x3ed7   :  { %v5777_v7 = vpop.f32.mrf.mxu1 }
0x3ed8   :  { %5799 = vst.msk [vmem:[%s6291_s20 + $0x18] sm:$0xff] %vm741_vm7, %v5783_v51  ;;  %v5778_v1 = vadd.f32 %v6490_v24, %v5777_v7 }
0x3ed9   :  { %v7345_v6 = vpop.f32.mrf.mxu1 }
0x3eda   :  { %5798 = vst.msk [vmem:[%s6291_s20 + $0x10] sm:$0xff] %vm741_vm7, %v5778_v1  ;;  %v5793_v53 = vadd.f32 %v7345_v6, %v6490_v24 }
0x3edb   :  { %v5787_v29 = vpop.f32.mrf.mxu1 }
0x3edc   :  { %5802 = vst.msk [vmem:[%s6291_s20 + $0x28] sm:$0x3] %vm5801_vm0, %v5793_v53  ;;  %v5788_v23 = vadd.f32 %v6490_v24, %v5787_v29 }
0x3edd   :  { %v7361_v3 = vpop.f32.mrf.mxu1 }
0x3ede   :  { %5800 = vst.msk [vmem:[%s6291_s20 + $0x20] sm:$0xff] %vm741_vm7, %v5788_v23  ;;  %v6036_v41 = vadd.f32 %v7372_v27, %v7361_v3 }
0x3edf   :  { %v5955_v56 = vpop.f32.mrf.mxu1 }
0x3ee0   :  { %v6031_v28 = vadd.f32 %v6030_v18, %v5955_v56  ;;  %v6047_v12 = vadd.f32 %v6503_v36, %v6036_v41 }
0x3ee2   :  { %v6046_v61 = vadd.f32 %v6503_v36, %v6031_v28 }
0x3ee4   :  { %7722 = vtanh.f32 %v6046_v61 }
0x3ee5   :  { %7724 = vtanh.f32 %v6047_v12 }
0x3ef1   :  { %v7723_v39 = vpop.eup %7722 }
0x3ef2   :  { %v7725_v31 = vpop.eup %7724  ;;  %7381 = vmatprep.mubr.msk.f32.mxu1 %vm288_vm4, %v7723_v39 }
0x3ef3   :  { %7382 = vmatmul.mubr.msk.f32.vlgmr.msra.gmra.mxu1 %vm288_vm4, %v7725_v31 }
0x3fb3   :  { %v7383_v2 = vpop.f32.mrf.mxu1 }
0x3fb4   :  { %v6139_v17 = vadd.f32 %v7383_v2, %v6504_v5 }
0x3fb5   :  { %v6133_v0 = vpop.f32.mrf.mxu1 }
0x3fb6   :  { %v6134_v19 = vadd.f32 %v6504_v5, %v6133_v0 }
0x3fb8   :  { %7726 = vtanh.f32 %v6134_v19 }
0x3fb9   :  { %7728 = vtanh.f32 %v6139_v17 }
0x3fc5   :  { %v7727_v48 = vpop.eup %7726 }
0x3fc6   :  { %v7729_v55 = vpop.eup %7728  ;;  %7392 = vmatprep.mubr.msk.f32.mxu0 %vm288_vm4, %v7727_v48 }
0x3fc7   :  { %7393 = vmatmul.mubr.msk.f32.vlgmr.msra.gmra.mxu0 %vm288_vm4, %v7729_v55 }
0x4087   :  { %v7394_v11 = vpop.f32.mrf.mxu0 }
0x4088   :  { %v6233_v54 = vadd.f32 %v7394_v11, %v6507_v21 }
0x4089   :  { %v6227_v13 = vpop.f32.mrf.mxu0 }
0x408a   :  { %6237 = vst.msk [vmem:[%s6292_s10 + $0x8] sm:$0x3f] %vm743_vm6, %v6233_v54  ;;  %v6228_v9 = vadd.f32 %v6507_v21, %v6227_v13 }
0x408c   :  { %6236 = vst.msk [vmem:[%s6292_s10] sm:$0xff] %vm741_vm7, %v6228_v9 }

</bundles_post_ra>
